<compile_context>
chip_gen: v6e
topology: v6e:2x2x1
jax: 0.10.0
libtpu: 0.0.40
codegen_flags: <defaults>
</compile_context>

<pallas_src>
import functools

import jax
import jax.numpy as jnp
from jax.experimental import pallas as pl
from jax.experimental.pallas import tpu as pltpu


_PAR = pltpu.CompilerParams(dimension_semantics=("parallel",))
_FUSE_K_MAX = 1024          # concatenate taps along K up to this contraction depth
_PHASES = ((0, 0), (0, 1), (1, 0), (1, 1))   # space-to-depth phase order used everywhere


def _round8(v):
    return ((v + 7) // 8) * 8


# ------------------------------- in-kernel helpers -------------------------------

def _rect_sum(x3, r0, nr, c0, nc):
    """Sum of x3[r0:r0+nr, c0:c0+nc, :] -> (1, ch).

    Rows (outer dim) are sliced and reduced first, then the small 2-D (cols, ch) partial is
    sliced on its sublane dim -- so only outer-dim 3-D slices and 2-D sublane slices are emitted
    (both proven-cheap patterns), never a misaligned 3-D slice.
    """
    cols = jnp.sum(x3[r0:r0 + nr], axis=0)                        # (C, ch)
    return jnp.sum(cols[c0:c0 + nc, :], axis=0, keepdims=True)    # (1, ch)


def _cbin_lrelu(x_f32, cb, *, hp, wpad, pad, h_in, w_in, inv_n):
    """CBINorm2d(affine=False) + LeakyReLU(0.2) on a row-flattened padded image.

    Stats use only the interior (the original unpadded image) with a centered two-pass
    variance; the reflected border / alignment-padding rows get the same pointwise transform,
    which is exactly reflect_pad(CBIN+LReLU(x)) since the op is pointwise given the stats.
    """
    cin = x_f32.shape[-1]
    x3 = x_f32[: hp * wpad].reshape(hp, wpad, cin)
    mean = _rect_sum(x3, pad, h_in, pad, w_in) * inv_n            # (1, cin)
    cent = x3[pad:pad + h_in] - mean                              # (h_in, wpad, cin)
    colsq = jnp.sum(cent * cent, axis=0)                          # (wpad, cin)
    var = jnp.sum(colsq[pad:pad + w_in, :], axis=0, keepdims=True) * inv_n
    y = (x_f32 - mean) * jax.lax.rsqrt(var + 1e-5) + cb
    return jnp.where(y >= 0.0, y, 0.2 * y)                        # LeakyReLU(0.2)


def _cbin_lrelu_s2d(x_f32, cb4, *, hp2, wpad, h2, w2, cin, inv_n):
    """Same CBIN+LReLU, but on a space-to-depth(2)-packed reflect-padded activation.

    Channel block k = 2p+q holds phase (p, q); each phase's interior is a contiguous rectangle
    (rows [1-p, 1-p+h2), cols [1-q, 1-q+w2)) and the four rectangles partition the original
    interior, so per-original-channel stats are the sum of four rectangle sums.
    """
    x3 = x_f32[: hp2 * wpad].reshape(hp2, wpad, 4 * cin)

    s = None
    for p in (0, 1):
        cols = jnp.sum(x3[1 - p:1 - p + h2], axis=0)              # (wpad, 4cin)
        for q in (0, 1):
            k = 2 * p + q
            sk = jnp.sum(cols[1 - q:1 - q + w2, :], axis=0,
                         keepdims=True)[:, k * cin:(k + 1) * cin]
            s = sk if s is None else s + sk
    mean = s * inv_n                                              # (1, cin)
    mean4 = jnp.concatenate([mean] * 4, axis=1)                   # (1, 4cin)

    v = None
    for p in (0, 1):
        cent = x3[1 - p:1 - p + h2] - mean4                       # (h2, wpad, 4cin)
        colsq = jnp.sum(cent * cent, axis=0)                      # (wpad, 4cin)
        for q in (0, 1):
            k = 2 * p + q
            vk = jnp.sum(colsq[1 - q:1 - q + w2, :], axis=0,
                         keepdims=True)[:, k * cin:(k + 1) * cin]
            v = vk if v is None else v + vk
    var = v * inv_n
    var4 = jnp.concatenate([var] * 4, axis=1)

    y = (x_f32 - mean4) * jax.lax.rsqrt(var4 + 1e-5) + cb4
    return jnp.where(y >= 0.0, y, 0.2 * y)


def _tap_matmul(yb, offsets, m_out, w_ref, fuse_k):
    """Stride-1 conv on the flattened image as shifted matmuls.

    yb is cast to bf16 ONCE by the caller; each tap is a sublane-aligned-row slice (row stride
    is a multiple of 8).  With fuse_k the taps are concatenated along K and a single
    (M, kh*kw*Cin) @ (kh*kw*Cin, Cout) matmul fills the MXU and touches the f32 accumulator
    once; otherwise (very large K) fall back to per-tap matmuls.
    """
    taps = [yb[off:off + m_out, :] for off in offsets]
    if fuse_k:
        a = taps[0] if len(taps) == 1 else jnp.concatenate(taps, axis=1)
        return jnp.dot(a, w_ref[...], preferred_element_type=jnp.float32)
    acc = None
    for t, a in enumerate(taps):
        d = jnp.dot(a, w_ref[t], preferred_element_type=jnp.float32)
        acc = d if acc is None else acc + d
    return acc


# ----------------------------------- kernels ------------------------------------

def _conv_kernel(*refs, offsets, hp, wpad, pad, h_in, w_in, inv_n, wo,
                 use_cbin, has_bias, fuse_k):
    """[CBIN+LReLU] -> stride-1 conv (tap-concat matmul) -> [+bias] -> trim -> store.

    Refs (per grid step = one image):
      x_ref  (1, M_ext, Cin)          row-flattened (reflect-)padded activation
      [cb_ref (1, 1, Cin)]            tanh(code @ W + b), precomputed in glue
      w_ref  (kh*kw*Cin, Cout) bf16   (or (kh*kw, Cin, Cout) when not fuse_k)
      [b_ref (1, Cout)]
      o_ref  (1, Ho, Wo, Cout)        trimmed NHWC output (bf16 or f32)
    """
    it = iter(refs)
    x_ref = next(it)
    cb_ref = next(it) if use_cbin else None
    w_ref = next(it)
    b_ref = next(it) if has_bias else None
    o_ref = next(it)

    if use_cbin:
        y = _cbin_lrelu(x_ref[0].astype(jnp.float32), cb_ref[0],
                        hp=hp, wpad=wpad, pad=pad, h_in=h_in, w_in=w_in, inv_n=inv_n)
        yb = y.astype(jnp.bfloat16)                      # cast once, slice bf16 per tap
    else:
        yb = x_ref[0].astype(jnp.bfloat16)

    ho = o_ref.shape[1]
    m_out = ho * wpad
    acc = _tap_matmul(yb, offsets, m_out, w_ref, fuse_k)            # (m_out, Cout) f32
    if has_bias:
        acc = acc + b_ref[...]
    cout = acc.shape[1]
    # in-VMEM trim of the kw-1 (+ width-alignment) garbage columns before the store
    o_ref[0] = acc.reshape(ho, wpad, cout)[:, :wo, :].astype(o_ref.dtype)


def _block_tail_kernel(xh_ref, cb_ref, wc_ref, xs_ref, ws_ref, b_ref, o_ref, *,
                       offsets, hp2, wpad, h2, w2, cin, inv_n, fuse_k):
    """Fused second half of ConDownResidualBlock (both AvgPool2d(2,2) absorbed):

        out = AvgPool2(conv3x3(LReLU(CBIN(h1)))) + conv1x1(AvgPool2(x)) + bias

    computed as a stride-1 2x2 conv on space-to-depth(padded h1) with window-averaged 4x4
    weights, plus a 1x1 conv on space-to-depth(x) with phase-replicated weights / 4, summed in
    f32 and stored directly at the pooled resolution.
    """
    y = _cbin_lrelu_s2d(xh_ref[0].astype(jnp.float32), cb_ref[0],
                        hp2=hp2, wpad=wpad, h2=h2, w2=w2, cin=cin, inv_n=inv_n)
    yb = y.astype(jnp.bfloat16)
    m_out = h2 * wpad
    acc = _tap_matmul(yb, offsets, m_out, wc_ref, fuse_k)           # cmp branch (pooled)
    acc = acc + jnp.dot(xs_ref[0], ws_ref[...],                     # fused shortcut branch
                        preferred_element_type=jnp.float32)
    acc = acc + b_ref[...]
    cout = acc.shape[1]
    o_ref[0] = acc.reshape(h2, wpad, cout)[:, :w2, :].astype(o_ref.dtype)


# ------------------------------ pallas_call wrappers ------------------------------

def _flatten_padded(x_nhwc, pad, kw):
    """reflect-pad, pad width up to a multiple of 8 (sublane-aligned row stride), flatten rows,
    and append a small tail so every tap slice stays in-bounds."""
    n, h, w, c = x_nhwc.shape
    if pad:
        x_nhwc = jnp.pad(x_nhwc, ((0, 0), (pad, pad), (pad, pad), (0, 0)), mode="reflect")
    hp, wp = h + 2 * pad, w + 2 * pad
    wpad = _round8(wp)
    if wpad > wp:
        x_nhwc = jnp.pad(x_nhwc, ((0, 0), (0, 0), (0, wpad - wp), (0, 0)))
    x2 = x_nhwc.reshape(n, hp * wpad, c)
    if kw > 1:
        x2 = jnp.pad(x2, ((0, 0), (0, 8), (0, 0)))
    return x2, hp, wp, wpad


def conv2d(x_nhwc, w_oihw, *, bias=None, pad=0, cbias=None, out_dtype=jnp.bfloat16):
    """Stride-1 Conv2d (PyTorch cross-correlation, reflect padding) with optional fused
    CBINorm2d(affine=False)+LeakyReLU(0.2) pre-op.  One pallas_call, grid over the batch."""
    n, h, w, cin = x_nhwc.shape
    cout, cin_w, kh, kw = w_oihw.shape
    assert cin_w == cin
    x2, hp, wp, wpad = _flatten_padded(x_nhwc, pad, kw)
    m_ext = x2.shape[1]
    ho, wo = hp - kh + 1, wp - kw + 1
    offsets = tuple(ki * wpad + kj for ki in range(kh) for kj in range(kw))

    ktot = kh * kw * cin
    fuse_k = ktot <= _FUSE_K_MAX
    wmat = jnp.transpose(w_oihw, (2, 3, 1, 0))                      # (kh, kw, cin, cout)
    if fuse_k:
        wmat = wmat.reshape(ktot, cout).astype(jnp.bfloat16)
        w_spec = pl.BlockSpec((ktot, cout), lambda i: (0, 0))
    else:
        wmat = wmat.reshape(kh * kw, cin, cout).astype(jnp.bfloat16)
        w_spec = pl.BlockSpec((kh * kw, cin, cout), lambda i: (0, 0, 0))

    use_cbin = cbias is not None
    has_bias = bias is not None

    inputs = [x2]
    in_specs = [pl.BlockSpec((1, m_ext, cin), lambda i: (i, 0, 0))]
    if use_cbin:
        inputs.append(cbias.reshape(n, 1, cin).astype(jnp.float32))
        in_specs.append(pl.BlockSpec((1, 1, cin), lambda i: (i, 0, 0)))
    inputs.append(wmat)
    in_specs.append(w_spec)
    if has_bias:
        inputs.append(bias.reshape(1, cout).astype(jnp.float32))
        in_specs.append(pl.BlockSpec((1, cout), lambda i: (0, 0)))

    kernel = functools.partial(
        _conv_kernel, offsets=offsets, hp=hp, wpad=wpad, pad=pad,
        h_in=h, w_in=w, inv_n=1.0 / float(h * w), wo=wo,
        use_cbin=use_cbin, has_bias=has_bias, fuse_k=fuse_k)
    return pl.pallas_call(
        kernel,
        out_shape=jax.ShapeDtypeStruct((n, ho, wo, cout), out_dtype),
        grid=(n,),
        in_specs=in_specs,
        out_specs=pl.BlockSpec((1, ho, wo, cout), lambda i: (i, 0, 0, 0)),
        compiler_params=_PAR,
    )(*inputs)


def _space_to_depth2(x):
    """(N, H, W, C) -> (N, ceil(H/2), ceil(W/2), 4C), phase order (0,0),(0,1),(1,0),(1,1)."""
    return jnp.concatenate([x[:, p::2, q::2, :] for p, q in _PHASES], axis=-1)


def head_conv(x_nhwc, w_oihw, bias):
    """ReflectionPad2d(1) + SN-Conv2d(k=4, s=2, bias) == space-to-depth(2) in glue + a
    stride-1 2x2 conv on the fused Pallas conv kernel."""
    xp = jnp.pad(x_nhwc, ((0, 0), (1, 1), (1, 1), (0, 0)), mode="reflect")
    xs = _space_to_depth2(xp).astype(jnp.bfloat16)                  # (N, H/2+1, W/2+1, 4Cin)
    w2 = jnp.concatenate([w_oihw[:, :, p::2, q::2] for p, q in _PHASES], axis=1)
    return conv2d(xs, w2, bias=bias, pad=0)


def block_tail(h1, x, cbias, w_cmp, w_sc, b_sc, out_dtype=jnp.bfloat16):
    """Fused cmp+shortcut tail of ConDownResidualBlock (see _block_tail_kernel)."""
    n, h, w, cin = h1.shape
    cout = w_cmp.shape[0]
    h2, w2 = h // 2, w // 2

    # cmp branch input: reflect-pad(1) + space-to-depth(2), width-aligned + flattened.
    hpd = jnp.pad(h1, ((0, 0), (1, 1), (1, 1), (0, 0)), mode="reflect")
    xs_h = _space_to_depth2(hpd)                                    # (N, h/2+1, w/2+1, 4cin)
    x2, hp2, wp2, wpad = _flatten_padded(xs_h, 0, 2)
    m_ext = x2.shape[1]

    # shortcut branch input: space-to-depth(2)(x), width-padded to the SAME row stride so both
    # branches can be added in the flat (h2*wpad, Cout) layout with no extra reshapes.
    xs_x = _space_to_depth2(x)                                      # (N, h2, w2, 4cin)
    xs_x = jnp.pad(xs_x, ((0, 0), (0, 0), (0, wpad - w2), (0, 0)))
    xs_x = xs_x.reshape(n, h2 * wpad, 4 * cin).astype(jnp.bfloat16)

    # conv3x3 + avgpool2  ->  window-averaged 4x4 weights  ->  s2d-rearranged 2x2 weights.
    w4 = sum(jnp.pad(w_cmp, ((0, 0), (0, 0), (a, 1 - a), (b, 1 - b)))
             for a in (0, 1) for b in (0, 1)) * 0.25                # (cout, cin, 4, 4)
    w4 = jnp.concatenate([w4[:, :, p::2, q::2] for p, q in _PHASES], axis=1)  # (cout,4cin,2,2)
    ktot = 2 * 2 * 4 * cin
    fuse_k = ktot <= _FUSE_K_MAX
    wc = jnp.transpose(w4, (2, 3, 1, 0))
    if fuse_k:
        wc = wc.reshape(ktot, cout).astype(jnp.bfloat16)
        wc_spec = pl.BlockSpec((ktot, cout), lambda i: (0, 0))
    else:
        wc = wc.reshape(4, 4 * cin, cout).astype(jnp.bfloat16)
        wc_spec = pl.BlockSpec((4, 4 * cin, cout), lambda i: (0, 0, 0))

    # avgpool2 + conv1x1  ->  phase-replicated 1x1 weights / 4.
    ws = (jnp.concatenate([w_sc[:, :, 0, 0].T] * 4, axis=0) * 0.25).astype(jnp.bfloat16)

    cb4 = jnp.concatenate([cbias] * 4, axis=-1).reshape(n, 1, 4 * cin).astype(jnp.float32)
    offsets = (0, 1, wpad, wpad + 1)
    kernel = functools.partial(
        _block_tail_kernel, offsets=offsets, hp2=hp2, wpad=wpad,
        h2=h2, w2=w2, cin=cin, inv_n=1.0 / float(h * w), fuse_k=fuse_k)
    return pl.pallas_call(
        kernel,
        out_shape=jax.ShapeDtypeStruct((n, h2, w2, cout), out_dtype),
        grid=(n,),
        in_specs=[pl.BlockSpec((1, m_ext, 4 * cin), lambda i: (i, 0, 0)),
                  pl.BlockSpec((1, 1, 4 * cin), lambda i: (i, 0, 0)),
                  wc_spec,
                  pl.BlockSpec((1, h2 * wpad, 4 * cin), lambda i: (i, 0, 0)),
                  pl.BlockSpec((4 * cin, cout), lambda i: (0, 0)),
                  pl.BlockSpec((1, cout), lambda i: (0, 0))],
        out_specs=pl.BlockSpec((1, h2, w2, cout), lambda i: (i, 0, 0, 0)),
        compiler_params=_PAR,
    )(x2, cb4, wc, xs_x, ws, b_sc.reshape(1, cout).astype(jnp.float32))


def avg_pool_3x3_s2(x):
    """AvgPool2d(3, stride=2, padding=1, count_include_pad=False): pure-XLA shifted sum
    (~1x HBM traffic, no patch tensor, no extra kernel launch)."""
    n, h, w, c = x.shape
    xp = jnp.pad(x, ((0, 0), (1, 1), (1, 1), (0, 0)))
    ho, wo = (h - 1) // 2 + 1, (w - 1) // 2 + 1

    def sh(a, i, j):
        return a[:, i:i + 2 * (ho - 1) + 1:2, j:j + 2 * (wo - 1) + 1:2, :]

    s = sum(sh(xp, i, j) for i in range(3) for j in range(3))
    ones = jnp.pad(jnp.ones((1, h, w, 1), x.dtype), ((0, 0), (1, 1), (1, 1), (0, 0)))
    cnt = sum(sh(ones, i, j) for i in range(3) for j in range(3))
    return s / cnt


# --------------------------------- Model (glue) ----------------------------------

def con_down_res_block(p, x, code):
    # CBINorm2d(affine=False) conditional bias: tanh(Linear(code)) precomputed in glue.
    cb1 = jnp.tanh(code @ p["cn1_w"] + p["cn1_b"])
    cb2 = jnp.tanh(code @ p["cn2_w"] + p["cn2_b"])
    h1 = conv2d(x, p["conv1_w"], pad=1, cbias=cb1)                  # CBIN+LReLU -> conv3x3
    return block_tail(h1, x, cb2, p["cmp_w"], p["sc_w"], p["sc_b"])  # fused cmp+pool+shortcut


def style_discriminator(p, x, code):
    h = head_conv(x, p["head_w"], p["head_b"])
    for bp in p["blocks"]:
        h = con_down_res_block(bp, h, code)
    return conv2d(h, p["final_w"], bias=p["final_b"], pad=0, out_dtype=jnp.float32)


def multi_style_discriminator(params, x_nchw, code):
    x = jnp.transpose(x_nchw, (0, 2, 3, 1))                         # NCHW -> NHWC
    pre1 = style_discriminator(params["model_1"], x, code)
    xd = avg_pool_3x3_s2(x)
    pre2 = style_discriminator(params["model_2"], xd, code)
    # return NCHW tensors, matching the PyTorch module output convention
    return [jnp.transpose(pre1, (0, 3, 1, 2)), jnp.transpose(pre2, (0, 3, 1, 2))]


# ----------------------------- Parameter construction -----------------------------

def spectral_normalize(w):
    # TODO(synk): PyTorch spectral_norm does one power iteration per forward with a persistent
    # random `u`; here we divide by a converged spectral norm once at parameter-setup time.
    cout = w.shape[0]
    m = w.reshape(cout, -1)
    v = jnp.ones((m.shape[1],), jnp.float32)
    u = jnp.ones((cout,), jnp.float32)
    for _ in range(30):
        u = m @ v
        u = u / (jnp.linalg.norm(u) + 1e-12)
        v = m.T @ u
        v = v / (jnp.linalg.norm(v) + 1e-12)
    sigma = u @ (m @ v)
    return w / sigma


def init_style_discriminator_params(key, input_nc, ndf, n_block=3, n_latent=2):
    keys = iter(jax.random.split(key, 64))

    def nrm(shape, scale=0.1):
        return scale * jax.random.normal(next(keys), shape, jnp.float32)

    p = {
        "head_w": spectral_normalize(nrm((ndf, input_nc, 4, 4))),
        "head_b": nrm((ndf,)),
    }
    blocks = []
    dim_in = ndf
    for _ in range(1, n_block):
        dim_out = min(dim_in * 2, 512)
        blocks.append({
            "cn1_w": nrm((n_latent, dim_in)), "cn1_b": nrm((1, dim_in)),
            "conv1_w": spectral_normalize(nrm((dim_in, dim_in, 3, 3))),
            "cn2_w": nrm((n_latent, dim_in)), "cn2_b": nrm((1, dim_in)),
            "cmp_w": spectral_normalize(nrm((dim_out, dim_in, 3, 3))),
            "sc_w": spectral_normalize(nrm((dim_out, dim_in, 1, 1))),
            "sc_b": nrm((dim_out,)),
        })
        dim_in = dim_out
    p["blocks"] = blocks
    p["final_w"] = spectral_normalize(nrm((1, dim_in, 1, 1)))
    p["final_b"] = nrm((1,))
    return p


# -------------------------------------- main --------------------------------------

if __name__ == "__main__":
    key = jax.random.PRNGKey(0)
    kx, kc, k1, k2 = jax.random.split(key, 4)

    # Small shapes consistent with the module: batch=2, input_nc=3, 16x16 spatial,
    # ndf=8 (model_2 uses ndf//2=4), n_block=3, n_latent=2.
    x = jax.random.normal(kx, (2, 3, 16, 16), jnp.float32)          # NCHW, like PyTorch
    code = jax.random.normal(kc, (2, 2), jnp.float32)               # (batch, n_latent)

    params = {
        "model_1": init_style_discriminator_params(k1, input_nc=3, ndf=8),
        "model_2": init_style_discriminator_params(k2, input_nc=3, ndf=4),
    }

    fwd = jax.jit(lambda xx, cc: multi_style_discriminator(params, xx, cc))
    pre1, pre2 = fwd(x, code)
    jax.block_until_ready((pre1, pre2))

    assert pre1.shape == (2, 1, 2, 2), pre1.shape
    assert pre2.shape == (2, 1, 1, 1), pre2.shape
    print("KERNEL_OK")
</pallas_src>

<mosaic_0001>
module attributes {stable_mosaic.version = 11 : i64} {
  func.func @_conv_kernel(%arg0: i32, %arg1: memref<1x152x12xbf16, #tpu.memory_space<vmem>>, %arg2: memref<48x8xbf16, #tpu.memory_space<vmem>>, %arg3: memref<1x8xf32, #tpu.memory_space<vmem>>, %arg4: memref<1x8x8x8xbf16, #tpu.memory_space<vmem>>) attributes {dimension_semantics = [#tpu.dimension_semantics<parallel>], iteration_bounds = array<i64: 2>, scalar_prefetch = 0 : i64, scratch_operands = 0 : i64, tpu.core_type = #tpu.core_type<tc>, window_params = [{transform_indices = @transform_0, window_bounds = array<i64: 1, 152, 12>}, {pipeline_mode = #tpu.pipeline_mode<synchronous>, transform_indices = @transform_1, window_bounds = array<i64: 48, 8>}, {pipeline_mode = #tpu.pipeline_mode<synchronous>, transform_indices = @transform_2, window_bounds = array<i64: 1, 8>}, {transform_indices = @transform_3, window_bounds = array<i64: 1, 8, 8, 8>}]} {
    %c0 = arith.constant 0 : index
    %c0_0 = arith.constant 0 : index
    %c0_1 = arith.constant 0 : index
    %0 = vector.load %arg1[%c0, %c0_0, %c0_1] : memref<1x152x12xbf16, #tpu.memory_space<vmem>>, vector<1x152x12xbf16>
    %1 = vector.shape_cast %0 : vector<1x152x12xbf16> to vector<152x12xbf16>
    %2 = vector.extract_strided_slice %1 {offsets = [0, 0], sizes = [128, 12], strides = [1, 1]} : vector<152x12xbf16> to vector<128x12xbf16>
    %3 = vector.extract_strided_slice %1 {offsets = [1, 0], sizes = [128, 12], strides = [1, 1]} : vector<152x12xbf16> to vector<128x12xbf16>
    %4 = vector.extract_strided_slice %1 {offsets = [16, 0], sizes = [128, 12], strides = [1, 1]} : vector<152x12xbf16> to vector<128x12xbf16>
    %5 = vector.extract_strided_slice %1 {offsets = [17, 0], sizes = [128, 12], strides = [1, 1]} : vector<152x12xbf16> to vector<128x12xbf16>
    %6 = tpu.concatenate %2, %3, %4, %5 in 1 : vector<128x12xbf16>, vector<128x12xbf16>, vector<128x12xbf16>, vector<128x12xbf16> -> vector<128x48xbf16>
    %c0_2 = arith.constant 0 : index
    %c0_3 = arith.constant 0 : index
    %7 = vector.load %arg2[%c0_2, %c0_3] : memref<48x8xbf16, #tpu.memory_space<vmem>>, vector<48x8xbf16>
    %cst = arith.constant dense<0.000000e+00> : vector<128x8xf32>
    %8 = tpu.matmul %6, %7, %cst {dimension_numbers = #tpu.dot_dimension_numbers<[1], [0], [0], [1], [0, 0, 1, 1], [], []>} : vector<128x48xbf16>, vector<48x8xbf16>, vector<128x8xf32> -> vector<128x8xf32>
    %c0_4 = arith.constant 0 : index
    %c0_5 = arith.constant 0 : index
    %9 = vector.load %arg3[%c0_4, %c0_5] : memref<1x8xf32, #tpu.memory_space<vmem>>, vector<1x8xf32>
    %10 = vector.broadcast %9 : vector<1x8xf32> to vector<128x8xf32>
    %11 = arith.addf %8, %10 : vector<128x8xf32>
    %12 = vector.shape_cast %11 : vector<128x8xf32> to vector<8x16x8xf32>
    %13 = vector.extract_strided_slice %12 {offsets = [0, 0, 0], sizes = [8, 8, 8], strides = [1, 1, 1]} : vector<8x16x8xf32> to vector<8x8x8xf32>
    %14 = arith.truncf %13 : vector<8x8x8xf32> to vector<8x8x8xbf16>
    %c0_6 = arith.constant 0 : index
    %c0_7 = arith.constant 0 : index
    %c0_8 = arith.constant 0 : index
    %c0_9 = arith.constant 0 : index
    %15 = vector.load %arg4[%c0_6, %c0_7, %c0_8, %c0_9] : memref<1x8x8x8xbf16, #tpu.memory_space<vmem>>, vector<1x8x8x8xbf16>
    %16 = vector.shape_cast %15 : vector<1x8x8x8xbf16> to vector<8x8x8xbf16>
    %17 = vector.shape_cast %14 : vector<8x8x8xbf16> to vector<1x8x8x8xbf16>
    tpu.vector_store %arg4[%c0_6, %c0_7, %c0_8, %c0_9], %17 {strides = array<i32>} : memref<1x8x8x8xbf16, #tpu.memory_space<vmem>>, vector<1x8x8x8xbf16>,
    return
  }
  func.func @transform_0(%arg0: i32) -> (i32, i32, i32) {
    %c0_i32 = arith.constant 0 : i32
    %c0_i32_0 = arith.constant 0 : i32
    %c0_i32_1 = arith.constant 0 : i32
    return %arg0, %c0_i32, %c0_i32_0 : i32, i32, i32
  }
  func.func @transform_1(%arg0: i32) -> (i32, i32) {
    %c0_i32 = arith.constant 0 : i32
    %c0_i32_0 = arith.constant 0 : i32
    %c0_i32_1 = arith.constant 0 : i32
    return %c0_i32, %c0_i32_0 : i32, i32
  }
  func.func @transform_2(%arg0: i32) -> (i32, i32) {
    %c0_i32 = arith.constant 0 : i32
    %c0_i32_0 = arith.constant 0 : i32
    %c0_i32_1 = arith.constant 0 : i32
    return %c0_i32, %c0_i32_0 : i32, i32
  }
  func.func @transform_3(%arg0: i32) -> (i32, i32, i32, i32) {
    %c0_i32 = arith.constant 0 : i32
    %c0_i32_0 = arith.constant 0 : i32
    %c0_i32_1 = arith.constant 0 : i32
    %c0_i32_2 = arith.constant 0 : i32
    return %arg0, %c0_i32, %c0_i32_0, %c0_i32_1 : i32, i32, i32, i32
  }
}

module attributes {stable_mosaic.version = 11 : i64} {
  func.func @_conv_kernel(%arg0: i32, %arg1: memref<1x168x8xbf16, #tpu.memory_space<vmem>>, %arg2: memref<1x1x8xf32, #tpu.memory_space<vmem>>, %arg3: memref<72x8xbf16, #tpu.memory_space<vmem>>, %arg4: memref<1x8x8x8xbf16, #tpu.memory_space<vmem>>) attributes {dimension_semantics = [#tpu.dimension_semantics<parallel>], iteration_bounds = array<i64: 2>, scalar_prefetch = 0 : i64, scratch_operands = 0 : i64, tpu.core_type = #tpu.core_type<tc>, window_params = [{transform_indices = @transform_0, window_bounds = array<i64: 1, 168, 8>}, {transform_indices = @transform_1, window_bounds = array<i64: 1, 1, 8>}, {pipeline_mode = #tpu.pipeline_mode<synchronous>, transform_indices = @transform_2, window_bounds = array<i64: 72, 8>}, {transform_indices = @transform_3, window_bounds = array<i64: 1, 8, 8, 8>}]} {
    %c0 = arith.constant 0 : index
    %c0_0 = arith.constant 0 : index
    %c0_1 = arith.constant 0 : index
    %0 = vector.load %arg1[%c0, %c0_0, %c0_1] : memref<1x168x8xbf16, #tpu.memory_space<vmem>>, vector<1x168x8xbf16>
    %1 = vector.shape_cast %0 : vector<1x168x8xbf16> to vector<168x8xbf16>
    %2 = arith.extf %1 : vector<168x8xbf16> to vector<168x8xf32>
    %c0_2 = arith.constant 0 : index
    %c0_3 = arith.constant 0 : index
    %c0_4 = arith.constant 0 : index
    %3 = vector.load %arg2[%c0_2, %c0_3, %c0_4] : memref<1x1x8xf32, #tpu.memory_space<vmem>>, vector<1x1x8xf32>
    %4 = vector.shape_cast %3 : vector<1x1x8xf32> to vector<1x8xf32>
    %5 = vector.extract_strided_slice %2 {offsets = [0, 0], sizes = [160, 8], strides = [1, 1]} : vector<168x8xf32> to vector<160x8xf32>
    %6 = vector.shape_cast %5 : vector<160x8xf32> to vector<10x16x8xf32>
    %7 = vector.extract_strided_slice %6 {offsets = [1, 0, 0], sizes = [8, 16, 8], strides = [1, 1, 1]} : vector<10x16x8xf32> to vector<8x16x8xf32>
    %cst = arith.constant dense<0.000000e+00> : vector<16x8xf32>
    %8 = vector.multi_reduction <add>, %7, %cst [0] : vector<8x16x8xf32> to vector<16x8xf32>
    %9 = vector.extract_strided_slice %8 {offsets = [1, 0], sizes = [8, 8], strides = [1, 1]} : vector<16x8xf32> to vector<8x8xf32>
    %cst_5 = arith.constant dense<0.000000e+00> : vector<8xf32>
    %10 = vector.multi_reduction <add>, %9, %cst_5 [0] : vector<8x8xf32> to vector<8xf32>
    %11 = vector.shape_cast %10 : vector<8xf32> to vector<1x8xf32>
    %cst_6 = arith.constant 1.562500e-02 : f32
    %12 = vector.broadcast %cst_6 : f32 to vector<1x8xf32>
    %13 = arith.mulf %11, %12 : vector<1x8xf32>
    %14 = vector.extract_strided_slice %6 {offsets = [1, 0, 0], sizes = [8, 16, 8], strides = [1, 1, 1]} : vector<10x16x8xf32> to vector<8x16x8xf32>
    %15 = vector.shape_cast %13 : vector<1x8xf32> to vector<1x1x8xf32>
    %16 = vector.broadcast %15 : vector<1x1x8xf32> to vector<8x16x8xf32>
    %17 = arith.subf %14, %16 : vector<8x16x8xf32>
    %18 = arith.mulf %17, %17 : vector<8x16x8xf32>
    %cst_7 = arith.constant dense<0.000000e+00> : vector<16x8xf32>
    %19 = vector.multi_reduction <add>, %18, %cst_7 [0] : vector<8x16x8xf32> to vector<16x8xf32>
    %20 = vector.extract_strided_slice %19 {offsets = [1, 0], sizes = [8, 8], strides = [1, 1]} : vector<16x8xf32> to vector<8x8xf32>
    %cst_8 = arith.constant dense<0.000000e+00> : vector<8xf32>
    %21 = vector.multi_reduction <add>, %20, %cst_8 [0] : vector<8x8xf32> to vector<8xf32>
    %22 = vector.shape_cast %21 : vector<8xf32> to vector<1x8xf32>
    %cst_9 = arith.constant 1.562500e-02 : f32
    %23 = vector.broadcast %cst_9 : f32 to vector<1x8xf32>
    %24 = arith.mulf %22, %23 : vector<1x8xf32>
    %25 = vector.broadcast %13 : vector<1x8xf32> to vector<168x8xf32>
    %26 = arith.subf %2, %25 : vector<168x8xf32>
    %cst_10 = arith.constant 9.99999974E-6 : f32
    %27 = vector.broadcast %cst_10 : f32 to vector<1x8xf32>
    %28 = arith.addf %24, %27 : vector<1x8xf32>
    %29 = math.rsqrt %28 : vector<1x8xf32>
    %30 = vector.broadcast %29 : vector<1x8xf32> to vector<168x8xf32>
    %31 = arith.mulf %26, %30 : vector<168x8xf32>
    %32 = vector.broadcast %4 : vector<1x8xf32> to vector<168x8xf32>
    %33 = arith.addf %31, %32 : vector<168x8xf32>
    %cst_11 = arith.constant 0.000000e+00 : f32
    %34 = vector.broadcast %cst_11 : f32 to vector<168x8xf32>
    %35 = arith.cmpf oge, %33, %34 : vector<168x8xf32>
    %cst_12 = arith.constant 2.000000e-01 : f32
    %36 = vector.broadcast %cst_12 : f32 to vector<168x8xf32>
    %37 = arith.mulf %36, %33 : vector<168x8xf32>
    %38 = arith.select %35, %33, %37 : vector<168x8xi1>, vector<168x8xf32>
    %39 = arith.truncf %38 : vector<168x8xf32> to vector<168x8xbf16>
    %40 = vector.extract_strided_slice %39 {offsets = [0, 0], sizes = [128, 8], strides = [1, 1]} : vector<168x8xbf16> to vector<128x8xbf16>
    %41 = vector.extract_strided_slice %39 {offsets = [1, 0], sizes = [128, 8], strides = [1, 1]} : vector<168x8xbf16> to vector<128x8xbf16>
    %42 = vector.extract_strided_slice %39 {offsets = [2, 0], sizes = [128, 8], strides = [1, 1]} : vector<168x8xbf16> to vector<128x8xbf16>
    %43 = vector.extract_strided_slice %39 {offsets = [16, 0], sizes = [128, 8], strides = [1, 1]} : vector<168x8xbf16> to vector<128x8xbf16>
    %44 = vector.extract_strided_slice %39 {offsets = [17, 0], sizes = [128, 8], strides = [1, 1]} : vector<168x8xbf16> to vector<128x8xbf16>
    %45 = vector.extract_strided_slice %39 {offsets = [18, 0], sizes = [128, 8], strides = [1, 1]} : vector<168x8xbf16> to vector<128x8xbf16>
    %46 = vector.extract_strided_slice %39 {offsets = [32, 0], sizes = [128, 8], strides = [1, 1]} : vector<168x8xbf16> to vector<128x8xbf16>
    %47 = vector.extract_strided_slice %39 {offsets = [33, 0], sizes = [128, 8], strides = [1, 1]} : vector<168x8xbf16> to vector<128x8xbf16>
    %48 = vector.extract_strided_slice %39 {offsets = [34, 0], sizes = [128, 8], strides = [1, 1]} : vector<168x8xbf16> to vector<128x8xbf16>
    %49 = tpu.concatenate %40, %41, %42, %43, %44, %45, %46, %47, %48 in 1 : vector<128x8xbf16>, vector<128x8xbf16>, vector<128x8xbf16>, vector<128x8xbf16>, vector<128x8xbf16>, vector<128x8xbf16>, vector<128x8xbf16>, vector<128x8xbf16>, vector<128x8xbf16> -> vector<128x72xbf16>
    %c0_13 = arith.constant 0 : index
    %c0_14 = arith.constant 0 : index
    %50 = vector.load %arg3[%c0_13, %c0_14] : memref<72x8xbf16, #tpu.memory_space<vmem>>, vector<72x8xbf16>
    %cst_15 = arith.constant dense<0.000000e+00> : vector<128x8xf32>
    %51 = tpu.matmul %49, %50, %cst_15 {dimension_numbers = #tpu.dot_dimension_numbers<[1], [0], [0], [1], [0, 0, 1, 1], [], []>} : vector<128x72xbf16>, vector<72x8xbf16>, vector<128x8xf32> -> vector<128x8xf32>
    %52 = vector.shape_cast %51 : vector<128x8xf32> to vector<8x16x8xf32>
    %53 = vector.extract_strided_slice %52 {offsets = [0, 0, 0], sizes = [8, 8, 8], strides = [1, 1, 1]} : vector<8x16x8xf32> to vector<8x8x8xf32>
    %54 = arith.truncf %53 : vector<8x8x8xf32> to vector<8x8x8xbf16>
    %c0_16 = arith.constant 0 : index
    %c0_17 = arith.constant 0 : index
    %c0_18 = arith.constant 0 : index
    %c0_19 = arith.constant 0 : index
    %55 = vector.load %arg4[%c0_16, %c0_17, %c0_18, %c0_19] : memref<1x8x8x8xbf16, #tpu.memory_space<vmem>>, vector<1x8x8x8xbf16>
    %56 = vector.shape_cast %55 : vector<1x8x8x8xbf16> to vector<8x8x8xbf16>
    %57 = vector.shape_cast %54 : vector<8x8x8xbf16> to vector<1x8x8x8xbf16>
    tpu.vector_store %arg4[%c0_16, %c0_17, %c0_18, %c0_19], %57 {strides = array<i32>} : memref<1x8x8x8xbf16, #tpu.memory_space<vmem>>, vector<1x8x8x8xbf16>,
    return
  }
  func.func @transform_0(%arg0: i32) -> (i32, i32, i32) {
    %c0_i32 = arith.constant 0 : i32
    %c0_i32_0 = arith.constant 0 : i32
    %c0_i32_1 = arith.constant 0 : i32
    return %arg0, %c0_i32, %c0_i32_0 : i32, i32, i32
  }
  func.func @transform_1(%arg0: i32) -> (i32, i32, i32) {
    %c0_i32 = arith.constant 0 : i32
    %c0_i32_0 = arith.constant 0 : i32
    %c0_i32_1 = arith.constant 0 : i32
    return %arg0, %c0_i32, %c0_i32_0 : i32, i32, i32
  }
  func.func @transform_2(%arg0: i32) -> (i32, i32) {
    %c0_i32 = arith.constant 0 : i32
    %c0_i32_0 = arith.constant 0 : i32
    %c0_i32_1 = arith.constant 0 : i32
    return %c0_i32, %c0_i32_0 : i32, i32
  }
  func.func @transform_3(%arg0: i32) -> (i32, i32, i32, i32) {
    %c0_i32 = arith.constant 0 : i32
    %c0_i32_0 = arith.constant 0 : i32
    %c0_i32_1 = arith.constant 0 : i32
    %c0_i32_2 = arith.constant 0 : i32
    return %arg0, %c0_i32, %c0_i32_0, %c0_i32_1 : i32, i32, i32, i32
  }
}

module attributes {stable_mosaic.version = 11 : i64} {
  func.func @_block_tail_kernel(%arg0: i32, %arg1: memref<1x48x32xbf16, #tpu.memory_space<vmem>>, %arg2: memref<1x1x32xf32, #tpu.memory_space<vmem>>, %arg3: memref<128x16xbf16, #tpu.memory_space<vmem>>, %arg4: memref<1x32x32xbf16, #tpu.memory_space<vmem>>, %arg5: memref<32x16xbf16, #tpu.memory_space<vmem>>, %arg6: memref<1x16xf32, #tpu.memory_space<vmem>>, %arg7: memref<1x4x4x16xbf16, #tpu.memory_space<vmem>>) attributes {dimension_semantics = [#tpu.dimension_semantics<parallel>], iteration_bounds = array<i64: 2>, scalar_prefetch = 0 : i64, scratch_operands = 0 : i64, tpu.core_type = #tpu.core_type<tc>, window_params = [{transform_indices = @transform_0, window_bounds = array<i64: 1, 48, 32>}, {transform_indices = @transform_1, window_bounds = array<i64: 1, 1, 32>}, {pipeline_mode = #tpu.pipeline_mode<synchronous>, transform_indices = @transform_2, window_bounds = array<i64: 128, 16>}, {transform_indices = @transform_3, window_bounds = array<i64: 1, 32, 32>}, {pipeline_mode = #tpu.pipeline_mode<synchronous>, transform_indices = @transform_4, window_bounds = array<i64: 32, 16>}, {pipeline_mode = #tpu.pipeline_mode<synchronous>, transform_indices = @transform_5, window_bounds = array<i64: 1, 16>}, {transform_indices = @transform_6, window_bounds = array<i64: 1, 4, 4, 16>}]} {
    %c0 = arith.constant 0 : index
    %c0_0 = arith.constant 0 : index
    %c0_1 = arith.constant 0 : index
    %0 = vector.load %arg1[%c0, %c0_0, %c0_1] : memref<1x48x32xbf16, #tpu.memory_space<vmem>>, vector<1x48x32xbf16>
    %1 = vector.shape_cast %0 : vector<1x48x32xbf16> to vector<48x32xbf16>
    %2 = arith.extf %1 : vector<48x32xbf16> to vector<48x32xf32>
    %c0_2 = arith.constant 0 : index
    %c0_3 = arith.constant 0 : index
    %c0_4 = arith.constant 0 : index
    %3 = vector.load %arg2[%c0_2, %c0_3, %c0_4] : memref<1x1x32xf32, #tpu.memory_space<vmem>>, vector<1x1x32xf32>
    %4 = vector.shape_cast %3 : vector<1x1x32xf32> to vector<1x32xf32>
    %5 = vector.extract_strided_slice %2 {offsets = [0, 0], sizes = [40, 32], strides = [1, 1]} : vector<48x32xf32> to vector<40x32xf32>
    %6 = vector.shape_cast %5 : vector<40x32xf32> to vector<5x8x32xf32>
    %7 = vector.extract_strided_slice %6 {offsets = [1, 0, 0], sizes = [4, 8, 32], strides = [1, 1, 1]} : vector<5x8x32xf32> to vector<4x8x32xf32>
    %cst = arith.constant dense<0.000000e+00> : vector<8x32xf32>
    %8 = vector.multi_reduction <add>, %7, %cst [0] : vector<4x8x32xf32> to vector<8x32xf32>
    %9 = vector.extract_strided_slice %8 {offsets = [1, 0], sizes = [4, 32], strides = [1, 1]} : vector<8x32xf32> to vector<4x32xf32>
    %cst_5 = arith.constant dense<0.000000e+00> : vector<32xf32>
    %10 = vector.multi_reduction <add>, %9, %cst_5 [0] : vector<4x32xf32> to vector<32xf32>
    %11 = vector.shape_cast %10 : vector<32xf32> to vector<1x32xf32>
    %12 = vector.extract_strided_slice %11 {offsets = [0, 0], sizes = [1, 8], strides = [1, 1]} : vector<1x32xf32> to vector<1x8xf32>
    %13 = vector.extract_strided_slice %8 {offsets = [0, 0], sizes = [4, 32], strides = [1, 1]} : vector<8x32xf32> to vector<4x32xf32>
    %cst_6 = arith.constant dense<0.000000e+00> : vector<32xf32>
    %14 = vector.multi_reduction <add>, %13, %cst_6 [0] : vector<4x32xf32> to vector<32xf32>
    %15 = vector.shape_cast %14 : vector<32xf32> to vector<1x32xf32>
    %16 = vector.extract_strided_slice %15 {offsets = [0, 8], sizes = [1, 8], strides = [1, 1]} : vector<1x32xf32> to vector<1x8xf32>
    %17 = arith.addf %12, %16 : vector<1x8xf32>
    %18 = vector.extract_strided_slice %6 {offsets = [0, 0, 0], sizes = [4, 8, 32], strides = [1, 1, 1]} : vector<5x8x32xf32> to vector<4x8x32xf32>
    %cst_7 = arith.constant dense<0.000000e+00> : vector<8x32xf32>
    %19 = vector.multi_reduction <add>, %18, %cst_7 [0] : vector<4x8x32xf32> to vector<8x32xf32>
    %20 = vector.extract_strided_slice %19 {offsets = [1, 0], sizes = [4, 32], strides = [1, 1]} : vector<8x32xf32> to vector<4x32xf32>
    %cst_8 = arith.constant dense<0.000000e+00> : vector<32xf32>
    %21 = vector.multi_reduction <add>, %20, %cst_8 [0] : vector<4x32xf32> to vector<32xf32>
    %22 = vector.shape_cast %21 : vector<32xf32> to vector<1x32xf32>
    %23 = vector.extract_strided_slice %22 {offsets = [0, 16], sizes = [1, 8], strides = [1, 1]} : vector<1x32xf32> to vector<1x8xf32>
    %24 = arith.addf %17, %23 : vector<1x8xf32>
    %25 = vector.extract_strided_slice %19 {offsets = [0, 0], sizes = [4, 32], strides = [1, 1]} : vector<8x32xf32> to vector<4x32xf32>
    %cst_9 = arith.constant dense<0.000000e+00> : vector<32xf32>
    %26 = vector.multi_reduction <add>, %25, %cst_9 [0] : vector<4x32xf32> to vector<32xf32>
    %27 = vector.shape_cast %26 : vector<32xf32> to vector<1x32xf32>
    %28 = vector.extract_strided_slice %27 {offsets = [0, 24], sizes = [1, 8], strides = [1, 1]} : vector<1x32xf32> to vector<1x8xf32>
    %29 = arith.addf %24, %28 : vector<1x8xf32>
    %cst_10 = arith.constant 1.562500e-02 : f32
    %30 = vector.broadcast %cst_10 : f32 to vector<1x8xf32>
    %31 = arith.mulf %29, %30 : vector<1x8xf32>
    %32 = tpu.concatenate %31, %31, %31, %31 in 1 : vector<1x8xf32>, vector<1x8xf32>, vector<1x8xf32>, vector<1x8xf32> -> vector<1x32xf32>
    %33 = vector.extract_strided_slice %6 {offsets = [1, 0, 0], sizes = [4, 8, 32], strides = [1, 1, 1]} : vector<5x8x32xf32> to vector<4x8x32xf32>
    %34 = vector.shape_cast %32 : vector<1x32xf32> to vector<1x1x32xf32>
    %35 = vector.broadcast %34 : vector<1x1x32xf32> to vector<4x8x32xf32>
    %36 = arith.subf %33, %35 : vector<4x8x32xf32>
    %37 = arith.mulf %36, %36 : vector<4x8x32xf32>
    %cst_11 = arith.constant dense<0.000000e+00> : vector<8x32xf32>
    %38 = vector.multi_reduction <add>, %37, %cst_11 [0] : vector<4x8x32xf32> to vector<8x32xf32>
    %39 = vector.extract_strided_slice %38 {offsets = [1, 0], sizes = [4, 32], strides = [1, 1]} : vector<8x32xf32> to vector<4x32xf32>
    %cst_12 = arith.constant dense<0.000000e+00> : vector<32xf32>
    %40 = vector.multi_reduction <add>, %39, %cst_12 [0] : vector<4x32xf32> to vector<32xf32>
    %41 = vector.shape_cast %40 : vector<32xf32> to vector<1x32xf32>
    %42 = vector.extract_strided_slice %41 {offsets = [0, 0], sizes = [1, 8], strides = [1, 1]} : vector<1x32xf32> to vector<1x8xf32>
    %43 = vector.extract_strided_slice %38 {offsets = [0, 0], sizes = [4, 32], strides = [1, 1]} : vector<8x32xf32> to vector<4x32xf32>
    %cst_13 = arith.constant dense<0.000000e+00> : vector<32xf32>
    %44 = vector.multi_reduction <add>, %43, %cst_13 [0] : vector<4x32xf32> to vector<32xf32>
    %45 = vector.shape_cast %44 : vector<32xf32> to vector<1x32xf32>
    %46 = vector.extract_strided_slice %45 {offsets = [0, 8], sizes = [1, 8], strides = [1, 1]} : vector<1x32xf32> to vector<1x8xf32>
    %47 = arith.addf %42, %46 : vector<1x8xf32>
    %48 = vector.extract_strided_slice %6 {offsets = [0, 0, 0], sizes = [4, 8, 32], strides = [1, 1, 1]} : vector<5x8x32xf32> to vector<4x8x32xf32>
    %49 = vector.shape_cast %32 : vector<1x32xf32> to vector<1x1x32xf32>
    %50 = vector.broadcast %49 : vector<1x1x32xf32> to vector<4x8x32xf32>
    %51 = arith.subf %48, %50 : vector<4x8x32xf32>
    %52 = arith.mulf %51, %51 : vector<4x8x32xf32>
    %cst_14 = arith.constant dense<0.000000e+00> : vector<8x32xf32>
    %53 = vector.multi_reduction <add>, %52, %cst_14 [0] : vector<4x8x32xf32> to vector<8x32xf32>
    %54 = vector.extract_strided_slice %53 {offsets = [1, 0], sizes = [4, 32], strides = [1, 1]} : vector<8x32xf32> to vector<4x32xf32>
    %cst_15 = arith.constant dense<0.000000e+00> : vector<32xf32>
    %55 = vector.multi_reduction <add>, %54, %cst_15 [0] : vector<4x32xf32> to vector<32xf32>
    %56 = vector.shape_cast %55 : vector<32xf32> to vector<1x32xf32>
    %57 = vector.extract_strided_slice %56 {offsets = [0, 16], sizes = [1, 8], strides = [1, 1]} : vector<1x32xf32> to vector<1x8xf32>
    %58 = arith.addf %47, %57 : vector<1x8xf32>
    %59 = vector.extract_strided_slice %53 {offsets = [0, 0], sizes = [4, 32], strides = [1, 1]} : vector<8x32xf32> to vector<4x32xf32>
    %cst_16 = arith.constant dense<0.000000e+00> : vector<32xf32>
    %60 = vector.multi_reduction <add>, %59, %cst_16 [0] : vector<4x32xf32> to vector<32xf32>
    %61 = vector.shape_cast %60 : vector<32xf32> to vector<1x32xf32>
    %62 = vector.extract_strided_slice %61 {offsets = [0, 24], sizes = [1, 8], strides = [1, 1]} : vector<1x32xf32> to vector<1x8xf32>
    %63 = arith.addf %58, %62 : vector<1x8xf32>
    %cst_17 = arith.constant 1.562500e-02 : f32
    %64 = vector.broadcast %cst_17 : f32 to vector<1x8xf32>
    %65 = arith.mulf %63, %64 : vector<1x8xf32>
    %66 = tpu.concatenate %65, %65, %65, %65 in 1 : vector<1x8xf32>, vector<1x8xf32>, vector<1x8xf32>, vector<1x8xf32> -> vector<1x32xf32>
    %67 = vector.broadcast %32 : vector<1x32xf32> to vector<48x32xf32>
    %68 = arith.subf %2, %67 : vector<48x32xf32>
    %cst_18 = arith.constant 9.99999974E-6 : f32
    %69 = vector.broadcast %cst_18 : f32 to vector<1x32xf32>
    %70 = arith.addf %66, %69 : vector<1x32xf32>
    %71 = math.rsqrt %70 : vector<1x32xf32>
    %72 = vector.broadcast %71 : vector<1x32xf32> to vector<48x32xf32>
    %73 = arith.mulf %68, %72 : vector<48x32xf32>
    %74 = vector.broadcast %4 : vector<1x32xf32> to vector<48x32xf32>
    %75 = arith.addf %73, %74 : vector<48x32xf32>
    %cst_19 = arith.constant 0.000000e+00 : f32
    %76 = vector.broadcast %cst_19 : f32 to vector<48x32xf32>
    %77 = arith.cmpf oge, %75, %76 : vector<48x32xf32>
    %cst_20 = arith.constant 2.000000e-01 : f32
    %78 = vector.broadcast %cst_20 : f32 to vector<48x32xf32>
    %79 = arith.mulf %78, %75 : vector<48x32xf32>
    %80 = arith.select %77, %75, %79 : vector<48x32xi1>, vector<48x32xf32>
    %81 = arith.truncf %80 : vector<48x32xf32> to vector<48x32xbf16>
    %82 = vector.extract_strided_slice %81 {offsets = [0, 0], sizes = [32, 32], strides = [1, 1]} : vector<48x32xbf16> to vector<32x32xbf16>
    %83 = vector.extract_strided_slice %81 {offsets = [1, 0], sizes = [32, 32], strides = [1, 1]} : vector<48x32xbf16> to vector<32x32xbf16>
    %84 = vector.extract_strided_slice %81 {offsets = [8, 0], sizes = [32, 32], strides = [1, 1]} : vector<48x32xbf16> to vector<32x32xbf16>
    %85 = vector.extract_strided_slice %81 {offsets = [9, 0], sizes = [32, 32], strides = [1, 1]} : vector<48x32xbf16> to vector<32x32xbf16>
    %86 = tpu.concatenate %82, %83, %84, %85 in 1 : vector<32x32xbf16>, vector<32x32xbf16>, vector<32x32xbf16>, vector<32x32xbf16> -> vector<32x128xbf16>
    %c0_21 = arith.constant 0 : index
    %c0_22 = arith.constant 0 : index
    %87 = vector.load %arg3[%c0_21, %c0_22] : memref<128x16xbf16, #tpu.memory_space<vmem>>, vector<128x16xbf16>
    %cst_23 = arith.constant dense<0.000000e+00> : vector<32x16xf32>
    %88 = tpu.matmul %86, %87, %cst_23 {dimension_numbers = #tpu.dot_dimension_numbers<[1], [0], [0], [1], [0, 0, 1, 1], [], []>} : vector<32x128xbf16>, vector<128x16xbf16>, vector<32x16xf32> -> vector<32x16xf32>
    %c0_24 = arith.constant 0 : index
    %c0_25 = arith.constant 0 : index
    %c0_26 = arith.constant 0 : index
    %89 = vector.load %arg4[%c0_24, %c0_25, %c0_26] : memref<1x32x32xbf16, #tpu.memory_space<vmem>>, vector<1x32x32xbf16>
    %90 = vector.shape_cast %89 : vector<1x32x32xbf16> to vector<32x32xbf16>
    %c0_27 = arith.constant 0 : index
    %c0_28 = arith.constant 0 : index
    %91 = vector.load %arg5[%c0_27, %c0_28] : memref<32x16xbf16, #tpu.memory_space<vmem>>, vector<32x16xbf16>
    %cst_29 = arith.constant dense<0.000000e+00> : vector<32x16xf32>
    %92 = tpu.matmul %90, %91, %cst_29 {dimension_numbers = #tpu.dot_dimension_numbers<[1], [0], [0], [1], [0, 0, 1, 1], [], []>} : vector<32x32xbf16>, vector<32x16xbf16>, vector<32x16xf32> -> vector<32x16xf32>
    %93 = arith.addf %88, %92 : vector<32x16xf32>
    %c0_30 = arith.constant 0 : index
    %c0_31 = arith.constant 0 : index
    %94 = vector.load %arg6[%c0_30, %c0_31] : memref<1x16xf32, #tpu.memory_space<vmem>>, vector<1x16xf32>
    %95 = vector.broadcast %94 : vector<1x16xf32> to vector<32x16xf32>
    %96 = arith.addf %93, %95 : vector<32x16xf32>
    %97 = vector.shape_cast %96 : vector<32x16xf32> to vector<4x8x16xf32>
    %98 = vector.extract_strided_slice %97 {offsets = [0, 0, 0], sizes = [4, 4, 16], strides = [1, 1, 1]} : vector<4x8x16xf32> to vector<4x4x16xf32>
    %99 = arith.truncf %98 : vector<4x4x16xf32> to vector<4x4x16xbf16>
    %c0_32 = arith.constant 0 : index
    %c0_33 = arith.constant 0 : index
    %c0_34 = arith.constant 0 : index
    %c0_35 = arith.constant 0 : index
    %100 = vector.load %arg7[%c0_32, %c0_33, %c0_34, %c0_35] : memref<1x4x4x16xbf16, #tpu.memory_space<vmem>>, vector<1x4x4x16xbf16>
    %101 = vector.shape_cast %100 : vector<1x4x4x16xbf16> to vector<4x4x16xbf16>
    %102 = vector.shape_cast %99 : vector<4x4x16xbf16> to vector<1x4x4x16xbf16>
    tpu.vector_store %arg7[%c0_32, %c0_33, %c0_34, %c0_35], %102 {strides = array<i32>} : memref<1x4x4x16xbf16, #tpu.memory_space<vmem>>, vector<1x4x4x16xbf16>,
    return
  }
  func.func @transform_0(%arg0: i32) -> (i32, i32, i32) {
    %c0_i32 = arith.constant 0 : i32
    %c0_i32_0 = arith.constant 0 : i32
    %c0_i32_1 = arith.constant 0 : i32
    return %arg0, %c0_i32, %c0_i32_0 : i32, i32, i32
  }
  func.func @transform_1(%arg0: i32) -> (i32, i32, i32) {
    %c0_i32 = arith.constant 0 : i32
    %c0_i32_0 = arith.constant 0 : i32
    %c0_i32_1 = arith.constant 0 : i32
    return %arg0, %c0_i32, %c0_i32_0 : i32, i32, i32
  }
  func.func @transform_2(%arg0: i32) -> (i32, i32) {
    %c0_i32 = arith.constant 0 : i32
    %c0_i32_0 = arith.constant 0 : i32
    %c0_i32_1 = arith.constant 0 : i32
    return %c0_i32, %c0_i32_0 : i32, i32
  }
  func.func @transform_3(%arg0: i32) -> (i32, i32, i32) {
    %c0_i32 = arith.constant 0 : i32
    %c0_i32_0 = arith.constant 0 : i32
    %c0_i32_1 = arith.constant 0 : i32
    return %arg0, %c0_i32, %c0_i32_0 : i32, i32, i32
  }
  func.func @transform_4(%arg0: i32) -> (i32, i32) {
    %c0_i32 = arith.constant 0 : i32
    %c0_i32_0 = arith.constant 0 : i32
    %c0_i32_1 = arith.constant 0 : i32
    return %c0_i32, %c0_i32_0 : i32, i32
  }
  func.func @transform_5(%arg0: i32) -> (i32, i32) {
    %c0_i32 = arith.constant 0 : i32
    %c0_i32_0 = arith.constant 0 : i32
    %c0_i32_1 = arith.constant 0 : i32
    return %c0_i32, %c0_i32_0 : i32, i32
  }
  func.func @transform_6(%arg0: i32) -> (i32, i32, i32, i32) {
    %c0_i32 = arith.constant 0 : i32
    %c0_i32_0 = arith.constant 0 : i32
    %c0_i32_1 = arith.constant 0 : i32
    %c0_i32_2 = arith.constant 0 : i32
    return %arg0, %c0_i32, %c0_i32_0, %c0_i32_1 : i32, i32, i32, i32
  }
}

module attributes {stable_mosaic.version = 11 : i64} {
  func.func @_conv_kernel(%arg0: i32, %arg1: memref<1x56x16xbf16, #tpu.memory_space<vmem>>, %arg2: memref<1x1x16xf32, #tpu.memory_space<vmem>>, %arg3: memref<144x16xbf16, #tpu.memory_space<vmem>>, %arg4: memref<1x4x4x16xbf16, #tpu.memory_space<vmem>>) attributes {dimension_semantics = [#tpu.dimension_semantics<parallel>], iteration_bounds = array<i64: 2>, scalar_prefetch = 0 : i64, scratch_operands = 0 : i64, tpu.core_type = #tpu.core_type<tc>, window_params = [{transform_indices = @transform_0, window_bounds = array<i64: 1, 56, 16>}, {transform_indices = @transform_1, window_bounds = array<i64: 1, 1, 16>}, {pipeline_mode = #tpu.pipeline_mode<synchronous>, transform_indices = @transform_2, window_bounds = array<i64: 144, 16>}, {transform_indices = @transform_3, window_bounds = array<i64: 1, 4, 4, 16>}]} {
    %c0 = arith.constant 0 : index
    %c0_0 = arith.constant 0 : index
    %c0_1 = arith.constant 0 : index
    %0 = vector.load %arg1[%c0, %c0_0, %c0_1] : memref<1x56x16xbf16, #tpu.memory_space<vmem>>, vector<1x56x16xbf16>
    %1 = vector.shape_cast %0 : vector<1x56x16xbf16> to vector<56x16xbf16>
    %2 = arith.extf %1 : vector<56x16xbf16> to vector<56x16xf32>
    %c0_2 = arith.constant 0 : index
    %c0_3 = arith.constant 0 : index
    %c0_4 = arith.constant 0 : index
    %3 = vector.load %arg2[%c0_2, %c0_3, %c0_4] : memref<1x1x16xf32, #tpu.memory_space<vmem>>, vector<1x1x16xf32>
    %4 = vector.shape_cast %3 : vector<1x1x16xf32> to vector<1x16xf32>
    %5 = vector.extract_strided_slice %2 {offsets = [0, 0], sizes = [48, 16], strides = [1, 1]} : vector<56x16xf32> to vector<48x16xf32>
    %6 = vector.shape_cast %5 : vector<48x16xf32> to vector<6x8x16xf32>
    %7 = vector.extract_strided_slice %6 {offsets = [1, 0, 0], sizes = [4, 8, 16], strides = [1, 1, 1]} : vector<6x8x16xf32> to vector<4x8x16xf32>
    %cst = arith.constant dense<0.000000e+00> : vector<8x16xf32>
    %8 = vector.multi_reduction <add>, %7, %cst [0] : vector<4x8x16xf32> to vector<8x16xf32>
    %9 = vector.extract_strided_slice %8 {offsets = [1, 0], sizes = [4, 16], strides = [1, 1]} : vector<8x16xf32> to vector<4x16xf32>
    %cst_5 = arith.constant dense<0.000000e+00> : vector<16xf32>
    %10 = vector.multi_reduction <add>, %9, %cst_5 [0] : vector<4x16xf32> to vector<16xf32>
    %11 = vector.shape_cast %10 : vector<16xf32> to vector<1x16xf32>
    %cst_6 = arith.constant 6.250000e-02 : f32
    %12 = vector.broadcast %cst_6 : f32 to vector<1x16xf32>
    %13 = arith.mulf %11, %12 : vector<1x16xf32>
    %14 = vector.extract_strided_slice %6 {offsets = [1, 0, 0], sizes = [4, 8, 16], strides = [1, 1, 1]} : vector<6x8x16xf32> to vector<4x8x16xf32>
    %15 = vector.shape_cast %13 : vector<1x16xf32> to vector<1x1x16xf32>
    %16 = vector.broadcast %15 : vector<1x1x16xf32> to vector<4x8x16xf32>
    %17 = arith.subf %14, %16 : vector<4x8x16xf32>
    %18 = arith.mulf %17, %17 : vector<4x8x16xf32>
    %cst_7 = arith.constant dense<0.000000e+00> : vector<8x16xf32>
    %19 = vector.multi_reduction <add>, %18, %cst_7 [0] : vector<4x8x16xf32> to vector<8x16xf32>
    %20 = vector.extract_strided_slice %19 {offsets = [1, 0], sizes = [4, 16], strides = [1, 1]} : vector<8x16xf32> to vector<4x16xf32>
    %cst_8 = arith.constant dense<0.000000e+00> : vector<16xf32>
    %21 = vector.multi_reduction <add>, %20, %cst_8 [0] : vector<4x16xf32> to vector<16xf32>
    %22 = vector.shape_cast %21 : vector<16xf32> to vector<1x16xf32>
    %cst_9 = arith.constant 6.250000e-02 : f32
    %23 = vector.broadcast %cst_9 : f32 to vector<1x16xf32>
    %24 = arith.mulf %22, %23 : vector<1x16xf32>
    %25 = vector.broadcast %13 : vector<1x16xf32> to vector<56x16xf32>
    %26 = arith.subf %2, %25 : vector<56x16xf32>
    %cst_10 = arith.constant 9.99999974E-6 : f32
    %27 = vector.broadcast %cst_10 : f32 to vector<1x16xf32>
    %28 = arith.addf %24, %27 : vector<1x16xf32>
    %29 = math.rsqrt %28 : vector<1x16xf32>
    %30 = vector.broadcast %29 : vector<1x16xf32> to vector<56x16xf32>
    %31 = arith.mulf %26, %30 : vector<56x16xf32>
    %32 = vector.broadcast %4 : vector<1x16xf32> to vector<56x16xf32>
    %33 = arith.addf %31, %32 : vector<56x16xf32>
    %cst_11 = arith.constant 0.000000e+00 : f32
    %34 = vector.broadcast %cst_11 : f32 to vector<56x16xf32>
    %35 = arith.cmpf oge, %33, %34 : vector<56x16xf32>
    %cst_12 = arith.constant 2.000000e-01 : f32
    %36 = vector.broadcast %cst_12 : f32 to vector<56x16xf32>
    %37 = arith.mulf %36, %33 : vector<56x16xf32>
    %38 = arith.select %35, %33, %37 : vector<56x16xi1>, vector<56x16xf32>
    %39 = arith.truncf %38 : vector<56x16xf32> to vector<56x16xbf16>
    %40 = vector.extract_strided_slice %39 {offsets = [0, 0], sizes = [32, 16], strides = [1, 1]} : vector<56x16xbf16> to vector<32x16xbf16>
    %41 = vector.extract_strided_slice %39 {offsets = [1, 0], sizes = [32, 16], strides = [1, 1]} : vector<56x16xbf16> to vector<32x16xbf16>
    %42 = vector.extract_strided_slice %39 {offsets = [2, 0], sizes = [32, 16], strides = [1, 1]} : vector<56x16xbf16> to vector<32x16xbf16>
    %43 = vector.extract_strided_slice %39 {offsets = [8, 0], sizes = [32, 16], strides = [1, 1]} : vector<56x16xbf16> to vector<32x16xbf16>
    %44 = vector.extract_strided_slice %39 {offsets = [9, 0], sizes = [32, 16], strides = [1, 1]} : vector<56x16xbf16> to vector<32x16xbf16>
    %45 = vector.extract_strided_slice %39 {offsets = [10, 0], sizes = [32, 16], strides = [1, 1]} : vector<56x16xbf16> to vector<32x16xbf16>
    %46 = vector.extract_strided_slice %39 {offsets = [16, 0], sizes = [32, 16], strides = [1, 1]} : vector<56x16xbf16> to vector<32x16xbf16>
    %47 = vector.extract_strided_slice %39 {offsets = [17, 0], sizes = [32, 16], strides = [1, 1]} : vector<56x16xbf16> to vector<32x16xbf16>
    %48 = vector.extract_strided_slice %39 {offsets = [18, 0], sizes = [32, 16], strides = [1, 1]} : vector<56x16xbf16> to vector<32x16xbf16>
    %49 = tpu.concatenate %40, %41, %42, %43, %44, %45, %46, %47, %48 in 1 : vector<32x16xbf16>, vector<32x16xbf16>, vector<32x16xbf16>, vector<32x16xbf16>, vector<32x16xbf16>, vector<32x16xbf16>, vector<32x16xbf16>, vector<32x16xbf16>, vector<32x16xbf16> -> vector<32x144xbf16>
    %c0_13 = arith.constant 0 : index
    %c0_14 = arith.constant 0 : index
    %50 = vector.load %arg3[%c0_13, %c0_14] : memref<144x16xbf16, #tpu.memory_space<vmem>>, vector<144x16xbf16>
    %cst_15 = arith.constant dense<0.000000e+00> : vector<32x16xf32>
    %51 = tpu.matmul %49, %50, %cst_15 {dimension_numbers = #tpu.dot_dimension_numbers<[1], [0], [0], [1], [0, 0, 1, 1], [], []>} : vector<32x144xbf16>, vector<144x16xbf16>, vector<32x16xf32> -> vector<32x16xf32>
    %52 = vector.shape_cast %51 : vector<32x16xf32> to vector<4x8x16xf32>
    %53 = vector.extract_strided_slice %52 {offsets = [0, 0, 0], sizes = [4, 4, 16], strides = [1, 1, 1]} : vector<4x8x16xf32> to vector<4x4x16xf32>
    %54 = arith.truncf %53 : vector<4x4x16xf32> to vector<4x4x16xbf16>
    %c0_16 = arith.constant 0 : index
    %c0_17 = arith.constant 0 : index
    %c0_18 = arith.constant 0 : index
    %c0_19 = arith.constant 0 : index
    %55 = vector.load %arg4[%c0_16, %c0_17, %c0_18, %c0_19] : memref<1x4x4x16xbf16, #tpu.memory_space<vmem>>, vector<1x4x4x16xbf16>
    %56 = vector.shape_cast %55 : vector<1x4x4x16xbf16> to vector<4x4x16xbf16>
    %57 = vector.shape_cast %54 : vector<4x4x16xbf16> to vector<1x4x4x16xbf16>
    tpu.vector_store %arg4[%c0_16, %c0_17, %c0_18, %c0_19], %57 {strides = array<i32>} : memref<1x4x4x16xbf16, #tpu.memory_space<vmem>>, vector<1x4x4x16xbf16>,
    return
  }
  func.func @transform_0(%arg0: i32) -> (i32, i32, i32) {
    %c0_i32 = arith.constant 0 : i32
    %c0_i32_0 = arith.constant 0 : i32
    %c0_i32_1 = arith.constant 0 : i32
    return %arg0, %c0_i32, %c0_i32_0 : i32, i32, i32
  }
  func.func @transform_1(%arg0: i32) -> (i32, i32, i32) {
    %c0_i32 = arith.constant 0 : i32
    %c0_i32_0 = arith.constant 0 : i32
    %c0_i32_1 = arith.constant 0 : i32
    return %arg0, %c0_i32, %c0_i32_0 : i32, i32, i32
  }
  func.func @transform_2(%arg0: i32) -> (i32, i32) {
    %c0_i32 = arith.constant 0 : i32
    %c0_i32_0 = arith.constant 0 : i32
    %c0_i32_1 = arith.constant 0 : i32
    return %c0_i32, %c0_i32_0 : i32, i32
  }
  func.func @transform_3(%arg0: i32) -> (i32, i32, i32, i32) {
    %c0_i32 = arith.constant 0 : i32
    %c0_i32_0 = arith.constant 0 : i32
    %c0_i32_1 = arith.constant 0 : i32
    %c0_i32_2 = arith.constant 0 : i32
    return %arg0, %c0_i32, %c0_i32_0, %c0_i32_1 : i32, i32, i32, i32
  }
}

module attributes {stable_mosaic.version = 11 : i64} {
  func.func @_conv_kernel(%arg0: i32, %arg1: memref<1x16x32xbf16, #tpu.memory_space<vmem>>, %arg2: memref<32x1xbf16, #tpu.memory_space<vmem>>, %arg3: memref<1x1xf32, #tpu.memory_space<vmem>>, %arg4: memref<1x2x2x1xf32, #tpu.memory_space<vmem>>) attributes {dimension_semantics = [#tpu.dimension_semantics<parallel>], iteration_bounds = array<i64: 2>, scalar_prefetch = 0 : i64, scratch_operands = 0 : i64, tpu.core_type = #tpu.core_type<tc>, window_params = [{transform_indices = @transform_0, window_bounds = array<i64: 1, 16, 32>}, {pipeline_mode = #tpu.pipeline_mode<synchronous>, transform_indices = @transform_1, window_bounds = array<i64: 32, 1>}, {pipeline_mode = #tpu.pipeline_mode<synchronous>, transform_indices = @transform_2, window_bounds = array<i64: 1, 1>}, {transform_indices = @transform_3, window_bounds = array<i64: 1, 2, 2, 1>}]} {
    %c0 = arith.constant 0 : index
    %c0_0 = arith.constant 0 : index
    %c0_1 = arith.constant 0 : index
    %0 = vector.load %arg1[%c0, %c0_0, %c0_1] : memref<1x16x32xbf16, #tpu.memory_space<vmem>>, vector<1x16x32xbf16>
    %1 = vector.shape_cast %0 : vector<1x16x32xbf16> to vector<16x32xbf16>
    %c0_2 = arith.constant 0 : index
    %c0_3 = arith.constant 0 : index
    %2 = vector.load %arg2[%c0_2, %c0_3] : memref<32x1xbf16, #tpu.memory_space<vmem>>, vector<32x1xbf16>
    %cst = arith.constant dense<0.000000e+00> : vector<16x1xf32>
    %3 = tpu.matmul %1, %2, %cst {dimension_numbers = #tpu.dot_dimension_numbers<[1], [0], [0], [1], [0, 0, 1, 1], [], []>} : vector<16x32xbf16>, vector<32x1xbf16>, vector<16x1xf32> -> vector<16x1xf32>
    %c0_4 = arith.constant 0 : index
    %c0_5 = arith.constant 0 : index
    %4 = vector.load %arg3[%c0_4, %c0_5] : memref<1x1xf32, #tpu.memory_space<vmem>>, vector<1x1xf32>
    %5 = vector.broadcast %4 : vector<1x1xf32> to vector<16x1xf32>
    %6 = arith.addf %3, %5 : vector<16x1xf32>
    %7 = vector.shape_cast %6 : vector<16x1xf32> to vector<2x8x1xf32>
    %8 = vector.extract_strided_slice %7 {offsets = [0, 0, 0], sizes = [2, 2, 1], strides = [1, 1, 1]} : vector<2x8x1xf32> to vector<2x2x1xf32>
    %c0_6 = arith.constant 0 : index
    %c0_7 = arith.constant 0 : index
    %c0_8 = arith.constant 0 : index
    %c0_9 = arith.constant 0 : index
    %9 = vector.load %arg4[%c0_6, %c0_7, %c0_8, %c0_9] : memref<1x2x2x1xf32, #tpu.memory_space<vmem>>, vector<1x2x2x1xf32>
    %10 = vector.shape_cast %9 : vector<1x2x2x1xf32> to vector<2x2x1xf32>
    %11 = vector.shape_cast %8 : vector<2x2x1xf32> to vector<1x2x2x1xf32>
    tpu.vector_store %arg4[%c0_6, %c0_7, %c0_8, %c0_9], %11 {strides = array<i32>} : memref<1x2x2x1xf32, #tpu.memory_space<vmem>>, vector<1x2x2x1xf32>,
    return
  }
  func.func @transform_0(%arg0: i32) -> (i32, i32, i32) {
    %c0_i32 = arith.constant 0 : i32
    %c0_i32_0 = arith.constant 0 : i32
    %c0_i32_1 = arith.constant 0 : i32
    return %arg0, %c0_i32, %c0_i32_0 : i32, i32, i32
  }
  func.func @transform_1(%arg0: i32) -> (i32, i32) {
    %c0_i32 = arith.constant 0 : i32
    %c0_i32_0 = arith.constant 0 : i32
    %c0_i32_1 = arith.constant 0 : i32
    return %c0_i32, %c0_i32_0 : i32, i32
  }
  func.func @transform_2(%arg0: i32) -> (i32, i32) {
    %c0_i32 = arith.constant 0 : i32
    %c0_i32_0 = arith.constant 0 : i32
    %c0_i32_1 = arith.constant 0 : i32
    return %c0_i32, %c0_i32_0 : i32, i32
  }
  func.func @transform_3(%arg0: i32) -> (i32, i32, i32, i32) {
    %c0_i32 = arith.constant 0 : i32
    %c0_i32_0 = arith.constant 0 : i32
    %c0_i32_1 = arith.constant 0 : i32
    %c0_i32_2 = arith.constant 0 : i32
    return %arg0, %c0_i32, %c0_i32_0, %c0_i32_1 : i32, i32, i32, i32
  }
}

module attributes {stable_mosaic.version = 11 : i64} {
  func.func @_block_tail_kernel(%arg0: i32, %arg1: memref<1x32x64xbf16, #tpu.memory_space<vmem>>, %arg2: memref<1x1x64xf32, #tpu.memory_space<vmem>>, %arg3: memref<256x32xbf16, #tpu.memory_space<vmem>>, %arg4: memref<1x16x64xbf16, #tpu.memory_space<vmem>>, %arg5: memref<64x32xbf16, #tpu.memory_space<vmem>>, %arg6: memref<1x32xf32, #tpu.memory_space<vmem>>, %arg7: memref<1x2x2x32xbf16, #tpu.memory_space<vmem>>) attributes {dimension_semantics = [#tpu.dimension_semantics<parallel>], iteration_bounds = array<i64: 2>, scalar_prefetch = 0 : i64, scratch_operands = 0 : i64, tpu.core_type = #tpu.core_type<tc>, window_params = [{transform_indices = @transform_0, window_bounds = array<i64: 1, 32, 64>}, {transform_indices = @transform_1, window_bounds = array<i64: 1, 1, 64>}, {pipeline_mode = #tpu.pipeline_mode<synchronous>, transform_indices = @transform_2, window_bounds = array<i64: 256, 32>}, {transform_indices = @transform_3, window_bounds = array<i64: 1, 16, 64>}, {pipeline_mode = #tpu.pipeline_mode<synchronous>, transform_indices = @transform_4, window_bounds = array<i64: 64, 32>}, {pipeline_mode = #tpu.pipeline_mode<synchronous>, transform_indices = @transform_5, window_bounds = array<i64: 1, 32>}, {transform_indices = @transform_6, window_bounds = array<i64: 1, 2, 2, 32>}]} {
    %c0 = arith.constant 0 : index
    %c0_0 = arith.constant 0 : index
    %c0_1 = arith.constant 0 : index
    %0 = vector.load %arg1[%c0, %c0_0, %c0_1] : memref<1x32x64xbf16, #tpu.memory_space<vmem>>, vector<1x32x64xbf16>
    %1 = vector.shape_cast %0 : vector<1x32x64xbf16> to vector<32x64xbf16>
    %2 = arith.extf %1 : vector<32x64xbf16> to vector<32x64xf32>
    %c0_2 = arith.constant 0 : index
    %c0_3 = arith.constant 0 : index
    %c0_4 = arith.constant 0 : index
    %3 = vector.load %arg2[%c0_2, %c0_3, %c0_4] : memref<1x1x64xf32, #tpu.memory_space<vmem>>, vector<1x1x64xf32>
    %4 = vector.shape_cast %3 : vector<1x1x64xf32> to vector<1x64xf32>
    %5 = vector.extract_strided_slice %2 {offsets = [0, 0], sizes = [24, 64], strides = [1, 1]} : vector<32x64xf32> to vector<24x64xf32>
    %6 = vector.shape_cast %5 : vector<24x64xf32> to vector<3x8x64xf32>
    %7 = vector.extract_strided_slice %6 {offsets = [1, 0, 0], sizes = [2, 8, 64], strides = [1, 1, 1]} : vector<3x8x64xf32> to vector<2x8x64xf32>
    %cst = arith.constant dense<0.000000e+00> : vector<8x64xf32>
    %8 = vector.multi_reduction <add>, %7, %cst [0] : vector<2x8x64xf32> to vector<8x64xf32>
    %9 = vector.extract_strided_slice %8 {offsets = [1, 0], sizes = [2, 64], strides = [1, 1]} : vector<8x64xf32> to vector<2x64xf32>
    %cst_5 = arith.constant dense<0.000000e+00> : vector<64xf32>
    %10 = vector.multi_reduction <add>, %9, %cst_5 [0] : vector<2x64xf32> to vector<64xf32>
    %11 = vector.shape_cast %10 : vector<64xf32> to vector<1x64xf32>
    %12 = vector.extract_strided_slice %11 {offsets = [0, 0], sizes = [1, 16], strides = [1, 1]} : vector<1x64xf32> to vector<1x16xf32>
    %13 = vector.extract_strided_slice %8 {offsets = [0, 0], sizes = [2, 64], strides = [1, 1]} : vector<8x64xf32> to vector<2x64xf32>
    %cst_6 = arith.constant dense<0.000000e+00> : vector<64xf32>
    %14 = vector.multi_reduction <add>, %13, %cst_6 [0] : vector<2x64xf32> to vector<64xf32>
    %15 = vector.shape_cast %14 : vector<64xf32> to vector<1x64xf32>
    %16 = vector.extract_strided_slice %15 {offsets = [0, 16], sizes = [1, 16], strides = [1, 1]} : vector<1x64xf32> to vector<1x16xf32>
    %17 = arith.addf %12, %16 : vector<1x16xf32>
    %18 = vector.extract_strided_slice %6 {offsets = [0, 0, 0], sizes = [2, 8, 64], strides = [1, 1, 1]} : vector<3x8x64xf32> to vector<2x8x64xf32>
    %cst_7 = arith.constant dense<0.000000e+00> : vector<8x64xf32>
    %19 = vector.multi_reduction <add>, %18, %cst_7 [0] : vector<2x8x64xf32> to vector<8x64xf32>
    %20 = vector.extract_strided_slice %19 {offsets = [1, 0], sizes = [2, 64], strides = [1, 1]} : vector<8x64xf32> to vector<2x64xf32>
    %cst_8 = arith.constant dense<0.000000e+00> : vector<64xf32>
    %21 = vector.multi_reduction <add>, %20, %cst_8 [0] : vector<2x64xf32> to vector<64xf32>
    %22 = vector.shape_cast %21 : vector<64xf32> to vector<1x64xf32>
    %23 = vector.extract_strided_slice %22 {offsets = [0, 32], sizes = [1, 16], strides = [1, 1]} : vector<1x64xf32> to vector<1x16xf32>
    %24 = arith.addf %17, %23 : vector<1x16xf32>
    %25 = vector.extract_strided_slice %19 {offsets = [0, 0], sizes = [2, 64], strides = [1, 1]} : vector<8x64xf32> to vector<2x64xf32>
    %cst_9 = arith.constant dense<0.000000e+00> : vector<64xf32>
    %26 = vector.multi_reduction <add>, %25, %cst_9 [0] : vector<2x64xf32> to vector<64xf32>
    %27 = vector.shape_cast %26 : vector<64xf32> to vector<1x64xf32>
    %28 = vector.extract_strided_slice %27 {offsets = [0, 48], sizes = [1, 16], strides = [1, 1]} : vector<1x64xf32> to vector<1x16xf32>
    %29 = arith.addf %24, %28 : vector<1x16xf32>
    %cst_10 = arith.constant 6.250000e-02 : f32
    %30 = vector.broadcast %cst_10 : f32 to vector<1x16xf32>
    %31 = arith.mulf %29, %30 : vector<1x16xf32>
    %32 = tpu.concatenate %31, %31, %31, %31 in 1 : vector<1x16xf32>, vector<1x16xf32>, vector<1x16xf32>, vector<1x16xf32> -> vector<1x64xf32>
    %33 = vector.extract_strided_slice %6 {offsets = [1, 0, 0], sizes = [2, 8, 64], strides = [1, 1, 1]} : vector<3x8x64xf32> to vector<2x8x64xf32>
    %34 = vector.shape_cast %32 : vector<1x64xf32> to vector<1x1x64xf32>
    %35 = vector.broadcast %34 : vector<1x1x64xf32> to vector<2x8x64xf32>
    %36 = arith.subf %33, %35 : vector<2x8x64xf32>
    %37 = arith.mulf %36, %36 : vector<2x8x64xf32>
    %cst_11 = arith.constant dense<0.000000e+00> : vector<8x64xf32>
    %38 = vector.multi_reduction <add>, %37, %cst_11 [0] : vector<2x8x64xf32> to vector<8x64xf32>
    %39 = vector.extract_strided_slice %38 {offsets = [1, 0], sizes = [2, 64], strides = [1, 1]} : vector<8x64xf32> to vector<2x64xf32>
    %cst_12 = arith.constant dense<0.000000e+00> : vector<64xf32>
    %40 = vector.multi_reduction <add>, %39, %cst_12 [0] : vector<2x64xf32> to vector<64xf32>
    %41 = vector.shape_cast %40 : vector<64xf32> to vector<1x64xf32>
    %42 = vector.extract_strided_slice %41 {offsets = [0, 0], sizes = [1, 16], strides = [1, 1]} : vector<1x64xf32> to vector<1x16xf32>
    %43 = vector.extract_strided_slice %38 {offsets = [0, 0], sizes = [2, 64], strides = [1, 1]} : vector<8x64xf32> to vector<2x64xf32>
    %cst_13 = arith.constant dense<0.000000e+00> : vector<64xf32>
    %44 = vector.multi_reduction <add>, %43, %cst_13 [0] : vector<2x64xf32> to vector<64xf32>
    %45 = vector.shape_cast %44 : vector<64xf32> to vector<1x64xf32>
    %46 = vector.extract_strided_slice %45 {offsets = [0, 16], sizes = [1, 16], strides = [1, 1]} : vector<1x64xf32> to vector<1x16xf32>
    %47 = arith.addf %42, %46 : vector<1x16xf32>
    %48 = vector.extract_strided_slice %6 {offsets = [0, 0, 0], sizes = [2, 8, 64], strides = [1, 1, 1]} : vector<3x8x64xf32> to vector<2x8x64xf32>
    %49 = vector.shape_cast %32 : vector<1x64xf32> to vector<1x1x64xf32>
    %50 = vector.broadcast %49 : vector<1x1x64xf32> to vector<2x8x64xf32>
    %51 = arith.subf %48, %50 : vector<2x8x64xf32>
    %52 = arith.mulf %51, %51 : vector<2x8x64xf32>
    %cst_14 = arith.constant dense<0.000000e+00> : vector<8x64xf32>
    %53 = vector.multi_reduction <add>, %52, %cst_14 [0] : vector<2x8x64xf32> to vector<8x64xf32>
    %54 = vector.extract_strided_slice %53 {offsets = [1, 0], sizes = [2, 64], strides = [1, 1]} : vector<8x64xf32> to vector<2x64xf32>
    %cst_15 = arith.constant dense<0.000000e+00> : vector<64xf32>
    %55 = vector.multi_reduction <add>, %54, %cst_15 [0] : vector<2x64xf32> to vector<64xf32>
    %56 = vector.shape_cast %55 : vector<64xf32> to vector<1x64xf32>
    %57 = vector.extract_strided_slice %56 {offsets = [0, 32], sizes = [1, 16], strides = [1, 1]} : vector<1x64xf32> to vector<1x16xf32>
    %58 = arith.addf %47, %57 : vector<1x16xf32>
    %59 = vector.extract_strided_slice %53 {offsets = [0, 0], sizes = [2, 64], strides = [1, 1]} : vector<8x64xf32> to vector<2x64xf32>
    %cst_16 = arith.constant dense<0.000000e+00> : vector<64xf32>
    %60 = vector.multi_reduction <add>, %59, %cst_16 [0] : vector<2x64xf32> to vector<64xf32>
    %61 = vector.shape_cast %60 : vector<64xf32> to vector<1x64xf32>
    %62 = vector.extract_strided_slice %61 {offsets = [0, 48], sizes = [1, 16], strides = [1, 1]} : vector<1x64xf32> to vector<1x16xf32>
    %63 = arith.addf %58, %62 : vector<1x16xf32>
    %cst_17 = arith.constant 6.250000e-02 : f32
    %64 = vector.broadcast %cst_17 : f32 to vector<1x16xf32>
    %65 = arith.mulf %63, %64 : vector<1x16xf32>
    %66 = tpu.concatenate %65, %65, %65, %65 in 1 : vector<1x16xf32>, vector<1x16xf32>, vector<1x16xf32>, vector<1x16xf32> -> vector<1x64xf32>
    %67 = vector.broadcast %32 : vector<1x64xf32> to vector<32x64xf32>
    %68 = arith.subf %2, %67 : vector<32x64xf32>
    %cst_18 = arith.constant 9.99999974E-6 : f32
    %69 = vector.broadcast %cst_18 : f32 to vector<1x64xf32>
    %70 = arith.addf %66, %69 : vector<1x64xf32>
    %71 = math.rsqrt %70 : vector<1x64xf32>
    %72 = vector.broadcast %71 : vector<1x64xf32> to vector<32x64xf32>
    %73 = arith.mulf %68, %72 : vector<32x64xf32>
    %74 = vector.broadcast %4 : vector<1x64xf32> to vector<32x64xf32>
    %75 = arith.addf %73, %74 : vector<32x64xf32>
    %cst_19 = arith.constant 0.000000e+00 : f32
    %76 = vector.broadcast %cst_19 : f32 to vector<32x64xf32>
    %77 = arith.cmpf oge, %75, %76 : vector<32x64xf32>
    %cst_20 = arith.constant 2.000000e-01 : f32
    %78 = vector.broadcast %cst_20 : f32 to vector<32x64xf32>
    %79 = arith.mulf %78, %75 : vector<32x64xf32>
    %80 = arith.select %77, %75, %79 : vector<32x64xi1>, vector<32x64xf32>
    %81 = arith.truncf %80 : vector<32x64xf32> to vector<32x64xbf16>
    %82 = vector.extract_strided_slice %81 {offsets = [0, 0], sizes = [16, 64], strides = [1, 1]} : vector<32x64xbf16> to vector<16x64xbf16>
    %83 = vector.extract_strided_slice %81 {offsets = [1, 0], sizes = [16, 64], strides = [1, 1]} : vector<32x64xbf16> to vector<16x64xbf16>
    %84 = vector.extract_strided_slice %81 {offsets = [8, 0], sizes = [16, 64], strides = [1, 1]} : vector<32x64xbf16> to vector<16x64xbf16>
    %85 = vector.extract_strided_slice %81 {offsets = [9, 0], sizes = [16, 64], strides = [1, 1]} : vector<32x64xbf16> to vector<16x64xbf16>
    %86 = tpu.concatenate %82, %83, %84, %85 in 1 : vector<16x64xbf16>, vector<16x64xbf16>, vector<16x64xbf16>, vector<16x64xbf16> -> vector<16x256xbf16>
    %c0_21 = arith.constant 0 : index
    %c0_22 = arith.constant 0 : index
    %87 = vector.load %arg3[%c0_21, %c0_22] : memref<256x32xbf16, #tpu.memory_space<vmem>>, vector<256x32xbf16>
    %cst_23 = arith.constant dense<0.000000e+00> : vector<16x32xf32>
    %88 = tpu.matmul %86, %87, %cst_23 {dimension_numbers = #tpu.dot_dimension_numbers<[1], [0], [0], [1], [0, 0, 1, 1], [], []>} : vector<16x256xbf16>, vector<256x32xbf16>, vector<16x32xf32> -> vector<16x32xf32>
    %c0_24 = arith.constant 0 : index
    %c0_25 = arith.constant 0 : index
    %c0_26 = arith.constant 0 : index
    %89 = vector.load %arg4[%c0_24, %c0_25, %c0_26] : memref<1x16x64xbf16, #tpu.memory_space<vmem>>, vector<1x16x64xbf16>
    %90 = vector.shape_cast %89 : vector<1x16x64xbf16> to vector<16x64xbf16>
    %c0_27 = arith.constant 0 : index
    %c0_28 = arith.constant 0 : index
    %91 = vector.load %arg5[%c0_27, %c0_28] : memref<64x32xbf16, #tpu.memory_space<vmem>>, vector<64x32xbf16>
    %cst_29 = arith.constant dense<0.000000e+00> : vector<16x32xf32>
    %92 = tpu.matmul %90, %91, %cst_29 {dimension_numbers = #tpu.dot_dimension_numbers<[1], [0], [0], [1], [0, 0, 1, 1], [], []>} : vector<16x64xbf16>, vector<64x32xbf16>, vector<16x32xf32> -> vector<16x32xf32>
    %93 = arith.addf %88, %92 : vector<16x32xf32>
    %c0_30 = arith.constant 0 : index
    %c0_31 = arith.constant 0 : index
    %94 = vector.load %arg6[%c0_30, %c0_31] : memref<1x32xf32, #tpu.memory_space<vmem>>, vector<1x32xf32>
    %95 = vector.broadcast %94 : vector<1x32xf32> to vector<16x32xf32>
    %96 = arith.addf %93, %95 : vector<16x32xf32>
    %97 = vector.shape_cast %96 : vector<16x32xf32> to vector<2x8x32xf32>
    %98 = vector.extract_strided_slice %97 {offsets = [0, 0, 0], sizes = [2, 2, 32], strides = [1, 1, 1]} : vector<2x8x32xf32> to vector<2x2x32xf32>
    %99 = arith.truncf %98 : vector<2x2x32xf32> to vector<2x2x32xbf16>
    %c0_32 = arith.constant 0 : index
    %c0_33 = arith.constant 0 : index
    %c0_34 = arith.constant 0 : index
    %c0_35 = arith.constant 0 : index
    %100 = vector.load %arg7[%c0_32, %c0_33, %c0_34, %c0_35] : memref<1x2x2x32xbf16, #tpu.memory_space<vmem>>, vector<1x2x2x32xbf16>
    %101 = vector.shape_cast %100 : vector<1x2x2x32xbf16> to vector<2x2x32xbf16>
    %102 = vector.shape_cast %99 : vector<2x2x32xbf16> to vector<1x2x2x32xbf16>
    tpu.vector_store %arg7[%c0_32, %c0_33, %c0_34, %c0_35], %102 {strides = array<i32>} : memref<1x2x2x32xbf16, #tpu.memory_space<vmem>>, vector<1x2x2x32xbf16>,
    return
  }
  func.func @transform_0(%arg0: i32) -> (i32, i32, i32) {
    %c0_i32 = arith.constant 0 : i32
    %c0_i32_0 = arith.constant 0 : i32
    %c0_i32_1 = arith.constant 0 : i32
    return %arg0, %c0_i32, %c0_i32_0 : i32, i32, i32
  }
  func.func @transform_1(%arg0: i32) -> (i32, i32, i32) {
    %c0_i32 = arith.constant 0 : i32
    %c0_i32_0 = arith.constant 0 : i32
    %c0_i32_1 = arith.constant 0 : i32
    return %arg0, %c0_i32, %c0_i32_0 : i32, i32, i32
  }
  func.func @transform_2(%arg0: i32) -> (i32, i32) {
    %c0_i32 = arith.constant 0 : i32
    %c0_i32_0 = arith.constant 0 : i32
    %c0_i32_1 = arith.constant 0 : i32
    return %c0_i32, %c0_i32_0 : i32, i32
  }
  func.func @transform_3(%arg0: i32) -> (i32, i32, i32) {
    %c0_i32 = arith.constant 0 : i32
    %c0_i32_0 = arith.constant 0 : i32
    %c0_i32_1 = arith.constant 0 : i32
    return %arg0, %c0_i32, %c0_i32_0 : i32, i32, i32
  }
  func.func @transform_4(%arg0: i32) -> (i32, i32) {
    %c0_i32 = arith.constant 0 : i32
    %c0_i32_0 = arith.constant 0 : i32
    %c0_i32_1 = arith.constant 0 : i32
    return %c0_i32, %c0_i32_0 : i32, i32
  }
  func.func @transform_5(%arg0: i32) -> (i32, i32) {
    %c0_i32 = arith.constant 0 : i32
    %c0_i32_0 = arith.constant 0 : i32
    %c0_i32_1 = arith.constant 0 : i32
    return %c0_i32, %c0_i32_0 : i32, i32
  }
  func.func @transform_6(%arg0: i32) -> (i32, i32, i32, i32) {
    %c0_i32 = arith.constant 0 : i32
    %c0_i32_0 = arith.constant 0 : i32
    %c0_i32_1 = arith.constant 0 : i32
    %c0_i32_2 = arith.constant 0 : i32
    return %arg0, %c0_i32, %c0_i32_0, %c0_i32_1 : i32, i32, i32, i32
  }
}

module attributes {stable_mosaic.version = 11 : i64} {
  func.func @_conv_kernel(%arg0: i32, %arg1: memref<1x48x12xbf16, #tpu.memory_space<vmem>>, %arg2: memref<48x4xbf16, #tpu.memory_space<vmem>>, %arg3: memref<1x4xf32, #tpu.memory_space<vmem>>, %arg4: memref<1x4x4x4xbf16, #tpu.memory_space<vmem>>) attributes {dimension_semantics = [#tpu.dimension_semantics<parallel>], iteration_bounds = array<i64: 2>, scalar_prefetch = 0 : i64, scratch_operands = 0 : i64, tpu.core_type = #tpu.core_type<tc>, window_params = [{transform_indices = @transform_0, window_bounds = array<i64: 1, 48, 12>}, {pipeline_mode = #tpu.pipeline_mode<synchronous>, transform_indices = @transform_1, window_bounds = array<i64: 48, 4>}, {pipeline_mode = #tpu.pipeline_mode<synchronous>, transform_indices = @transform_2, window_bounds = array<i64: 1, 4>}, {transform_indices = @transform_3, window_bounds = array<i64: 1, 4, 4, 4>}]} {
    %c0 = arith.constant 0 : index
    %c0_0 = arith.constant 0 : index
    %c0_1 = arith.constant 0 : index
    %0 = vector.load %arg1[%c0, %c0_0, %c0_1] : memref<1x48x12xbf16, #tpu.memory_space<vmem>>, vector<1x48x12xbf16>
    %1 = vector.shape_cast %0 : vector<1x48x12xbf16> to vector<48x12xbf16>
    %2 = vector.extract_strided_slice %1 {offsets = [0, 0], sizes = [32, 12], strides = [1, 1]} : vector<48x12xbf16> to vector<32x12xbf16>
    %3 = vector.extract_strided_slice %1 {offsets = [1, 0], sizes = [32, 12], strides = [1, 1]} : vector<48x12xbf16> to vector<32x12xbf16>
    %4 = vector.extract_strided_slice %1 {offsets = [8, 0], sizes = [32, 12], strides = [1, 1]} : vector<48x12xbf16> to vector<32x12xbf16>
    %5 = vector.extract_strided_slice %1 {offsets = [9, 0], sizes = [32, 12], strides = [1, 1]} : vector<48x12xbf16> to vector<32x12xbf16>
    %6 = tpu.concatenate %2, %3, %4, %5 in 1 : vector<32x12xbf16>, vector<32x12xbf16>, vector<32x12xbf16>, vector<32x12xbf16> -> vector<32x48xbf16>
    %c0_2 = arith.constant 0 : index
    %c0_3 = arith.constant 0 : index
    %7 = vector.load %arg2[%c0_2, %c0_3] : memref<48x4xbf16, #tpu.memory_space<vmem>>, vector<48x4xbf16>
    %cst = arith.constant dense<0.000000e+00> : vector<32x4xf32>
    %8 = tpu.matmul %6, %7, %cst {dimension_numbers = #tpu.dot_dimension_numbers<[1], [0], [0], [1], [0, 0, 1, 1], [], []>} : vector<32x48xbf16>, vector<48x4xbf16>, vector<32x4xf32> -> vector<32x4xf32>
    %c0_4 = arith.constant 0 : index
    %c0_5 = arith.constant 0 : index
    %9 = vector.load %arg3[%c0_4, %c0_5] : memref<1x4xf32, #tpu.memory_space<vmem>>, vector<1x4xf32>
    %10 = vector.broadcast %9 : vector<1x4xf32> to vector<32x4xf32>
    %11 = arith.addf %8, %10 : vector<32x4xf32>
    %12 = vector.shape_cast %11 : vector<32x4xf32> to vector<4x8x4xf32>
    %13 = vector.extract_strided_slice %12 {offsets = [0, 0, 0], sizes = [4, 4, 4], strides = [1, 1, 1]} : vector<4x8x4xf32> to vector<4x4x4xf32>
    %14 = arith.truncf %13 : vector<4x4x4xf32> to vector<4x4x4xbf16>
    %c0_6 = arith.constant 0 : index
    %c0_7 = arith.constant 0 : index
    %c0_8 = arith.constant 0 : index
    %c0_9 = arith.constant 0 : index
    %15 = vector.load %arg4[%c0_6, %c0_7, %c0_8, %c0_9] : memref<1x4x4x4xbf16, #tpu.memory_space<vmem>>, vector<1x4x4x4xbf16>
    %16 = vector.shape_cast %15 : vector<1x4x4x4xbf16> to vector<4x4x4xbf16>
    %17 = vector.shape_cast %14 : vector<4x4x4xbf16> to vector<1x4x4x4xbf16>
    tpu.vector_store %arg4[%c0_6, %c0_7, %c0_8, %c0_9], %17 {strides = array<i32>} : memref<1x4x4x4xbf16, #tpu.memory_space<vmem>>, vector<1x4x4x4xbf16>,
    return
  }
  func.func @transform_0(%arg0: i32) -> (i32, i32, i32) {
    %c0_i32 = arith.constant 0 : i32
    %c0_i32_0 = arith.constant 0 : i32
    %c0_i32_1 = arith.constant 0 : i32
    return %arg0, %c0_i32, %c0_i32_0 : i32, i32, i32
  }
  func.func @transform_1(%arg0: i32) -> (i32, i32) {
    %c0_i32 = arith.constant 0 : i32
    %c0_i32_0 = arith.constant 0 : i32
    %c0_i32_1 = arith.constant 0 : i32
    return %c0_i32, %c0_i32_0 : i32, i32
  }
  func.func @transform_2(%arg0: i32) -> (i32, i32) {
    %c0_i32 = arith.constant 0 : i32
    %c0_i32_0 = arith.constant 0 : i32
    %c0_i32_1 = arith.constant 0 : i32
    return %c0_i32, %c0_i32_0 : i32, i32
  }
  func.func @transform_3(%arg0: i32) -> (i32, i32, i32, i32) {
    %c0_i32 = arith.constant 0 : i32
    %c0_i32_0 = arith.constant 0 : i32
    %c0_i32_1 = arith.constant 0 : i32
    %c0_i32_2 = arith.constant 0 : i32
    return %arg0, %c0_i32, %c0_i32_0, %c0_i32_1 : i32, i32, i32, i32
  }
}

module attributes {stable_mosaic.version = 11 : i64} {
  func.func @_conv_kernel(%arg0: i32, %arg1: memref<1x56x4xbf16, #tpu.memory_space<vmem>>, %arg2: memref<1x1x4xf32, #tpu.memory_space<vmem>>, %arg3: memref<36x4xbf16, #tpu.memory_space<vmem>>, %arg4: memref<1x4x4x4xbf16, #tpu.memory_space<vmem>>) attributes {dimension_semantics = [#tpu.dimension_semantics<parallel>], iteration_bounds = array<i64: 2>, scalar_prefetch = 0 : i64, scratch_operands = 0 : i64, tpu.core_type = #tpu.core_type<tc>, window_params = [{transform_indices = @transform_0, window_bounds = array<i64: 1, 56, 4>}, {transform_indices = @transform_1, window_bounds = array<i64: 1, 1, 4>}, {pipeline_mode = #tpu.pipeline_mode<synchronous>, transform_indices = @transform_2, window_bounds = array<i64: 36, 4>}, {transform_indices = @transform_3, window_bounds = array<i64: 1, 4, 4, 4>}]} {
    %c0 = arith.constant 0 : index
    %c0_0 = arith.constant 0 : index
    %c0_1 = arith.constant 0 : index
    %0 = vector.load %arg1[%c0, %c0_0, %c0_1] : memref<1x56x4xbf16, #tpu.memory_space<vmem>>, vector<1x56x4xbf16>
    %1 = vector.shape_cast %0 : vector<1x56x4xbf16> to vector<56x4xbf16>
    %2 = arith.extf %1 : vector<56x4xbf16> to vector<56x4xf32>
    %c0_2 = arith.constant 0 : index
    %c0_3 = arith.constant 0 : index
    %c0_4 = arith.constant 0 : index
    %3 = vector.load %arg2[%c0_2, %c0_3, %c0_4] : memref<1x1x4xf32, #tpu.memory_space<vmem>>, vector<1x1x4xf32>
    %4 = vector.shape_cast %3 : vector<1x1x4xf32> to vector<1x4xf32>
    %5 = vector.extract_strided_slice %2 {offsets = [0, 0], sizes = [48, 4], strides = [1, 1]} : vector<56x4xf32> to vector<48x4xf32>
    %6 = vector.shape_cast %5 : vector<48x4xf32> to vector<6x8x4xf32>
    %7 = vector.extract_strided_slice %6 {offsets = [1, 0, 0], sizes = [4, 8, 4], strides = [1, 1, 1]} : vector<6x8x4xf32> to vector<4x8x4xf32>
    %cst = arith.constant dense<0.000000e+00> : vector<8x4xf32>
    %8 = vector.multi_reduction <add>, %7, %cst [0] : vector<4x8x4xf32> to vector<8x4xf32>
    %9 = vector.extract_strided_slice %8 {offsets = [1, 0], sizes = [4, 4], strides = [1, 1]} : vector<8x4xf32> to vector<4x4xf32>
    %cst_5 = arith.constant dense<0.000000e+00> : vector<4xf32>
    %10 = vector.multi_reduction <add>, %9, %cst_5 [0] : vector<4x4xf32> to vector<4xf32>
    %11 = vector.shape_cast %10 : vector<4xf32> to vector<1x4xf32>
    %cst_6 = arith.constant 6.250000e-02 : f32
    %12 = vector.broadcast %cst_6 : f32 to vector<1x4xf32>
    %13 = arith.mulf %11, %12 : vector<1x4xf32>
    %14 = vector.extract_strided_slice %6 {offsets = [1, 0, 0], sizes = [4, 8, 4], strides = [1, 1, 1]} : vector<6x8x4xf32> to vector<4x8x4xf32>
    %15 = vector.shape_cast %13 : vector<1x4xf32> to vector<1x1x4xf32>
    %16 = vector.broadcast %15 : vector<1x1x4xf32> to vector<4x8x4xf32>
    %17 = arith.subf %14, %16 : vector<4x8x4xf32>
    %18 = arith.mulf %17, %17 : vector<4x8x4xf32>
    %cst_7 = arith.constant dense<0.000000e+00> : vector<8x4xf32>
    %19 = vector.multi_reduction <add>, %18, %cst_7 [0] : vector<4x8x4xf32> to vector<8x4xf32>
    %20 = vector.extract_strided_slice %19 {offsets = [1, 0], sizes = [4, 4], strides = [1, 1]} : vector<8x4xf32> to vector<4x4xf32>
    %cst_8 = arith.constant dense<0.000000e+00> : vector<4xf32>
    %21 = vector.multi_reduction <add>, %20, %cst_8 [0] : vector<4x4xf32> to vector<4xf32>
    %22 = vector.shape_cast %21 : vector<4xf32> to vector<1x4xf32>
    %cst_9 = arith.constant 6.250000e-02 : f32
    %23 = vector.broadcast %cst_9 : f32 to vector<1x4xf32>
    %24 = arith.mulf %22, %23 : vector<1x4xf32>
    %25 = vector.broadcast %13 : vector<1x4xf32> to vector<56x4xf32>
    %26 = arith.subf %2, %25 : vector<56x4xf32>
    %cst_10 = arith.constant 9.99999974E-6 : f32
    %27 = vector.broadcast %cst_10 : f32 to vector<1x4xf32>
    %28 = arith.addf %24, %27 : vector<1x4xf32>
    %29 = math.rsqrt %28 : vector<1x4xf32>
    %30 = vector.broadcast %29 : vector<1x4xf32> to vector<56x4xf32>
    %31 = arith.mulf %26, %30 : vector<56x4xf32>
    %32 = vector.broadcast %4 : vector<1x4xf32> to vector<56x4xf32>
    %33 = arith.addf %31, %32 : vector<56x4xf32>
    %cst_11 = arith.constant 0.000000e+00 : f32
    %34 = vector.broadcast %cst_11 : f32 to vector<56x4xf32>
    %35 = arith.cmpf oge, %33, %34 : vector<56x4xf32>
    %cst_12 = arith.constant 2.000000e-01 : f32
    %36 = vector.broadcast %cst_12 : f32 to vector<56x4xf32>
    %37 = arith.mulf %36, %33 : vector<56x4xf32>
    %38 = arith.select %35, %33, %37 : vector<56x4xi1>, vector<56x4xf32>
    %39 = arith.truncf %38 : vector<56x4xf32> to vector<56x4xbf16>
    %40 = vector.extract_strided_slice %39 {offsets = [0, 0], sizes = [32, 4], strides = [1, 1]} : vector<56x4xbf16> to vector<32x4xbf16>
    %41 = vector.extract_strided_slice %39 {offsets = [1, 0], sizes = [32, 4], strides = [1, 1]} : vector<56x4xbf16> to vector<32x4xbf16>
    %42 = vector.extract_strided_slice %39 {offsets = [2, 0], sizes = [32, 4], strides = [1, 1]} : vector<56x4xbf16> to vector<32x4xbf16>
    %43 = vector.extract_strided_slice %39 {offsets = [8, 0], sizes = [32, 4], strides = [1, 1]} : vector<56x4xbf16> to vector<32x4xbf16>
    %44 = vector.extract_strided_slice %39 {offsets = [9, 0], sizes = [32, 4], strides = [1, 1]} : vector<56x4xbf16> to vector<32x4xbf16>
    %45 = vector.extract_strided_slice %39 {offsets = [10, 0], sizes = [32, 4], strides = [1, 1]} : vector<56x4xbf16> to vector<32x4xbf16>
    %46 = vector.extract_strided_slice %39 {offsets = [16, 0], sizes = [32, 4], strides = [1, 1]} : vector<56x4xbf16> to vector<32x4xbf16>
    %47 = vector.extract_strided_slice %39 {offsets = [17, 0], sizes = [32, 4], strides = [1, 1]} : vector<56x4xbf16> to vector<32x4xbf16>
    %48 = vector.extract_strided_slice %39 {offsets = [18, 0], sizes = [32, 4], strides = [1, 1]} : vector<56x4xbf16> to vector<32x4xbf16>
    %49 = tpu.concatenate %40, %41, %42, %43, %44, %45, %46, %47, %48 in 1 : vector<32x4xbf16>, vector<32x4xbf16>, vector<32x4xbf16>, vector<32x4xbf16>, vector<32x4xbf16>, vector<32x4xbf16>, vector<32x4xbf16>, vector<32x4xbf16>, vector<32x4xbf16> -> vector<32x36xbf16>
    %c0_13 = arith.constant 0 : index
    %c0_14 = arith.constant 0 : index
    %50 = vector.load %arg3[%c0_13, %c0_14] : memref<36x4xbf16, #tpu.memory_space<vmem>>, vector<36x4xbf16>
    %cst_15 = arith.constant dense<0.000000e+00> : vector<32x4xf32>
    %51 = tpu.matmul %49, %50, %cst_15 {dimension_numbers = #tpu.dot_dimension_numbers<[1], [0], [0], [1], [0, 0, 1, 1], [], []>} : vector<32x36xbf16>, vector<36x4xbf16>, vector<32x4xf32> -> vector<32x4xf32>
    %52 = vector.shape_cast %51 : vector<32x4xf32> to vector<4x8x4xf32>
    %53 = vector.extract_strided_slice %52 {offsets = [0, 0, 0], sizes = [4, 4, 4], strides = [1, 1, 1]} : vector<4x8x4xf32> to vector<4x4x4xf32>
    %54 = arith.truncf %53 : vector<4x4x4xf32> to vector<4x4x4xbf16>
    %c0_16 = arith.constant 0 : index
    %c0_17 = arith.constant 0 : index
    %c0_18 = arith.constant 0 : index
    %c0_19 = arith.constant 0 : index
    %55 = vector.load %arg4[%c0_16, %c0_17, %c0_18, %c0_19] : memref<1x4x4x4xbf16, #tpu.memory_space<vmem>>, vector<1x4x4x4xbf16>
    %56 = vector.shape_cast %55 : vector<1x4x4x4xbf16> to vector<4x4x4xbf16>
    %57 = vector.shape_cast %54 : vector<4x4x4xbf16> to vector<1x4x4x4xbf16>
    tpu.vector_store %arg4[%c0_16, %c0_17, %c0_18, %c0_19], %57 {strides = array<i32>} : memref<1x4x4x4xbf16, #tpu.memory_space<vmem>>, vector<1x4x4x4xbf16>,
    return
  }
  func.func @transform_0(%arg0: i32) -> (i32, i32, i32) {
    %c0_i32 = arith.constant 0 : i32
    %c0_i32_0 = arith.constant 0 : i32
    %c0_i32_1 = arith.constant 0 : i32
    return %arg0, %c0_i32, %c0_i32_0 : i32, i32, i32
  }
  func.func @transform_1(%arg0: i32) -> (i32, i32, i32) {
    %c0_i32 = arith.constant 0 : i32
    %c0_i32_0 = arith.constant 0 : i32
    %c0_i32_1 = arith.constant 0 : i32
    return %arg0, %c0_i32, %c0_i32_0 : i32, i32, i32
  }
  func.func @transform_2(%arg0: i32) -> (i32, i32) {
    %c0_i32 = arith.constant 0 : i32
    %c0_i32_0 = arith.constant 0 : i32
    %c0_i32_1 = arith.constant 0 : i32
    return %c0_i32, %c0_i32_0 : i32, i32
  }
  func.func @transform_3(%arg0: i32) -> (i32, i32, i32, i32) {
    %c0_i32 = arith.constant 0 : i32
    %c0_i32_0 = arith.constant 0 : i32
    %c0_i32_1 = arith.constant 0 : i32
    %c0_i32_2 = arith.constant 0 : i32
    return %arg0, %c0_i32, %c0_i32_0, %c0_i32_1 : i32, i32, i32, i32
  }
}

module attributes {stable_mosaic.version = 11 : i64} {
  func.func @_block_tail_kernel(%arg0: i32, %arg1: memref<1x32x16xbf16, #tpu.memory_space<vmem>>, %arg2: memref<1x1x16xf32, #tpu.memory_space<vmem>>, %arg3: memref<64x8xbf16, #tpu.memory_space<vmem>>, %arg4: memref<1x16x16xbf16, #tpu.memory_space<vmem>>, %arg5: memref<16x8xbf16, #tpu.memory_space<vmem>>, %arg6: memref<1x8xf32, #tpu.memory_space<vmem>>, %arg7: memref<1x2x2x8xbf16, #tpu.memory_space<vmem>>) attributes {dimension_semantics = [#tpu.dimension_semantics<parallel>], iteration_bounds = array<i64: 2>, scalar_prefetch = 0 : i64, scratch_operands = 0 : i64, tpu.core_type = #tpu.core_type<tc>, window_params = [{transform_indices = @transform_0, window_bounds = array<i64: 1, 32, 16>}, {transform_indices = @transform_1, window_bounds = array<i64: 1, 1, 16>}, {pipeline_mode = #tpu.pipeline_mode<synchronous>, transform_indices = @transform_2, window_bounds = array<i64: 64, 8>}, {transform_indices = @transform_3, window_bounds = array<i64: 1, 16, 16>}, {pipeline_mode = #tpu.pipeline_mode<synchronous>, transform_indices = @transform_4, window_bounds = array<i64: 16, 8>}, {pipeline_mode = #tpu.pipeline_mode<synchronous>, transform_indices = @transform_5, window_bounds = array<i64: 1, 8>}, {transform_indices = @transform_6, window_bounds = array<i64: 1, 2, 2, 8>}]} {
    %c0 = arith.constant 0 : index
    %c0_0 = arith.constant 0 : index
    %c0_1 = arith.constant 0 : index
    %0 = vector.load %arg1[%c0, %c0_0, %c0_1] : memref<1x32x16xbf16, #tpu.memory_space<vmem>>, vector<1x32x16xbf16>
    %1 = vector.shape_cast %0 : vector<1x32x16xbf16> to vector<32x16xbf16>
    %2 = arith.extf %1 : vector<32x16xbf16> to vector<32x16xf32>
    %c0_2 = arith.constant 0 : index
    %c0_3 = arith.constant 0 : index
    %c0_4 = arith.constant 0 : index
    %3 = vector.load %arg2[%c0_2, %c0_3, %c0_4] : memref<1x1x16xf32, #tpu.memory_space<vmem>>, vector<1x1x16xf32>
    %4 = vector.shape_cast %3 : vector<1x1x16xf32> to vector<1x16xf32>
    %5 = vector.extract_strided_slice %2 {offsets = [0, 0], sizes = [24, 16], strides = [1, 1]} : vector<32x16xf32> to vector<24x16xf32>
    %6 = vector.shape_cast %5 : vector<24x16xf32> to vector<3x8x16xf32>
    %7 = vector.extract_strided_slice %6 {offsets = [1, 0, 0], sizes = [2, 8, 16], strides = [1, 1, 1]} : vector<3x8x16xf32> to vector<2x8x16xf32>
    %cst = arith.constant dense<0.000000e+00> : vector<8x16xf32>
    %8 = vector.multi_reduction <add>, %7, %cst [0] : vector<2x8x16xf32> to vector<8x16xf32>
    %9 = vector.extract_strided_slice %8 {offsets = [1, 0], sizes = [2, 16], strides = [1, 1]} : vector<8x16xf32> to vector<2x16xf32>
    %cst_5 = arith.constant dense<0.000000e+00> : vector<16xf32>
    %10 = vector.multi_reduction <add>, %9, %cst_5 [0] : vector<2x16xf32> to vector<16xf32>
    %11 = vector.shape_cast %10 : vector<16xf32> to vector<1x16xf32>
    %12 = vector.extract_strided_slice %11 {offsets = [0, 0], sizes = [1, 4], strides = [1, 1]} : vector<1x16xf32> to vector<1x4xf32>
    %13 = vector.extract_strided_slice %8 {offsets = [0, 0], sizes = [2, 16], strides = [1, 1]} : vector<8x16xf32> to vector<2x16xf32>
    %cst_6 = arith.constant dense<0.000000e+00> : vector<16xf32>
    %14 = vector.multi_reduction <add>, %13, %cst_6 [0] : vector<2x16xf32> to vector<16xf32>
    %15 = vector.shape_cast %14 : vector<16xf32> to vector<1x16xf32>
    %16 = vector.extract_strided_slice %15 {offsets = [0, 4], sizes = [1, 4], strides = [1, 1]} : vector<1x16xf32> to vector<1x4xf32>
    %17 = arith.addf %12, %16 : vector<1x4xf32>
    %18 = vector.extract_strided_slice %6 {offsets = [0, 0, 0], sizes = [2, 8, 16], strides = [1, 1, 1]} : vector<3x8x16xf32> to vector<2x8x16xf32>
    %cst_7 = arith.constant dense<0.000000e+00> : vector<8x16xf32>
    %19 = vector.multi_reduction <add>, %18, %cst_7 [0] : vector<2x8x16xf32> to vector<8x16xf32>
    %20 = vector.extract_strided_slice %19 {offsets = [1, 0], sizes = [2, 16], strides = [1, 1]} : vector<8x16xf32> to vector<2x16xf32>
    %cst_8 = arith.constant dense<0.000000e+00> : vector<16xf32>
    %21 = vector.multi_reduction <add>, %20, %cst_8 [0] : vector<2x16xf32> to vector<16xf32>
    %22 = vector.shape_cast %21 : vector<16xf32> to vector<1x16xf32>
    %23 = vector.extract_strided_slice %22 {offsets = [0, 8], sizes = [1, 4], strides = [1, 1]} : vector<1x16xf32> to vector<1x4xf32>
    %24 = arith.addf %17, %23 : vector<1x4xf32>
    %25 = vector.extract_strided_slice %19 {offsets = [0, 0], sizes = [2, 16], strides = [1, 1]} : vector<8x16xf32> to vector<2x16xf32>
    %cst_9 = arith.constant dense<0.000000e+00> : vector<16xf32>
    %26 = vector.multi_reduction <add>, %25, %cst_9 [0] : vector<2x16xf32> to vector<16xf32>
    %27 = vector.shape_cast %26 : vector<16xf32> to vector<1x16xf32>
    %28 = vector.extract_strided_slice %27 {offsets = [0, 12], sizes = [1, 4], strides = [1, 1]} : vector<1x16xf32> to vector<1x4xf32>
    %29 = arith.addf %24, %28 : vector<1x4xf32>
    %cst_10 = arith.constant 6.250000e-02 : f32
    %30 = vector.broadcast %cst_10 : f32 to vector<1x4xf32>
    %31 = arith.mulf %29, %30 : vector<1x4xf32>
    %32 = tpu.concatenate %31, %31, %31, %31 in 1 : vector<1x4xf32>, vector<1x4xf32>, vector<1x4xf32>, vector<1x4xf32> -> vector<1x16xf32>
    %33 = vector.extract_strided_slice %6 {offsets = [1, 0, 0], sizes = [2, 8, 16], strides = [1, 1, 1]} : vector<3x8x16xf32> to vector<2x8x16xf32>
    %34 = vector.shape_cast %32 : vector<1x16xf32> to vector<1x1x16xf32>
    %35 = vector.broadcast %34 : vector<1x1x16xf32> to vector<2x8x16xf32>
    %36 = arith.subf %33, %35 : vector<2x8x16xf32>
    %37 = arith.mulf %36, %36 : vector<2x8x16xf32>
    %cst_11 = arith.constant dense<0.000000e+00> : vector<8x16xf32>
    %38 = vector.multi_reduction <add>, %37, %cst_11 [0] : vector<2x8x16xf32> to vector<8x16xf32>
    %39 = vector.extract_strided_slice %38 {offsets = [1, 0], sizes = [2, 16], strides = [1, 1]} : vector<8x16xf32> to vector<2x16xf32>
    %cst_12 = arith.constant dense<0.000000e+00> : vector<16xf32>
    %40 = vector.multi_reduction <add>, %39, %cst_12 [0] : vector<2x16xf32> to vector<16xf32>
    %41 = vector.shape_cast %40 : vector<16xf32> to vector<1x16xf32>
    %42 = vector.extract_strided_slice %41 {offsets = [0, 0], sizes = [1, 4], strides = [1, 1]} : vector<1x16xf32> to vector<1x4xf32>
    %43 = vector.extract_strided_slice %38 {offsets = [0, 0], sizes = [2, 16], strides = [1, 1]} : vector<8x16xf32> to vector<2x16xf32>
    %cst_13 = arith.constant dense<0.000000e+00> : vector<16xf32>
    %44 = vector.multi_reduction <add>, %43, %cst_13 [0] : vector<2x16xf32> to vector<16xf32>
    %45 = vector.shape_cast %44 : vector<16xf32> to vector<1x16xf32>
    %46 = vector.extract_strided_slice %45 {offsets = [0, 4], sizes = [1, 4], strides = [1, 1]} : vector<1x16xf32> to vector<1x4xf32>
    %47 = arith.addf %42, %46 : vector<1x4xf32>
    %48 = vector.extract_strided_slice %6 {offsets = [0, 0, 0], sizes = [2, 8, 16], strides = [1, 1, 1]} : vector<3x8x16xf32> to vector<2x8x16xf32>
    %49 = vector.shape_cast %32 : vector<1x16xf32> to vector<1x1x16xf32>
    %50 = vector.broadcast %49 : vector<1x1x16xf32> to vector<2x8x16xf32>
    %51 = arith.subf %48, %50 : vector<2x8x16xf32>
    %52 = arith.mulf %51, %51 : vector<2x8x16xf32>
    %cst_14 = arith.constant dense<0.000000e+00> : vector<8x16xf32>
    %53 = vector.multi_reduction <add>, %52, %cst_14 [0] : vector<2x8x16xf32> to vector<8x16xf32>
    %54 = vector.extract_strided_slice %53 {offsets = [1, 0], sizes = [2, 16], strides = [1, 1]} : vector<8x16xf32> to vector<2x16xf32>
    %cst_15 = arith.constant dense<0.000000e+00> : vector<16xf32>
    %55 = vector.multi_reduction <add>, %54, %cst_15 [0] : vector<2x16xf32> to vector<16xf32>
    %56 = vector.shape_cast %55 : vector<16xf32> to vector<1x16xf32>
    %57 = vector.extract_strided_slice %56 {offsets = [0, 8], sizes = [1, 4], strides = [1, 1]} : vector<1x16xf32> to vector<1x4xf32>
    %58 = arith.addf %47, %57 : vector<1x4xf32>
    %59 = vector.extract_strided_slice %53 {offsets = [0, 0], sizes = [2, 16], strides = [1, 1]} : vector<8x16xf32> to vector<2x16xf32>
    %cst_16 = arith.constant dense<0.000000e+00> : vector<16xf32>
    %60 = vector.multi_reduction <add>, %59, %cst_16 [0] : vector<2x16xf32> to vector<16xf32>
    %61 = vector.shape_cast %60 : vector<16xf32> to vector<1x16xf32>
    %62 = vector.extract_strided_slice %61 {offsets = [0, 12], sizes = [1, 4], strides = [1, 1]} : vector<1x16xf32> to vector<1x4xf32>
    %63 = arith.addf %58, %62 : vector<1x4xf32>
    %cst_17 = arith.constant 6.250000e-02 : f32
    %64 = vector.broadcast %cst_17 : f32 to vector<1x4xf32>
    %65 = arith.mulf %63, %64 : vector<1x4xf32>
    %66 = tpu.concatenate %65, %65, %65, %65 in 1 : vector<1x4xf32>, vector<1x4xf32>, vector<1x4xf32>, vector<1x4xf32> -> vector<1x16xf32>
    %67 = vector.broadcast %32 : vector<1x16xf32> to vector<32x16xf32>
    %68 = arith.subf %2, %67 : vector<32x16xf32>
    %cst_18 = arith.constant 9.99999974E-6 : f32
    %69 = vector.broadcast %cst_18 : f32 to vector<1x16xf32>
    %70 = arith.addf %66, %69 : vector<1x16xf32>
    %71 = math.rsqrt %70 : vector<1x16xf32>
    %72 = vector.broadcast %71 : vector<1x16xf32> to vector<32x16xf32>
    %73 = arith.mulf %68, %72 : vector<32x16xf32>
    %74 = vector.broadcast %4 : vector<1x16xf32> to vector<32x16xf32>
    %75 = arith.addf %73, %74 : vector<32x16xf32>
    %cst_19 = arith.constant 0.000000e+00 : f32
    %76 = vector.broadcast %cst_19 : f32 to vector<32x16xf32>
    %77 = arith.cmpf oge, %75, %76 : vector<32x16xf32>
    %cst_20 = arith.constant 2.000000e-01 : f32
    %78 = vector.broadcast %cst_20 : f32 to vector<32x16xf32>
    %79 = arith.mulf %78, %75 : vector<32x16xf32>
    %80 = arith.select %77, %75, %79 : vector<32x16xi1>, vector<32x16xf32>
    %81 = arith.truncf %80 : vector<32x16xf32> to vector<32x16xbf16>
    %82 = vector.extract_strided_slice %81 {offsets = [0, 0], sizes = [16, 16], strides = [1, 1]} : vector<32x16xbf16> to vector<16x16xbf16>
    %83 = vector.extract_strided_slice %81 {offsets = [1, 0], sizes = [16, 16], strides = [1, 1]} : vector<32x16xbf16> to vector<16x16xbf16>
    %84 = vector.extract_strided_slice %81 {offsets = [8, 0], sizes = [16, 16], strides = [1, 1]} : vector<32x16xbf16> to vector<16x16xbf16>
    %85 = vector.extract_strided_slice %81 {offsets = [9, 0], sizes = [16, 16], strides = [1, 1]} : vector<32x16xbf16> to vector<16x16xbf16>
    %86 = tpu.concatenate %82, %83, %84, %85 in 1 : vector<16x16xbf16>, vector<16x16xbf16>, vector<16x16xbf16>, vector<16x16xbf16> -> vector<16x64xbf16>
    %c0_21 = arith.constant 0 : index
    %c0_22 = arith.constant 0 : index
    %87 = vector.load %arg3[%c0_21, %c0_22] : memref<64x8xbf16, #tpu.memory_space<vmem>>, vector<64x8xbf16>
    %cst_23 = arith.constant dense<0.000000e+00> : vector<16x8xf32>
    %88 = tpu.matmul %86, %87, %cst_23 {dimension_numbers = #tpu.dot_dimension_numbers<[1], [0], [0], [1], [0, 0, 1, 1], [], []>} : vector<16x64xbf16>, vector<64x8xbf16>, vector<16x8xf32> -> vector<16x8xf32>
    %c0_24 = arith.constant 0 : index
    %c0_25 = arith.constant 0 : index
    %c0_26 = arith.constant 0 : index
    %89 = vector.load %arg4[%c0_24, %c0_25, %c0_26] : memref<1x16x16xbf16, #tpu.memory_space<vmem>>, vector<1x16x16xbf16>
    %90 = vector.shape_cast %89 : vector<1x16x16xbf16> to vector<16x16xbf16>
    %c0_27 = arith.constant 0 : index
    %c0_28 = arith.constant 0 : index
    %91 = vector.load %arg5[%c0_27, %c0_28] : memref<16x8xbf16, #tpu.memory_space<vmem>>, vector<16x8xbf16>
    %cst_29 = arith.constant dense<0.000000e+00> : vector<16x8xf32>
    %92 = tpu.matmul %90, %91, %cst_29 {dimension_numbers = #tpu.dot_dimension_numbers<[1], [0], [0], [1], [0, 0, 1, 1], [], []>} : vector<16x16xbf16>, vector<16x8xbf16>, vector<16x8xf32> -> vector<16x8xf32>
    %93 = arith.addf %88, %92 : vector<16x8xf32>
    %c0_30 = arith.constant 0 : index
    %c0_31 = arith.constant 0 : index
    %94 = vector.load %arg6[%c0_30, %c0_31] : memref<1x8xf32, #tpu.memory_space<vmem>>, vector<1x8xf32>
    %95 = vector.broadcast %94 : vector<1x8xf32> to vector<16x8xf32>
    %96 = arith.addf %93, %95 : vector<16x8xf32>
    %97 = vector.shape_cast %96 : vector<16x8xf32> to vector<2x8x8xf32>
    %98 = vector.extract_strided_slice %97 {offsets = [0, 0, 0], sizes = [2, 2, 8], strides = [1, 1, 1]} : vector<2x8x8xf32> to vector<2x2x8xf32>
    %99 = arith.truncf %98 : vector<2x2x8xf32> to vector<2x2x8xbf16>
    %c0_32 = arith.constant 0 : index
    %c0_33 = arith.constant 0 : index
    %c0_34 = arith.constant 0 : index
    %c0_35 = arith.constant 0 : index
    %100 = vector.load %arg7[%c0_32, %c0_33, %c0_34, %c0_35] : memref<1x2x2x8xbf16, #tpu.memory_space<vmem>>, vector<1x2x2x8xbf16>
    %101 = vector.shape_cast %100 : vector<1x2x2x8xbf16> to vector<2x2x8xbf16>
    %102 = vector.shape_cast %99 : vector<2x2x8xbf16> to vector<1x2x2x8xbf16>
    tpu.vector_store %arg7[%c0_32, %c0_33, %c0_34, %c0_35], %102 {strides = array<i32>} : memref<1x2x2x8xbf16, #tpu.memory_space<vmem>>, vector<1x2x2x8xbf16>,
    return
  }
  func.func @transform_0(%arg0: i32) -> (i32, i32, i32) {
    %c0_i32 = arith.constant 0 : i32
    %c0_i32_0 = arith.constant 0 : i32
    %c0_i32_1 = arith.constant 0 : i32
    return %arg0, %c0_i32, %c0_i32_0 : i32, i32, i32
  }
  func.func @transform_1(%arg0: i32) -> (i32, i32, i32) {
    %c0_i32 = arith.constant 0 : i32
    %c0_i32_0 = arith.constant 0 : i32
    %c0_i32_1 = arith.constant 0 : i32
    return %arg0, %c0_i32, %c0_i32_0 : i32, i32, i32
  }
  func.func @transform_2(%arg0: i32) -> (i32, i32) {
    %c0_i32 = arith.constant 0 : i32
    %c0_i32_0 = arith.constant 0 : i32
    %c0_i32_1 = arith.constant 0 : i32
    return %c0_i32, %c0_i32_0 : i32, i32
  }
  func.func @transform_3(%arg0: i32) -> (i32, i32, i32) {
    %c0_i32 = arith.constant 0 : i32
    %c0_i32_0 = arith.constant 0 : i32
    %c0_i32_1 = arith.constant 0 : i32
    return %arg0, %c0_i32, %c0_i32_0 : i32, i32, i32
  }
  func.func @transform_4(%arg0: i32) -> (i32, i32) {
    %c0_i32 = arith.constant 0 : i32
    %c0_i32_0 = arith.constant 0 : i32
    %c0_i32_1 = arith.constant 0 : i32
    return %c0_i32, %c0_i32_0 : i32, i32
  }
  func.func @transform_5(%arg0: i32) -> (i32, i32) {
    %c0_i32 = arith.constant 0 : i32
    %c0_i32_0 = arith.constant 0 : i32
    %c0_i32_1 = arith.constant 0 : i32
    return %c0_i32, %c0_i32_0 : i32, i32
  }
  func.func @transform_6(%arg0: i32) -> (i32, i32, i32, i32) {
    %c0_i32 = arith.constant 0 : i32
    %c0_i32_0 = arith.constant 0 : i32
    %c0_i32_1 = arith.constant 0 : i32
    %c0_i32_2 = arith.constant 0 : i32
    return %arg0, %c0_i32, %c0_i32_0, %c0_i32_1 : i32, i32, i32, i32
  }
}

module attributes {stable_mosaic.version = 11 : i64} {
  func.func @_conv_kernel(%arg0: i32, %arg1: memref<1x40x8xbf16, #tpu.memory_space<vmem>>, %arg2: memref<1x1x8xf32, #tpu.memory_space<vmem>>, %arg3: memref<72x8xbf16, #tpu.memory_space<vmem>>, %arg4: memref<1x2x2x8xbf16, #tpu.memory_space<vmem>>) attributes {dimension_semantics = [#tpu.dimension_semantics<parallel>], iteration_bounds = array<i64: 2>, scalar_prefetch = 0 : i64, scratch_operands = 0 : i64, tpu.core_type = #tpu.core_type<tc>, window_params = [{transform_indices = @transform_0, window_bounds = array<i64: 1, 40, 8>}, {transform_indices = @transform_1, window_bounds = array<i64: 1, 1, 8>}, {pipeline_mode = #tpu.pipeline_mode<synchronous>, transform_indices = @transform_2, window_bounds = array<i64: 72, 8>}, {transform_indices = @transform_3, window_bounds = array<i64: 1, 2, 2, 8>}]} {
    %c0 = arith.constant 0 : index
    %c0_0 = arith.constant 0 : index
    %c0_1 = arith.constant 0 : index
    %0 = vector.load %arg1[%c0, %c0_0, %c0_1] : memref<1x40x8xbf16, #tpu.memory_space<vmem>>, vector<1x40x8xbf16>
    %1 = vector.shape_cast %0 : vector<1x40x8xbf16> to vector<40x8xbf16>
    %2 = arith.extf %1 : vector<40x8xbf16> to vector<40x8xf32>
    %c0_2 = arith.constant 0 : index
    %c0_3 = arith.constant 0 : index
    %c0_4 = arith.constant 0 : index
    %3 = vector.load %arg2[%c0_2, %c0_3, %c0_4] : memref<1x1x8xf32, #tpu.memory_space<vmem>>, vector<1x1x8xf32>
    %4 = vector.shape_cast %3 : vector<1x1x8xf32> to vector<1x8xf32>
    %5 = vector.extract_strided_slice %2 {offsets = [0, 0], sizes = [32, 8], strides = [1, 1]} : vector<40x8xf32> to vector<32x8xf32>
    %6 = vector.shape_cast %5 : vector<32x8xf32> to vector<4x8x8xf32>
    %7 = vector.extract_strided_slice %6 {offsets = [1, 0, 0], sizes = [2, 8, 8], strides = [1, 1, 1]} : vector<4x8x8xf32> to vector<2x8x8xf32>
    %cst = arith.constant dense<0.000000e+00> : vector<8x8xf32>
    %8 = vector.multi_reduction <add>, %7, %cst [0] : vector<2x8x8xf32> to vector<8x8xf32>
    %9 = vector.extract_strided_slice %8 {offsets = [1, 0], sizes = [2, 8], strides = [1, 1]} : vector<8x8xf32> to vector<2x8xf32>
    %cst_5 = arith.constant dense<0.000000e+00> : vector<8xf32>
    %10 = vector.multi_reduction <add>, %9, %cst_5 [0] : vector<2x8xf32> to vector<8xf32>
    %11 = vector.shape_cast %10 : vector<8xf32> to vector<1x8xf32>
    %cst_6 = arith.constant 2.500000e-01 : f32
    %12 = vector.broadcast %cst_6 : f32 to vector<1x8xf32>
    %13 = arith.mulf %11, %12 : vector<1x8xf32>
    %14 = vector.extract_strided_slice %6 {offsets = [1, 0, 0], sizes = [2, 8, 8], strides = [1, 1, 1]} : vector<4x8x8xf32> to vector<2x8x8xf32>
    %15 = vector.shape_cast %13 : vector<1x8xf32> to vector<1x1x8xf32>
    %16 = vector.broadcast %15 : vector<1x1x8xf32> to vector<2x8x8xf32>
    %17 = arith.subf %14, %16 : vector<2x8x8xf32>
    %18 = arith.mulf %17, %17 : vector<2x8x8xf32>
    %cst_7 = arith.constant dense<0.000000e+00> : vector<8x8xf32>
    %19 = vector.multi_reduction <add>, %18, %cst_7 [0] : vector<2x8x8xf32> to vector<8x8xf32>
    %20 = vector.extract_strided_slice %19 {offsets = [1, 0], sizes = [2, 8], strides = [1, 1]} : vector<8x8xf32> to vector<2x8xf32>
    %cst_8 = arith.constant dense<0.000000e+00> : vector<8xf32>
    %21 = vector.multi_reduction <add>, %20, %cst_8 [0] : vector<2x8xf32> to vector<8xf32>
    %22 = vector.shape_cast %21 : vector<8xf32> to vector<1x8xf32>
    %cst_9 = arith.constant 2.500000e-01 : f32
    %23 = vector.broadcast %cst_9 : f32 to vector<1x8xf32>
    %24 = arith.mulf %22, %23 : vector<1x8xf32>
    %25 = vector.broadcast %13 : vector<1x8xf32> to vector<40x8xf32>
    %26 = arith.subf %2, %25 : vector<40x8xf32>
    %cst_10 = arith.constant 9.99999974E-6 : f32
    %27 = vector.broadcast %cst_10 : f32 to vector<1x8xf32>
    %28 = arith.addf %24, %27 : vector<1x8xf32>
    %29 = math.rsqrt %28 : vector<1x8xf32>
    %30 = vector.broadcast %29 : vector<1x8xf32> to vector<40x8xf32>
    %31 = arith.mulf %26, %30 : vector<40x8xf32>
    %32 = vector.broadcast %4 : vector<1x8xf32> to vector<40x8xf32>
    %33 = arith.addf %31, %32 : vector<40x8xf32>
    %cst_11 = arith.constant 0.000000e+00 : f32
    %34 = vector.broadcast %cst_11 : f32 to vector<40x8xf32>
    %35 = arith.cmpf oge, %33, %34 : vector<40x8xf32>
    %cst_12 = arith.constant 2.000000e-01 : f32
    %36 = vector.broadcast %cst_12 : f32 to vector<40x8xf32>
    %37 = arith.mulf %36, %33 : vector<40x8xf32>
    %38 = arith.select %35, %33, %37 : vector<40x8xi1>, vector<40x8xf32>
    %39 = arith.truncf %38 : vector<40x8xf32> to vector<40x8xbf16>
    %40 = vector.extract_strided_slice %39 {offsets = [0, 0], sizes = [16, 8], strides = [1, 1]} : vector<40x8xbf16> to vector<16x8xbf16>
    %41 = vector.extract_strided_slice %39 {offsets = [1, 0], sizes = [16, 8], strides = [1, 1]} : vector<40x8xbf16> to vector<16x8xbf16>
    %42 = vector.extract_strided_slice %39 {offsets = [2, 0], sizes = [16, 8], strides = [1, 1]} : vector<40x8xbf16> to vector<16x8xbf16>
    %43 = vector.extract_strided_slice %39 {offsets = [8, 0], sizes = [16, 8], strides = [1, 1]} : vector<40x8xbf16> to vector<16x8xbf16>
    %44 = vector.extract_strided_slice %39 {offsets = [9, 0], sizes = [16, 8], strides = [1, 1]} : vector<40x8xbf16> to vector<16x8xbf16>
    %45 = vector.extract_strided_slice %39 {offsets = [10, 0], sizes = [16, 8], strides = [1, 1]} : vector<40x8xbf16> to vector<16x8xbf16>
    %46 = vector.extract_strided_slice %39 {offsets = [16, 0], sizes = [16, 8], strides = [1, 1]} : vector<40x8xbf16> to vector<16x8xbf16>
    %47 = vector.extract_strided_slice %39 {offsets = [17, 0], sizes = [16, 8], strides = [1, 1]} : vector<40x8xbf16> to vector<16x8xbf16>
    %48 = vector.extract_strided_slice %39 {offsets = [18, 0], sizes = [16, 8], strides = [1, 1]} : vector<40x8xbf16> to vector<16x8xbf16>
    %49 = tpu.concatenate %40, %41, %42, %43, %44, %45, %46, %47, %48 in 1 : vector<16x8xbf16>, vector<16x8xbf16>, vector<16x8xbf16>, vector<16x8xbf16>, vector<16x8xbf16>, vector<16x8xbf16>, vector<16x8xbf16>, vector<16x8xbf16>, vector<16x8xbf16> -> vector<16x72xbf16>
    %c0_13 = arith.constant 0 : index
    %c0_14 = arith.constant 0 : index
    %50 = vector.load %arg3[%c0_13, %c0_14] : memref<72x8xbf16, #tpu.memory_space<vmem>>, vector<72x8xbf16>
    %cst_15 = arith.constant dense<0.000000e+00> : vector<16x8xf32>
    %51 = tpu.matmul %49, %50, %cst_15 {dimension_numbers = #tpu.dot_dimension_numbers<[1], [0], [0], [1], [0, 0, 1, 1], [], []>} : vector<16x72xbf16>, vector<72x8xbf16>, vector<16x8xf32> -> vector<16x8xf32>
    %52 = vector.shape_cast %51 : vector<16x8xf32> to vector<2x8x8xf32>
    %53 = vector.extract_strided_slice %52 {offsets = [0, 0, 0], sizes = [2, 2, 8], strides = [1, 1, 1]} : vector<2x8x8xf32> to vector<2x2x8xf32>
    %54 = arith.truncf %53 : vector<2x2x8xf32> to vector<2x2x8xbf16>
    %c0_16 = arith.constant 0 : index
    %c0_17 = arith.constant 0 : index
    %c0_18 = arith.constant 0 : index
    %c0_19 = arith.constant 0 : index
    %55 = vector.load %arg4[%c0_16, %c0_17, %c0_18, %c0_19] : memref<1x2x2x8xbf16, #tpu.memory_space<vmem>>, vector<1x2x2x8xbf16>
    %56 = vector.shape_cast %55 : vector<1x2x2x8xbf16> to vector<2x2x8xbf16>
    %57 = vector.shape_cast %54 : vector<2x2x8xbf16> to vector<1x2x2x8xbf16>
    tpu.vector_store %arg4[%c0_16, %c0_17, %c0_18, %c0_19], %57 {strides = array<i32>} : memref<1x2x2x8xbf16, #tpu.memory_space<vmem>>, vector<1x2x2x8xbf16>,
    return
  }
  func.func @transform_0(%arg0: i32) -> (i32, i32, i32) {
    %c0_i32 = arith.constant 0 : i32
    %c0_i32_0 = arith.constant 0 : i32
    %c0_i32_1 = arith.constant 0 : i32
    return %arg0, %c0_i32, %c0_i32_0 : i32, i32, i32
  }
  func.func @transform_1(%arg0: i32) -> (i32, i32, i32) {
    %c0_i32 = arith.constant 0 : i32
    %c0_i32_0 = arith.constant 0 : i32
    %c0_i32_1 = arith.constant 0 : i32
    return %arg0, %c0_i32, %c0_i32_0 : i32, i32, i32
  }
  func.func @transform_2(%arg0: i32) -> (i32, i32) {
    %c0_i32 = arith.constant 0 : i32
    %c0_i32_0 = arith.constant 0 : i32
    %c0_i32_1 = arith.constant 0 : i32
    return %c0_i32, %c0_i32_0 : i32, i32
  }
  func.func @transform_3(%arg0: i32) -> (i32, i32, i32, i32) {
    %c0_i32 = arith.constant 0 : i32
    %c0_i32_0 = arith.constant 0 : i32
    %c0_i32_1 = arith.constant 0 : i32
    %c0_i32_2 = arith.constant 0 : i32
    return %arg0, %c0_i32, %c0_i32_0, %c0_i32_1 : i32, i32, i32, i32
  }
}

module attributes {stable_mosaic.version = 11 : i64} {
  func.func @_conv_kernel(%arg0: i32, %arg1: memref<1x8x16xbf16, #tpu.memory_space<vmem>>, %arg2: memref<16x1xbf16, #tpu.memory_space<vmem>>, %arg3: memref<1x1xf32, #tpu.memory_space<vmem>>, %arg4: memref<1x1x1x1xf32, #tpu.memory_space<vmem>>) attributes {dimension_semantics = [#tpu.dimension_semantics<parallel>], iteration_bounds = array<i64: 2>, scalar_prefetch = 0 : i64, scratch_operands = 0 : i64, tpu.core_type = #tpu.core_type<tc>, window_params = [{transform_indices = @transform_0, window_bounds = array<i64: 1, 8, 16>}, {pipeline_mode = #tpu.pipeline_mode<synchronous>, transform_indices = @transform_1, window_bounds = array<i64: 16, 1>}, {pipeline_mode = #tpu.pipeline_mode<synchronous>, transform_indices = @transform_2, window_bounds = array<i64: 1, 1>}, {transform_indices = @transform_3, window_bounds = array<i64: 1, 1, 1, 1>}]} {
    %c0 = arith.constant 0 : index
    %c0_0 = arith.constant 0 : index
    %c0_1 = arith.constant 0 : index
    %0 = vector.load %arg1[%c0, %c0_0, %c0_1] : memref<1x8x16xbf16, #tpu.memory_space<vmem>>, vector<1x8x16xbf16>
    %1 = vector.shape_cast %0 : vector<1x8x16xbf16> to vector<8x16xbf16>
    %c0_2 = arith.constant 0 : index
    %c0_3 = arith.constant 0 : index
    %2 = vector.load %arg2[%c0_2, %c0_3] : memref<16x1xbf16, #tpu.memory_space<vmem>>, vector<16x1xbf16>
    %cst = arith.constant dense<0.000000e+00> : vector<8x1xf32>
    %3 = tpu.matmul %1, %2, %cst {dimension_numbers = #tpu.dot_dimension_numbers<[1], [0], [0], [1], [0, 0, 1, 1], [], []>} : vector<8x16xbf16>, vector<16x1xbf16>, vector<8x1xf32> -> vector<8x1xf32>
    %c0_4 = arith.constant 0 : index
    %c0_5 = arith.constant 0 : index
    %4 = vector.load %arg3[%c0_4, %c0_5] : memref<1x1xf32, #tpu.memory_space<vmem>>, vector<1x1xf32>
    %5 = vector.broadcast %4 : vector<1x1xf32> to vector<8x1xf32>
    %6 = arith.addf %3, %5 : vector<8x1xf32>
    %7 = vector.shape_cast %6 : vector<8x1xf32> to vector<1x8x1xf32>
    %8 = vector.extract_strided_slice %7 {offsets = [0, 0, 0], sizes = [1, 1, 1], strides = [1, 1, 1]} : vector<1x8x1xf32> to vector<1x1x1xf32>
    %c0_6 = arith.constant 0 : index
    %c0_7 = arith.constant 0 : index
    %c0_8 = arith.constant 0 : index
    %c0_9 = arith.constant 0 : index
    %9 = vector.load %arg4[%c0_6, %c0_7, %c0_8, %c0_9] : memref<1x1x1x1xf32, #tpu.memory_space<vmem>>, vector<1x1x1x1xf32>
    %10 = vector.shape_cast %9 : vector<1x1x1x1xf32> to vector<1x1x1xf32>
    %11 = vector.shape_cast %8 : vector<1x1x1xf32> to vector<1x1x1x1xf32>
    tpu.vector_store %arg4[%c0_6, %c0_7, %c0_8, %c0_9], %11 {strides = array<i32>} : memref<1x1x1x1xf32, #tpu.memory_space<vmem>>, vector<1x1x1x1xf32>,
    return
  }
  func.func @transform_0(%arg0: i32) -> (i32, i32, i32) {
    %c0_i32 = arith.constant 0 : i32
    %c0_i32_0 = arith.constant 0 : i32
    %c0_i32_1 = arith.constant 0 : i32
    return %arg0, %c0_i32, %c0_i32_0 : i32, i32, i32
  }
  func.func @transform_1(%arg0: i32) -> (i32, i32) {
    %c0_i32 = arith.constant 0 : i32
    %c0_i32_0 = arith.constant 0 : i32
    %c0_i32_1 = arith.constant 0 : i32
    return %c0_i32, %c0_i32_0 : i32, i32
  }
  func.func @transform_2(%arg0: i32) -> (i32, i32) {
    %c0_i32 = arith.constant 0 : i32
    %c0_i32_0 = arith.constant 0 : i32
    %c0_i32_1 = arith.constant 0 : i32
    return %c0_i32, %c0_i32_0 : i32, i32
  }
  func.func @transform_3(%arg0: i32) -> (i32, i32, i32, i32) {
    %c0_i32 = arith.constant 0 : i32
    %c0_i32_0 = arith.constant 0 : i32
    %c0_i32_1 = arith.constant 0 : i32
    %c0_i32_2 = arith.constant 0 : i32
    return %arg0, %c0_i32, %c0_i32_0, %c0_i32_1 : i32, i32, i32, i32
  }
}

module attributes {stable_mosaic.version = 11 : i64} {
  func.func @_block_tail_kernel(%arg0: i32, %arg1: memref<1x24x32xbf16, #tpu.memory_space<vmem>>, %arg2: memref<1x1x32xf32, #tpu.memory_space<vmem>>, %arg3: memref<128x16xbf16, #tpu.memory_space<vmem>>, %arg4: memref<1x8x32xbf16, #tpu.memory_space<vmem>>, %arg5: memref<32x16xbf16, #tpu.memory_space<vmem>>, %arg6: memref<1x16xf32, #tpu.memory_space<vmem>>, %arg7: memref<1x1x1x16xbf16, #tpu.memory_space<vmem>>) attributes {dimension_semantics = [#tpu.dimension_semantics<parallel>], iteration_bounds = array<i64: 2>, scalar_prefetch = 0 : i64, scratch_operands = 0 : i64, tpu.core_type = #tpu.core_type<tc>, window_params = [{transform_indices = @transform_0, window_bounds = array<i64: 1, 24, 32>}, {transform_indices = @transform_1, window_bounds = array<i64: 1, 1, 32>}, {pipeline_mode = #tpu.pipeline_mode<synchronous>, transform_indices = @transform_2, window_bounds = array<i64: 128, 16>}, {transform_indices = @transform_3, window_bounds = array<i64: 1, 8, 32>}, {pipeline_mode = #tpu.pipeline_mode<synchronous>, transform_indices = @transform_4, window_bounds = array<i64: 32, 16>}, {pipeline_mode = #tpu.pipeline_mode<synchronous>, transform_indices = @transform_5, window_bounds = array<i64: 1, 16>}, {transform_indices = @transform_6, window_bounds = array<i64: 1, 1, 1, 16>}]} {
    %c0 = arith.constant 0 : index
    %c0_0 = arith.constant 0 : index
    %c0_1 = arith.constant 0 : index
    %0 = vector.load %arg1[%c0, %c0_0, %c0_1] : memref<1x24x32xbf16, #tpu.memory_space<vmem>>, vector<1x24x32xbf16>
    %1 = vector.shape_cast %0 : vector<1x24x32xbf16> to vector<24x32xbf16>
    %2 = arith.extf %1 : vector<24x32xbf16> to vector<24x32xf32>
    %c0_2 = arith.constant 0 : index
    %c0_3 = arith.constant 0 : index
    %c0_4 = arith.constant 0 : index
    %3 = vector.load %arg2[%c0_2, %c0_3, %c0_4] : memref<1x1x32xf32, #tpu.memory_space<vmem>>, vector<1x1x32xf32>
    %4 = vector.shape_cast %3 : vector<1x1x32xf32> to vector<1x32xf32>
    %5 = vector.extract_strided_slice %2 {offsets = [0, 0], sizes = [16, 32], strides = [1, 1]} : vector<24x32xf32> to vector<16x32xf32>
    %6 = vector.shape_cast %5 : vector<16x32xf32> to vector<2x8x32xf32>
    %7 = vector.extract_strided_slice %6 {offsets = [1, 0, 0], sizes = [1, 8, 32], strides = [1, 1, 1]} : vector<2x8x32xf32> to vector<1x8x32xf32>
    %cst = arith.constant dense<0.000000e+00> : vector<8x32xf32>
    %8 = vector.multi_reduction <add>, %7, %cst [0] : vector<1x8x32xf32> to vector<8x32xf32>
    %9 = vector.extract_strided_slice %8 {offsets = [1, 0], sizes = [1, 32], strides = [1, 1]} : vector<8x32xf32> to vector<1x32xf32>
    %cst_5 = arith.constant dense<0.000000e+00> : vector<32xf32>
    %10 = vector.multi_reduction <add>, %9, %cst_5 [0] : vector<1x32xf32> to vector<32xf32>
    %11 = vector.shape_cast %10 : vector<32xf32> to vector<1x32xf32>
    %12 = vector.extract_strided_slice %11 {offsets = [0, 0], sizes = [1, 8], strides = [1, 1]} : vector<1x32xf32> to vector<1x8xf32>
    %13 = vector.extract_strided_slice %8 {offsets = [0, 0], sizes = [1, 32], strides = [1, 1]} : vector<8x32xf32> to vector<1x32xf32>
    %cst_6 = arith.constant dense<0.000000e+00> : vector<32xf32>
    %14 = vector.multi_reduction <add>, %13, %cst_6 [0] : vector<1x32xf32> to vector<32xf32>
    %15 = vector.shape_cast %14 : vector<32xf32> to vector<1x32xf32>
    %16 = vector.extract_strided_slice %15 {offsets = [0, 8], sizes = [1, 8], strides = [1, 1]} : vector<1x32xf32> to vector<1x8xf32>
    %17 = arith.addf %12, %16 : vector<1x8xf32>
    %18 = vector.extract_strided_slice %6 {offsets = [0, 0, 0], sizes = [1, 8, 32], strides = [1, 1, 1]} : vector<2x8x32xf32> to vector<1x8x32xf32>
    %cst_7 = arith.constant dense<0.000000e+00> : vector<8x32xf32>
    %19 = vector.multi_reduction <add>, %18, %cst_7 [0] : vector<1x8x32xf32> to vector<8x32xf32>
    %20 = vector.extract_strided_slice %19 {offsets = [1, 0], sizes = [1, 32], strides = [1, 1]} : vector<8x32xf32> to vector<1x32xf32>
    %cst_8 = arith.constant dense<0.000000e+00> : vector<32xf32>
    %21 = vector.multi_reduction <add>, %20, %cst_8 [0] : vector<1x32xf32> to vector<32xf32>
    %22 = vector.shape_cast %21 : vector<32xf32> to vector<1x32xf32>
    %23 = vector.extract_strided_slice %22 {offsets = [0, 16], sizes = [1, 8], strides = [1, 1]} : vector<1x32xf32> to vector<1x8xf32>
    %24 = arith.addf %17, %23 : vector<1x8xf32>
    %25 = vector.extract_strided_slice %19 {offsets = [0, 0], sizes = [1, 32], strides = [1, 1]} : vector<8x32xf32> to vector<1x32xf32>
    %cst_9 = arith.constant dense<0.000000e+00> : vector<32xf32>
    %26 = vector.multi_reduction <add>, %25, %cst_9 [0] : vector<1x32xf32> to vector<32xf32>
    %27 = vector.shape_cast %26 : vector<32xf32> to vector<1x32xf32>
    %28 = vector.extract_strided_slice %27 {offsets = [0, 24], sizes = [1, 8], strides = [1, 1]} : vector<1x32xf32> to vector<1x8xf32>
    %29 = arith.addf %24, %28 : vector<1x8xf32>
    %cst_10 = arith.constant 2.500000e-01 : f32
    %30 = vector.broadcast %cst_10 : f32 to vector<1x8xf32>
    %31 = arith.mulf %29, %30 : vector<1x8xf32>
    %32 = tpu.concatenate %31, %31, %31, %31 in 1 : vector<1x8xf32>, vector<1x8xf32>, vector<1x8xf32>, vector<1x8xf32> -> vector<1x32xf32>
    %33 = vector.extract_strided_slice %6 {offsets = [1, 0, 0], sizes = [1, 8, 32], strides = [1, 1, 1]} : vector<2x8x32xf32> to vector<1x8x32xf32>
    %34 = vector.shape_cast %32 : vector<1x32xf32> to vector<1x1x32xf32>
    %35 = vector.broadcast %34 : vector<1x1x32xf32> to vector<1x8x32xf32>
    %36 = arith.subf %33, %35 : vector<1x8x32xf32>
    %37 = arith.mulf %36, %36 : vector<1x8x32xf32>
    %cst_11 = arith.constant dense<0.000000e+00> : vector<8x32xf32>
    %38 = vector.multi_reduction <add>, %37, %cst_11 [0] : vector<1x8x32xf32> to vector<8x32xf32>
    %39 = vector.extract_strided_slice %38 {offsets = [1, 0], sizes = [1, 32], strides = [1, 1]} : vector<8x32xf32> to vector<1x32xf32>
    %cst_12 = arith.constant dense<0.000000e+00> : vector<32xf32>
    %40 = vector.multi_reduction <add>, %39, %cst_12 [0] : vector<1x32xf32> to vector<32xf32>
    %41 = vector.shape_cast %40 : vector<32xf32> to vector<1x32xf32>
    %42 = vector.extract_strided_slice %41 {offsets = [0, 0], sizes = [1, 8], strides = [1, 1]} : vector<1x32xf32> to vector<1x8xf32>
    %43 = vector.extract_strided_slice %38 {offsets = [0, 0], sizes = [1, 32], strides = [1, 1]} : vector<8x32xf32> to vector<1x32xf32>
    %cst_13 = arith.constant dense<0.000000e+00> : vector<32xf32>
    %44 = vector.multi_reduction <add>, %43, %cst_13 [0] : vector<1x32xf32> to vector<32xf32>
    %45 = vector.shape_cast %44 : vector<32xf32> to vector<1x32xf32>
    %46 = vector.extract_strided_slice %45 {offsets = [0, 8], sizes = [1, 8], strides = [1, 1]} : vector<1x32xf32> to vector<1x8xf32>
    %47 = arith.addf %42, %46 : vector<1x8xf32>
    %48 = vector.extract_strided_slice %6 {offsets = [0, 0, 0], sizes = [1, 8, 32], strides = [1, 1, 1]} : vector<2x8x32xf32> to vector<1x8x32xf32>
    %49 = vector.shape_cast %32 : vector<1x32xf32> to vector<1x1x32xf32>
    %50 = vector.broadcast %49 : vector<1x1x32xf32> to vector<1x8x32xf32>
    %51 = arith.subf %48, %50 : vector<1x8x32xf32>
    %52 = arith.mulf %51, %51 : vector<1x8x32xf32>
    %cst_14 = arith.constant dense<0.000000e+00> : vector<8x32xf32>
    %53 = vector.multi_reduction <add>, %52, %cst_14 [0] : vector<1x8x32xf32> to vector<8x32xf32>
    %54 = vector.extract_strided_slice %53 {offsets = [1, 0], sizes = [1, 32], strides = [1, 1]} : vector<8x32xf32> to vector<1x32xf32>
    %cst_15 = arith.constant dense<0.000000e+00> : vector<32xf32>
    %55 = vector.multi_reduction <add>, %54, %cst_15 [0] : vector<1x32xf32> to vector<32xf32>
    %56 = vector.shape_cast %55 : vector<32xf32> to vector<1x32xf32>
    %57 = vector.extract_strided_slice %56 {offsets = [0, 16], sizes = [1, 8], strides = [1, 1]} : vector<1x32xf32> to vector<1x8xf32>
    %58 = arith.addf %47, %57 : vector<1x8xf32>
    %59 = vector.extract_strided_slice %53 {offsets = [0, 0], sizes = [1, 32], strides = [1, 1]} : vector<8x32xf32> to vector<1x32xf32>
    %cst_16 = arith.constant dense<0.000000e+00> : vector<32xf32>
    %60 = vector.multi_reduction <add>, %59, %cst_16 [0] : vector<1x32xf32> to vector<32xf32>
    %61 = vector.shape_cast %60 : vector<32xf32> to vector<1x32xf32>
    %62 = vector.extract_strided_slice %61 {offsets = [0, 24], sizes = [1, 8], strides = [1, 1]} : vector<1x32xf32> to vector<1x8xf32>
    %63 = arith.addf %58, %62 : vector<1x8xf32>
    %cst_17 = arith.constant 2.500000e-01 : f32
    %64 = vector.broadcast %cst_17 : f32 to vector<1x8xf32>
    %65 = arith.mulf %63, %64 : vector<1x8xf32>
    %66 = tpu.concatenate %65, %65, %65, %65 in 1 : vector<1x8xf32>, vector<1x8xf32>, vector<1x8xf32>, vector<1x8xf32> -> vector<1x32xf32>
    %67 = vector.broadcast %32 : vector<1x32xf32> to vector<24x32xf32>
    %68 = arith.subf %2, %67 : vector<24x32xf32>
    %cst_18 = arith.constant 9.99999974E-6 : f32
    %69 = vector.broadcast %cst_18 : f32 to vector<1x32xf32>
    %70 = arith.addf %66, %69 : vector<1x32xf32>
    %71 = math.rsqrt %70 : vector<1x32xf32>
    %72 = vector.broadcast %71 : vector<1x32xf32> to vector<24x32xf32>
    %73 = arith.mulf %68, %72 : vector<24x32xf32>
    %74 = vector.broadcast %4 : vector<1x32xf32> to vector<24x32xf32>
    %75 = arith.addf %73, %74 : vector<24x32xf32>
    %cst_19 = arith.constant 0.000000e+00 : f32
    %76 = vector.broadcast %cst_19 : f32 to vector<24x32xf32>
    %77 = arith.cmpf oge, %75, %76 : vector<24x32xf32>
    %cst_20 = arith.constant 2.000000e-01 : f32
    %78 = vector.broadcast %cst_20 : f32 to vector<24x32xf32>
    %79 = arith.mulf %78, %75 : vector<24x32xf32>
    %80 = arith.select %77, %75, %79 : vector<24x32xi1>, vector<24x32xf32>
    %81 = arith.truncf %80 : vector<24x32xf32> to vector<24x32xbf16>
    %82 = vector.extract_strided_slice %81 {offsets = [0, 0], sizes = [8, 32], strides = [1, 1]} : vector<24x32xbf16> to vector<8x32xbf16>
    %83 = vector.extract_strided_slice %81 {offsets = [1, 0], sizes = [8, 32], strides = [1, 1]} : vector<24x32xbf16> to vector<8x32xbf16>
    %84 = vector.extract_strided_slice %81 {offsets = [8, 0], sizes = [8, 32], strides = [1, 1]} : vector<24x32xbf16> to vector<8x32xbf16>
    %85 = vector.extract_strided_slice %81 {offsets = [9, 0], sizes = [8, 32], strides = [1, 1]} : vector<24x32xbf16> to vector<8x32xbf16>
    %86 = tpu.concatenate %82, %83, %84, %85 in 1 : vector<8x32xbf16>, vector<8x32xbf16>, vector<8x32xbf16>, vector<8x32xbf16> -> vector<8x128xbf16>
    %c0_21 = arith.constant 0 : index
    %c0_22 = arith.constant 0 : index
    %87 = vector.load %arg3[%c0_21, %c0_22] : memref<128x16xbf16, #tpu.memory_space<vmem>>, vector<128x16xbf16>
    %cst_23 = arith.constant dense<0.000000e+00> : vector<8x16xf32>
    %88 = tpu.matmul %86, %87, %cst_23 {dimension_numbers = #tpu.dot_dimension_numbers<[1], [0], [0], [1], [0, 0, 1, 1], [], []>} : vector<8x128xbf16>, vector<128x16xbf16>, vector<8x16xf32> -> vector<8x16xf32>
    %c0_24 = arith.constant 0 : index
    %c0_25 = arith.constant 0 : index
    %c0_26 = arith.constant 0 : index
    %89 = vector.load %arg4[%c0_24, %c0_25, %c0_26] : memref<1x8x32xbf16, #tpu.memory_space<vmem>>, vector<1x8x32xbf16>
    %90 = vector.shape_cast %89 : vector<1x8x32xbf16> to vector<8x32xbf16>
    %c0_27 = arith.constant 0 : index
    %c0_28 = arith.constant 0 : index
    %91 = vector.load %arg5[%c0_27, %c0_28] : memref<32x16xbf16, #tpu.memory_space<vmem>>, vector<32x16xbf16>
    %cst_29 = arith.constant dense<0.000000e+00> : vector<8x16xf32>
    %92 = tpu.matmul %90, %91, %cst_29 {dimension_numbers = #tpu.dot_dimension_numbers<[1], [0], [0], [1], [0, 0, 1, 1], [], []>} : vector<8x32xbf16>, vector<32x16xbf16>, vector<8x16xf32> -> vector<8x16xf32>
    %93 = arith.addf %88, %92 : vector<8x16xf32>
    %c0_30 = arith.constant 0 : index
    %c0_31 = arith.constant 0 : index
    %94 = vector.load %arg6[%c0_30, %c0_31] : memref<1x16xf32, #tpu.memory_space<vmem>>, vector<1x16xf32>
    %95 = vector.broadcast %94 : vector<1x16xf32> to vector<8x16xf32>
    %96 = arith.addf %93, %95 : vector<8x16xf32>
    %97 = vector.shape_cast %96 : vector<8x16xf32> to vector<1x8x16xf32>
    %98 = vector.extract_strided_slice %97 {offsets = [0, 0, 0], sizes = [1, 1, 16], strides = [1, 1, 1]} : vector<1x8x16xf32> to vector<1x1x16xf32>
    %99 = arith.truncf %98 : vector<1x1x16xf32> to vector<1x1x16xbf16>
    %c0_32 = arith.constant 0 : index
    %c0_33 = arith.constant 0 : index
    %c0_34 = arith.constant 0 : index
    %c0_35 = arith.constant 0 : index
    %100 = vector.load %arg7[%c0_32, %c0_33, %c0_34, %c0_35] : memref<1x1x1x16xbf16, #tpu.memory_space<vmem>>, vector<1x1x1x16xbf16>
    %101 = vector.shape_cast %100 : vector<1x1x1x16xbf16> to vector<1x1x16xbf16>
    %102 = vector.shape_cast %99 : vector<1x1x16xbf16> to vector<1x1x1x16xbf16>
    tpu.vector_store %arg7[%c0_32, %c0_33, %c0_34, %c0_35], %102 {strides = array<i32>} : memref<1x1x1x16xbf16, #tpu.memory_space<vmem>>, vector<1x1x1x16xbf16>,
    return
  }
  func.func @transform_0(%arg0: i32) -> (i32, i32, i32) {
    %c0_i32 = arith.constant 0 : i32
    %c0_i32_0 = arith.constant 0 : i32
    %c0_i32_1 = arith.constant 0 : i32
    return %arg0, %c0_i32, %c0_i32_0 : i32, i32, i32
  }
  func.func @transform_1(%arg0: i32) -> (i32, i32, i32) {
    %c0_i32 = arith.constant 0 : i32
    %c0_i32_0 = arith.constant 0 : i32
    %c0_i32_1 = arith.constant 0 : i32
    return %arg0, %c0_i32, %c0_i32_0 : i32, i32, i32
  }
  func.func @transform_2(%arg0: i32) -> (i32, i32) {
    %c0_i32 = arith.constant 0 : i32
    %c0_i32_0 = arith.constant 0 : i32
    %c0_i32_1 = arith.constant 0 : i32
    return %c0_i32, %c0_i32_0 : i32, i32
  }
  func.func @transform_3(%arg0: i32) -> (i32, i32, i32) {
    %c0_i32 = arith.constant 0 : i32
    %c0_i32_0 = arith.constant 0 : i32
    %c0_i32_1 = arith.constant 0 : i32
    return %arg0, %c0_i32, %c0_i32_0 : i32, i32, i32
  }
  func.func @transform_4(%arg0: i32) -> (i32, i32) {
    %c0_i32 = arith.constant 0 : i32
    %c0_i32_0 = arith.constant 0 : i32
    %c0_i32_1 = arith.constant 0 : i32
    return %c0_i32, %c0_i32_0 : i32, i32
  }
  func.func @transform_5(%arg0: i32) -> (i32, i32) {
    %c0_i32 = arith.constant 0 : i32
    %c0_i32_0 = arith.constant 0 : i32
    %c0_i32_1 = arith.constant 0 : i32
    return %c0_i32, %c0_i32_0 : i32, i32
  }
  func.func @transform_6(%arg0: i32) -> (i32, i32, i32, i32) {
    %c0_i32 = arith.constant 0 : i32
    %c0_i32_0 = arith.constant 0 : i32
    %c0_i32_1 = arith.constant 0 : i32
    %c0_i32_2 = arith.constant 0 : i32
    return %arg0, %c0_i32, %c0_i32_0, %c0_i32_1 : i32, i32, i32, i32
  }
}

</mosaic_0001>

<bundles_post_ra>
// kernel: _lambda_.12
= control target key start
LH: loop header
LB: loop body
LE: loop exit
PB: predicated region body
PF: predicated region fallthrough
CT: control target
= control target key end

     0   :  { %s760_s12 = smov 0   ;;  %s937_s0 = inlined_call_operand.vmem [shape: bf16[2,152,12], index: 0, kind: input, shape index: {}]   ;;  %s938_s1 = inlined_call_operand.vmem [shape: bf16[48,8], index: 1, kind: input, shape index: {}]   ;;  %s939_s2 = inlined_call_operand.vmem [shape: f32[1,8], index: 2, kind: input, shape index: {}]   ;;  %s940_s3 = inlined_call_operand.vmem [shape: bf16[2,8,8,8], index: 3, kind: output, shape index: {}]  }
   0x1 LB: > { %s630_s13 = sadd.s32 4294967295, %s735_s12   ;;  %p634_p0 = scmp.ge.s32.totalorder %s735_s12, 1  ;;  %s735_s12 = sphi %s760_s12, %s13_s12  }
   0x2   : > { %p137_p1 = scmp.lt.s32.totalorder %s735_s12, 3 }
   0x4   : > { %p138_p2 = pnand %p634_p0, %p137_p1 }
   0x5   : > { %p161_p3 = scmp.lt.s32.totalorder (!%p138_p2), %s630_s13, 1  ;;  %s737_s20 = smov (!%p138_p2), 24  }
   0x6   : > { %141 = sbr.rel (%p138_p2) target bundleno = 377 (0x179), region = 32  ;;  %s738_s21 = smov (!%p138_p2), 12  }
   0x7   : > { %s739_s26 = smov (!%p138_p2), 36  }
   0xb   : > { %s942_s13 = smov (!%p161_p3, %s630_s13), 1  ;;  %vm234_vm0 = vsmask.f32 7424  ;;  %v726_v0 = vld [vmem:[%s938_s1 + $0x10] sm:$0xff]   ;;  %v727_v35 = vld [vmem:[%s938_s1 + $0x8] sm:$0xff]   ;;  %v728_v36 = vld [vmem:[%s938_s1] sm:$0xff]  }
   0xc   : > { %s703_s14 = smul.u32 76, %s942_s13  ;;  %675 = vmatprep.subr.bf16.mxu0 %v726_v0  ;;  %697 = vmatprep.subr.bf16.mxu1 %v726_v0  ;;  %vm370_vm1 = vcmask 97280   ;;  %vm404_vm2 = vcmask 293888   ;;  %vm387_vm3 = vcmask 195584   ;;  %vm452_vm4 = vcmask 392192   ;;  %s663_s29 = sshll.u32 %s942_s13, 5 }
   0xd   : > { %676 = vmatpush3.bf16.msra.mxu0 %v726_v0  ;;  %700 = vmatpush3.bf16.msra.mxu1 %v726_v0  ;;  %s916_s5 = scalar_lea.vmem %s940_s3, %s663_s29  ;;  %vm566_vm5 = vcmask 60416  }
   0xe   : > { %s774_s17 = scalar_lea.vmem %s937_s0, %s703_s14  ;;  %677 = vmatprep.subr.bf16.mxu0 %v727_v35  ;;  %698 = vmatprep.subr.bf16.mxu1 %v727_v35 }
   0xf   : > { %v780_v1 = vld [vmem:[%s774_s17 + $0x28] sm:$0xff]   ;;  %v788_v3 = vld [vmem:[%s774_s17 + $0x30] sm:$0xff]   ;;  %v799_v8 = vld [vmem:[%s774_s17] sm:$0xff]  }
  0x10   : > { %v783_v2 = vld [vmem:[%s774_s17 + $0x8] sm:$0xff]   ;;  %330 = vrot.lane.b32.xlu1 %v780_v1, %s737_s20  ;;  %v275_v4 = vshll.u32 %v780_v1, 16  ;;  %v794_v5 = vld [vmem:[%s774_s17 + $0x10] sm:$0xff]   ;;  %v279_v12 = vshrl.u32 %v780_v1, 16  ;;  %v236_v13 = vshrl.u32 %v799_v8, 16  ;;  %v238_v14 = vshll.u32 %v799_v8, 16 }
  0x11   : > { %322 = vrot.lane.b32.xlu0 %v783_v2, %s737_s20  ;;  %v243_v6 = vshll.u32 %v783_v2, 16  ;;  %v247_v7 = vshrl.u32 %v783_v2, 16  ;;  %v251_v10 = vshll.u32 %v794_v5, 16  ;;  %v283_v15 = vshll.u32 %v788_v3, 16  ;;  %v809_v16 = vld [vmem:[%s774_s17 + $0x20] sm:$0xff]   ;;  %v814_v20 = vld [vmem:[%s774_s17 + $0x38] sm:$0xff]   ;;  %678 = vmatpush3.bf16.msra.mxu0 %v727_v35 }
  0x12   : > { %v277_v11 = vrot.slane %v275_v4, 1  ;;  %v240_v21 = vrot.slane %v238_v14, 1  ;;  %v267_v23 = vshll.u32 %v809_v16, 16  ;;  %v271_v24 = vshrl.u32 %v809_v16, 16  ;;  %v821_v28 = vld [vmem:[%s774_s17 + $0x18] sm:$0xff]   ;;  %701 = vmatpush3.bf16.msra.mxu1 %v727_v35  ;;  %679 = vmatprep.subr.bf16.mxu0 %v728_v36 }
  0x13   : > { %v245_v9 = vrot.slane %v243_v6, 1  ;;  %v253_v18 = vrot.slane %v251_v10, 1  ;;  %v285_v22 = vrot.slane %v283_v15, 1  ;;  %v287_v30 = vshrl.u32 %v788_v3, 16  ;;  %v188_v34 = vld [vmem:[%s774_s17 + $0x40] sm:$0xf]  ;;  %699 = vmatprep.subr.bf16.mxu1 %v728_v36 }
  0x14   : > { %332 = vrot.lane.b32.xlu1 %v788_v3, %s737_s20  ;;  %v281_v19 = vor.u32 %v279_v12, %v277_v11  ;;  %v241_v26 = vor.u32 %v240_v21, %v236_v13  ;;  %v269_v27 = vrot.slane %v267_v23, 1  ;;  %v291_v31 = vshll.u32 %v814_v20, 16  ;;  %v189_v52 = vld [vmem:[%s774_s17 + $0x44] sm:$0xf]  ;;  %v725_v58 = vld [vmem:[%s774_s17 + $0x48] ss:$0 sps:$4 sm:$0xff]  }
  0x15   : > { %324 = vrot.lane.b32.xlu0 %v794_v5, %s737_s20  ;;  %v249_v17 = vor.u32 %v247_v7, %v245_v9  ;;  %v255_v38 = vshrl.u32 %v794_v5, 16  ;;  %v259_v39 = vshll.u32 %v821_v28, 16  ;;  %v289_v40 = vor.u32 %v287_v30, %v285_v22  ;;  %680 = vmatpush3.bf16.msra.mxu0 %v728_v36 }
  0x16   : > { %v286_v29 = vsel %vm234_vm0, %v281_v19, %v285_v22  ;;  %v246_v32 = vsel %vm234_vm0, %v241_v26, %v245_v9  ;;  %v273_v33 = vor.u32 %v271_v24, %v269_v27  ;;  %v293_v41 = vrot.slane %v291_v31, 1  ;;  %702 = vmatpush3.bf16.msra.mxu1 %v728_v36 }
  0x17   : > { %v254_v25 = vsel %vm234_vm0, %v249_v17, %v253_v18  ;;  %v646_v42 = vcombine.low %v188_v34, %v188_v34  ;;  %v257_v43 = vor.u32 %v255_v38, %v253_v18  ;;  %v261_v44 = vrot.slane %v259_v39, 1 }
  0x18   : > { %305 = vrot.lane.b32.xlu1 %v254_v25, %s738_s21  ;;  %v278_v37 = vsel %vm234_vm0, %v273_v33, %v277_v11  ;;  %v294_v45 = vsel %vm234_vm0, %v289_v40, %v293_v41  ;;  %v295_v46 = vshrl.u32 %v814_v20, 16  ;;  %v263_v49 = vshrl.u32 %v821_v28, 16 }
  0x19   : > { %303 = vrot.lane.b32.xlu0 %v246_v32, %s738_s21  ;;  %v299_v47 = vshll.u32 %v646_v42, 16  ;;  %v262_v48 = vsel %vm234_vm0, %v257_v43, %v261_v44  ;;  %v647_v55 = vcombine.low %v188_v34, %v189_v52  ;;  %v350_v61 = vshll.u32 %v725_v58, 16 }
  0x1a   : > { %v297_v50 = vor.u32 %v295_v46, %v293_v41  ;;  %v265_v53 = vor.u32 %v263_v49, %v261_v44 }
  0x1b   : > { %v301_v51 = vrot.slane %v299_v47, 1  ;;  %v342_v57 = vshll.u32 %v647_v55, 16  ;;  %v346_v60 = vshrl.u32 %v647_v55, 16  ;;  %v352_v0 = vrot.slane %v350_v61, 1 }
  0x1c   : > { %313 = vrot.lane.b32.xlu1 %v286_v29, %s738_s21  ;;  %v270_v56 = vsel %vm234_vm0, %v265_v53, %v269_v27 }
  0x1d   : > { %311 = vrot.lane.b32.xlu0 %v278_v37, %s738_s21  ;;  %v302_v54 = vsel %vm234_vm0, %v297_v50, %v301_v51  ;;  %v344_v59 = vrot.slane %v342_v57, 1  ;;  %v649_v51 = vld [vmem:[%s939_s2] ss:$0 sm:$0xff] }
  0x1f   : > { %v345_v62 = vsel %vm234_vm0, %v297_v50, %v344_v59  ;;  %v348_v63 = vor.u32 %v346_v60, %v344_v59 }
  0x20   : > { %362 = vrot.lane.b32.xlu1 %v286_v29, %s739_s26 }
  0x21   : > { %354 = vrot.lane.b32.xlu0 %v254_v25, %s739_s26  ;;  %v353_v4 = vsel %vm234_vm0, %v348_v63, %v352_v0 }
  0x24   : > { %364 = vrot.lane.b32.xlu1 %v294_v45, %s739_s26 }
  0x25   : > { %356 = vrot.lane.b32.xlu0 %v262_v48, %s739_s26 }
  0x28   : > { %315 = vrot.lane.b32.xlu1 %v294_v45, %s738_s21 }
  0x29   : > { %307 = vrot.lane.b32.xlu0 %v262_v48, %s738_s21 }
  0x2c   : > { %317 = vrot.lane.b32.xlu1 %v302_v54, %s738_s21 }
  0x2d   : > { %309 = vrot.lane.b32.xlu0 %v270_v56, %s738_s21 }
  0x30   : > { %334 = vrot.lane.b32.xlu1 %v814_v20, %s737_s20 }
  0x31   : > { %326 = vrot.lane.b32.xlu0 %v821_v28, %s737_s20 }
  0x34   : > { %336 = vrot.lane.b32.xlu1 %v647_v55, %s737_s20 }
  0x35   : > { %328 = vrot.lane.b32.xlu0 %v809_v16, %s737_s20 }
  0x38   : > { %366 = vrot.lane.b32.xlu1 %v345_v62, %s739_s26 }
  0x39   : > { %358 = vrot.lane.b32.xlu0 %v270_v56, %s739_s26 }
  0x3c   : > { %368 = vrot.lane.b32.xlu1 %v353_v4, %s739_s26 }
  0x3d   : > { %360 = vrot.lane.b32.xlu0 %v278_v37, %s739_s26 }
  0x82   : > { %v331_v6 = vpop.permute.xlu1 %330 }
  0x83   : > { %v323_v7 = vpop.permute.xlu0 %322 }
  0x86   : > { %v333_v9 = vpop.permute.xlu1 %332 }
  0x87   : > { %v325_v10 = vpop.permute.xlu0 %324 }
  0x8a   : > { %v306_v11 = vpop.permute.xlu1 %305 }
  0x8b   : > { %v304_v12 = vpop.permute.xlu0 %303 }
  0x8c   : > { %v372_v15 = vsel %vm370_vm1, %v799_v8, %v304_v12  ;;  %v374_v8 = vsel %vm370_vm1, %v783_v2, %v306_v11 }
  0x8d   : > { %v389_v24 = vsel %vm387_vm3, %v372_v15, %v323_v7  ;;  %v391_v27 = vsel %vm387_vm3, %v374_v8, %v325_v10 }
  0x8e   : > { %v314_v13 = vpop.permute.xlu1 %313 }
  0x8f   : > { %v312_v14 = vpop.permute.xlu0 %311  ;;  %v382_v19 = vsel %vm370_vm1, %v780_v1, %v314_v13 }
  0x90   : > { %v380_v17 = vsel %vm370_vm1, %v809_v16, %v312_v14  ;;  %v399_v25 = vsel %vm387_vm3, %v382_v19, %v333_v9 }
  0x91   : > { %v397_v21 = vsel %vm387_vm3, %v380_v17, %v331_v6 }
  0x92   : > { %v363_v18 = vpop.permute.xlu1 %362 }
  0x93   : > { %v414_v22 = vsel %vm404_vm2, %v397_v21, %v363_v18  ;;  %v355_v23 = vpop.permute.xlu0 %354 }
  0x94   : > { %689 = vmatprep.mubr.msk.bf16.mxu1 %vm452_vm4, %v414_v22  ;;  %v406_v16 = vsel %vm404_vm2, %v389_v24, %v355_v23 }
  0x95   : > { %681 = vmatprep.mubr.msk.bf16.mxu0 %vm452_vm4, %v406_v16 }
  0x96   : > { %v365_v26 = vpop.permute.xlu1 %364 }
  0x97   : > { %v416_v1 = vsel %vm404_vm2, %v399_v25, %v365_v26  ;;  %v357_v29 = vpop.permute.xlu0 %356 }
  0x98   : > { %690 = vmatmul.mubr.msk.bf16.vlgmr.msra.gmra.mxu1 %vm452_vm4, %v416_v1  ;;  %v408_v30 = vsel %vm404_vm2, %v391_v27, %v357_v29 }
  0x99   : > { %682 = vmatmul.mubr.msk.bf16.vlgmr.msra.gmra.mxu0 %vm452_vm4, %v408_v30 }
  0x9a   : > { %v316_v31 = vpop.permute.xlu1 %315 }
  0x9b   : > { %v308_v2 = vpop.permute.xlu0 %307  ;;  %v384_v37 = vsel %vm370_vm1, %v788_v3, %v316_v31 }
  0x9c   : > { %v376_v42 = vsel %vm370_vm1, %v794_v5, %v308_v2 }
  0x9e   : > { %v318_v32 = vpop.permute.xlu1 %317 }
  0x9f   : > { %v310_v33 = vpop.permute.xlu0 %309  ;;  %v386_v43 = vsel %vm370_vm1, %v814_v20, %v318_v32 }
  0xa0   : > { %v378_v5 = vsel %vm370_vm1, %v821_v28, %v310_v33 }
  0xa2   : > { %v335_v34 = vpop.permute.xlu1 %334 }
  0xa3   : > { %v327_v35 = vpop.permute.xlu0 %326  ;;  %v401_v39 = vsel %vm387_vm3, %v384_v37, %v335_v34 }
  0xa4   : > { %v393_v44 = vsel %vm387_vm3, %v376_v42, %v327_v35 }
  0xa6   : > { %v337_v36 = vpop.permute.xlu1 %336 }
  0xa7   : > { %v329_v38 = vpop.permute.xlu0 %328  ;;  %v403_v3 = vsel %vm387_vm3, %v386_v43, %v337_v36 }
  0xa8   : > { %v395_v49 = vsel %vm387_vm3, %v378_v5, %v329_v38 }
  0xaa   : > { %v367_v40 = vpop.permute.xlu1 %366 }
  0xab   : > { %v418_v41 = vsel %vm404_vm2, %v401_v39, %v367_v40  ;;  %v359_v45 = vpop.permute.xlu0 %358 }
  0xac   : > { %693 = vmatprep.mubr.msk.bf16.mxu1 %vm452_vm4, %v418_v41  ;;  %v410_v46 = vsel %vm404_vm2, %v393_v44, %v359_v45 }
  0xad   : > { %685 = vmatprep.mubr.msk.bf16.mxu0 %vm452_vm4, %v410_v46 }
  0xae   : > { %v369_v47 = vpop.permute.xlu1 %368 }
  0xaf   : > { %v420_v48 = vsel %vm404_vm2, %v403_v3, %v369_v47  ;;  %v361_v20 = vpop.permute.xlu0 %360 }
  0xb0   : > { %694 = vmatmul.mubr.msk.bf16.gmra.mxu1 %vm452_vm4, %v420_v48  ;;  %v412_v50 = vsel %vm404_vm2, %v395_v49, %v361_v20 }
  0xb1   : > { %686 = vmatmul.mubr.msk.bf16.gmra.mxu0 %vm452_vm4, %v412_v50 }
 0x158   : > { %v691_v52 = vpop.f32.mrf.mxu1 }
 0x159   : > { %v539_v53 = vadd.f32 %v691_v52, %v649_v51  ;;  %v683_v54 = vpop.f32.mrf.mxu0 }
 0x15a   : > { %v531_v28 = vpop.f32.mrf.mxu1  ;;  %v511_v57 = vadd.f32 %v683_v54, %v649_v51 }
 0x15b   : > { %v563_v55 = vpack.c.bf16 %v539_v53, %v539_v53  ;;  %v532_v56 = vadd.f32 %v649_v51, %v531_v28  ;;  %v503_v59 = vpop.f32.mrf.mxu0 }
 0x15c   : > { %v692_v58 = vpop.f32.mrf.mxu1  ;;  %v559_v61 = vpack.c.bf16 %v511_v57, %v511_v57  ;;  %v504_v62 = vadd.f32 %v649_v51, %v503_v59 }
 0x15d   : > { %572 = vst.msk [vmem:[%s916_s5 + $0x14] sm:$0xf] %vm566_vm5, %v563_v55  ;;  %v562_v60 = vpack.c.bf16 %v532_v56, %v532_v56  ;;  %v684_v0 = vpop.f32.mrf.mxu0 }
 0x15e   : > { %v534_v63 = vpop.f32.mrf.mxu1  ;;  %568 = vst.msk [vmem:[%s916_s5 + $0x4] sm:$0xf] %vm566_vm5, %v559_v61  ;;  %v558_v4 = vpack.c.bf16 %v504_v62, %v504_v62 }
 0x15f   : > { %571 = vst.msk [vmem:[%s916_s5 + $0x10] sm:$0xf] %vm566_vm5, %v562_v60  ;;  %v506_v6 = vpop.f32.mrf.mxu0 }
 0x160   : > { %567 = vst.msk [vmem:[%s916_s5] sm:$0xf] %vm566_vm5, %v558_v4 }
 0x170   : > { %v695_v7 = vpop.f32.mrf.mxu1 }
 0x171   : > { %v553_v9 = vadd.f32 %v695_v7, %v649_v51  ;;  %v687_v11 = vpop.f32.mrf.mxu0 }
 0x172   : > { %v545_v10 = vpop.f32.mrf.mxu1  ;;  %v525_v14 = vadd.f32 %v687_v11, %v649_v51 }
 0x173   : > { %v565_v12 = vpack.c.bf16 %v553_v9, %v553_v9  ;;  %v546_v13 = vadd.f32 %v649_v51, %v545_v10  ;;  %v517_v17 = vpop.f32.mrf.mxu0 }
 0x174   : > { %v696_v15 = vpop.f32.mrf.mxu1  ;;  %v561_v19 = vpack.c.bf16 %v525_v14, %v525_v14  ;;  %v518_v21 = vadd.f32 %v649_v51, %v517_v17 }
 0x175   : > { %574 = vst.msk [vmem:[%s916_s5 + $0x1c] sm:$0xf] %vm566_vm5, %v565_v12  ;;  %v564_v18 = vpack.c.bf16 %v546_v13, %v546_v13  ;;  %v688_v23 = vpop.f32.mrf.mxu0 }
 0x176   : > { %v548_v22 = vpop.f32.mrf.mxu1  ;;  %570 = vst.msk [vmem:[%s916_s5 + $0xc] sm:$0xf] %vm566_vm5, %v561_v19  ;;  %v560_v24 = vpack.c.bf16 %v518_v21, %v518_v21 }
 0x177   : > { %573 = vst.msk [vmem:[%s916_s5 + $0x18] sm:$0xf] %vm566_vm5, %v564_v18  ;;  %v520_v8 = vpop.f32.mrf.mxu0 }
 0x178   : > { %569 = vst.msk [vmem:[%s916_s5 + $0x8] sm:$0xf] %vm566_vm5, %v560_v24 }
 0x179 PF: > { %s13_s12 = sadd.s32 1, %s735_s12  }
 0x17a   : > { %p10_p4 = scmp.ge.s32.totalorder %s13_s12, 4  }
 0x17c   :  { %12 = sbr.rel (!%p10_p4) target bundleno = 1 (0x1), region = 62 }

// kernel: _lambda_.13
= control target key start
LH: loop header
LB: loop body
LE: loop exit
PB: predicated region body
PF: predicated region fallthrough
CT: control target
= control target key end

     0   :  { %s1273_s12 = smov 0   ;;  %s1900_s0 = inlined_call_operand.vmem [shape: bf16[2,168,8], index: 0, kind: input, shape index: {}]   ;;  %s1901_s1 = inlined_call_operand.vmem [shape: f32[2,1,8], index: 1, kind: input, shape index: {}]   ;;  %s1902_s2 = inlined_call_operand.vmem [shape: bf16[72,8], index: 2, kind: input, shape index: {}]   ;;  %s1903_s3 = inlined_call_operand.vmem [shape: bf16[2,8,8,8], index: 3, kind: output, shape index: {}]  }
   0x1 LB: > { %s1088_s13 = sadd.s32 4294967295, %s1243_s12   ;;  %p1092_p0 = scmp.ge.s32.totalorder %s1243_s12, 1  ;;  %s1243_s12 = sphi %s1273_s12, %s13_s12  }
   0x2   : > { %p145_p1 = scmp.lt.s32.totalorder %s1243_s12, 3 }
   0x4   : > { %p146_p2 = pnand %p1092_p0, %p145_p1 }
   0x5   : > { %p172_p3 = scmp.lt.s32.totalorder (!%p146_p2), %s1088_s13, 1  ;;  %s1245_s21 = smov (!%p146_p2), 24  }
   0x6   : > { %149 = sbr.rel (%p146_p2) target bundleno = 559 (0x22f), region = 32  ;;  %s1246_s22 = smov (!%p146_p2), 48  }
   0x7   : > { %s1247_s23 = smov (!%p146_p2), 16   ;;  %s1248_s24 = smov (!%p146_p2), 40  }
   0x8   : > { %s1249_s25 = smov (!%p146_p2), 64   ;;  %s1250_s5 = smov (!%p146_p2), 8  }
   0x9   : > { %s1251_s10 = smov (!%p146_p2), 32   ;;  %s1252_s11 = smov (!%p146_p2), 56  }
   0xb   : > { %s1905_s13 = smov (!%p172_p3, %s1088_s13), 1  ;;  %vm229_vm0 = vcmask 64512   ;;  %vm262_vm1 = vcmask 1046528  }
   0xc   : > { %s1213_s14 = smul.u32 84, %s1905_s13  ;;  %s179_s20 = scalar_lea.vmem %s1901_s1, %s1905_s13 }
   0xe   : > { %s1287_s17 = scalar_lea.vmem %s1900_s0, %s1213_s14  ;;  %s1112_s14 = sshll.u32 %s1905_s13, 5 }
   0xf   : > { %v1290_v0 = vld [vmem:[%s1287_s17 + $0x8] sm:$0xff]   ;;  %v1293_v1 = vld [vmem:[%s1287_s17 + $0x10] sm:$0xff]   ;;  %v1296_v2 = vld [vmem:[%s1287_s17 + $0x18] sm:$0xff]  }
  0x10   : > { %v1119_v3 = vunpack.c.l.bf16 %v1290_v0  ;;  %v1123_v4 = vunpack.c.l.bf16 %v1293_v1  ;;  %v1301_v5 = vld [vmem:[%s1287_s17 + $0x20] sm:$0xff]   ;;  %v1127_v6 = vunpack.c.l.bf16 %v1296_v2  ;;  %v1305_v7 = vld [vmem:[%s1287_s17 + $0x28] sm:$0xff]   ;;  %v1120_v8 = vunpack.c.h.bf16 %v1290_v0  ;;  %v1312_v12 = vld [vmem:[%s1287_s17 + $0x30] sm:$0xff]  }
  0x11   : > { %v1124_v9 = vunpack.c.h.bf16 %v1293_v1  ;;  %v1128_v10 = vunpack.c.h.bf16 %v1296_v2  ;;  %v1131_v11 = vunpack.c.l.bf16 %v1301_v5  ;;  %v1132_v13 = vunpack.c.h.bf16 %v1301_v5  ;;  %v1328_v20 = vld [vmem:[%s1287_s17 + $0x38] sm:$0xff]   ;;  %v1335_v26 = vld [vmem:[%s1287_s17 + $0x40] sm:$0xff]  }
  0x12   : > { %v1135_v14 = vunpack.c.l.bf16 %v1305_v7  ;;  %v230_v15 = vsel %vm229_vm0, %v1119_v3, 0.0  ;;  %v231_v16 = vsel %vm229_vm0, %v1123_v4, 0.0  ;;  %v233_v17 = vsel %vm229_vm0, %v1127_v6, 0.0 }
  0x13   : > { %v1136_v18 = vunpack.c.h.bf16 %v1305_v7  ;;  %v1139_v19 = vunpack.c.l.bf16 %v1312_v12  ;;  %v232_v21 = vadd.f32 %v231_v16, %v230_v15  ;;  %v235_v22 = vsel %vm229_vm0, %v1131_v11, 0.0 }
  0x14   : > { %v245_v23 = vsel %vm229_vm0, %v1120_v8, 0.0  ;;  %v246_v24 = vsel %vm229_vm0, %v1124_v9, 0.0  ;;  %v248_v25 = vsel %vm229_vm0, %v1128_v10, 0.0  ;;  %v1140_v29 = vunpack.c.h.bf16 %v1312_v12 }
  0x15   : > { %v234_v27 = vadd.f32 %v233_v17, %v232_v21  ;;  %v247_v28 = vadd.f32 %v246_v24, %v245_v23  ;;  %v1143_v30 = vunpack.c.l.bf16 %v1328_v20  ;;  %v237_v31 = vsel %vm229_vm0, %v1135_v14, 0.0 }
  0x16   : > { %v250_v32 = vsel %vm229_vm0, %v1132_v13, 0.0  ;;  %v1144_v35 = vunpack.c.h.bf16 %v1328_v20  ;;  %v1147_v36 = vunpack.c.l.bf16 %v1335_v26  ;;  %v239_v37 = vsel %vm229_vm0, %v1139_v19, 0.0 }
  0x17   : > { %v236_v33 = vadd.f32 %v235_v22, %v234_v27  ;;  %v249_v34 = vadd.f32 %v248_v25, %v247_v28  ;;  %v252_v38 = vsel %vm229_vm0, %v1136_v18, 0.0  ;;  %v1148_v41 = vunpack.c.h.bf16 %v1335_v26 }
  0x18   : > { %v241_v42 = vsel %vm229_vm0, %v1143_v30, 0.0  ;;  %v254_v43 = vsel %vm229_vm0, %v1140_v29, 0.0  ;;  %v243_v46 = vsel %vm229_vm0, %v1147_v36, 0.0  ;;  %v256_v47 = vsel %vm229_vm0, %v1144_v35, 0.0 }
  0x19   : > { %v238_v39 = vadd.f32 %v237_v31, %v236_v33  ;;  %v251_v40 = vadd.f32 %v250_v32, %v249_v34  ;;  %v258_v50 = vsel %vm229_vm0, %v1148_v41, 0.0 }
  0x1b   : > { %v240_v44 = vadd.f32 %v239_v37, %v238_v39  ;;  %v253_v45 = vadd.f32 %v252_v38, %v251_v40 }
  0x1d   : > { %v242_v48 = vadd.f32 %v241_v42, %v240_v44  ;;  %v255_v49 = vadd.f32 %v254_v43, %v253_v45 }
  0x1f   : > { %v244_v51 = vadd.f32 %v243_v46, %v242_v48  ;;  %v257_v52 = vadd.f32 %v256_v47, %v255_v49 }
  0x21   : > { %v259_v53 = vadd.f32 %v258_v50, %v257_v52  ;;  %v263_v54 = vrot.slane %v244_v51, 1 }
  0x23   : > { %v264_v55 = vrot.slane %v259_v53, 1 }
  0x25   : > { %v265_v56 = vsel %vm262_vm1, %v263_v54, %v264_v55 }
  0x26   : > { %v267_v57 = vsel %vm229_vm0, %v265_v56, 0.0 }
  0x27   : > { %v268_v58 = vrot.slane %v267_v57, 4 }
  0x29   : > { %v269_v59 = vadd.f32 %v268_v58, %v267_v57 }
  0x2b   : > { %v270_v60 = vrot.slane %v269_v59, 2 }
  0x2d   : > { %v271_v61 = vadd.f32 %v270_v60, %v269_v59 }
  0x2f   : > { %v272_v62 = vrot.slane %v271_v61, 1 }
  0x31   : > { %v273_v63 = vadd.f32 %v272_v62, %v271_v61 }
  0x33   : > { %v1353_v5 = vmul.f32 0.015625, %v273_v63 }
  0x35   : > { %v1358_v7 = vsub.f32 %v1119_v3, %v1353_v5  ;;  %v1363_v12 = vsub.f32 %v1123_v4, %v1353_v5  ;;  %v1368_v15 = vsub.f32 %v1127_v6, %v1353_v5  ;;  %v1371_v16 = vsub.f32 %v1120_v8, %v1353_v5 }
  0x36   : > { %v1374_v17 = vsub.f32 %v1124_v9, %v1353_v5  ;;  %v1377_v0 = vsub.f32 %v1128_v10, %v1353_v5  ;;  %v1380_v3 = vsub.f32 %v1131_v11, %v1353_v5  ;;  %v1383_v1 = vsub.f32 %v1132_v13, %v1353_v5 }
  0x37   : > { %v1386_v4 = vsub.f32 %v1135_v14, %v1353_v5  ;;  %v291_v2 = vmul.f32 %v1358_v7, %v1358_v7  ;;  %v293_v6 = vmul.f32 %v1363_v12, %v1363_v12  ;;  %v1393_v8 = vsub.f32 %v1136_v18, %v1353_v5 }
  0x38   : > { %v1396_v9 = vsub.f32 %v1139_v19, %v1353_v5  ;;  %v295_v10 = vmul.f32 %v1368_v15, %v1368_v15  ;;  %v292_v11 = vmul.f32 %v1371_v16, %v1371_v16  ;;  %v294_v13 = vmul.f32 %v1374_v17, %v1374_v17 }
  0x39   : > { %v296_v14 = vmul.f32 %v1377_v0, %v1377_v0  ;;  %v297_v20 = vmul.f32 %v1380_v3, %v1380_v3  ;;  %v1409_v18 = vsub.f32 %v1140_v29, %v1353_v5  ;;  %v1412_v19 = vsub.f32 %v1143_v30, %v1353_v5 }
  0x3a   : > { %v1415_v21 = vsub.f32 %v1144_v35, %v1353_v5  ;;  %v298_v22 = vmul.f32 %v1383_v1, %v1383_v1  ;;  %v299_v23 = vmul.f32 %v1386_v4, %v1386_v4  ;;  %v307_v24 = vsel %vm229_vm0, %v291_v2, 0.0 }
  0x3b   : > { %v308_v25 = vsel %vm229_vm0, %v293_v6, 0.0  ;;  %v310_v26 = vsel %vm229_vm0, %v295_v10, 0.0  ;;  %v1425_v27 = vsub.f32 %v1147_v36, %v1353_v5  ;;  %v300_v28 = vmul.f32 %v1393_v8, %v1393_v8 }
  0x3c   : > { %v301_v29 = vmul.f32 %v1396_v9, %v1396_v9  ;;  %v309_v30 = vadd.f32 %v308_v25, %v307_v24  ;;  %v312_v31 = vsel %vm229_vm0, %v297_v20, 0.0  ;;  %v322_v32 = vsel %vm229_vm0, %v292_v11, 0.0 }
  0x3d   : > { %v323_v33 = vsel %vm229_vm0, %v294_v13, 0.0  ;;  %v325_v34 = vsel %vm229_vm0, %v296_v14, 0.0  ;;  %v1436_v35 = vsub.f32 %v1148_v41, %v1353_v5  ;;  %v302_v38 = vmul.f32 %v1409_v18, %v1409_v18 }
  0x3e   : > { %v311_v36 = vadd.f32 %v310_v26, %v309_v30  ;;  %v324_v37 = vadd.f32 %v323_v33, %v322_v32  ;;  %v303_v39 = vmul.f32 %v1412_v19, %v1412_v19  ;;  %v314_v40 = vsel %vm229_vm0, %v299_v23, 0.0  ;;  %v1161_v26 = vld [vmem:[%s1287_s17 + $0x48] sm:$0xff]  }
  0x3f   : > { %v327_v42 = vsel %vm229_vm0, %v298_v22, 0.0  ;;  %v304_v45 = vmul.f32 %v1415_v21, %v1415_v21  ;;  %v305_v41 = vmul.f32 %v1425_v27, %v1425_v27  ;;  %v316_v46 = vsel %vm229_vm0, %v301_v29, 0.0 }
  0x40   : > { %v313_v43 = vadd.f32 %v312_v31, %v311_v36  ;;  %v326_v44 = vadd.f32 %v325_v34, %v324_v37  ;;  %v329_v47 = vsel %vm229_vm0, %v300_v28, 0.0  ;;  %v306_v50 = vmul.f32 %v1436_v35, %v1436_v35  ;;  %v1114_v28 = vld [vmem:[%s1287_s17] sm:$0xff]  }
  0x41   : > { %v318_v51 = vsel %vm229_vm0, %v303_v39, 0.0  ;;  %v331_v52 = vsel %vm229_vm0, %v302_v38, 0.0  ;;  %v320_v55 = vsel %vm229_vm0, %v305_v41, 0.0  ;;  %v333_v56 = vsel %vm229_vm0, %v304_v45, 0.0  ;;  %v1467_v34 = vld [vmem:[%s179_s20] ss:$0 sm:$0xff] }
  0x42   : > { %v315_v48 = vadd.f32 %v314_v40, %v313_v43  ;;  %v328_v49 = vadd.f32 %v327_v42, %v326_v44  ;;  %v335_v59 = vsel %vm229_vm0, %v306_v50, 0.0  ;;  %v1151_v29 = vunpack.c.l.bf16 %v1161_v26 }
  0x43   : > { %v1152_v30 = vunpack.c.h.bf16 %v1161_v26  ;;  %v1115_v31 = vunpack.c.l.bf16 %v1114_v28  ;;  %v1116_v32 = vunpack.c.h.bf16 %v1114_v28 }
  0x44   : > { %v317_v53 = vadd.f32 %v316_v46, %v315_v48  ;;  %v330_v54 = vadd.f32 %v329_v47, %v328_v49  ;;  %v1470_v36 = vsub.f32 %v1151_v29, %v1353_v5 }
  0x45   : > { %v1473_v37 = vsub.f32 %v1152_v30, %v1353_v5  ;;  %v1476_v38 = vsub.f32 %v1115_v31, %v1353_v5  ;;  %v1479_v39 = vsub.f32 %v1116_v32, %v1353_v5 }
  0x46   : > { %v319_v57 = vadd.f32 %v318_v51, %v317_v53  ;;  %v332_v58 = vadd.f32 %v331_v52, %v330_v54 }
  0x48   : > { %v321_v60 = vadd.f32 %v320_v55, %v319_v57  ;;  %v334_v61 = vadd.f32 %v333_v56, %v332_v58 }
  0x4a   : > { %v336_v62 = vadd.f32 %v335_v59, %v334_v61  ;;  %v339_v63 = vrot.slane %v321_v60, 1 }
  0x4c   : > { %v340_v2 = vrot.slane %v336_v62, 1 }
  0x4e   : > { %v341_v6 = vsel %vm262_vm1, %v339_v63, %v340_v2 }
  0x4f   : > { %v343_v10 = vsel %vm229_vm0, %v341_v6, 0.0 }
  0x50   : > { %v344_v11 = vrot.slane %v343_v10, 4 }
  0x52   : > { %v345_v13 = vadd.f32 %v344_v11, %v343_v10 }
  0x54   : > { %v346_v14 = vrot.slane %v345_v13, 2 }
  0x56   : > { %v347_v20 = vadd.f32 %v346_v14, %v345_v13 }
  0x58   : > { %v348_v22 = vrot.slane %v347_v20, 1 }
  0x5a   : > { %v349_v23 = vadd.f32 %v348_v22, %v347_v20 }
  0x5c   : > { %v350_v24 = vmul.f32 0.015625, %v349_v23 }
  0x5e   : > { %v356_v25 = vadd.f32 1e-05, %v350_v24 }
  0x60   : > { %1235 = vrsqrt.f32 %v356_v25 }
  0x6d   : > { %v1465_v33 = vpop.eup %1235 }
  0x6e   : > { %v368_v40 = vmul.f32 %v1465_v33, %v1386_v4  ;;  %v369_v42 = vmul.f32 %v1465_v33, %v1393_v8  ;;  %v360_v43 = vmul.f32 %v1465_v33, %v1358_v7  ;;  %v361_v44 = vmul.f32 %v1465_v33, %v1371_v16 }
  0x6f   : > { %v370_v45 = vmul.f32 %v1465_v33, %v1396_v9  ;;  %v371_v41 = vmul.f32 %v1465_v33, %v1409_v18  ;;  %v362_v46 = vmul.f32 %v1465_v33, %v1363_v12  ;;  %v363_v4 = vmul.f32 %v1465_v33, %v1374_v17 }
  0x70   : > { %v395_v8 = vadd.f32 %v1467_v34, %v368_v40  ;;  %v396_v47 = vadd.f32 %v1467_v34, %v369_v42  ;;  %v387_v7 = vadd.f32 %v1467_v34, %v360_v43  ;;  %v388_v16 = vadd.f32 %v1467_v34, %v361_v44 }
  0x71   : > { %v397_v48 = vadd.f32 %v1467_v34, %v370_v45  ;;  %v398_v9 = vadd.f32 %v1467_v34, %v371_v41  ;;  %v389_v18 = vadd.f32 %v1467_v34, %v362_v46  ;;  %v390_v49 = vadd.f32 %v1467_v34, %v363_v4 }
  0x72   : > { %vm416_vm2 = vcmp.ge.f32.partialorder %v395_v8, 0.0  ;;  %vm417_vm3 = vcmp.ge.f32.partialorder %v396_v47, 0.0  ;;  %v437_v12 = vmul.f32 0.2, %v395_v8  ;;  %v438_v17 = vmul.f32 0.2, %v396_v47 }
  0x73   : > { %vm408_vm4 = vcmp.ge.f32.partialorder %v387_v7, 0.0  ;;  %vm409_vm5 = vcmp.ge.f32.partialorder %v388_v16, 0.0  ;;  %v429_v50 = vmul.f32 0.2, %v387_v7  ;;  %v430_v51 = vmul.f32 0.2, %v388_v16 }
  0x74   : > { %v458_v52 = vsel %vm416_vm2, %v395_v8, %v437_v12  ;;  %v459_v53 = vsel %vm417_vm3, %v396_v47, %v438_v17  ;;  %vm418_vm6 = vcmp.ge.f32.partialorder %v397_v48, 0.0  ;;  %vm419_vm7 = vcmp.ge.f32.partialorder %v398_v9, 0.0 }
  0x75   : > { %v1505_v54 = vpack.c.bf16 %v459_v53, %v458_v52  ;;  %v450_v55 = vsel %vm408_vm4, %v387_v7, %v429_v50  ;;  %v451_v56 = vsel %vm409_vm5, %v388_v16, %v430_v51  ;;  %v439_v57 = vmul.f32 0.2, %v397_v48 }
  0x76   : > { %v1507_v58 = vpack.c.bf16 %v451_v56, %v450_v55  ;;  %v440_v59 = vmul.f32 0.2, %v398_v9  ;;  %vm410_vm8 = vcmp.ge.f32.partialorder %v389_v18, 0.0  ;;  %vm411_vm9 = vcmp.ge.f32.partialorder %v390_v49, 0.0 }
  0x77   : > { %616 = vrot.lane.b32.xlu1 %v1505_v54, %s1245_s21  ;;  %v460_v60 = vsel %vm418_vm6, %v397_v48, %v439_v57  ;;  %v431_v61 = vmul.f32 0.2, %v389_v18  ;;  %v432_v62 = vmul.f32 0.2, %v390_v49  ;;  %v372_v63 = vmul.f32 %v1465_v33, %v1412_v19 }
  0x78   : > { %608 = vrot.lane.b32.xlu0 %v1507_v58, %s1245_s21  ;;  %v461_v2 = vsel %vm419_vm7, %v398_v9, %v440_v59  ;;  %v373_v6 = vmul.f32 %v1465_v33, %v1415_v21  ;;  %v364_v10 = vmul.f32 %v1465_v33, %v1368_v15  ;;  %v365_v11 = vmul.f32 %v1465_v33, %v1377_v0 }
  0x79   : > { %v1522_v13 = vpack.c.bf16 %v461_v2, %v460_v60  ;;  %v452_v14 = vsel %vm410_vm8, %v389_v18, %v431_v61  ;;  %v453_v20 = vsel %vm411_vm9, %v390_v49, %v432_v62  ;;  %v399_v19 = vadd.f32 %v1467_v34, %v372_v63  ;;  %v206_v62 = vld [vmem:[%s1287_s17 + $0x50] sm:$0xf]  ;;  %s1879_s17 = scalar_lea.vmem %s1903_s3, %s1112_s14 }
  0x7a   : > { %v1525_v22 = vpack.c.bf16 %v453_v20, %v452_v14  ;;  %v400_v23 = vadd.f32 %v1467_v34, %v373_v6  ;;  %v391_v24 = vadd.f32 %v1467_v34, %v364_v10  ;;  %v392_v21 = vadd.f32 %v1467_v34, %v365_v11 }
  0x7b   : > { %618 = vrot.lane.b32.xlu1 %v1522_v13, %s1245_s21  ;;  %vm420_vm10 = vcmp.ge.f32.partialorder %v399_v19, 0.0  ;;  %v441_v15 = vmul.f32 0.2, %v399_v19  ;;  %v374_v0 = vmul.f32 %v1465_v33, %v1425_v27  ;;  %v375_v25 = vmul.f32 %v1465_v33, %v1436_v35 }
  0x7c   : > { %610 = vrot.lane.b32.xlu0 %v1525_v22, %s1245_s21  ;;  %vm421_vm11 = vcmp.ge.f32.partialorder %v400_v23, 0.0  ;;  %v442_v26 = vmul.f32 0.2, %v400_v23  ;;  %vm412_vm12 = vcmp.ge.f32.partialorder %v391_v24, 0.0  ;;  %vm413_vm13 = vcmp.ge.f32.partialorder %v392_v21, 0.0 }
  0x7d   : > { %v462_v28 = vsel %vm420_vm10, %v399_v19, %v441_v15  ;;  %v433_v29 = vmul.f32 0.2, %v391_v24  ;;  %v434_v30 = vmul.f32 0.2, %v392_v21  ;;  %v401_v31 = vadd.f32 %v1467_v34, %v374_v0 }
  0x7e   : > { %v463_v32 = vsel %vm421_vm11, %v400_v23, %v442_v26  ;;  %v402_v40 = vadd.f32 %v1467_v34, %v375_v25  ;;  %v366_v27 = vmul.f32 %v1465_v33, %v1380_v3  ;;  %v367_v35 = vmul.f32 %v1465_v33, %v1383_v1 }
  0x7f   : > { %675 = vrot.lane.b32.xlu1 %v1522_v13, %s1246_s22  ;;  %v1546_v42 = vpack.c.bf16 %v463_v32, %v462_v28  ;;  %v454_v43 = vsel %vm412_vm12, %v391_v24, %v433_v29  ;;  %v455_v44 = vsel %vm413_vm13, %v392_v21, %v434_v30  ;;  %vm422_vm14 = vcmp.ge.f32.partialorder %v401_v31, 0.0 }
  0x80   : > { %667 = vrot.lane.b32.xlu0 %v1525_v22, %s1246_s22  ;;  %v1550_v45 = vpack.c.bf16 %v455_v44, %v454_v43  ;;  %vm423_vm15 = vcmp.ge.f32.partialorder %v402_v40, 0.0  ;;  %v443_v41 = vmul.f32 0.2, %v401_v31  ;;  %v444_v3 = vmul.f32 0.2, %v402_v40 }
  0x81   : > { %v393_v46 = vadd.f32 %v1467_v34, %v366_v27  ;;  %v394_v1 = vadd.f32 %v1467_v34, %v367_v35  ;;  %v376_v4 = vmul.f32 %v1465_v33, %v1470_v36  ;;  %v377_v8 = vmul.f32 %v1465_v33, %v1473_v37 }
  0x82   : > { %v464_v47 = vsel %vm422_vm14, %v401_v31, %v443_v41  ;;  %v358_v7 = vmul.f32 %v1465_v33, %v1476_v38  ;;  %v465_v16 = vsel %vm423_vm15, %v402_v40, %v444_v3  ;;  %v359_v37 = vmul.f32 %v1465_v33, %v1479_v39 }
  0x83   : > { %677 = vrot.lane.b32.xlu1 %v1546_v42, %s1246_s22  ;;  %vm414_vm2 = vcmp.ge.f32.partialorder %v393_v46, 0.0  ;;  %vm415_vm3 = vcmp.ge.f32.partialorder %v394_v1, 0.0  ;;  %v435_v48 = vmul.f32 0.2, %v393_v46  ;;  %v436_v9 = vmul.f32 0.2, %v394_v1 }
  0x84   : > { %669 = vrot.lane.b32.xlu0 %v1550_v45, %s1246_s22  ;;  %v403_v36 = vadd.f32 %v1467_v34, %v376_v4  ;;  %v404_v18 = vadd.f32 %v1467_v34, %v377_v8  ;;  %v385_v38 = vadd.f32 %v1467_v34, %v358_v7  ;;  %v1571_v17 = vpack.c.bf16 %v465_v16, %v464_v47 }
  0x85   : > { %v456_v49 = vsel %vm414_vm2, %v393_v46, %v435_v48  ;;  %v457_v12 = vsel %vm415_vm3, %v394_v1, %v436_v9  ;;  %v386_v50 = vadd.f32 %v1467_v34, %v359_v37  ;;  %v584_v6 = vrot.slane %v1505_v54, 1 }
  0x86   : > { %vm406_vm4 = vcmp.ge.f32.partialorder %v385_v38, 0.0  ;;  %v1576_v51 = vpack.c.bf16 %v457_v12, %v456_v49  ;;  %v445_v52 = vmul.f32 0.2, %v403_v36  ;;  %v446_v39 = vmul.f32 0.2, %v404_v18 }
  0x87   : > { %620 = vrot.lane.b32.xlu1 %v1546_v42, %s1245_s21  ;;  %v427_v53 = vmul.f32 0.2, %v385_v38  ;;  %vm424_vm5 = vcmp.ge.f32.partialorder %v403_v36, 0.0  ;;  %vm425_vm6 = vcmp.ge.f32.partialorder %v404_v18, 0.0  ;;  %vm407_vm7 = vcmp.ge.f32.partialorder %v386_v50, 0.0 }
  0x88   : > { %612 = vrot.lane.b32.xlu0 %v1550_v45, %s1245_s21  ;;  %v428_v55 = vmul.f32 0.2, %v386_v50  ;;  %v466_v59 = vsel %vm424_vm5, %v403_v36, %v445_v52  ;;  %v467_v60 = vsel %vm425_vm6, %v404_v18, %v446_v39  ;;  %v582_v2 = vrot.slane %v1576_v51, 1 }
  0x89   : > { %v448_v56 = vsel %vm406_vm4, %v385_v38, %v427_v53  ;;  %v1587_v63 = vpack.c.bf16 %v467_v60, %v466_v59  ;;  %v227_v10 = vunpack.c.l.bf16 %v206_v62  ;;  %v576_v14 = vrot.slane %v1507_v58, 1  ;;  %v1230_v38 = vld [vmem:[%s1902_s2 + $0x20] ss:$0 sps:$4 sm:$0xff]   ;;  %v1231_v59 = vld [vmem:[%s1902_s2 + $0x18] sm:$0xff]  }
  0x8a   : > { %v449_v57 = vsel %vm407_vm7, %v386_v50, %v428_v55  ;;  %v1600_v20 = vsel %vm262_vm1, %v582_v2, %v584_v6  ;;  %v586_v19 = vrot.slane %v1522_v13, 1  ;;  %v578_v21 = vrot.slane %v1525_v22, 1 }
  0x8b   : > { %622 = vrot.lane.b32.xlu1 %v1571_v17, %s1245_s21  ;;  %v1582_v61 = vpack.c.bf16 %v449_v57, %v448_v56  ;;  %v355_v23 = vsub.f32 %v227_v10, %v1353_v5  ;;  %v545_v15 = vshll.u32 %v1571_v17, 16  ;;  %v624_v0 = vshrl.u32 %v1571_v17, 16 }
  0x8c   : > { %614 = vrot.lane.b32.xlu0 %v1576_v51, %s1245_s21  ;;  %v628_v25 = vshll.u32 %v1587_v63, 16  ;;  %v1613_v26 = vsel %vm262_vm1, %v584_v6, %v586_v19  ;;  %v579_v29 = vsel %vm262_vm1, %v576_v14, %v578_v21  ;;  %vm480_vm8 = vsmask.f32 7424 }
  0x8d   : > { %v575_v11 = vrot.slane %v1582_v61, 1  ;;  %v1615_v5 = vrot.slane %v545_v15, 1  ;;  %v378_v28 = vmul.f32 %v1465_v33, %v355_v23  ;;  %v588_v40 = vrot.slane %v1546_v42, 1 }
  0x8e   : > { %v630_v30 = vrot.slane %v628_v25, 1  ;;  %v580_v35 = vrot.slane %v1550_v45, 1  ;;  %v683_v43 = vshrl.u32 %v1587_v63, 16  ;;  %v649_v3 = vrot.slane %v1587_v63, 1 }
  0x8f   : > { %679 = vrot.lane.b32.xlu1 %v1571_v17, %s1246_s22  ;;  %v577_v24 = vsel %vm262_vm1, %v575_v11, %v576_v14  ;;  %v626_v31 = vor.u32 %v624_v0, %v1615_v5  ;;  %v405_v32 = vadd.f32 %v1467_v34, %v378_v28  ;;  %v589_v41 = vsel %vm262_vm1, %v586_v19, %v588_v40  ;;  %v1232_v14 = vld [vmem:[%s1902_s2 + $0x10] sm:$0xff]   ;;  %v1233_v0 = vld [vmem:[%s1902_s2 + $0x8] sm:$0xff]  }
  0x90   : > { %671 = vrot.lane.b32.xlu0 %v1576_v51, %s1246_s22  ;;  %v581_v46 = vsel %vm262_vm1, %v578_v21, %v580_v35  ;;  %v685_v1 = vor.u32 %v683_v43, %v630_v30  ;;  %v590_v16 = vrot.slane %v1571_v17, 1  ;;  %v583_v36 = vsel %vm262_vm1, %v580_v35, %v582_v2 }
  0x91   : > { %v1626_v27 = vsel %vm480_vm8, %v626_v31, %v630_v30  ;;  %vm426_vm9 = vcmp.ge.f32.partialorder %v405_v32, 0.0  ;;  %v447_v33 = vmul.f32 0.2, %v405_v32  ;;  %v489_v18 = vshll.u32 %v1507_v58, 16 }
  0x92   : > { %v591_v9 = vsel %vm262_vm1, %v588_v40, %v590_v16  ;;  %v484_v37 = vshll.u32 %v1582_v61, 16  ;;  %v493_v49 = vshrl.u32 %v1507_v58, 16  ;;  %v497_v17 = vshll.u32 %v1525_v22, 16  ;;  %v1234_v40 = vld [vmem:[%s1902_s2] sm:$0xff]  }
  0x93   : > { %681 = vrot.lane.b32.xlu1 %v1587_v63, %s1246_s22  ;;  %v468_v44 = vsel %vm426_vm9, %v405_v32, %v447_v33  ;;  %v491_v12 = vrot.slane %v489_v18, 1  ;;  %v521_v50 = vshll.u32 %v1505_v54, 16  ;;  %vm914_vm10 = vcmask 1043456  }
  0x94   : > { %673 = vrot.lane.b32.xlu0 %v1505_v54, %s1246_s22  ;;  %v479_v34 = vpack.c.bf16 %v468_v44, %v468_v44  ;;  %v482_v52 = vshrl.u32 %v1582_v61, 16  ;;  %v486_v39 = vrot.slane %v484_v37, 1  ;;  %v513_v53 = vshll.u32 %v1576_v51, 16  ;;  %1211 = vmatprep.subr.msk.bf16.mxu0 %vm914_vm10, %v1230_v38 }
  0x95   : > { %1212 = vmatprep.subr.msk.bf16.mxu1 %vm914_vm10, %v1230_v38  ;;  %v916_v55 = vsel %vm914_vm10, %v1230_v38, 0  ;;  %v1667_v56 = vsel %vm262_vm1, %v590_v16, %v649_v3  ;;  %v525_v57 = vshrl.u32 %v1505_v54, 16  ;;  %v495_v60 = vor.u32 %v493_v49, %v491_v12 }
  0x96   : > { %v687_v4 = vshll.u32 %v479_v34, 16  ;;  %v708_v8 = vrot.slane %v479_v34, 1  ;;  %1176 = vmatpush3.bf16.msra.mxu0 %v916_v55  ;;  %1206 = vmatpush3.bf16.msra.mxu1 %v916_v55  ;;  %v499_v62 = vrot.slane %v497_v17, 1  ;;  %v523_v63 = vrot.slane %v521_v50, 1 }
  0x97   : > { %600 = vrot.lane.b32.xlu1 %v1600_v20, %s1247_s23  ;;  %v529_v2 = vshll.u32 %v1522_v13, 16  ;;  %v487_v6 = vor.u32 %v486_v39, %v482_v52  ;;  %v515_v10 = vrot.slane %v513_v53, 1  ;;  %v517_v11 = vshrl.u32 %v1576_v51, 16  ;;  %1177 = vmatprep.subr.bf16.mxu0 %v1231_v59 }
  0x98   : > { %592 = vrot.lane.b32.xlu0 %v577_v24, %s1247_s23  ;;  %v689_v47 = vrot.slane %v687_v4, 1  ;;  %v1638_v7 = vsel %vm262_vm1, %v649_v3, %v708_v8  ;;  %1202 = vmatprep.subr.bf16.mxu1 %v1231_v59  ;;  %v500_v19 = vsel %vm480_vm8, %v495_v60, %v499_v62  ;;  %v527_v23 = vor.u32 %v525_v57, %v523_v63 }
  0x99   : > { %v531_v24 = vrot.slane %v529_v2, 1  ;;  %v492_v21 = vsel %vm480_vm8, %v487_v6, %v491_v12  ;;  %v519_v15 = vor.u32 %v517_v11, %v515_v10  ;;  %v533_v28 = vshrl.u32 %v1522_v13, 16 }
  0x9a   : > { %v1643_v48 = vsel %vm480_vm8, %v685_v1, %v689_v47  ;;  %1178 = vmatpush3.bf16.msra.mxu0 %v1231_v59  ;;  %1207 = vmatpush3.bf16.msra.mxu1 %v1231_v59  ;;  %v501_v31 = vshrl.u32 %v1525_v22, 16  ;;  %v505_v32 = vshll.u32 %v1550_v45, 16  ;;  %vm742_vm1 = vcmask 130048  }
  0x9b   : > { %602 = vrot.lane.b32.xlu1 %v1613_v26, %s1247_s23  ;;  %1179 = vmatprep.subr.bf16.mxu0 %v1232_v14  ;;  %v532_v25 = vsel %vm480_vm8, %v527_v23, %v531_v24  ;;  %v524_v30 = vsel %vm480_vm8, %v519_v15, %v523_v63  ;;  %v535_v33 = vor.u32 %v533_v28, %v531_v24  ;;  %vm759_vm11 = vcmask 195584  }
  0x9c   : > { %594 = vrot.lane.b32.xlu0 %v579_v29, %s1247_s23  ;;  %1203 = vmatprep.subr.bf16.mxu1 %v1232_v14  ;;  %v503_v43 = vor.u32 %v501_v31, %v499_v62  ;;  %v507_v44 = vrot.slane %v505_v32, 1  ;;  %vm776_vm12 = vcmask 261120   ;;  %vm793_vm13 = vcmask 326656  }
  0x9d   : > { %vm810_vm14 = vcmask 392192   ;;  %vm827_vm15 = vcmask 457728   ;;  %vm844_vm2 = vcmask 523264   ;;  %vm897_vm3 = vcmask 588800  }
  0x9e   : > { %1180 = vmatpush3.bf16.msra.mxu0 %v1232_v14  ;;  %1208 = vmatpush3.bf16.msra.mxu1 %v1232_v14  ;;  %v508_v3 = vsel %vm480_vm8, %v503_v43, %v507_v44 }
  0x9f   : > { %659 = vrot.lane.b32.xlu1 %v1613_v26, %s1248_s24  ;;  %1181 = vmatprep.subr.bf16.mxu0 %v1233_v0 }
  0xa0   : > { %651 = vrot.lane.b32.xlu0 %v579_v29, %s1248_s24  ;;  %v537_v29 = vshll.u32 %v1546_v42, 16  ;;  %1204 = vmatprep.subr.bf16.mxu1 %v1233_v0 }
  0xa2   : > { %1182 = vmatpush3.bf16.msra.mxu0 %v1233_v0  ;;  %1209 = vmatpush3.bf16.msra.mxu1 %v1233_v0  ;;  %v539_v35 = vrot.slane %v537_v29, 1 }
  0xa3   : > { %661 = vrot.lane.b32.xlu1 %v589_v41, %s1248_s24  ;;  %1183 = vmatprep.subr.bf16.mxu0 %v1234_v40 }
  0xa4   : > { %653 = vrot.lane.b32.xlu0 %v581_v46, %s1248_s24  ;;  %1205 = vmatprep.subr.bf16.mxu1 %v1234_v40  ;;  %v540_v34 = vsel %vm480_vm8, %v535_v33, %v539_v35 }
  0xa6   : > { %1184 = vmatpush3.bf16.msra.mxu0 %v1234_v40  ;;  %1210 = vmatpush3.bf16.msra.mxu1 %v1234_v40 }
  0xa7   : > { %718 = vrot.lane.b32.xlu1 %v589_v41, %s1249_s25 }
  0xa8   : > { %710 = vrot.lane.b32.xlu0 %v581_v46, %s1249_s25 }
  0xab   : > { %720 = vrot.lane.b32.xlu1 %v591_v9, %s1249_s25 }
  0xac   : > { %712 = vrot.lane.b32.xlu0 %v583_v36, %s1249_s25 }
  0xaf   : > { %604 = vrot.lane.b32.xlu1 %v589_v41, %s1247_s23  ;;  %v541_v41 = vshrl.u32 %v1546_v42, 16 }
  0xb0   : > { %596 = vrot.lane.b32.xlu0 %v581_v46, %s1247_s23  ;;  %v509_v46 = vshrl.u32 %v1550_v45, 16 }
  0xb1   : > { %v543_v1 = vor.u32 %v541_v41, %v539_v35 }
  0xb2   : > { %v511_v4 = vor.u32 %v509_v46, %v507_v44 }
  0xb3   : > { %606 = vrot.lane.b32.xlu1 %v591_v9, %s1247_s23  ;;  %v548_v8 = vsel %vm480_vm8, %v543_v1, %v1615_v5 }
  0xb4   : > { %598 = vrot.lane.b32.xlu0 %v583_v36, %s1247_s23  ;;  %v516_v47 = vsel %vm480_vm8, %v511_v4, %v515_v10 }
  0xb7   : > { %663 = vrot.lane.b32.xlu1 %v591_v9, %s1248_s24 }
  0xb8   : > { %655 = vrot.lane.b32.xlu0 %v583_v36, %s1248_s24 }
  0xbb   : > { %665 = vrot.lane.b32.xlu1 %v1667_v56, %s1248_s24 }
  0xbc   : > { %657 = vrot.lane.b32.xlu0 %v1600_v20, %s1248_s24 }
  0xbf   : > { %551 = vrot.lane.b32.xlu1 %v500_v19, %s1250_s5 }
  0xc0   : > { %549 = vrot.lane.b32.xlu0 %v492_v21, %s1250_s5 }
  0xc3   : > { %559 = vrot.lane.b32.xlu1 %v532_v25, %s1250_s5 }
  0xc4   : > { %557 = vrot.lane.b32.xlu0 %v524_v30, %s1250_s5 }
  0xc7   : > { %640 = vrot.lane.b32.xlu1 %v532_v25, %s1251_s10 }
  0xc8   : > { %632 = vrot.lane.b32.xlu0 %v500_v19, %s1251_s10 }
  0xcb   : > { %642 = vrot.lane.b32.xlu1 %v540_v34, %s1251_s10 }
  0xcc   : > { %634 = vrot.lane.b32.xlu0 %v508_v3, %s1251_s10 }
  0xcf   : > { %699 = vrot.lane.b32.xlu1 %v540_v34, %s1252_s11 }
  0xd0   : > { %691 = vrot.lane.b32.xlu0 %v508_v3, %s1252_s11 }
  0xd3   : > { %701 = vrot.lane.b32.xlu1 %v548_v8, %s1252_s11 }
  0xd4   : > { %693 = vrot.lane.b32.xlu0 %v516_v47, %s1252_s11 }
  0xd7   : > { %561 = vrot.lane.b32.xlu1 %v540_v34, %s1250_s5 }
  0xd8   : > { %553 = vrot.lane.b32.xlu0 %v508_v3, %s1250_s5 }
  0xdb   : > { %563 = vrot.lane.b32.xlu1 %v548_v8, %s1250_s5 }
  0xdc   : > { %555 = vrot.lane.b32.xlu0 %v516_v47, %s1250_s5 }
  0xdf   : > { %644 = vrot.lane.b32.xlu1 %v548_v8, %s1251_s10 }
  0xe0   : > { %636 = vrot.lane.b32.xlu0 %v516_v47, %s1251_s10 }
  0xe3   : > { %646 = vrot.lane.b32.xlu1 %v1626_v27, %s1251_s10 }
  0xe4   : > { %638 = vrot.lane.b32.xlu0 %v524_v30, %s1251_s10 }
  0xe7   : > { %703 = vrot.lane.b32.xlu1 %v1626_v27, %s1252_s11 }
  0xe8   : > { %695 = vrot.lane.b32.xlu0 %v524_v30, %s1252_s11 }
  0xe9   : > { %v617_v5 = vpop.permute.xlu1 %616 }
  0xea   : > { %v609_v16 = vpop.permute.xlu0 %608 }
  0xeb   : > { %705 = vrot.lane.b32.xlu1 %v1643_v48, %s1252_s11 }
  0xec   : > { %697 = vrot.lane.b32.xlu0 %v532_v25, %s1252_s11 }
  0xed   : > { %v1715_v9 = vpop.permute.xlu1 %618 }
  0xee   : > { %v1717_v36 = vpop.permute.xlu0 %610 }
  0xef   : > { %722 = vrot.lane.b32.xlu1 %v1667_v56, %s1249_s25 }
  0xf0   : > { %714 = vrot.lane.b32.xlu0 %v1600_v20, %s1249_s25 }
  0xf1   : > { %v1723_v18 = vpop.permute.xlu1 %675 }
  0xf2   : > { %v1725_v37 = vpop.permute.xlu0 %667 }
  0xf3   : > { %724 = vrot.lane.b32.xlu1 %v1638_v7, %s1249_s25 }
  0xf4   : > { %716 = vrot.lane.b32.xlu0 %v1613_v26, %s1249_s25 }
  0xf5   : > { %v1731_v27 = vpop.permute.xlu1 %677 }
  0xf6   : > { %v1733_v48 = vpop.permute.xlu0 %669 }
  0xf9   : > { %v1735_v49 = vpop.permute.xlu1 %620 }
  0xfa   : > { %v1737_v38 = vpop.permute.xlu0 %612 }
  0xfd   : > { %v1739_v12 = vpop.permute.xlu1 %622 }
  0xfe   : > { %v1741_v20 = vpop.permute.xlu0 %614 }
 0x101   : > { %v1743_v17 = vpop.permute.xlu1 %679 }
 0x102   : > { %v1745_v50 = vpop.permute.xlu0 %671 }
 0x105   : > { %v1747_v7 = vpop.permute.xlu1 %681 }
 0x106   : > { %v1749_v52 = vpop.permute.xlu0 %673 }
 0x109   : > { %v601_v26 = vpop.permute.xlu1 %600 }
 0x10a   : > { %v593_v39 = vpop.permute.xlu0 %592 }
 0x10d   : > { %v603_v53 = vpop.permute.xlu1 %602 }
 0x10e   : > { %v595_v55 = vpop.permute.xlu0 %594 }
 0x111   : > { %v660_v56 = vpop.permute.xlu1 %659 }
 0x112   : > { %v652_v57 = vpop.permute.xlu0 %651 }
 0x115   : > { %v662_v59 = vpop.permute.xlu1 %661 }
 0x116   : > { %v654_v60 = vpop.permute.xlu0 %653 }
 0x119   : > { %v719_v62 = vpop.permute.xlu1 %718 }
 0x11a   : > { %v711_v63 = vpop.permute.xlu0 %710 }
 0x11d   : > { %v1751_v2 = vpop.permute.xlu1 %720 }
 0x11e   : > { %v1753_v6 = vpop.permute.xlu0 %712 }
 0x121   : > { %v1755_v10 = vpop.permute.xlu1 %604 }
 0x122   : > { %v1757_v11 = vpop.permute.xlu0 %596 }
 0x125   : > { %v1759_v14 = vpop.permute.xlu1 %606 }
 0x126   : > { %v1761_v19 = vpop.permute.xlu0 %598 }
 0x129   : > { %v1763_v23 = vpop.permute.xlu1 %663 }
 0x12a   : > { %v1765_v24 = vpop.permute.xlu0 %655 }
 0x12d   : > { %v1767_v21 = vpop.permute.xlu1 %665 }
 0x12e   : > { %v1769_v15 = vpop.permute.xlu0 %657 }
 0x131   : > { %v552_v0 = vpop.permute.xlu1 %551 }
 0x132   : > { %v550_v25 = vpop.permute.xlu0 %549  ;;  %v729_v35 = vsel %vm229_vm0, %v1507_v58, %v552_v0 }
 0x133   : > { %v727_v28 = vsel %vm229_vm0, %v1582_v61, %v550_v25  ;;  %v746_v3 = vsel %vm742_vm1, %v729_v35, %v595_v55 }
 0x134   : > { %v744_v32 = vsel %vm742_vm1, %v727_v28, %v593_v39 }
 0x135   : > { %v560_v29 = vpop.permute.xlu1 %559  ;;  %v761_v41 = vsel %vm759_vm11, %v744_v32, %v609_v16 }
 0x136   : > { %v558_v30 = vpop.permute.xlu0 %557  ;;  %v737_v40 = vsel %vm229_vm0, %v1505_v54, %v560_v29 }
 0x137   : > { %v735_v31 = vsel %vm229_vm0, %v1576_v51, %v558_v30  ;;  %v754_v34 = vsel %vm742_vm1, %v737_v40, %v603_v53 }
 0x138   : > { %v752_v33 = vsel %vm742_vm1, %v735_v31, %v601_v26  ;;  %v771_v58 = vsel %vm759_vm11, %v754_v34, %v1715_v9 }
 0x139   : > { %v641_v43 = vpop.permute.xlu1 %640  ;;  %v769_v61 = vsel %vm759_vm11, %v752_v33, %v617_v5  ;;  %v763_v5 = vsel %vm759_vm11, %v746_v3, %v1717_v36 }
 0x13a   : > { %v633_v44 = vpop.permute.xlu0 %632  ;;  %v786_v51 = vsel %vm776_vm12, %v769_v61, %v641_v43 }
 0x13b   : > { %v778_v54 = vsel %vm776_vm12, %v761_v41, %v633_v44  ;;  %v803_v1 = vsel %vm793_vm13, %v786_v51, %v660_v56 }
 0x13c   : > { %v795_v8 = vsel %vm793_vm13, %v778_v54, %v652_v57  ;;  %v820_v39 = vsel %vm810_vm14, %v803_v1, %v1723_v18 }
 0x13d   : > { %v643_v46 = vpop.permute.xlu1 %642  ;;  %v812_v55 = vsel %vm810_vm14, %v795_v8, %v1725_v37 }
 0x13e   : > { %v635_v4 = vpop.permute.xlu0 %634  ;;  %v788_v47 = vsel %vm776_vm12, %v771_v58, %v643_v46 }
 0x13f   : > { %v780_v16 = vsel %vm776_vm12, %v763_v5, %v635_v4  ;;  %v805_v9 = vsel %vm793_vm13, %v788_v47, %v662_v59 }
 0x140   : > { %v797_v57 = vsel %vm793_vm13, %v780_v16, %v654_v60  ;;  %v822_v18 = vsel %vm810_vm14, %v805_v9, %v1731_v27 }
 0x141   : > { %v700_v26 = vpop.permute.xlu1 %699  ;;  %v814_v37 = vsel %vm810_vm14, %v797_v57, %v1733_v48 }
 0x142   : > { %v837_v53 = vsel %vm827_vm15, %v820_v39, %v700_v26  ;;  %v692_v56 = vpop.permute.xlu0 %691 }
 0x143   : > { %v829_v36 = vsel %vm827_vm15, %v812_v55, %v692_v56  ;;  %v854_v0 = vsel %vm844_vm2, %v837_v53, %v719_v62 }
 0x144   : > { %v846_v25 = vsel %vm844_vm2, %v829_v36, %v711_v63  ;;  %1193 = vmatprep.mubr.msk.bf16.mxu1 %vm897_vm3, %v854_v0 }
 0x145   : > { %1185 = vmatprep.mubr.msk.bf16.mxu0 %vm897_vm3, %v846_v25  ;;  %v702_v59 = vpop.permute.xlu1 %701 }
 0x146   : > { %v839_v28 = vsel %vm827_vm15, %v822_v18, %v702_v59  ;;  %v694_v60 = vpop.permute.xlu0 %693 }
 0x147   : > { %v831_v29 = vsel %vm827_vm15, %v814_v37, %v694_v60  ;;  %v856_v62 = vsel %vm844_vm2, %v839_v28, %v1751_v2 }
 0x148   : > { %v848_v63 = vsel %vm844_vm2, %v831_v29, %v1753_v6  ;;  %1194 = vmatmul.mubr.msk.bf16.vlgmr.msra.gmra.mxu1 %vm897_vm3, %v856_v62 }
 0x149   : > { %1186 = vmatmul.mubr.msk.bf16.vlgmr.msra.gmra.mxu0 %vm897_vm3, %v848_v63  ;;  %v562_v27 = vpop.permute.xlu1 %561 }
 0x14a   : > { %v554_v30 = vpop.permute.xlu0 %553  ;;  %v739_v48 = vsel %vm229_vm0, %v1522_v13, %v562_v27 }
 0x14b   : > { %v731_v35 = vsel %vm229_vm0, %v1525_v22, %v554_v30  ;;  %v756_v6 = vsel %vm742_vm1, %v739_v48, %v1755_v10 }
 0x14c   : > { %v748_v61 = vsel %vm742_vm1, %v731_v35, %v1757_v11  ;;  %v773_v13 = vsel %vm759_vm11, %v756_v6, %v1735_v49 }
 0x14d   : > { %v564_v31 = vpop.permute.xlu1 %563  ;;  %v765_v10 = vsel %vm759_vm11, %v748_v61, %v1737_v38 }
 0x14e   : > { %v556_v32 = vpop.permute.xlu0 %555  ;;  %v741_v44 = vsel %vm229_vm0, %v1546_v42, %v564_v31 }
 0x14f   : > { %v733_v34 = vsel %vm229_vm0, %v1550_v45, %v556_v32  ;;  %v758_v22 = vsel %vm742_vm1, %v741_v44, %v1759_v14  ;;  %vm1015_vm0 = vcmask 60416  }
 0x150   : > { %v750_v11 = vsel %vm742_vm1, %v733_v34, %v1761_v19  ;;  %v775_v49 = vsel %vm759_vm11, %v758_v22, %v1739_v12 }
 0x151   : > { %v645_v40 = vpop.permute.xlu1 %644  ;;  %v767_v38 = vsel %vm759_vm11, %v750_v11, %v1741_v20 }
 0x152   : > { %v637_v33 = vpop.permute.xlu0 %636  ;;  %v790_v41 = vsel %vm776_vm12, %v773_v13, %v645_v40 }
 0x153   : > { %v782_v42 = vsel %vm776_vm12, %v765_v10, %v637_v33  ;;  %v807_v45 = vsel %vm793_vm13, %v790_v41, %v1763_v23 }
 0x154   : > { %v799_v14 = vsel %vm793_vm13, %v782_v42, %v1765_v24  ;;  %v824_v58 = vsel %vm810_vm14, %v807_v45, %v1743_v17 }
 0x155   : > { %v647_v2 = vpop.permute.xlu1 %646  ;;  %v816_v4 = vsel %vm810_vm14, %v799_v14, %v1745_v50 }
 0x156   : > { %v639_v43 = vpop.permute.xlu0 %638  ;;  %v792_v46 = vsel %vm776_vm12, %v775_v49, %v647_v2 }
 0x157   : > { %v784_v19 = vsel %vm776_vm12, %v767_v38, %v639_v43  ;;  %v809_v23 = vsel %vm793_vm13, %v792_v46, %v1767_v21 }
 0x158   : > { %v801_v8 = vsel %vm793_vm13, %v784_v19, %v1769_v15  ;;  %v826_v21 = vsel %vm810_vm14, %v809_v23, %v1747_v7 }
 0x159   : > { %v704_v51 = vpop.permute.xlu1 %703  ;;  %v818_v15 = vsel %vm810_vm14, %v801_v8, %v1749_v52 }
 0x15a   : > { %v696_v3 = vpop.permute.xlu0 %695  ;;  %v841_v12 = vsel %vm827_vm15, %v824_v58, %v704_v51 }
 0x15b   : > { %v833_v20 = vsel %vm827_vm15, %v816_v4, %v696_v3 }
 0x15d   : > { %v706_v54 = vpop.permute.xlu1 %705 }
 0x15e   : > { %v698_v1 = vpop.permute.xlu0 %697  ;;  %v843_v50 = vsel %vm827_vm15, %v826_v21, %v706_v54 }
 0x15f   : > { %v835_v26 = vsel %vm827_vm15, %v818_v15, %v698_v1 }
 0x161   : > { %v723_v24 = vpop.permute.xlu1 %722 }
 0x162   : > { %v858_v47 = vsel %vm844_vm2, %v841_v12, %v723_v24  ;;  %v715_v5 = vpop.permute.xlu0 %714 }
 0x163   : > { %v850_v17 = vsel %vm844_vm2, %v833_v20, %v715_v5  ;;  %1197 = vmatprep.mubr.msk.bf16.mxu1 %vm897_vm3, %v858_v47 }
 0x164   : > { %1189 = vmatprep.mubr.msk.bf16.mxu0 %vm897_vm3, %v850_v17 }
 0x165   : > { %v725_v16 = vpop.permute.xlu1 %724 }
 0x166   : > { %v860_v39 = vsel %vm844_vm2, %v843_v50, %v725_v16  ;;  %v717_v9 = vpop.permute.xlu0 %716 }
 0x167   : > { %v852_v53 = vsel %vm844_vm2, %v835_v26, %v717_v9  ;;  %1198 = vmatmul.mubr.msk.bf16.gmra.mxu1 %vm897_vm3, %v860_v39 }
 0x168   : > { %1190 = vmatmul.mubr.msk.bf16.gmra.mxu0 %vm897_vm3, %v852_v53 }
 0x208   : > { %v1195_v7 = vpop.f32.mrf.mxu1 }
 0x209   : > { %v1187_v52 = vpop.f32.mrf.mxu0  ;;  %v1012_v55 = vpack.c.bf16 %v1195_v7, %v1195_v7 }
 0x20a   : > { %v1008_v56 = vpack.c.bf16 %v1187_v52, %v1187_v52  ;;  %v980_v57 = vpop.f32.mrf.mxu1 }
 0x20b   : > { %1021 = vst.msk [vmem:[%s1879_s17 + $0x14] sm:$0xf] %vm1015_vm0, %v1012_v55  ;;  %v952_v36 = vpop.f32.mrf.mxu0  ;;  %v1011_v0 = vpack.c.bf16 %v980_v57, %v980_v57 }
 0x20c   : > { %1017 = vst.msk [vmem:[%s1879_s17 + $0x4] sm:$0xf] %vm1015_vm0, %v1008_v56  ;;  %v1007_v25 = vpack.c.bf16 %v952_v36, %v952_v36  ;;  %v1196_v18 = vpop.f32.mrf.mxu1 }
 0x20d   : > { %1020 = vst.msk [vmem:[%s1879_s17 + $0x10] sm:$0xf] %vm1015_vm0, %v1011_v0  ;;  %v1188_v59 = vpop.f32.mrf.mxu0 }
 0x20e   : > { %1016 = vst.msk [vmem:[%s1879_s17] sm:$0xf] %vm1015_vm0, %v1007_v25  ;;  %v983_v28 = vpop.f32.mrf.mxu1 }
 0x20f   : > { %v955_v37 = vpop.f32.mrf.mxu0 }
 0x227   : > { %v1199_v60 = vpop.f32.mrf.mxu1 }
 0x228   : > { %v1191_v29 = vpop.f32.mrf.mxu0  ;;  %v1014_v62 = vpack.c.bf16 %v1199_v60, %v1199_v60 }
 0x229   : > { %v1010_v63 = vpack.c.bf16 %v1191_v29, %v1191_v29  ;;  %v994_v27 = vpop.f32.mrf.mxu1 }
 0x22a   : > { %1023 = vst.msk [vmem:[%s1879_s17 + $0x1c] sm:$0xf] %vm1015_vm0, %v1014_v62  ;;  %v966_v30 = vpop.f32.mrf.mxu0  ;;  %v1013_v31 = vpack.c.bf16 %v994_v27, %v994_v27 }
 0x22b   : > { %1019 = vst.msk [vmem:[%s1879_s17 + $0xc] sm:$0xf] %vm1015_vm0, %v1010_v63  ;;  %v1009_v32 = vpack.c.bf16 %v966_v30, %v966_v30  ;;  %v1200_v40 = vpop.f32.mrf.mxu1 }
 0x22c   : > { %1022 = vst.msk [vmem:[%s1879_s17 + $0x18] sm:$0xf] %vm1015_vm0, %v1013_v31  ;;  %v1192_v33 = vpop.f32.mrf.mxu0 }
 0x22d   : > { %1018 = vst.msk [vmem:[%s1879_s17 + $0x8] sm:$0xf] %vm1015_vm0, %v1009_v32  ;;  %v997_v48 = vpop.f32.mrf.mxu1 }
 0x22e   : > { %v969_v35 = vpop.f32.mrf.mxu0 }
 0x22f PF: > { %s13_s12 = sadd.s32 1, %s1243_s12  }
 0x230   : > { %p10_p4 = scmp.ge.s32.totalorder %s13_s12, 4  }
 0x232   :  { %12 = sbr.rel (!%p10_p4) target bundleno = 1 (0x1), region = 65 }

// kernel: _lambda_.15
= control target key start
LH: loop header
LB: loop body
LE: loop exit
PB: predicated region body
PF: predicated region fallthrough
CT: control target
= control target key end

     0   :  { %s745_s12 = smov 0   ;;  %s886_s0 = inlined_call_operand.vmem [shape: bf16[2,56,16], index: 0, kind: input, shape index: {}]   ;;  %s887_s1 = inlined_call_operand.vmem [shape: f32[2,1,16], index: 1, kind: input, shape index: {}]   ;;  %s888_s2 = inlined_call_operand.vmem [shape: bf16[144,16], index: 2, kind: input, shape index: {}]   ;;  %s889_s3 = inlined_call_operand.vmem [shape: bf16[2,4,4,16], index: 3, kind: output, shape index: {}]  }
   0x1 LB: > { %s626_s13 = sadd.s32 4294967295, %s715_s12   ;;  %p630_p0 = scmp.ge.s32.totalorder %s715_s12, 1  ;;  %s715_s12 = sphi %s745_s12, %s13_s12  }
   0x2   : > { %p145_p1 = scmp.lt.s32.totalorder %s715_s12, 3 }
   0x4   : > { %p146_p2 = pnand %p630_p0, %p145_p1 }
   0x5   : > { %p172_p3 = scmp.lt.s32.totalorder (!%p146_p2), %s626_s13, 1  ;;  %s718_s6 = smov (!%p146_p2), 96  }
   0x6   : > { %149 = sbr.rel (%p146_p2) target bundleno = 438 (0x1b6), region = 32  ;;  %s719_s11 = smov (!%p146_p2), 48  }
   0x7   : > { %s720_s14 = smov (!%p146_p2), 32   ;;  %s721_s17 = smov (!%p146_p2), 80  }
   0x8   : > { %s722_s18 = smov (!%p146_p2), 16   ;;  %s723_s19 = smov (!%p146_p2), 64  }
   0x9   : > { %s724_s20 = smov (!%p146_p2), 112  }
   0xb   : > { %s891_s13 = smov (!%p172_p3, %s626_s13), 1  ;;  %v717_v0 = vmov 0   ;;  %v698_v1 = vld [vmem:[%s888_s2 + $0x38] sm:$0xff]   ;;  %v699_v2 = vld [vmem:[%s888_s2 + $0x30] sm:$0xff]   ;;  %vm201_vm0 = vcmask 130048   ;;  %v700_v10 = vld [vmem:[%s888_s2 + $0x28] sm:$0xff]  }
   0xc   : > { %504 = vmatprep.subr.bf16.mxu0 %v717_v0  ;;  %663 = vmatprep.subr.bf16.mxu1 %v717_v0  ;;  %s681_s16 = smul.u32 28, %s891_s13  ;;  %vm212_vm1 = vcmask 125952   ;;  %s179_s26 = scalar_lea.vmem %s887_s1, %s891_s13  ;;  %v701_v57 = vld [vmem:[%s888_s2 + $0x20] sm:$0xff]   ;;  %vm335_vm8 = vcmask 1043456   ;;  %vm325_vm9 = vcmask 1046528   ;;  %vm363_vm10 = vcmask 1042432  }
   0xd   : > { %505 = vmatpush1.bf16.msra.mxu0 %v698_v1  ;;  %672 = vmatpush1.bf16.msra.mxu1 %v698_v1  ;;  %v634_v60 = vld [vmem:[%s179_s26] ss:$0 sm:$0xff]  ;;  %vm297_vm12 = vsmask.f32 7424  ;;  %vm345_vm13 = vsmask.f32 3328 }
   0xe   : > { %506 = vmatprep.subr.bf16.mxu0 %v717_v0  ;;  %664 = vmatprep.subr.bf16.mxu1 %v717_v0  ;;  %s769_s21 = scalar_lea.vmem %s886_s0, %s681_s16  ;;  %vm394_vm14 = vcmask 261120   ;;  %vm399_vm15 = vcmask 392192  }
   0xf   : > { %v772_v3 = vld [vmem:[%s769_s21] sm:$0xff]   ;;  %v661_v4 = vld [vmem:[%s769_s21 + $0x8] sm:$0xff]   ;;  %v776_v5 = vld [vmem:[%s769_s21 + $0x10] sm:$0xff]  }
  0x10   : > { %v652_v6 = vunpack.c.h.bf16 %v772_v3  ;;  %v655_v7 = vunpack.c.l.bf16 %v661_v4  ;;  %v656_v8 = vunpack.c.h.bf16 %v661_v4  ;;  %v659_v9 = vunpack.c.l.bf16 %v776_v5  ;;  %v192_v53 = vld [vmem:[%s769_s21 + $0x18] sm:$0xf]  ;;  %s648_s21 = sshll.u32 %s891_s13, 3 }
  0x11   : > { %507 = vmatpush1.bf16.msra.mxu0 %v699_v2  ;;  %673 = vmatpush1.bf16.msra.mxu1 %v699_v2  ;;  %v660_v52 = vunpack.c.h.bf16 %v776_v5  ;;  %v651_v54 = vunpack.c.l.bf16 %v772_v3  ;;  %v199_v55 = vunpack.c.l.bf16 %v192_v53  ;;  %s184_s24 = scalar_lea.vmem %s889_s3, %s648_s21 }
  0x12   : > { %508 = vmatprep.subr.bf16.mxu0 %v717_v0  ;;  %665 = vmatprep.subr.bf16.mxu1 %v717_v0  ;;  %v202_v11 = vsel %vm201_vm0, %v652_v6, 0.0  ;;  %v203_v12 = vsel %vm201_vm0, %v655_v7, 0.0  ;;  %v205_v13 = vsel %vm201_vm0, %v656_v8, 0.0  ;;  %v207_v15 = vsel %vm201_vm0, %v659_v9, 0.0 }
  0x13   : > { %v204_v14 = vadd.f32 %v203_v12, %v202_v11 }
  0x15   : > { %509 = vmatpush1.bf16.msra.mxu0 %v700_v10  ;;  %674 = vmatpush1.bf16.msra.mxu1 %v700_v10  ;;  %v206_v16 = vadd.f32 %v205_v13, %v204_v14 }
  0x16   : > { %510 = vmatprep.subr.bf16.mxu0 %v717_v0  ;;  %666 = vmatprep.subr.bf16.mxu1 %v717_v0 }
  0x17   : > { %v208_v17 = vadd.f32 %v207_v15, %v206_v16 }
  0x19   : > { %v210_v18 = vrot.slane %v208_v17, 1  ;;  %511 = vmatpush1.bf16.msra.mxu0 %v701_v57  ;;  %675 = vmatpush1.bf16.msra.mxu1 %v701_v57 }
  0x1a   : > { %512 = vmatprep.subr.bf16.mxu0 %v717_v0  ;;  %667 = vmatprep.subr.bf16.mxu1 %v717_v0 }
  0x1b   : > { %v213_v19 = vsel %vm212_vm1, %v210_v18, 0.0 }
  0x1c   : > { %v214_v20 = vrot.slane %v213_v19, 4 }
  0x1e   : > { %v215_v21 = vadd.f32 %v214_v20, %v213_v19  ;;  %v703_v19 = vld [vmem:[%s888_s2 + $0x10] sm:$0xff]  }
  0x20   : > { %v216_v22 = vrot.slane %v215_v21, 2 }
  0x22   : > { %v217_v23 = vadd.f32 %v216_v22, %v215_v21 }
  0x24   : > { %v218_v24 = vrot.slane %v217_v23, 1 }
  0x26   : > { %v219_v25 = vadd.f32 %v218_v24, %v217_v23 }
  0x28   : > { %v220_v26 = vmul.f32 0.0625, %v219_v25 }
  0x2a   : > { %v221_v27 = vsub.f32 %v652_v6, %v220_v26  ;;  %v222_v28 = vsub.f32 %v655_v7, %v220_v26  ;;  %v223_v29 = vsub.f32 %v656_v8, %v220_v26  ;;  %v224_v30 = vsub.f32 %v659_v9, %v220_v26  ;;  %v702_v9 = vld [vmem:[%s888_s2 + $0x18] sm:$0xff]  }
  0x2b   : > { %v248_v56 = vsub.f32 %v660_v52, %v220_v26  ;;  %v247_v58 = vsub.f32 %v651_v54, %v220_v26  ;;  %v249_v61 = vsub.f32 %v199_v55, %v220_v26  ;;  %513 = vmatpush1.bf16.msra.mxu0 %v702_v9  ;;  %676 = vmatpush1.bf16.msra.mxu1 %v702_v9 }
  0x2c   : > { %v225_v31 = vmul.f32 %v221_v27, %v221_v27  ;;  %v226_v32 = vmul.f32 %v222_v28, %v222_v28  ;;  %v227_v33 = vmul.f32 %v223_v29, %v223_v29  ;;  %v228_v34 = vmul.f32 %v224_v30, %v224_v30  ;;  %514 = vmatprep.subr.bf16.mxu0 %v717_v0 }
  0x2d   : > { %668 = vmatprep.subr.bf16.mxu1 %v717_v0 }
  0x2e   : > { %v229_v35 = vsel %vm201_vm0, %v225_v31, 0.0  ;;  %v230_v36 = vsel %vm201_vm0, %v226_v32, 0.0  ;;  %v232_v37 = vsel %vm201_vm0, %v227_v33, 0.0  ;;  %v234_v39 = vsel %vm201_vm0, %v228_v34, 0.0  ;;  %v704_v33 = vld [vmem:[%s888_s2 + $0x8] sm:$0xff]  }
  0x2f   : > { %v231_v38 = vadd.f32 %v230_v36, %v229_v35  ;;  %515 = vmatpush1.bf16.msra.mxu0 %v703_v19  ;;  %677 = vmatpush1.bf16.msra.mxu1 %v703_v19 }
  0x30   : > { %516 = vmatprep.subr.bf16.mxu0 %v717_v0  ;;  %669 = vmatprep.subr.bf16.mxu1 %v717_v0 }
  0x31   : > { %v233_v40 = vadd.f32 %v232_v37, %v231_v38 }
  0x33   : > { %v235_v41 = vadd.f32 %v234_v39, %v233_v40  ;;  %517 = vmatpush1.bf16.msra.mxu0 %v704_v33  ;;  %678 = vmatpush1.bf16.msra.mxu1 %v704_v33 }
  0x34   : > { %518 = vmatprep.subr.bf16.mxu0 %v717_v0  ;;  %670 = vmatprep.subr.bf16.mxu1 %v717_v0 }
  0x35   : > { %v237_v42 = vrot.slane %v235_v41, 1 }
  0x37   : > { %v239_v43 = vsel %vm212_vm1, %v237_v42, 0.0  ;;  %vm404_vm1 = vcmask 523264  }
  0x38   : > { %v240_v44 = vrot.slane %v239_v43, 4 }
  0x3a   : > { %v241_v45 = vadd.f32 %v240_v44, %v239_v43 }
  0x3c   : > { %v242_v46 = vrot.slane %v241_v45, 2 }
  0x3e   : > { %v243_v47 = vadd.f32 %v242_v46, %v241_v45 }
  0x40   : > { %v244_v48 = vrot.slane %v243_v47, 1 }
  0x42   : > { %v245_v49 = vadd.f32 %v244_v48, %v243_v47  ;;  %v705_v47 = vld [vmem:[%s888_s2] sm:$0xff]  }
  0x43   : > { %519 = vmatpush1.bf16.msra.mxu0 %v705_v47  ;;  %679 = vmatpush1.bf16.msra.mxu1 %v705_v47 }
  0x44   : > { %v246_v50 = vmul.f32 0.0625, %v245_v49  ;;  %534 = vmatprep.subr.bf16.mxu0 %v717_v0  ;;  %671 = vmatprep.subr.bf16.mxu1 %v717_v0 }
  0x46   : > { %v250_v51 = vadd.f32 1e-05, %v246_v50 }
  0x48   : > { %707 = vrsqrt.f32 %v250_v51 }
  0x55   : > { %v708_v59 = vpop.eup %707 }
  0x56   : > { %v256_v62 = vmul.f32 %v708_v59, %v224_v30  ;;  %v257_v63 = vmul.f32 %v708_v59, %v248_v56  ;;  %v254_v1 = vmul.f32 %v708_v59, %v222_v28  ;;  %v255_v2 = vmul.f32 %v708_v59, %v223_v29 }
  0x57   : > { %v252_v3 = vmul.f32 %v708_v59, %v247_v58  ;;  %v253_v4 = vmul.f32 %v708_v59, %v221_v27  ;;  %v258_v12 = vmul.f32 %v708_v59, %v249_v61 }
  0x58   : > { %v269_v5 = vadd.f32 %v634_v60, %v256_v62  ;;  %v270_v6 = vadd.f32 %v634_v60, %v257_v63  ;;  %v267_v7 = vadd.f32 %v634_v60, %v254_v1  ;;  %v268_v8 = vadd.f32 %v634_v60, %v255_v2 }
  0x59   : > { %v265_v10 = vadd.f32 %v634_v60, %v252_v3  ;;  %v266_v11 = vadd.f32 %v634_v60, %v253_v4  ;;  %v271_v26 = vadd.f32 %v634_v60, %v258_v12  ;;  %v706_v60 = vld [vmem:[%s888_s2 + $0x40] sm:$0xff]  }
  0x5a   : > { %vm276_vm2 = vcmp.ge.f32.partialorder %v269_v5, 0.0  ;;  %vm277_vm3 = vcmp.ge.f32.partialorder %v270_v6, 0.0  ;;  %v283_v13 = vmul.f32 0.2, %v269_v5  ;;  %v284_v14 = vmul.f32 0.2, %v270_v6  ;;  %535 = vmatpush2.bf16.msra.mxu0 %v706_v60  ;;  %680 = vmatpush2.bf16.msra.mxu1 %v706_v60 }
  0x5b   : > { %vm274_vm4 = vcmp.ge.f32.partialorder %v267_v7, 0.0  ;;  %vm275_vm5 = vcmp.ge.f32.partialorder %v268_v8, 0.0  ;;  %v281_v15 = vmul.f32 0.2, %v267_v7  ;;  %v282_v16 = vmul.f32 0.2, %v268_v8 }
  0x5c   : > { %v290_v17 = vsel %vm276_vm2, %v269_v5, %v283_v13  ;;  %v291_v18 = vsel %vm277_vm3, %v270_v6, %v284_v14  ;;  %vm272_vm6 = vcmp.ge.f32.partialorder %v265_v10, 0.0  ;;  %vm273_vm7 = vcmp.ge.f32.partialorder %v266_v11, 0.0 }
  0x5d   : > { %v817_v20 = vpack.c.bf16 %v291_v18, %v290_v17  ;;  %v288_v21 = vsel %vm274_vm4, %v267_v7, %v281_v15  ;;  %v289_v22 = vsel %vm275_vm5, %v268_v8, %v282_v16  ;;  %v279_v23 = vmul.f32 0.2, %v265_v10 }
  0x5e   : > { %v819_v24 = vpack.c.bf16 %v289_v22, %v288_v21  ;;  %v280_v25 = vmul.f32 0.2, %v266_v11  ;;  %v285_v35 = vmul.f32 0.2, %v271_v26  ;;  %vm278_vm11 = vcmp.ge.f32.partialorder %v271_v26, 0.0 }
  0x5f   : > { %375 = vrot.lane.b32.xlu1 %v817_v20, %s718_s6  ;;  %v286_v27 = vsel %vm272_vm6, %v265_v10, %v279_v23  ;;  %v329_v29 = vrot.slane %v817_v20, 1  ;;  %v339_v45 = vrot.slane %v817_v20, 4  ;;  %v314_v46 = vshll.u32 %v817_v20, 16 }
  0x60   : > { %373 = vrot.lane.b32.xlu0 %v819_v24, %s718_s6  ;;  %v287_v28 = vsel %vm273_vm7, %v266_v11, %v280_v25  ;;  %v337_v31 = vrot.slane %v819_v24, 4  ;;  %v327_v32 = vrot.slane %v819_v24, 1  ;;  %v365_v34 = vrot.slane %v819_v24, 5 }
  0x61   : > { %v827_v30 = vpack.c.bf16 %v287_v28, %v286_v27  ;;  %v306_v39 = vshll.u32 %v819_v24, 16  ;;  %v310_v49 = vshrl.u32 %v819_v24, 16  ;;  %v353_v50 = vshrl.u32 %v817_v20, 16 }
  0x62   : > { %v330_v40 = vsel %vm325_vm9, %v327_v32, %v329_v29  ;;  %v292_v53 = vsel %vm278_vm11, %v271_v26, %v285_v35  ;;  %v367_v55 = vrot.slane %v817_v20, 5  ;;  %v340_v56 = vsel %vm335_vm8, %v337_v31, %v339_v45 }
  0x63   : > { %v336_v36 = vrot.slane %v827_v30, 4  ;;  %v326_v37 = vrot.slane %v827_v30, 1  ;;  %v364_v38 = vrot.slane %v827_v30, 5  ;;  %v299_v41 = vshrl.u32 %v827_v30, 16  ;;  %644 = vmatprep.mubr.msk.bf16.mxu0 %vm201_vm0, %v330_v40 }
  0x64   : > { %v301_v42 = vshll.u32 %v827_v30, 16  ;;  %v308_v52 = vrot.slane %v306_v39, 1  ;;  %v316_v57 = vrot.slane %v314_v46, 1  ;;  %v349_v58 = vrot.slane %v310_v49, 4 }
  0x65   : > { %v338_v43 = vsel %vm335_vm8, %v336_v36, %v337_v31  ;;  %v328_v44 = vsel %vm325_vm9, %v326_v37, %v327_v32  ;;  %v366_v51 = vsel %vm363_vm10, %v364_v38, %v365_v34  ;;  %v296_v59 = vpack.c.bf16 %v292_v53, %v292_v53 }
  0x66   : > { %341 = vrot.lane.b32.xlu0 %v338_v43, %s719_s11  ;;  %331 = vrot.lane.b32.xlu1 %v328_v44, %s720_s14  ;;  %v303_v48 = vrot.slane %v301_v42, 1  ;;  %v312_v61 = vor.u32 %v310_v49, %v308_v52  ;;  %v350_v62 = vrot.slane %v306_v39, 5  ;;  %v355_v63 = vrot.slane %v353_v50, 4 }
  0x67   : > { %v356_v1 = vrot.slane %v314_v46, 5  ;;  %v346_v3 = vrot.slane %v299_v41, 4  ;;  %v347_v4 = vrot.slane %v301_v42, 5  ;;  %v388_v5 = vrot.slane %v296_v59, 1 }
  0x68   : > { %v304_v54 = vor.u32 %v303_v48, %v299_v41  ;;  %v368_v6 = vsel %vm363_vm10, %v365_v34, %v367_v55  ;;  %v351_v7 = vor.u32 %v350_v62, %v349_v58  ;;  %v317_v8 = vsel %vm297_vm12, %v312_v61, %v316_v57 }
  0x69   : > { %v389_v0 = vsel %vm325_vm9, %v329_v29, %v388_v5  ;;  %v357_v9 = vor.u32 %v356_v1, %v355_v63  ;;  %v348_v10 = vor.u32 %v347_v4, %v346_v3  ;;  %v379_v11 = vshll.u32 %v296_v59, 16 }
  0x6a   : > { %369 = vrot.lane.b32.xlu0 %v366_v51, %s721_s17  ;;  %333 = vrot.lane.b32.xlu1 %v330_v40, %s720_s14  ;;  %v309_v2 = vsel %vm297_vm12, %v304_v54, %v308_v52  ;;  %v377_v14 = vor.u32 %v353_v50, %v316_v57  ;;  %vm409_vm2 = vcmask 654336   ;;  %vm414_vm3 = vcmask 785408  }
  0x6b   : > { %645 = vmatprep.mubr.msk.bf16.mxu1 %vm201_vm0, %v389_v0  ;;  %v358_v12 = vsel %vm345_vm13, %v351_v7, %v357_v9  ;;  %v352_v13 = vsel %vm345_vm13, %v348_v10, %v351_v7  ;;  %v381_v15 = vrot.slane %v379_v11, 1  ;;  %vm419_vm4 = vcmask 916480  }
  0x6d   : > { %v382_v16 = vsel %vm297_vm12, %v377_v14, %v381_v15 }
  0x6e   : > { %343 = vrot.lane.b32.xlu1 %v340_v56, %s719_s11  ;;  %318 = vrot.lane.b32.xlu0 %v309_v2, %s722_s18 }
  0x72   : > { %371 = vrot.lane.b32.xlu1 %v368_v6, %s721_s17  ;;  %320 = vrot.lane.b32.xlu0 %v317_v8, %s722_s18 }
  0x76   : > { %361 = vrot.lane.b32.xlu1 %v358_v12, %s723_s19  ;;  %359 = vrot.lane.b32.xlu0 %v352_v13, %s723_s19 }
  0x7a   : > { %385 = vrot.lane.b32.xlu1 %v382_v16, %s724_s20  ;;  %383 = vrot.lane.b32.xlu0 %v317_v8, %s724_s20 }
  0xd1   : > { %v376_v17 = vpop.permute.xlu1 %375 }
  0xd2   : > { %v374_v18 = vpop.permute.xlu0 %373 }
  0xd8   : > { %v342_v19 = vpop.permute.xlu0 %341  ;;  %v332_v20 = vpop.permute.xlu1 %331 }
  0xdc   : > { %v370_v21 = vpop.permute.xlu0 %369  ;;  %v334_v22 = vpop.permute.xlu1 %333 }
  0xe0   : > { %v344_v23 = vpop.permute.xlu1 %343  ;;  %v319_v25 = vpop.permute.xlu0 %318 }
  0xe1   : > { %v391_v26 = vsel %vm201_vm0, %v827_v30, %v319_v25 }
  0xe2   : > { %v396_v29 = vsel %vm394_vm14, %v391_v26, %v332_v20 }
  0xe3   : > { %v401_v35 = vsel %vm399_vm15, %v396_v29, %v342_v19 }
  0xe4   : > { %v372_v27 = vpop.permute.xlu1 %371  ;;  %v321_v28 = vpop.permute.xlu0 %320 }
  0xe5   : > { %v393_v31 = vsel %vm201_vm0, %v819_v24, %v321_v28  ;;  %vm557_vm0 = vcmask 123904  }
  0xe6   : > { %v398_v32 = vsel %vm394_vm14, %v393_v31, %v334_v22 }
  0xe7   : > { %v403_v33 = vsel %vm399_vm15, %v398_v32, %v344_v23 }
  0xe8   : > { %v362_v34 = vpop.permute.xlu1 %361  ;;  %v360_v36 = vpop.permute.xlu0 %359 }
  0xe9   : > { %v408_v37 = vsel %vm404_vm1, %v403_v33, %v362_v34  ;;  %v406_v38 = vsel %vm404_vm1, %v401_v35, %v360_v36 }
  0xea   : > { %v413_v39 = vsel %vm409_vm2, %v408_v37, %v372_v27  ;;  %v411_v30 = vsel %vm409_vm2, %v406_v38, %v370_v21 }
  0xeb   : > { %v416_v40 = vsel %vm414_vm3, %v411_v30, %v374_v18  ;;  %v418_v41 = vsel %vm414_vm3, %v413_v39, %v376_v17 }
  0xec   : > { %v386_v42 = vpop.permute.xlu1 %385  ;;  %v384_v43 = vpop.permute.xlu0 %383 }
  0xed   : > { %v421_v24 = vsel %vm419_vm4, %v416_v40, %v384_v43  ;;  %v424_v44 = vsel %vm419_vm4, %v418_v41, %v386_v42 }
  0xee   : > { %537 = vmatmul.mubr.bf16.vlgmr.msra.gmra.mxu0 %v421_v24  ;;  %545 = vmatmul.mubr.bf16.vlgmr.msra.gmra.mxu1 %v424_v44 }
 0x1ae   : > { %v538_v45 = vpop.f32.mrf.mxu0  ;;  %v546_v46 = vpop.f32.mrf.mxu1 }
 0x1af   : > { %v553_v47 = vpack.c.bf16 %v538_v45, %v538_v45  ;;  %v555_v48 = vpack.c.bf16 %v546_v46, %v546_v46 }
 0x1b0   : > { %v540_v49 = vpop.f32.mrf.mxu0  ;;  %v548_v50 = vpop.f32.mrf.mxu1 }
 0x1b1   : > { %558 = vst.msk [vmem:[%s184_s24] sm:$0x3] %vm557_vm0, %v553_v47  ;;  %560 = vst.msk [vmem:[%s184_s24 + $0x4] sm:$0x3] %vm557_vm0, %v555_v48 }
 0x1b2   : > { %v541_v51 = vpop.f32.mrf.mxu0  ;;  %v549_v52 = vpop.f32.mrf.mxu1 }
 0x1b3   : > { %v554_v53 = vpack.c.bf16 %v541_v51, %v541_v51  ;;  %v556_v54 = vpack.c.bf16 %v549_v52, %v549_v52 }
 0x1b4   : > { %v543_v55 = vpop.f32.mrf.mxu0  ;;  %v551_v56 = vpop.f32.mrf.mxu1 }
 0x1b5   : > { %559 = vst.msk [vmem:[%s184_s24 + $0x2] sm:$0x3] %vm557_vm0, %v554_v53  ;;  %561 = vst.msk [vmem:[%s184_s24 + $0x6] sm:$0x3] %vm557_vm0, %v556_v54 }
 0x1b6 PF: > { %s13_s12 = sadd.s32 1, %s715_s12  }
 0x1b7   : > { %p10_p4 = scmp.ge.s32.totalorder %s13_s12, 4  }
 0x1b9   :  { %12 = sbr.rel (!%p10_p4) target bundleno = 1 (0x1), region = 65 }

// kernel: _lambda_.14
= control target key start
LH: loop header
LB: loop body
LE: loop exit
PB: predicated region body
PF: predicated region fallthrough
CT: control target
= control target key end

     0   :  { %s1049_s21 = smov 0   ;;  %s1227_s0 = inlined_call_operand.vmem [shape: bf16[2,48,32], index: 0, kind: input, shape index: {}]   ;;  %s1228_s1 = inlined_call_operand.vmem [shape: f32[2,1,32], index: 1, kind: input, shape index: {}]   ;;  %s1229_s2 = inlined_call_operand.vmem [shape: bf16[128,16], index: 2, kind: input, shape index: {}]   ;;  %s1230_s3 = inlined_call_operand.vmem [shape: bf16[2,32,32], index: 3, kind: input, shape index: {}]   ;;  %s1231_s4 = inlined_call_operand.vmem [shape: bf16[32,16], index: 4, kind: input, shape index: {}]   ;;  %s1232_s5 = inlined_call_operand.vmem [shape: f32[1,16], index: 5, kind: input, shape index: {}]   ;;  %s1233_s6 = inlined_call_operand.vmem [shape: bf16[2,4,4,16], index: 6, kind: output, shape index: {}]  }
   0x1 LB: > { %s879_s22 = sadd.s32 4294967295, %s1003_s21   ;;  %p883_p0 = scmp.ge.s32.totalorder %s1003_s21, 1  ;;  %s1003_s21 = sphi %s1049_s21, %s16_s21  }
   0x2   : > { %p230_p1 = scmp.lt.s32.totalorder %s1003_s21, 3 }
   0x4   : > { %p231_p2 = pnand %p883_p0, %p230_p1 }
   0x5   : > { %p268_p3 = scmp.lt.s32.totalorder (!%p231_p2), %s879_s22, 1  ;;  %s1005_s27 = smov (!%p231_p2), 120  }
   0x6   : > { %234 = sbr.rel (%p231_p2) target bundleno = 916 (0x394), region = 44  ;;  %s1006_s28 = smov (!%p231_p2), 104  }
   0x7   : > { %s1007_s29 = smov (!%p231_p2), 112   ;;  %s1008_s30 = smov (!%p231_p2), 16  }
   0x8   : > { %s1009_s7 = smov (!%p231_p2), 8   ;;  %s1010_s8 = smov (!%p231_p2), 24  }
   0x9   : > { %s1011_s14 = smov (!%p231_p2), 64   ;;  %s1012_s15 = smov (!%p231_p2), 32  }
   0xa   : > { %s1013_s16 = smov (!%p231_p2), 96  }
   0xb   : > { %s1235_s22 = smov (!%p268_p3, %s879_s22), 1  ;;  %vm300_vm0 = vcmask 261120   ;;  %vm311_vm1 = vcmask 257024   ;;  %v379_v56 = vlaneseq  ;;  %vm373_vm2 = vcmask 64512  }
   0xc   : > { %s965_s23 = smul.u32 24, %s1235_s22  ;;  %vm375_vm3 = vcmask 130048   ;;  %vm377_vm4 = vcmask 195584   ;;  %vm541_vm11 = vcmask 1043456   ;;  %vm513_vm12 = vsmask.f32 7424 }
   0xd   : > { %v1099_v57 = vshrl.u32 %v379_v56, 7  ;;  %vm551_vm13 = vsmask.f32 3328  ;;  %vm573_vm14 = vcmask 523264   ;;  %vm578_vm15 = vcmask 785408   ;;  %s908_s19 = sshll.u32 %s1235_s22, 3 }
   0xe   : > { %s272_s26 = scalar_lea.vmem %s1227_s0, %s965_s23  ;;  %s285_s24 = scalar_lea.vmem %s1233_s6, %s908_s19 }
   0xf   : > { %v1063_v0 = vld [vmem:[%s272_s26] sm:$0xff]   ;;  %v1065_v1 = vld [vmem:[%s272_s26 + $0x8] sm:$0xff]   ;;  %v1067_v2 = vld [vmem:[%s272_s26 + $0x10] sm:$0xff]   ;;  %v381_v61 = vsub.s32 0, %v1099_v57 }
  0x10   : > { %v912_v3 = vunpack.c.h.bf16 %v1063_v0  ;;  %v915_v4 = vunpack.c.l.bf16 %v1065_v1  ;;  %v916_v5 = vunpack.c.h.bf16 %v1065_v1  ;;  %v919_v6 = vunpack.c.l.bf16 %v1067_v2  ;;  %v991_v57 = vld [vmem:[%s1229_s2 + $0x8] sm:$0xff]  }
  0x11   : > { %v911_v7 = vunpack.c.l.bf16 %v1063_v0 }
  0x12   : > { %v301_v8 = vsel %vm300_vm0, %v912_v3, 0.0  ;;  %v302_v9 = vsel %vm300_vm0, %v915_v4, 0.0  ;;  %v304_v10 = vsel %vm300_vm0, %v916_v5, 0.0  ;;  %v306_v13 = vsel %vm300_vm0, %v919_v6, 0.0 }
  0x13   : > { %v303_v11 = vadd.f32 %v302_v9, %v301_v8  ;;  %v331_v12 = vsel %vm300_vm0, %v911_v7, 0.0 }
  0x14   : > { %v332_v14 = vadd.f32 %v331_v12, %v301_v8  ;;  %v920_v8 = vunpack.c.h.bf16 %v1067_v2 }
  0x15   : > { %v305_v15 = vadd.f32 %v304_v10, %v303_v11 }
  0x16   : > { %v333_v16 = vadd.f32 %v332_v14, %v302_v9 }
  0x17   : > { %v307_v17 = vadd.f32 %v306_v13, %v305_v15 }
  0x18   : > { %v334_v18 = vadd.f32 %v333_v16, %v304_v10 }
  0x19   : > { %v319_v19 = vsel %vm311_vm1, %v307_v17, 0.0  ;;  %v309_v41 = vrot.slane %v307_v17, 1 }
  0x1a   : > { %v320_v20 = vrot.slane %v319_v19, 4  ;;  %v336_v21 = vrot.slane %v334_v18, 1  ;;  %v350_v22 = vsel %vm311_vm1, %v334_v18, 0.0 }
  0x1b   : > { %v351_v23 = vrot.slane %v350_v22, 4  ;;  %v312_v42 = vsel %vm311_vm1, %v309_v41, 0.0 }
  0x1c   : > { %v321_v24 = vadd.f32 %v320_v20, %v319_v19  ;;  %v338_v25 = vsel %vm311_vm1, %v336_v21, 0.0  ;;  %v313_v43 = vrot.slane %v312_v42, 4 }
  0x1d   : > { %v339_v26 = vrot.slane %v338_v25, 4  ;;  %v352_v27 = vadd.f32 %v351_v23, %v350_v22 }
  0x1e   : > { %v322_v28 = vrot.slane %v321_v24, 2  ;;  %v314_v44 = vadd.f32 %v313_v43, %v312_v42 }
  0x1f   : > { %v340_v29 = vadd.f32 %v339_v26, %v338_v25  ;;  %v353_v30 = vrot.slane %v352_v27, 2 }
  0x20   : > { %v323_v31 = vadd.f32 %v322_v28, %v321_v24  ;;  %v315_v45 = vrot.slane %v314_v44, 2 }
  0x21   : > { %v341_v32 = vrot.slane %v340_v29, 2  ;;  %v354_v33 = vadd.f32 %v353_v30, %v352_v27 }
  0x22   : > { %v324_v34 = vrot.slane %v323_v31, 1  ;;  %v316_v46 = vadd.f32 %v315_v45, %v314_v44 }
  0x23   : > { %v342_v35 = vadd.f32 %v341_v32, %v340_v29  ;;  %v355_v36 = vrot.slane %v354_v33, 1 }
  0x24   : > { %v325_v37 = vadd.f32 %v324_v34, %v323_v31  ;;  %v317_v47 = vrot.slane %v316_v46, 1 }
  0x25   : > { %v343_v38 = vrot.slane %v342_v35, 1  ;;  %v356_v39 = vadd.f32 %v355_v36, %v354_v33 }
  0x26   : > { %327 = vrot.lane.b32.xlu0 %v325_v37, %s1005_s27  ;;  %v318_v48 = vadd.f32 %v317_v47, %v316_v46 }
  0x27   : > { %v344_v40 = vadd.f32 %v343_v38, %v342_v35  ;;  %358 = vrot.lane.b32.xlu1 %v356_v39, %s1006_s28 }
  0x2a   : > { %346 = vrot.lane.b32.xlu0 %v344_v40, %s1007_s29 }
  0x98   : > { %v328_v49 = vpop.permute.xlu0 %327 }
  0x99   : > { %v330_v50 = vadd.f32 %v328_v49, %v318_v48  ;;  %v359_v52 = vpop.permute.xlu1 %358 }
  0x9c   : > { %v347_v51 = vpop.permute.xlu0 %346 }
  0x9d   : > { %v349_v53 = vadd.f32 %v347_v51, %v330_v50 }
  0x9f   : > { %v361_v54 = vadd.f32 %v359_v52, %v349_v53 }
  0xa1   : > { %v362_v55 = vmul.f32 0.015625, %v361_v54 }
  0xa3   : > { %367 = vrot.lane.b32.xlu0 %v362_v55, %s1008_s30  ;;  %364 = vrot.lane.b32.xlu1 %v362_v55, %s1009_s7 }
  0xa7   : > { %370 = vrot.lane.b32.xlu1 %v362_v55, %s1010_s8 }
 0x115   : > { %v365_v58 = vpop.permute.xlu1 %364  ;;  %v368_v59 = vpop.permute.xlu0 %367 }
 0x116   : > { %v374_v60 = vsel %vm373_vm2, %v362_v55, %v365_v58 }
 0x117   : > { %v376_v62 = vsel %vm375_vm3, %v374_v60, %v368_v59 }
 0x119   : > { %v371_v63 = vpop.permute.xlu1 %370 }
 0x11a   : > { %v378_v9 = vsel %vm377_vm4, %v376_v62, %v371_v63 }
 0x11b   : > { %v382_v10 = vrot.slane %v378_v9, %v381_v61  ;;  %v984_v9 = vld [vmem:[%s1229_s2 + $0x30] sm:$0xff]  }
 0x11d   : > { %v1110_v11 = vsub.f32 %v911_v7, %v382_v10  ;;  %v1114_v12 = vsub.f32 %v912_v3, %v382_v10  ;;  %v1118_v13 = vsub.f32 %v915_v4, %v382_v10  ;;  %v1122_v14 = vsub.f32 %v916_v5, %v382_v10 }
 0x11e   : > { %v1126_v15 = vsub.f32 %v919_v6, %v382_v10  ;;  %v1128_v16 = vsub.f32 %v920_v8, %v382_v10  ;;  %v983_v8 = vld [vmem:[%s1229_s2 + $0x38] sm:$0xff]   ;;  %v988_v10 = vld [vmem:[%s1231_s4 + $0x8] sm:$0xff]  }
 0x11f   : > { %v387_v7 = vmul.f32 %v1114_v12, %v1114_v12  ;;  %v388_v0 = vmul.f32 %v1118_v13, %v1118_v13  ;;  %v389_v3 = vmul.f32 %v1122_v14, %v1122_v14  ;;  %v421_v1 = vmul.f32 %v1110_v11, %v1110_v11  ;;  %945 = vmatprep.subr.bf16.mxu1 %v983_v8 }
 0x120   : > { %v390_v4 = vmul.f32 %v1126_v15, %v1126_v15  ;;  %946 = vmatpush3.bf16.msra.mxu1 %v983_v8  ;;  %937 = vmatprep.subr.bf16.mxu0 %v988_v10 }
 0x121   : > { %v391_v2 = vsel %vm300_vm0, %v387_v7, 0.0  ;;  %v392_v5 = vsel %vm300_vm0, %v388_v0, 0.0  ;;  %v422_v6 = vsel %vm300_vm0, %v421_v1, 0.0  ;;  %v394_v19 = vsel %vm300_vm0, %v389_v3, 0.0  ;;  %947 = vmatprep.subr.bf16.mxu1 %v984_v9  ;;  %v985_v7 = vld [vmem:[%s1229_s2 + $0x28] sm:$0xff]   ;;  %938 = vmatpush3.bf16.msra.mxu0 %v988_v10  ;;  %v986_v0 = vld [vmem:[%s1229_s2 + $0x20] sm:$0xff]  }
 0x122   : > { %v393_v17 = vadd.f32 %v392_v5, %v391_v2  ;;  %v423_v18 = vadd.f32 %v422_v6, %v391_v2  ;;  %v396_v22 = vsel %vm300_vm0, %v390_v4, 0.0  ;;  %v987_v3 = vld [vmem:[%s1229_s2 + $0x18] sm:$0xff]   ;;  %v989_v1 = vld [vmem:[%s1229_s2 + $0x10] sm:$0xff]  }
 0x124   : > { %v395_v20 = vadd.f32 %v394_v19, %v393_v17  ;;  %v424_v21 = vadd.f32 %v423_v18, %v392_v5  ;;  %948 = vmatpush3.bf16.msra.mxu1 %v984_v9 }
 0x125   : > { %949 = vmatprep.subr.bf16.mxu1 %v985_v7 }
 0x126   : > { %v397_v23 = vadd.f32 %v396_v22, %v395_v20  ;;  %v425_v24 = vadd.f32 %v424_v21, %v394_v19 }
 0x128   : > { %v408_v25 = vsel %vm311_vm1, %v397_v23, 0.0  ;;  %v427_v26 = vrot.slane %v425_v24, 1  ;;  %v441_v27 = vsel %vm311_vm1, %v425_v24, 0.0  ;;  %v399_v47 = vrot.slane %v397_v23, 1  ;;  %950 = vmatpush3.bf16.msra.mxu1 %v985_v7 }
 0x129   : > { %v409_v28 = vrot.slane %v408_v25, 4  ;;  %v442_v29 = vrot.slane %v441_v27, 4  ;;  %951 = vmatprep.subr.bf16.mxu1 %v986_v0 }
 0x12a   : > { %v429_v30 = vsel %vm311_vm1, %v427_v26, 0.0  ;;  %v401_v48 = vsel %vm311_vm1, %v399_v47, 0.0 }
 0x12b   : > { %v410_v31 = vadd.f32 %v409_v28, %v408_v25  ;;  %v430_v32 = vrot.slane %v429_v30, 4  ;;  %v443_v33 = vadd.f32 %v442_v29, %v441_v27  ;;  %v402_v49 = vrot.slane %v401_v48, 4  ;;  %v990_v29 = vld [vmem:[%s1231_s4] sm:$0xff]  }
 0x12c   : > { %952 = vmatpush3.bf16.msra.mxu1 %v986_v0  ;;  %939 = vmatprep.subr.bf16.mxu0 %v990_v29 }
 0x12d   : > { %v411_v34 = vrot.slane %v410_v31, 2  ;;  %v431_v35 = vadd.f32 %v430_v32, %v429_v30  ;;  %v444_v36 = vrot.slane %v443_v33, 2  ;;  %v403_v50 = vadd.f32 %v402_v49, %v401_v48  ;;  %953 = vmatprep.subr.bf16.mxu1 %v987_v3  ;;  %940 = vmatpush3.bf16.msra.mxu0 %v990_v29 }
 0x12f   : > { %v412_v37 = vadd.f32 %v411_v34, %v410_v31  ;;  %v432_v38 = vrot.slane %v431_v35, 2  ;;  %v445_v39 = vadd.f32 %v444_v36, %v443_v33  ;;  %v404_v51 = vrot.slane %v403_v50, 2 }
 0x130   : > { %954 = vmatpush3.bf16.msra.mxu1 %v987_v3 }
 0x131   : > { %v413_v40 = vrot.slane %v412_v37, 1  ;;  %v433_v41 = vadd.f32 %v432_v38, %v431_v35  ;;  %v446_v44 = vrot.slane %v445_v39, 1  ;;  %v405_v52 = vadd.f32 %v404_v51, %v403_v50  ;;  %955 = vmatprep.subr.bf16.mxu1 %v989_v1 }
 0x133   : > { %v414_v42 = vadd.f32 %v413_v40, %v412_v37  ;;  %v434_v43 = vrot.slane %v433_v41, 1  ;;  %v447_v46 = vadd.f32 %v446_v44, %v445_v39  ;;  %v406_v53 = vrot.slane %v405_v52, 1  ;;  %v994_v40 = vld [vmem:[%s1229_s2] sm:$0xff]  }
 0x134   : > { %956 = vmatpush3.bf16.msra.mxu1 %v989_v1 }
 0x135   : > { %416 = vrot.lane.b32.xlu0 %v414_v42, %s1005_s27  ;;  %v435_v45 = vadd.f32 %v434_v43, %v433_v41  ;;  %v407_v54 = vadd.f32 %v406_v53, %v405_v52  ;;  %s275_s27 = scalar_lea.vmem %s1228_s1, %s1235_s22  ;;  %957 = vmatprep.subr.bf16.mxu1 %v991_v57 }
 0x136   : > { %v889_v22 = vld [vmem:[%s275_s27] ss:$0 sm:$0xff] }
 0x137   : > { %437 = vrot.lane.b32.xlu1 %v435_v45, %s1007_s29 }
 0x138   : > { %958 = vmatpush3.bf16.msra.mxu1 %v991_v57 }
 0x139   : > { %449 = vrot.lane.b32.xlu0 %v447_v46, %s1006_s28  ;;  %959 = vmatprep.subr.bf16.mxu1 %v994_v40 }
 0x13c   : > { %960 = vmatpush3.bf16.msra.mxu1 %v994_v40 }
 0x1a7   : > { %v417_v55 = vpop.permute.xlu0 %416 }
 0x1a8   : > { %v419_v56 = vadd.f32 %v417_v55, %v407_v54 }
 0x1a9   : > { %v438_v58 = vpop.permute.xlu1 %437 }
 0x1aa   : > { %v440_v59 = vadd.f32 %v438_v58, %v419_v56 }
 0x1ab   : > { %v450_v60 = vpop.permute.xlu0 %449 }
 0x1ac   : > { %v452_v62 = vadd.f32 %v450_v60, %v440_v59 }
 0x1ae   : > { %v453_v63 = vmul.f32 0.015625, %v452_v62 }
 0x1b0   : > { %458 = vrot.lane.b32.xlu0 %v453_v63, %s1008_s30  ;;  %455 = vrot.lane.b32.xlu1 %v453_v63, %s1009_s7 }
 0x1b4   : > { %461 = vrot.lane.b32.xlu1 %v453_v63, %s1010_s8  ;;  %s907_s8 = sshll.u32 %s1235_s22, 4 }
 0x1b5   : > { %s280_s11 = scalar_lea.vmem %s1230_s3, %s907_s8 }
 0x1b6   : > { %v993_v39 = vld [vmem:[%s280_s11 + $0x8] sm:$0xff]  }
 0x222   : > { %v456_v4 = vpop.permute.xlu1 %455  ;;  %v459_v2 = vpop.permute.xlu0 %458 }
 0x223   : > { %v464_v5 = vsel %vm373_vm2, %v453_v63, %v456_v4 }
 0x224   : > { %v465_v6 = vsel %vm375_vm3, %v464_v5, %v459_v2 }
 0x226   : > { %v462_v17 = vpop.permute.xlu1 %461 }
 0x227   : > { %v466_v18 = vsel %vm377_vm4, %v465_v6, %v462_v17 }
 0x228   : > { %v468_v19 = vadd.f32 1e-05, %v466_v18 }
 0x22a   : > { %995 = vrsqrt.f32 %v468_v19 }
 0x237   : > { %v996_v20 = vpop.eup %995 }
 0x238   : > { %v473_v21 = vrot.slane %v996_v20, %v381_v61 }
 0x23a   : > { %v476_v23 = vmul.f32 %v473_v21, %v1118_v13  ;;  %v477_v24 = vmul.f32 %v473_v21, %v1122_v14  ;;  %v478_v25 = vmul.f32 %v473_v21, %v1126_v15  ;;  %v479_v26 = vmul.f32 %v473_v21, %v1128_v16 }
 0x23b   : > { %v474_v27 = vmul.f32 %v473_v21, %v1110_v11  ;;  %v475_v28 = vmul.f32 %v473_v21, %v1114_v12  ;;  %v992_v12 = vld [vmem:[%s280_s11] sm:$0xff]  }
 0x23c   : > { %v488_v61 = vadd.f32 %v889_v22, %v476_v23  ;;  %v489_v13 = vadd.f32 %v889_v22, %v477_v24  ;;  %v490_v14 = vadd.f32 %v889_v22, %v478_v25  ;;  %v491_v30 = vadd.f32 %v889_v22, %v479_v26  ;;  %941 = vmatprep.mubr.msk.bf16.mxu0 %vm300_vm0, %v992_v12 }
 0x23d   : > { %v486_v11 = vadd.f32 %v889_v22, %v474_v27  ;;  %v487_v15 = vadd.f32 %v889_v22, %v475_v28  ;;  %942 = vmatmul.mubr.msk.bf16.vlgmr.msra.gmra.mxu0 %vm300_vm0, %v993_v39 }
 0x23e   : > { %vm494_vm5 = vcmp.ge.f32.partialorder %v488_v61, 0.0  ;;  %vm495_vm6 = vcmp.ge.f32.partialorder %v489_v13, 0.0  ;;  %vm496_vm7 = vcmp.ge.f32.partialorder %v490_v14, 0.0  ;;  %vm497_vm8 = vcmp.ge.f32.partialorder %v491_v30, 0.0 }
 0x23f   : > { %v500_v16 = vmul.f32 0.2, %v488_v61  ;;  %v501_v31 = vmul.f32 0.2, %v489_v13  ;;  %v502_v32 = vmul.f32 0.2, %v490_v14 }
 0x240   : > { %v503_v33 = vmul.f32 0.2, %v491_v30  ;;  %vm492_vm9 = vcmp.ge.f32.partialorder %v486_v11, 0.0  ;;  %vm493_vm10 = vcmp.ge.f32.partialorder %v487_v15, 0.0  ;;  %v498_v34 = vmul.f32 0.2, %v486_v11 }
 0x241   : > { %v506_v35 = vsel %vm494_vm5, %v488_v61, %v500_v16  ;;  %v507_v36 = vsel %vm495_vm6, %v489_v13, %v501_v31  ;;  %v508_v37 = vsel %vm496_vm7, %v490_v14, %v502_v32  ;;  %v499_v38 = vmul.f32 0.2, %v487_v15 }
 0x242   : > { %v509_v41 = vsel %vm497_vm8, %v491_v30, %v503_v33  ;;  %v511_v42 = vpack.c.bf16 %v507_v36, %v506_v35  ;;  %v504_v43 = vsel %vm492_vm9, %v486_v11, %v498_v34  ;;  %v904_v11 = vld [vmem:[%s1232_s5] ss:$0 sm:$0xff] }
 0x243   : > { %v512_v44 = vpack.c.bf16 %v509_v41, %v508_v37  ;;  %v505_v45 = vsel %vm493_vm10, %v487_v15, %v499_v38 }
 0x244   : > { %v543_v46 = vrot.slane %v511_v42, 4  ;;  %v510_v47 = vpack.c.bf16 %v505_v45, %v504_v43  ;;  %v522_v48 = vshll.u32 %v511_v42, 16  ;;  %v526_v49 = vshrl.u32 %v511_v42, 16 }
 0x245   : > { %v545_v50 = vrot.slane %v512_v44, 4  ;;  %v530_v51 = vshll.u32 %v512_v44, 16  ;;  %v559_v52 = vshrl.u32 %v512_v44, 16 }
 0x246   : > { %v542_v53 = vrot.slane %v510_v47, 4  ;;  %v524_v54 = vrot.slane %v522_v48, 1  ;;  %v515_v55 = vshrl.u32 %v510_v47, 16  ;;  %v517_v56 = vshll.u32 %v510_v47, 16 }
 0x247   : > { %v546_v58 = vsel %vm541_vm11, %v543_v46, %v545_v50  ;;  %v532_v59 = vrot.slane %v530_v51, 1  ;;  %v555_v60 = vrot.slane %v526_v49, 4  ;;  %v556_v62 = vrot.slane %v522_v48, 5 }
 0x248   : > { %549 = vrot.lane.b32.xlu1 %v546_v58, %s1011_s14  ;;  %v544_v63 = vsel %vm541_vm11, %v542_v53, %v543_v46  ;;  %v528_v8 = vor.u32 %v526_v49, %v524_v54  ;;  %v519_v9 = vrot.slane %v517_v56, 1  ;;  %v561_v10 = vrot.slane %v559_v52, 4 }
 0x249   : > { %547 = vrot.lane.b32.xlu0 %v544_v63, %s1011_s14  ;;  %v562_v7 = vrot.slane %v530_v51, 5  ;;  %v552_v0 = vrot.slane %v515_v55, 4  ;;  %v553_v3 = vrot.slane %v517_v56, 5  ;;  %v557_v2 = vor.u32 %v556_v62, %v555_v60 }
 0x24a   : > { %v533_v1 = vsel %vm513_vm12, %v528_v8, %v532_v59  ;;  %v520_v4 = vor.u32 %v519_v9, %v515_v55 }
 0x24b   : > { %v563_v5 = vor.u32 %v562_v7, %v561_v10  ;;  %v554_v17 = vor.u32 %v553_v3, %v552_v0 }
 0x24c   : > { %536 = vrot.lane.b32.xlu1 %v533_v1, %s1012_s15  ;;  %v525_v6 = vsel %vm513_vm12, %v520_v4, %v524_v54 }
 0x24d   : > { %534 = vrot.lane.b32.xlu0 %v525_v6, %s1012_s15  ;;  %v564_v18 = vsel %vm551_vm13, %v557_v2, %v563_v5  ;;  %v558_v19 = vsel %vm551_vm13, %v554_v17, %v557_v2 }
 0x250   : > { %567 = vrot.lane.b32.xlu1 %v564_v18, %s1013_s16 }
 0x251   : > { %565 = vrot.lane.b32.xlu0 %v558_v19, %s1013_s16 }
 0x2ba   : > { %v550_v20 = vpop.permute.xlu1 %549 }
 0x2bb   : > { %v548_v21 = vpop.permute.xlu0 %547 }
 0x2be   : > { %v537_v22 = vpop.permute.xlu1 %536 }
 0x2bf   : > { %v572_v23 = vsel %vm300_vm0, %v511_v42, %v537_v22  ;;  %v535_v24 = vpop.permute.xlu0 %534 }
 0x2c0   : > { %v570_v25 = vsel %vm300_vm0, %v510_v47, %v535_v24  ;;  %v577_v27 = vsel %vm573_vm14, %v572_v23, %v550_v20  ;;  %vm798_vm0 = vcmask 123904  }
 0x2c1   : > { %v575_v29 = vsel %vm573_vm14, %v570_v25, %v548_v21 }
 0x2c2   : > { %v568_v26 = vpop.permute.xlu1 %567 }
 0x2c3   : > { %v566_v28 = vpop.permute.xlu0 %565  ;;  %v583_v57 = vsel %vm578_vm15, %v577_v27, %v568_v26 }
 0x2c4   : > { %v580_v61 = vsel %vm578_vm15, %v575_v29, %v566_v28 }
 0x2c5   : > { %961 = vmatprep.mubr.bf16.mxu1 %v580_v61 }
 0x2c6   : > { %962 = vmatmul.mubr.bf16.vlgmr.msra.gmra.mxu1 %v583_v57 }
 0x2fd   : > { %v943_v13 = vpop.f32.mrf.mxu0 }
 0x2ff   : > { %v671_v14 = vpop.f32.mrf.mxu0 }
 0x301   : > { %v944_v12 = vpop.f32.mrf.mxu0 }
 0x303   : > { %v674_v37 = vpop.f32.mrf.mxu0 }
 0x386   : > { %v963_v30 = vpop.f32.mrf.mxu1 }
 0x387   : > { %v777_v15 = vadd.f32 %v963_v30, %v943_v13 }
 0x388   : > { %v768_v16 = vpop.f32.mrf.mxu1 }
 0x389   : > { %v792_v31 = vadd.f32 %v904_v11, %v777_v15  ;;  %v769_v32 = vadd.f32 %v768_v16, %v671_v14 }
 0x38a   : > { %v964_v33 = vpop.f32.mrf.mxu1 }
 0x38b   : > { %v796_v34 = vpack.c.bf16 %v792_v31, %v792_v31  ;;  %v790_v35 = vadd.f32 %v904_v11, %v769_v32  ;;  %v780_v36 = vadd.f32 %v964_v33, %v944_v12 }
 0x38c   : > { %v771_v38 = vpop.f32.mrf.mxu1 }
 0x38d   : > { %801 = vst.msk [vmem:[%s285_s24 + $0x4] sm:$0x3] %vm798_vm0, %v796_v34  ;;  %v794_v39 = vpack.c.bf16 %v790_v35, %v790_v35  ;;  %v793_v40 = vadd.f32 %v904_v11, %v780_v36  ;;  %v772_v41 = vadd.f32 %v771_v38, %v674_v37 }
 0x38f   : > { %799 = vst.msk [vmem:[%s285_s24] sm:$0x3] %vm798_vm0, %v794_v39  ;;  %v797_v42 = vpack.c.bf16 %v793_v40, %v793_v40  ;;  %v791_v43 = vadd.f32 %v904_v11, %v772_v41 }
 0x391   : > { %802 = vst.msk [vmem:[%s285_s24 + $0x6] sm:$0x3] %vm798_vm0, %v797_v42  ;;  %v795_v44 = vpack.c.bf16 %v791_v43, %v791_v43 }
 0x393   : > { %800 = vst.msk [vmem:[%s285_s24 + $0x2] sm:$0x3] %vm798_vm0, %v795_v44 }
 0x394 PF: > { %s16_s21 = sadd.s32 1, %s1003_s21  }
 0x395   : > { %p13_p4 = scmp.ge.s32.totalorder %s16_s21, 4  }
 0x397   :  { %15 = sbr.rel (!%p13_p4) target bundleno = 1 (0x1), region = 80 }

// kernel: _lambda_.17
= control target key start
LH: loop header
LB: loop body
LE: loop exit
PB: predicated region body
PF: predicated region fallthrough
CT: control target
= control target key end

     0   :  { %s382_s14 = smov 0   ;;  %s405_s0 = inlined_call_operand.vmem [shape: bf16[2,16,32], index: 0, kind: input, shape index: {}]   ;;  %s406_s1 = inlined_call_operand.vmem [shape: bf16[32,1], index: 1, kind: input, shape index: {}]   ;;  %s407_s2 = inlined_call_operand.<no memory space> [shape: f32[1,1], index: 2, kind: input, shape index: {}]   ;;  %s408_s3 = inlined_call_operand.vmem [shape: f32[2,2,2,1], index: 3, kind: output, shape index: {}]  }
   0x1   :  { %v8_v0 = vstv %s407_s2 }
   0x2   :  { %9 = vst [vmem:[#allocation2] sm:$0x1] %v8_v0 }
   0x3 LB: > { %s307_s15 = sadd.s32 4294967295, %s355_s14   ;;  %p311_p0 = scmp.ge.s32.totalorder %s355_s14, 1  ;;  %s355_s14 = sphi %s382_s14, %s15_s14  }
   0x4   : > { %p139_p1 = scmp.lt.s32.totalorder %s355_s14, 3 }
   0x6   : > { %p140_p2 = pnand %p311_p0, %p139_p1 }
   0x7   : > { %p163_p3 = scmp.lt.s32.totalorder (!%p140_p2), %s307_s15, 1 }
   0x8   : > { %143 = sbr.rel (%p140_p2) target bundleno = 222 (0xde), region = 32 }
   0xd   : > { %v346_v1 = vld [vmem:[%s406_s1 + $0x8] sm:$0xff]   ;;  %v357_v2 = vmov 0.0   ;;  %v347_v3 = vld [vmem:[%s406_s1] sm:$0xff]   ;;  %vm358_vm0 = vmmov 0   ;;  %s410_s15 = smov (!%p163_p3, %s307_s15), 1  ;;  %vm204_vm1 = vcmask 261120  }
   0xe   : > { %328 = vmatprep.subr.bf16.mxu0 %v357_v2  ;;  %332 = vmatprep.mubr.msk.bf16.mxu0 %vm358_vm0, %v357_v2  ;;  %s323_s19 = sshll.u32 %s410_s15, 3  ;;  %s324_s23 = sshll.u32 %s410_s15, 2  ;;  %v316_v5 = vld [vmem:[#allocation2] ss:$0 sm:$0xff]  ;;  %vm249_vm2 = vcmask 1024  }
   0xf   : > { %329 = vmatpush3.bf16.msra.mxu0 %v346_v1  ;;  %s167_s22 = scalar_lea.vmem %s405_s0, %s323_s19  ;;  %s172_s26 = scalar_lea.vmem %s408_s3, %s324_s23 }
  0x10   : > { %330 = vmatprep.subr.bf16.mxu0 %v357_v2  ;;  %v348_v4 = vld [vmem:[%s167_s22] sm:$0xff]  }
  0x13   : > { %331 = vmatpush3.bf16.msra.mxu0 %v347_v3 }
  0x16   : > { %333 = vmatmul.mubr.msk.bf16.vlgmr.msra.gmra.mxu0 %vm204_vm1, %v348_v4 }
  0xd6   : > { %v242_v6 = vpop.f32.mrf.mxu0 }
  0xd7   : > { %v243_v7 = vadd.f32 %v316_v5, %v242_v6 }
  0xd8   : > { %v334_v8 = vpop.f32.mrf.mxu0 }
  0xd9   : > { %250 = vst.msk [vmem:[%s172_s26] sm:$0x3] %vm249_vm2, %v243_v7 }
  0xda   : > { %v245_v9 = vpop.f32.mrf.mxu0 }
  0xdb   : > { %v246_v10 = vadd.f32 %v316_v5, %v245_v9 }
  0xdc   : > { %v335_v11 = vpop.f32.mrf.mxu0 }
  0xdd   : > { %251 = vst.msk [vmem:[%s172_s26 + $0x2] sm:$0x3] %vm249_vm2, %v246_v10 }
  0xde PF: > { %s15_s14 = sadd.s32 1, %s355_s14  }
  0xdf   : > { %p12_p4 = scmp.ge.s32.totalorder %s15_s14, 4  }
  0xe1   :  { %14 = sbr.rel (!%p12_p4) target bundleno = 3 (0x3), region = 62 }

// kernel: _lambda_.16
= control target key start
LH: loop header
LB: loop body
LE: loop exit
PB: predicated region body
PF: predicated region fallthrough
CT: control target
= control target key end

     0   :  { %s1038_s21 = smov 0   ;;  %s1213_s0 = inlined_call_operand.vmem [shape: bf16[2,32,64], index: 0, kind: input, shape index: {}]   ;;  %s1214_s1 = inlined_call_operand.vmem [shape: f32[2,1,64], index: 1, kind: input, shape index: {}]   ;;  %s1215_s2 = inlined_call_operand.vmem [shape: bf16[256,32], index: 2, kind: input, shape index: {}]   ;;  %s1216_s3 = inlined_call_operand.vmem [shape: bf16[2,16,64], index: 3, kind: input, shape index: {}]   ;;  %s1217_s4 = inlined_call_operand.vmem [shape: bf16[64,32], index: 4, kind: input, shape index: {}]   ;;  %s1218_s5 = inlined_call_operand.vmem [shape: f32[1,32], index: 5, kind: input, shape index: {}]   ;;  %s1219_s6 = inlined_call_operand.vmem [shape: bf16[2,2,2,32], index: 6, kind: output, shape index: {}]  }
   0x1 LB: > { %s860_s22 = sadd.s32 4294967295, %s992_s21   ;;  %p864_p0 = scmp.ge.s32.totalorder %s992_s21, 1  ;;  %s992_s21 = sphi %s1038_s21, %s16_s21  }
   0x2   : > { %p230_p1 = scmp.lt.s32.totalorder %s992_s21, 3 }
   0x4   : > { %p231_p2 = pnand %p864_p0, %p230_p1 }
   0x5   : > { %p267_p3 = scmp.lt.s32.totalorder (!%p231_p2), %s860_s22, 1  ;;  %s994_s27 = smov (!%p231_p2), 112  }
   0x6   : > { %234 = sbr.rel (%p231_p2) target bundleno = 904 (0x388), region = 44  ;;  %s995_s28 = smov (!%p231_p2), 80  }
   0x7   : > { %s996_s29 = smov (!%p231_p2), 96   ;;  %s997_s30 = smov (!%p231_p2), 32  }
   0x8   : > { %s998_s7 = smov (!%p231_p2), 16   ;;  %s999_s8 = smov (!%p231_p2), 48  }
   0x9   : > { %s1002_s12 = smov (!%p231_p2), 64  }
   0xb   : > { %s1221_s22 = smov (!%p267_p3, %s860_s22), 1  ;;  %vm294_vm0 = vcmask 523264   ;;  %vm301_vm1 = vcmask 517120   ;;  %v367_v47 = vlaneseq  ;;  %vm361_vm2 = vcmask 130048  }
   0xc   : > { %s896_s23 = sshll.u32 %s1221_s22, 4  ;;  %vm363_vm3 = vcmask 261120   ;;  %vm365_vm4 = vcmask 392192   ;;  %vm1001_vm5 = vmmov 0   ;;  %vm480_vm10 = vsmask.f32 7424 }
   0xd   : > { %s271_s26 = scalar_lea.vmem %s1213_s0, %s896_s23  ;;  %v1078_v48 = vshrl.u32 %v367_v47, 7  ;;  %v966_v47 = vld [vmem:[%s1215_s2 + $0x30] sm:$0xff]   ;;  %vm501_vm11 = vsmask.f32 3328  ;;  %vm497_vm12 = vcmask 1043456   ;;  %s869_s15 = sshll.u32 %s1221_s22, 1 }
   0xe   : > { %v1052_v0 = vld [vmem:[%s271_s26] sm:$0xff]   ;;  %v1054_v1 = vld [vmem:[%s271_s26 + $0x8] sm:$0xff]   ;;  %s283_s18 = scalar_lea.vmem %s1219_s6, %s869_s15  ;;  %vm783_vm13 = vcmask 253952  }
   0xf   : > { %v901_v2 = vunpack.c.h.bf16 %v1052_v0  ;;  %v904_v3 = vunpack.c.l.bf16 %v1054_v1  ;;  %v900_v4 = vunpack.c.l.bf16 %v1052_v0  ;;  %v369_v52 = vsub.s32 0, %v1078_v48 }
  0x11   : > { %v295_v5 = vsel %vm294_vm0, %v901_v2, 0.0  ;;  %v296_v6 = vsel %vm294_vm0, %v904_v3, 0.0  ;;  %v321_v7 = vsel %vm294_vm0, %v900_v4, 0.0 }
  0x12   : > { %v297_v8 = vadd.f32 %v296_v6, %v295_v5  ;;  %v322_v9 = vadd.f32 %v321_v7, %v295_v5 }
  0x14   : > { %v309_v10 = vsel %vm301_vm1, %v297_v8, 0.0  ;;  %v324_v11 = vrot.slane %v322_v9, 1  ;;  %v338_v12 = vsel %vm301_vm1, %v322_v9, 0.0  ;;  %v299_v32 = vrot.slane %v297_v8, 1 }
  0x15   : > { %v310_v13 = vrot.slane %v309_v10, 4  ;;  %v339_v14 = vrot.slane %v338_v12, 4 }
  0x16   : > { %v326_v15 = vsel %vm301_vm1, %v324_v11, 0.0  ;;  %v302_v33 = vsel %vm301_vm1, %v299_v32, 0.0 }
  0x17   : > { %v311_v16 = vadd.f32 %v310_v13, %v309_v10  ;;  %v327_v17 = vrot.slane %v326_v15, 4  ;;  %v340_v18 = vadd.f32 %v339_v14, %v338_v12  ;;  %v303_v34 = vrot.slane %v302_v33, 4 }
  0x19   : > { %v312_v19 = vrot.slane %v311_v16, 2  ;;  %v328_v20 = vadd.f32 %v327_v17, %v326_v15  ;;  %v341_v21 = vrot.slane %v340_v18, 2  ;;  %v304_v35 = vadd.f32 %v303_v34, %v302_v33 }
  0x1b   : > { %v313_v22 = vadd.f32 %v312_v19, %v311_v16  ;;  %v329_v23 = vrot.slane %v328_v20, 2  ;;  %v342_v24 = vadd.f32 %v341_v21, %v340_v18  ;;  %v305_v36 = vrot.slane %v304_v35, 2 }
  0x1d   : > { %v314_v25 = vrot.slane %v313_v22, 1  ;;  %v330_v26 = vadd.f32 %v329_v23, %v328_v20  ;;  %v343_v27 = vrot.slane %v342_v24, 1  ;;  %v306_v37 = vadd.f32 %v305_v36, %v304_v35 }
  0x1f   : > { %v315_v28 = vadd.f32 %v314_v25, %v313_v22  ;;  %v331_v29 = vrot.slane %v330_v26, 1  ;;  %v344_v30 = vadd.f32 %v343_v27, %v342_v24  ;;  %v307_v38 = vrot.slane %v306_v37, 1 }
  0x21   : > { %317 = vrot.lane.b32.xlu0 %v315_v28, %s994_s27  ;;  %v332_v31 = vadd.f32 %v331_v29, %v330_v26  ;;  %346 = vrot.lane.b32.xlu1 %v344_v30, %s995_s28  ;;  %v308_v39 = vadd.f32 %v307_v38, %v306_v37 }
  0x25   : > { %334 = vrot.lane.b32.xlu0 %v332_v31, %s996_s29 }
  0x93   : > { %v318_v40 = vpop.permute.xlu0 %317  ;;  %v347_v43 = vpop.permute.xlu1 %346 }
  0x94   : > { %v320_v41 = vadd.f32 %v318_v40, %v308_v39 }
  0x97   : > { %v335_v42 = vpop.permute.xlu0 %334 }
  0x98   : > { %v337_v44 = vadd.f32 %v335_v42, %v320_v41  ;;  %v963_v42 = vld [vmem:[%s1215_s2 + $0x78] sm:$0xff]  }
  0x99   : > { %912 = vmatprep.subr.bf16.mxu1 %v963_v42 }
  0x9a   : > { %v349_v45 = vadd.f32 %v347_v43, %v337_v44  ;;  %v964_v43 = vld [vmem:[%s1215_s2 + $0x38] sm:$0xff]   ;;  %v965_v44 = vld [vmem:[%s1215_s2 + $0x70] sm:$0xff]  }
  0x9b   : > { %913 = vmatpush3.bf16.msra.mxu1 %v964_v43 }
  0x9c   : > { %v350_v46 = vmul.f32 0.0625, %v349_v45  ;;  %v1000_v45 = vmov 0.0   ;;  %914 = vmatprep.subr.bf16.mxu1 %v965_v44 }
  0x9d   : > { %934 = vmatprep.subr.bf16.mxu0 %v1000_v45  ;;  %942 = vmatprep.mubr.msk.bf16.mxu0 %vm1001_vm5, %v1000_v45 }
  0x9e   : > { %355 = vrot.lane.b32.xlu0 %v350_v46, %s997_s30  ;;  %352 = vrot.lane.b32.xlu1 %v350_v46, %s998_s7 }
  0x9f   : > { %915 = vmatpush3.bf16.msra.mxu1 %v966_v47 }
  0xa2   : > { %358 = vrot.lane.b32.xlu1 %v350_v46, %s999_s8 }
 0x110   : > { %v353_v49 = vpop.permute.xlu1 %352  ;;  %v356_v50 = vpop.permute.xlu0 %355 }
 0x111   : > { %v362_v51 = vsel %vm361_vm2, %v350_v46, %v353_v49  ;;  %v971_v46 = vld [vmem:[%s1217_s4 + $0x18] sm:$0xff]   ;;  %v967_v49 = vld [vmem:[%s1215_s2 + $0x68] sm:$0xff]  }
 0x112   : > { %v364_v53 = vsel %vm363_vm3, %v362_v51, %v356_v50  ;;  %935 = vmatpush3.bf16.msra.mxu0 %v971_v46  ;;  %v974_v50 = vld [vmem:[%s1217_s4 + $0x10] sm:$0xff]   ;;  %v968_v51 = vld [vmem:[%s1215_s2 + $0x28] sm:$0xff]   ;;  %916 = vmatprep.subr.bf16.mxu1 %v967_v49 }
 0x113   : > { %936 = vmatprep.subr.bf16.mxu0 %v1000_v45  ;;  %917 = vmatpush3.bf16.msra.mxu1 %v968_v51 }
 0x114   : > { %v359_v54 = vpop.permute.xlu1 %358 }
 0x115   : > { %v366_v55 = vsel %vm365_vm4, %v364_v53, %v359_v54  ;;  %v969_v53 = vld [vmem:[%s1215_s2 + $0x60] sm:$0xff]   ;;  %v977_v54 = vld [vmem:[%s1217_s4 + $0x8] sm:$0xff]  }
 0x116   : > { %v1086_v56 = vrot.slane %v366_v55, %v369_v52  ;;  %937 = vmatpush3.bf16.msra.mxu0 %v974_v50  ;;  %v970_v55 = vld [vmem:[%s1215_s2 + $0x20] sm:$0xff]   ;;  %918 = vmatprep.subr.bf16.mxu1 %v969_v53 }
 0x117   : > { %938 = vmatprep.subr.bf16.mxu0 %v1000_v45  ;;  %919 = vmatpush3.bf16.msra.mxu1 %v970_v55 }
 0x118   : > { %v1091_v57 = vsub.f32 %v901_v2, %v1086_v56  ;;  %v1096_v58 = vsub.f32 %v904_v3, %v1086_v56  ;;  %v1101_v59 = vsub.f32 %v900_v4, %v1086_v56 }
 0x11a   : > { %v373_v60 = vmul.f32 %v1091_v57, %v1091_v57  ;;  %v374_v61 = vmul.f32 %v1096_v58, %v1096_v58  ;;  %v401_v62 = vmul.f32 %v1101_v59, %v1101_v59  ;;  %939 = vmatpush3.bf16.msra.mxu0 %v977_v54 }
 0x11b   : > { %940 = vmatprep.subr.bf16.mxu0 %v1000_v45 }
 0x11c   : > { %v375_v63 = vsel %vm294_vm0, %v373_v60, 0.0  ;;  %v376_v2 = vsel %vm294_vm0, %v374_v61, 0.0  ;;  %v402_v3 = vsel %vm294_vm0, %v401_v62, 0.0  ;;  %v972_v60 = vld [vmem:[%s1215_s2 + $0x58] sm:$0xff]   ;;  %v980_v61 = vld [vmem:[%s1217_s4] sm:$0xff]  }
 0x11d   : > { %v377_v5 = vadd.f32 %v376_v2, %v375_v63  ;;  %v403_v6 = vadd.f32 %v402_v3, %v375_v63  ;;  %v973_v62 = vld [vmem:[%s1215_s2 + $0x18] sm:$0xff]   ;;  %920 = vmatprep.subr.bf16.mxu1 %v972_v60  ;;  %v975_v63 = vld [vmem:[%s1215_s2 + $0x50] sm:$0xff]   ;;  %v978_v3 = vld [vmem:[%s1215_s2 + $0x48] sm:$0xff]  }
 0x11e   : > { %941 = vmatpush3.bf16.msra.mxu0 %v980_v61  ;;  %921 = vmatpush3.bf16.msra.mxu1 %v973_v62  ;;  %v976_v2 = vld [vmem:[%s1215_s2 + $0x10] sm:$0xff]  }
 0x11f   : > { %v388_v0 = vsel %vm301_vm1, %v377_v5, 0.0  ;;  %v405_v4 = vrot.slane %v403_v6, 1  ;;  %v419_v7 = vsel %vm301_vm1, %v403_v6, 0.0  ;;  %v379_v27 = vrot.slane %v377_v5, 1  ;;  %922 = vmatprep.subr.bf16.mxu1 %v975_v63  ;;  %v979_v5 = vld [vmem:[%s1215_s2 + $0x8] sm:$0xff]   ;;  %v981_v6 = vld [vmem:[%s1215_s2 + $0x40] sm:$0xff]  }
 0x120   : > { %v389_v8 = vrot.slane %v388_v0, 4  ;;  %v420_v9 = vrot.slane %v419_v7, 4 }
 0x121   : > { %v407_v10 = vsel %vm301_vm1, %v405_v4, 0.0  ;;  %v381_v28 = vsel %vm301_vm1, %v379_v27, 0.0 }
 0x122   : > { %v390_v11 = vadd.f32 %v389_v8, %v388_v0  ;;  %v408_v12 = vrot.slane %v407_v10, 4  ;;  %v421_v13 = vadd.f32 %v420_v9, %v419_v7  ;;  %v382_v29 = vrot.slane %v381_v28, 4  ;;  %923 = vmatpush3.bf16.msra.mxu1 %v976_v2  ;;  %v982_v0 = vld [vmem:[%s1215_s2] sm:$0xff]  }
 0x123   : > { %924 = vmatprep.subr.bf16.mxu1 %v978_v3  ;;  %v893_v3 = vld [vmem:[%s1218_s5] ss:$0 sm:$0xff] }
 0x124   : > { %v391_v14 = vrot.slane %v390_v11, 2  ;;  %v409_v15 = vadd.f32 %v408_v12, %v407_v10  ;;  %v422_v16 = vrot.slane %v421_v13, 2  ;;  %v383_v30 = vadd.f32 %v382_v29, %v381_v28 }
 0x126   : > { %v392_v17 = vadd.f32 %v391_v14, %v390_v11  ;;  %v410_v18 = vrot.slane %v409_v15, 2  ;;  %v423_v19 = vadd.f32 %v422_v16, %v421_v13  ;;  %v384_v31 = vrot.slane %v383_v30, 2  ;;  %925 = vmatpush3.bf16.msra.mxu1 %v979_v5 }
 0x127   : > { %926 = vmatprep.subr.bf16.mxu1 %v981_v6  ;;  %v905_v13 = vunpack.c.h.bf16 %v1054_v1 }
 0x128   : > { %v393_v20 = vrot.slane %v392_v17, 1  ;;  %v411_v21 = vadd.f32 %v410_v18, %v409_v15  ;;  %v424_v24 = vrot.slane %v423_v19, 1  ;;  %v385_v32 = vadd.f32 %v384_v31, %v383_v30 }
 0x129   : > { %v445_v15 = vsub.f32 %v905_v13, %v1086_v56 }
 0x12a   : > { %v394_v22 = vadd.f32 %v393_v20, %v392_v17  ;;  %v412_v23 = vrot.slane %v411_v21, 1  ;;  %v425_v26 = vadd.f32 %v424_v24, %v423_v19  ;;  %v386_v33 = vrot.slane %v385_v32, 1  ;;  %927 = vmatpush3.bf16.msra.mxu1 %v982_v0 }
 0x12c   : > { %396 = vrot.lane.b32.xlu0 %v394_v22, %s994_s27  ;;  %v413_v25 = vadd.f32 %v412_v23, %v411_v21  ;;  %v387_v34 = vadd.f32 %v386_v33, %v385_v32 }
 0x12e   : > { %415 = vrot.lane.b32.xlu1 %v413_v25, %s996_s29 }
 0x130   : > { %427 = vrot.lane.b32.xlu0 %v425_v26, %s995_s28 }
 0x19e   : > { %v397_v35 = vpop.permute.xlu0 %396 }
 0x19f   : > { %v399_v36 = vadd.f32 %v397_v35, %v387_v34 }
 0x1a0   : > { %v416_v37 = vpop.permute.xlu1 %415 }
 0x1a1   : > { %v418_v38 = vadd.f32 %v416_v37, %v399_v36 }
 0x1a2   : > { %v428_v39 = vpop.permute.xlu0 %427 }
 0x1a3   : > { %v430_v40 = vadd.f32 %v428_v39, %v418_v38 }
 0x1a5   : > { %v431_v41 = vmul.f32 0.0625, %v430_v40 }
 0x1a7   : > { %436 = vrot.lane.b32.xlu0 %v431_v41, %s997_s30  ;;  %433 = vrot.lane.b32.xlu1 %v431_v41, %s998_s7  ;;  %s274_s7 = scalar_lea.vmem %s1214_s1, %s1221_s22 }
 0x1a8   : > { %v870_v17 = vld [vmem:[%s274_s7] ss:$0 sm:$0xff] }
 0x1ab   : > { %439 = vrot.lane.b32.xlu1 %v431_v41, %s999_s8  ;;  %s897_s8 = sshll.u32 %s1221_s22, 3 }
 0x1ac   : > { %s279_s11 = scalar_lea.vmem %s1216_s3, %s897_s8 }
 0x1ad   : > { %v983_v56 = vld [vmem:[%s279_s11] sm:$0xff]  }
 0x1ae   : > { %943 = vmatmul.mubr.msk.bf16.vlgmr.msra.gmra.mxu0 %vm294_vm0, %v983_v56 }
 0x219   : > { %v434_v4 = vpop.permute.xlu1 %433  ;;  %v437_v7 = vpop.permute.xlu0 %436 }
 0x21a   : > { %v442_v8 = vsel %vm361_vm2, %v431_v41, %v434_v4 }
 0x21b   : > { %v443_v9 = vsel %vm363_vm3, %v442_v8, %v437_v7 }
 0x21d   : > { %v440_v10 = vpop.permute.xlu1 %439 }
 0x21e   : > { %v444_v11 = vsel %vm365_vm4, %v443_v9, %v440_v10 }
 0x21f   : > { %v446_v12 = vadd.f32 1e-05, %v444_v11 }
 0x221   : > { %984 = vrsqrt.f32 %v446_v12 }
 0x22e   : > { %v985_v14 = vpop.eup %984 }
 0x22f   : > { %v451_v16 = vrot.slane %v985_v14, %v369_v52 }
 0x231   : > { %v452_v18 = vmul.f32 %v451_v16, %v1101_v59  ;;  %v453_v19 = vmul.f32 %v451_v16, %v1091_v57  ;;  %v454_v20 = vmul.f32 %v451_v16, %v1096_v58  ;;  %v455_v21 = vmul.f32 %v451_v16, %v445_v15 }
 0x233   : > { %v462_v1 = vadd.f32 %v870_v17, %v452_v18  ;;  %v463_v22 = vadd.f32 %v870_v17, %v453_v19  ;;  %v464_v23 = vadd.f32 %v870_v17, %v454_v20  ;;  %v465_v24 = vadd.f32 %v870_v17, %v455_v21 }
 0x235   : > { %vm466_vm6 = vcmp.ge.f32.partialorder %v462_v1, 0.0  ;;  %vm467_vm7 = vcmp.ge.f32.partialorder %v463_v22, 0.0  ;;  %vm468_vm8 = vcmp.ge.f32.partialorder %v464_v23, 0.0  ;;  %vm469_vm9 = vcmp.ge.f32.partialorder %v465_v24, 0.0 }
 0x236   : > { %v470_v48 = vmul.f32 0.2, %v462_v1  ;;  %v471_v52 = vmul.f32 0.2, %v463_v22  ;;  %v472_v57 = vmul.f32 0.2, %v464_v23 }
 0x237   : > { %v473_v58 = vmul.f32 0.2, %v465_v24 }
 0x238   : > { %v474_v59 = vsel %vm466_vm6, %v462_v1, %v470_v48  ;;  %v475_v25 = vsel %vm467_vm7, %v463_v22, %v471_v52  ;;  %v476_v26 = vsel %vm468_vm8, %v464_v23, %v472_v57 }
 0x239   : > { %v477_v27 = vsel %vm469_vm9, %v465_v24, %v473_v58  ;;  %v478_v28 = vpack.c.bf16 %v475_v25, %v474_v59 }
 0x23a   : > { %v479_v29 = vpack.c.bf16 %v477_v27, %v476_v26 }
 0x23b   : > { %v482_v30 = vshrl.u32 %v478_v28, 16  ;;  %v484_v31 = vshll.u32 %v478_v28, 16  ;;  %v498_v45 = vrot.slane %v478_v28, 4 }
 0x23c   : > { %v489_v32 = vshll.u32 %v479_v29, 16  ;;  %v505_v33 = vshrl.u32 %v479_v29, 16  ;;  %v499_v46 = vrot.slane %v479_v29, 4 }
 0x23d   : > { %v502_v34 = vrot.slane %v482_v30, 4  ;;  %v503_v35 = vrot.slane %v484_v31, 5  ;;  %v486_v36 = vrot.slane %v484_v31, 1 }
 0x23e   : > { %v507_v37 = vrot.slane %v505_v33, 4  ;;  %v508_v38 = vrot.slane %v489_v32, 5  ;;  %v491_v41 = vrot.slane %v489_v32, 1  ;;  %v500_v50 = vsel %vm497_vm12, %v498_v45, %v499_v46 }
 0x23f   : > { %v504_v39 = vor.u32 %v503_v35, %v502_v34  ;;  %v487_v40 = vor.u32 %v486_v36, %v482_v30 }
 0x240   : > { %v509_v42 = vor.u32 %v508_v38, %v507_v37 }
 0x241   : > { %v492_v43 = vsel %vm480_vm10, %v487_v40, %v491_v41 }
 0x242   : > { %v510_v44 = vsel %vm501_vm11, %v504_v39, %v509_v42  ;;  %493 = vrot.lane.b32.xlu1 %v492_v43, %s1002_s12 }
 0x243   : > { %511 = vrot.lane.b32.xlu0 %v510_v44, %s1002_s12 }
 0x26e   : > { %v628_v54 = vpop.f32.mrf.mxu0 }
 0x270   : > { %v944_v55 = vpop.f32.mrf.mxu0 }
 0x272   : > { %v631_v60 = vpop.f32.mrf.mxu0 }
 0x274   : > { %v945_v61 = vpop.f32.mrf.mxu0 }
 0x2b4   : > { %v494_v47 = vpop.permute.xlu1 %493 }
 0x2b5   : > { %v512_v49 = vpop.permute.xlu0 %511  ;;  %v514_v51 = vsel %vm294_vm0, %v478_v28, %v494_v47 }
 0x2b6   : > { %v518_v53 = vsel %vm294_vm0, %v500_v50, %v512_v49 }
 0x2b7   : > { %763 = vmatprep.mubr.bf16.mxu1 %v518_v53 }
 0x2b8   : > { %764 = vmatmul.mubr.bf16.vlgmr.msra.gmra.mxu1 %v514_v51 }
 0x378   : > { %v928_v62 = vpop.f32.mrf.mxu1 }
 0x37a   : > { %v929_v63 = vpop.f32.mrf.mxu1 }
 0x37b   : > { %v930_v2 = vadd.f32 %v929_v63, %v928_v62 }
 0x37c   : > { %v931_v5 = vpop.f32.mrf.mxu1 }
 0x37d   : > { %v766_v6 = vadd.f32 %v930_v2, %v628_v54 }
 0x37e   : > { %v932_v0 = vpop.f32.mrf.mxu1 }
 0x37f   : > { %v779_v4 = vadd.f32 %v893_v3, %v766_v6  ;;  %v933_v7 = vadd.f32 %v932_v0, %v931_v5 }
 0x381   : > { %v781_v8 = vpack.c.bf16 %v779_v4, %v779_v4  ;;  %v769_v9 = vadd.f32 %v933_v7, %v631_v60 }
 0x383   : > { %784 = vst.msk [vmem:[%s283_s18] sm:$0x1] %vm783_vm13, %v781_v8  ;;  %v780_v10 = vadd.f32 %v893_v3, %v769_v9 }
 0x385   : > { %v782_v11 = vpack.c.bf16 %v780_v10, %v780_v10 }
 0x387   : > { %785 = vst.msk [vmem:[%s283_s18 + $0x1] sm:$0x1] %vm783_vm13, %v782_v11 }
 0x388 PF: > { %s16_s21 = sadd.s32 1, %s992_s21  }
 0x389   : > { %p13_p4 = scmp.ge.s32.totalorder %s16_s21, 4  }
 0x38b   :  { %15 = sbr.rel (!%p13_p4) target bundleno = 1 (0x1), region = 80 }

// kernel: _lambda_.18
= control target key start
LH: loop header
LB: loop body
LE: loop exit
PB: predicated region body
PF: predicated region fallthrough
CT: control target
= control target key end

     0   :  { %s503_s12 = smov 0   ;;  %s540_s0 = inlined_call_operand.vmem [shape: bf16[2,48,12], index: 0, kind: input, shape index: {}]   ;;  %s541_s1 = inlined_call_operand.vmem [shape: bf16[48,4], index: 1, kind: input, shape index: {}]   ;;  %s542_s2 = inlined_call_operand.vmem [shape: f32[1,4], index: 2, kind: input, shape index: {}]   ;;  %s543_s3 = inlined_call_operand.vmem [shape: bf16[2,4,4,4], index: 3, kind: output, shape index: {}]  }
   0x1 LB: > { %s413_s13 = sadd.s32 4294967295, %s478_s12   ;;  %p417_p0 = scmp.ge.s32.totalorder %s478_s12, 1  ;;  %s478_s12 = sphi %s503_s12, %s13_s12  }
   0x2   : > { %p137_p1 = scmp.lt.s32.totalorder %s478_s12, 3 }
   0x4   : > { %p138_p2 = pnand %p417_p0, %p137_p1 }
   0x5   : > { %p161_p3 = scmp.lt.s32.totalorder (!%p138_p2), %s413_s13, 1  ;;  %s480_s24 = smov (!%p138_p2), 24  }
   0x6   : > { %141 = sbr.rel (%p138_p2) target bundleno = 355 (0x163), region = 32  ;;  %s481_s25 = smov (!%p138_p2), 12  }
   0x7   : > { %s482_s26 = smov (!%p138_p2), 36  }
   0xb   : > { %v469_v0 = vld [vmem:[%s541_s1 + $0x10] sm:$0xff]   ;;  %s545_s13 = smov (!%p161_p3, %s413_s13), 1  ;;  %v470_v1 = vld [vmem:[%s541_s1 + $0x8] sm:$0xff]   ;;  %v471_v13 = vld [vmem:[%s541_s1] sm:$0xff]   ;;  %vm191_vm0 = vsmask.f32 7424 }
   0xc   : > { %441 = vmatprep.subr.bf16.mxu0 %v469_v0  ;;  %s451_s16 = smul.u32 24, %s545_s13  ;;  %vm249_vm1 = vcmask 97280   ;;  %vm254_vm2 = vcmask 195584   ;;  %vm259_vm3 = vcmask 293888   ;;  %vm295_vm4 = vcmask 392192   ;;  %s435_s29 = sshll.u32 %s545_s13, 3 }
   0xd   : > { %442 = vmatpush3.bf16.msra.mxu0 %v469_v0  ;;  %v427_v50 = vld [vmem:[%s542_s2] ss:$0 sm:$0xff]  ;;  %s170_s5 = scalar_lea.vmem %s543_s3, %s435_s29  ;;  %vm353_vm5 = vcmask 25600  }
   0xe   : > { %s165_s21 = scalar_lea.vmem %s540_s0, %s451_s16  ;;  %443 = vmatprep.subr.bf16.mxu0 %v470_v1 }
   0xf   : > { %v173_v2 = vld [vmem:[%s165_s21 + $0x4] sm:$0xf]  ;;  %v174_v3 = vld [vmem:[%s165_s21 + $0x8] sm:$0xf]  ;;  %v175_v4 = vld [vmem:[%s165_s21 + $0xc] sm:$0xf] }
  0x10   : > { %v422_v5 = vcombine.low %v174_v3, %v175_v4  ;;  %v424_v6 = vcombine.low %v173_v2, %v174_v3  ;;  %v172_v7 = vld [vmem:[%s165_s21] sm:$0xf]  ;;  %v176_v8 = vld [vmem:[%s165_s21 + $0x10] sm:$0xf]  ;;  %v468_v12 = vld [vmem:[%s165_s21 + $0x14] ss:$0 sps:$4 sm:$0xff]  }
  0x11   : > { %444 = vmatpush3.bf16.msra.mxu0 %v470_v1  ;;  %v421_v9 = vcombine.low %v172_v7, %v173_v2  ;;  %v423_v10 = vcombine.low %v176_v8, %v176_v8  ;;  %v425_v11 = vcombine.low %v175_v4, %v176_v8  ;;  %v241_v22 = vshll.u32 %v468_v12, 16 }
  0x12   : > { %218 = vrot.lane.b32.xlu1 %v424_v6, %s480_s24  ;;  %v228_v14 = vshll.u32 %v424_v6, 16  ;;  %v200_v15 = vshll.u32 %v422_v5, 16  ;;  %v204_v16 = vshrl.u32 %v422_v5, 16  ;;  %445 = vmatprep.subr.bf16.mxu0 %v471_v13  ;;  %v226_v27 = vshrl.u32 %v424_v6, 16 }
  0x13   : > { %v193_v17 = vshrl.u32 %v421_v9, 16  ;;  %v195_v18 = vshll.u32 %v421_v9, 16  ;;  %v208_v19 = vshll.u32 %v423_v10, 16  ;;  %v233_v20 = vshll.u32 %v425_v11, 16 }
  0x14   : > { %v237_v21 = vshrl.u32 %v425_v11, 16  ;;  %v202_v24 = vrot.slane %v200_v15, 1  ;;  %v243_v26 = vrot.slane %v241_v22, 1  ;;  %v230_v28 = vrot.slane %v228_v14, 1 }
  0x15   : > { %446 = vmatpush3.bf16.msra.mxu0 %v471_v13  ;;  %v197_v23 = vrot.slane %v195_v18, 1  ;;  %v235_v25 = vrot.slane %v233_v20, 1  ;;  %v210_v31 = vrot.slane %v208_v19, 1 }
  0x16   : > { %220 = vrot.lane.b32.xlu1 %v425_v11, %s480_s24  ;;  %v206_v30 = vor.u32 %v204_v16, %v202_v24  ;;  %v231_v36 = vor.u32 %v230_v28, %v226_v27 }
  0x17   : > { %v198_v29 = vor.u32 %v197_v23, %v193_v17  ;;  %v239_v32 = vor.u32 %v237_v21, %v235_v25 }
  0x18   : > { %v211_v35 = vsel %vm191_vm0, %v206_v30, %v210_v31  ;;  %v236_v37 = vsel %vm191_vm0, %v231_v36, %v235_v25 }
  0x19   : > { %v203_v33 = vsel %vm191_vm0, %v198_v29, %v202_v24  ;;  %v244_v34 = vsel %vm191_vm0, %v239_v32, %v243_v26 }
  0x1a   : > { %212 = vrot.lane.b32.xlu0 %v203_v33, %s481_s25  ;;  %247 = vrot.lane.b32.xlu1 %v244_v34, %s482_s26 }
  0x1e   : > { %214 = vrot.lane.b32.xlu0 %v211_v35, %s481_s25 }
  0x22   : > { %245 = vrot.lane.b32.xlu0 %v236_v37, %s482_s26 }
  0x84   : > { %v219_v38 = vpop.permute.xlu1 %218 }
  0x88   : > { %v221_v40 = vpop.permute.xlu1 %220 }
  0x8c   : > { %v213_v39 = vpop.permute.xlu0 %212  ;;  %v248_v44 = vpop.permute.xlu1 %247 }
  0x8d   : > { %v251_v42 = vsel %vm249_vm1, %v421_v9, %v213_v39 }
  0x8e   : > { %v256_v47 = vsel %vm254_vm2, %v251_v42, %v219_v38 }
  0x90   : > { %v215_v41 = vpop.permute.xlu0 %214 }
  0x91   : > { %v253_v43 = vsel %vm249_vm1, %v422_v5, %v215_v41 }
  0x92   : > { %v258_v45 = vsel %vm254_vm2, %v253_v43, %v221_v40 }
  0x93   : > { %v263_v49 = vsel %vm259_vm3, %v258_v45, %v248_v44 }
  0x94   : > { %v246_v46 = vpop.permute.xlu0 %245 }
  0x95   : > { %v261_v48 = vsel %vm259_vm3, %v256_v47, %v246_v46 }
  0x96   : > { %447 = vmatprep.mubr.msk.bf16.mxu0 %vm295_vm4, %v261_v48 }
  0x97   : > { %448 = vmatmul.mubr.msk.bf16.vlgmr.msra.gmra.mxu0 %vm295_vm4, %v263_v49 }
 0x157   : > { %v449_v51 = vpop.f32.mrf.mxu0 }
 0x158   : > { %v343_v52 = vadd.f32 %v449_v51, %v427_v50 }
 0x159   : > { %v334_v53 = vpop.f32.mrf.mxu0 }
 0x15a   : > { %v351_v54 = vpack.c.bf16 %v343_v52, %v343_v52  ;;  %v335_v55 = vadd.f32 %v427_v50, %v334_v53 }
 0x15b   : > { %v450_v56 = vpop.f32.mrf.mxu0 }
 0x15c   : > { %356 = vst.msk [vmem:[%s170_s5 + $0x4] sm:$0x3] %vm353_vm5, %v351_v54  ;;  %v349_v57 = vpack.c.bf16 %v335_v55, %v335_v55  ;;  %v346_v58 = vadd.f32 %v450_v56, %v427_v50 }
 0x15d   : > { %v337_v59 = vpop.f32.mrf.mxu0 }
 0x15e   : > { %354 = vst.msk [vmem:[%s170_s5] sm:$0x3] %vm353_vm5, %v349_v57  ;;  %v352_v60 = vpack.c.bf16 %v346_v58, %v346_v58  ;;  %v338_v61 = vadd.f32 %v427_v50, %v337_v59 }
 0x160   : > { %357 = vst.msk [vmem:[%s170_s5 + $0x6] sm:$0x3] %vm353_vm5, %v352_v60  ;;  %v350_v62 = vpack.c.bf16 %v338_v61, %v338_v61 }
 0x162   : > { %355 = vst.msk [vmem:[%s170_s5 + $0x2] sm:$0x3] %vm353_vm5, %v350_v62 }
 0x163 PF: > { %s13_s12 = sadd.s32 1, %s478_s12  }
 0x164   : > { %p10_p4 = scmp.ge.s32.totalorder %s13_s12, 4  }
 0x166   :  { %12 = sbr.rel (!%p10_p4) target bundleno = 1 (0x1), region = 62 }

// kernel: _lambda_.19
= control target key start
LH: loop header
LB: loop body
LE: loop exit
PB: predicated region body
PF: predicated region fallthrough
CT: control target
= control target key end

     0   :  { %s689_s12 = smov 0   ;;  %s777_s0 = inlined_call_operand.vmem [shape: bf16[2,56,4], index: 0, kind: input, shape index: {}]   ;;  %s778_s1 = inlined_call_operand.vmem [shape: f32[2,1,4], index: 1, kind: input, shape index: {}]   ;;  %s779_s2 = inlined_call_operand.vmem [shape: bf16[36,4], index: 2, kind: input, shape index: {}]   ;;  %s780_s3 = inlined_call_operand.vmem [shape: bf16[2,4,4,4], index: 3, kind: output, shape index: {}]  }
   0x1 LB: > { %s584_s13 = sadd.s32 4294967295, %s659_s12   ;;  %p588_p0 = scmp.ge.s32.totalorder %s659_s12, 1  ;;  %s659_s12 = sphi %s689_s12, %s13_s12  }
   0x2   : > { %p145_p1 = scmp.lt.s32.totalorder %s659_s12, 3 }
   0x4   : > { %p146_p2 = pnand %p588_p0, %p145_p1 }
   0x5   : > { %p172_p3 = scmp.lt.s32.totalorder (!%p146_p2), %s584_s13, 1  ;;  %s661_s21 = smov (!%p146_p2), 24  }
   0x6   : > { %149 = sbr.rel (%p146_p2) target bundleno = 445 (0x1bd), region = 32  ;;  %s662_s22 = smov (!%p146_p2), 12  }
   0x7   : > { %s663_s23 = smov (!%p146_p2), 8   ;;  %s664_s28 = smov (!%p146_p2), 20  }
   0x8   : > { %s665_s4 = smov (!%p146_p2), 4   ;;  %s666_s5 = smov (!%p146_p2), 16  }
   0x9   : > { %s667_s6 = smov (!%p146_p2), 28   ;;  %s668_s7 = smov (!%p146_p2), 32  }
   0xb   : > { %s782_s13 = smov (!%p172_p3, %s584_s13), 1  ;;  %vm201_vm0 = vcmask 31744   ;;  %vm212_vm1 = vcmask 27648   ;;  %vm335_vm8 = vcmask 1043456   ;;  %vm325_vm9 = vcmask 1046528  }
   0xc   : > { %s631_s14 = smul.u32 28, %s782_s13  ;;  %s179_s20 = scalar_lea.vmem %s778_s1, %s782_s13  ;;  %vm363_vm10 = vcmask 1042432   ;;  %vm297_vm12 = vsmask.f32 7424  ;;  %vm458_vm13 = vcmask 1041408   ;;  %vm398_vm15 = vcmask 64512  }
   0xd   : > { %v592_v56 = vld [vmem:[%s179_s20] ss:$0 sm:$0xff]  ;;  %vm345_vm14 = vsmask.f32 3328  ;;  %s600_s8 = sshll.u32 %s782_s13, 3 }
   0xe   : > { %s176_s17 = scalar_lea.vmem %s777_s0, %s631_s14  ;;  %s184_s11 = scalar_lea.vmem %s780_s3, %s600_s8 }
   0xf   : > { %v602_v0 = vld [vmem:[%s176_s17] sm:$0xff]   ;;  %v613_v1 = vld [vmem:[%s176_s17 + $0x8] sm:$0xff]   ;;  %v614_v2 = vld [vmem:[%s176_s17 + $0x10] sm:$0xff]  }
  0x10   : > { %v604_v3 = vunpack.c.h.bf16 %v602_v0  ;;  %v607_v4 = vunpack.c.l.bf16 %v613_v1  ;;  %v608_v5 = vunpack.c.h.bf16 %v613_v1  ;;  %v611_v6 = vunpack.c.l.bf16 %v614_v2  ;;  %v192_v21 = vld [vmem:[%s176_s17 + $0x18] sm:$0xf] }
  0x11   : > { %v199_v23 = vunpack.c.l.bf16 %v192_v21  ;;  %v612_v51 = vunpack.c.h.bf16 %v614_v2  ;;  %v603_v52 = vunpack.c.l.bf16 %v602_v0 }
  0x12   : > { %v202_v7 = vsel %vm201_vm0, %v604_v3, 0.0  ;;  %v203_v8 = vsel %vm201_vm0, %v607_v4, 0.0  ;;  %v205_v9 = vsel %vm201_vm0, %v608_v5, 0.0  ;;  %v207_v11 = vsel %vm201_vm0, %v611_v6, 0.0 }
  0x13   : > { %v204_v10 = vadd.f32 %v203_v8, %v202_v7 }
  0x15   : > { %v206_v12 = vadd.f32 %v205_v9, %v204_v10 }
  0x17   : > { %v208_v13 = vadd.f32 %v207_v11, %v206_v12 }
  0x19   : > { %v210_v14 = vrot.slane %v208_v13, 1 }
  0x1b   : > { %v213_v15 = vsel %vm212_vm1, %v210_v14, 0.0 }
  0x1c   : > { %v214_v16 = vrot.slane %v213_v15, 4 }
  0x1e   : > { %v215_v17 = vadd.f32 %v214_v16, %v213_v15 }
  0x20   : > { %v216_v18 = vrot.slane %v215_v17, 2 }
  0x22   : > { %v217_v19 = vadd.f32 %v216_v18, %v215_v17 }
  0x24   : > { %v218_v20 = vrot.slane %v217_v19, 1 }
  0x26   : > { %v219_v22 = vadd.f32 %v218_v20, %v217_v19 }
  0x28   : > { %v220_v24 = vmul.f32 0.0625, %v219_v22 }
  0x2a   : > { %v221_v25 = vsub.f32 %v604_v3, %v220_v24  ;;  %v222_v26 = vsub.f32 %v607_v4, %v220_v24  ;;  %v223_v27 = vsub.f32 %v608_v5, %v220_v24  ;;  %v224_v28 = vsub.f32 %v611_v6, %v220_v24 }
  0x2b   : > { %v249_v29 = vsub.f32 %v199_v23, %v220_v24  ;;  %v248_v53 = vsub.f32 %v612_v51, %v220_v24  ;;  %v247_v54 = vsub.f32 %v603_v52, %v220_v24  ;;  %v649_v51 = vld [vmem:[%s779_s2 + $0x8] sm:$0xff]  }
  0x2c   : > { %v225_v30 = vmul.f32 %v221_v25, %v221_v25  ;;  %v226_v31 = vmul.f32 %v222_v26, %v222_v26  ;;  %v227_v32 = vmul.f32 %v223_v27, %v223_v27  ;;  %v228_v33 = vmul.f32 %v224_v28, %v224_v28 }
  0x2e   : > { %v229_v34 = vsel %vm201_vm0, %v225_v30, 0.0  ;;  %v230_v35 = vsel %vm201_vm0, %v226_v31, 0.0  ;;  %v232_v36 = vsel %vm201_vm0, %v227_v32, 0.0  ;;  %v234_v38 = vsel %vm201_vm0, %v228_v33, 0.0 }
  0x2f   : > { %v231_v37 = vadd.f32 %v230_v35, %v229_v34 }
  0x31   : > { %v233_v39 = vadd.f32 %v232_v36, %v231_v37 }
  0x33   : > { %v235_v40 = vadd.f32 %v234_v38, %v233_v39 }
  0x35   : > { %v237_v41 = vrot.slane %v235_v40, 1 }
  0x37   : > { %v239_v42 = vsel %vm212_vm1, %v237_v41, 0.0  ;;  %vm403_vm1 = vcmask 97280  }
  0x38   : > { %v240_v43 = vrot.slane %v239_v42, 4 }
  0x3a   : > { %v241_v44 = vadd.f32 %v240_v43, %v239_v42  ;;  %v648_v43 = vld [vmem:[%s779_s2 + $0x10] ss:$0 sps:$4 sm:$0x33]  }
  0x3b   : > { %630 = vmatprep.subr.msk.bf16.mxu0 %vm458_vm13, %v648_v43 }
  0x3c   : > { %v242_v45 = vrot.slane %v241_v44, 2 }
  0x3e   : > { %v243_v46 = vadd.f32 %v242_v45, %v241_v44 }
  0x40   : > { %v244_v47 = vrot.slane %v243_v46, 1 }
  0x42   : > { %v245_v48 = vadd.f32 %v244_v47, %v243_v46 }
  0x44   : > { %v246_v49 = vmul.f32 0.0625, %v245_v48 }
  0x46   : > { %v250_v50 = vadd.f32 1e-05, %v246_v49 }
  0x48   : > { %651 = vrsqrt.f32 %v250_v50 }
  0x55   : > { %v652_v55 = vpop.eup %651 }
  0x56   : > { %v256_v57 = vmul.f32 %v652_v55, %v224_v28  ;;  %v257_v58 = vmul.f32 %v652_v55, %v248_v53  ;;  %v254_v59 = vmul.f32 %v652_v55, %v222_v26  ;;  %v255_v60 = vmul.f32 %v652_v55, %v223_v27 }
  0x57   : > { %v252_v61 = vmul.f32 %v652_v55, %v247_v54  ;;  %v253_v62 = vmul.f32 %v652_v55, %v221_v25  ;;  %v258_v5 = vmul.f32 %v652_v55, %v249_v29 }
  0x58   : > { %v269_v63 = vadd.f32 %v592_v56, %v256_v57  ;;  %v270_v1 = vadd.f32 %v592_v56, %v257_v58  ;;  %v267_v3 = vadd.f32 %v592_v56, %v254_v59  ;;  %v268_v4 = vadd.f32 %v592_v56, %v255_v60  ;;  %v650_v60 = vld [vmem:[%s779_s2] sm:$0xff]  }
  0x59   : > { %v265_v2 = vadd.f32 %v592_v56, %v252_v61  ;;  %v266_v0 = vadd.f32 %v592_v56, %v253_v62  ;;  %v271_v20 = vadd.f32 %v592_v56, %v258_v5  ;;  %v460_v59 = vsel %vm458_vm13, %v648_v43, 0 }
  0x5a   : > { %vm276_vm2 = vcmp.ge.f32.partialorder %v269_v63, 0.0  ;;  %vm277_vm3 = vcmp.ge.f32.partialorder %v270_v1, 0.0  ;;  %v283_v6 = vmul.f32 0.2, %v269_v63  ;;  %v284_v7 = vmul.f32 0.2, %v270_v1  ;;  %621 = vmatpush3.bf16.msra.mxu0 %v460_v59 }
  0x5b   : > { %vm274_vm4 = vcmp.ge.f32.partialorder %v267_v3, 0.0  ;;  %vm275_vm5 = vcmp.ge.f32.partialorder %v268_v4, 0.0  ;;  %v281_v8 = vmul.f32 0.2, %v267_v3  ;;  %v282_v9 = vmul.f32 0.2, %v268_v4  ;;  %622 = vmatprep.subr.bf16.mxu0 %v649_v51 }
  0x5c   : > { %v290_v10 = vsel %vm276_vm2, %v269_v63, %v283_v6  ;;  %v291_v11 = vsel %vm277_vm3, %v270_v1, %v284_v7  ;;  %vm272_vm6 = vcmp.ge.f32.partialorder %v265_v2, 0.0  ;;  %vm273_vm7 = vcmp.ge.f32.partialorder %v266_v0, 0.0 }
  0x5d   : > { %v717_v12 = vpack.c.bf16 %v291_v11, %v290_v10  ;;  %v288_v13 = vsel %vm274_vm4, %v267_v3, %v281_v8  ;;  %v289_v14 = vsel %vm275_vm5, %v268_v4, %v282_v9  ;;  %v279_v15 = vmul.f32 0.2, %v265_v2 }
  0x5e   : > { %v719_v16 = vpack.c.bf16 %v289_v14, %v288_v13  ;;  %v280_v17 = vmul.f32 0.2, %v266_v0  ;;  %v285_v33 = vmul.f32 0.2, %v271_v20  ;;  %vm278_vm11 = vcmp.ge.f32.partialorder %v271_v20, 0.0  ;;  %623 = vmatpush3.bf16.msra.mxu0 %v649_v51 }
  0x5f   : > { %375 = vrot.lane.b32.xlu1 %v717_v12, %s661_s21  ;;  %v286_v18 = vsel %vm272_vm6, %v265_v2, %v279_v15  ;;  %v329_v25 = vrot.slane %v717_v12, 1  ;;  %v339_v30 = vrot.slane %v717_v12, 4  ;;  %v314_v36 = vshll.u32 %v717_v12, 16  ;;  %624 = vmatprep.subr.bf16.mxu0 %v650_v60 }
  0x60   : > { %373 = vrot.lane.b32.xlu0 %v719_v16, %s661_s21  ;;  %v287_v19 = vsel %vm273_vm7, %v266_v0, %v280_v17  ;;  %v337_v22 = vrot.slane %v719_v16, 4  ;;  %v327_v23 = vrot.slane %v719_v16, 1  ;;  %v365_v24 = vrot.slane %v719_v16, 5 }
  0x61   : > { %v723_v21 = vpack.c.bf16 %v287_v19, %v286_v18  ;;  %v306_v29 = vshll.u32 %v719_v16, 16  ;;  %v310_v38 = vshrl.u32 %v719_v16, 16  ;;  %v353_v39 = vshrl.u32 %v717_v12, 16 }
  0x62   : > { %v330_v41 = vsel %vm325_vm9, %v327_v23, %v329_v25  ;;  %v340_v44 = vsel %vm335_vm8, %v337_v22, %v339_v30  ;;  %v367_v46 = vrot.slane %v717_v12, 5  ;;  %v292_v47 = vsel %vm278_vm11, %v271_v20, %v285_v33  ;;  %625 = vmatpush3.bf16.msra.mxu0 %v650_v60 }
  0x63   : > { %v336_v26 = vrot.slane %v723_v21, 4  ;;  %v326_v27 = vrot.slane %v723_v21, 1  ;;  %v364_v28 = vrot.slane %v723_v21, 5  ;;  %v299_v31 = vshrl.u32 %v723_v21, 16 }
  0x64   : > { %v301_v32 = vshll.u32 %v723_v21, 16  ;;  %v308_v42 = vrot.slane %v306_v29, 1  ;;  %v316_v48 = vrot.slane %v314_v36, 1  ;;  %v349_v49 = vrot.slane %v310_v38, 4 }
  0x65   : > { %v338_v34 = vsel %vm335_vm8, %v336_v26, %v337_v22  ;;  %v328_v35 = vsel %vm325_vm9, %v326_v27, %v327_v23  ;;  %v366_v40 = vsel %vm363_vm10, %v364_v28, %v365_v24  ;;  %v350_v50 = vrot.slane %v306_v29, 5 }
  0x66   : > { %341 = vrot.lane.b32.xlu0 %v338_v34, %s662_s22  ;;  %331 = vrot.lane.b32.xlu1 %v328_v35, %s663_s23  ;;  %v303_v37 = vrot.slane %v301_v32, 1  ;;  %v312_v52 = vor.u32 %v310_v38, %v308_v42  ;;  %v355_v53 = vrot.slane %v353_v39, 4  ;;  %v356_v54 = vrot.slane %v314_v36, 5 }
  0x67   : > { %v346_v55 = vrot.slane %v299_v31, 4  ;;  %v347_v57 = vrot.slane %v301_v32, 5  ;;  %v296_v58 = vpack.c.bf16 %v292_v47, %v292_v47  ;;  %v368_v61 = vsel %vm363_vm10, %v365_v24, %v367_v46 }
  0x68   : > { %v304_v45 = vor.u32 %v303_v37, %v299_v31  ;;  %v351_v62 = vor.u32 %v350_v50, %v349_v49  ;;  %v317_v63 = vsel %vm297_vm12, %v312_v52, %v316_v48  ;;  %v357_v1 = vor.u32 %v356_v54, %v355_v53 }
  0x69   : > { %v348_v3 = vor.u32 %v347_v57, %v346_v55  ;;  %v379_v4 = vshll.u32 %v296_v58, 16  ;;  %v377_v5 = vor.u32 %v353_v39, %v316_v48  ;;  %v388_v8 = vrot.slane %v296_v58, 1 }
  0x6a   : > { %369 = vrot.lane.b32.xlu0 %v366_v40, %s664_s28  ;;  %333 = vrot.lane.b32.xlu1 %v330_v41, %s663_s23  ;;  %v309_v56 = vsel %vm297_vm12, %v304_v45, %v308_v42  ;;  %v358_v2 = vsel %vm345_vm14, %v351_v62, %v357_v1  ;;  %vm408_vm2 = vcmask 130048   ;;  %vm413_vm3 = vcmask 162816  }
  0x6b   : > { %v352_v0 = vsel %vm345_vm14, %v348_v3, %v351_v62  ;;  %v381_v6 = vrot.slane %v379_v4, 1  ;;  %v389_v9 = vsel %vm325_vm9, %v329_v25, %v388_v8  ;;  %vm418_vm4 = vcmask 195584  }
  0x6c   : > { %vm423_vm5 = vcmask 228352   ;;  %vm453_vm6 = vcmask 293888   ;;  %vm515_vm7 = vcmask 25600  }
  0x6d   : > { %v382_v7 = vsel %vm297_vm12, %v377_v5, %v381_v6 }
  0x6e   : > { %343 = vrot.lane.b32.xlu1 %v340_v44, %s662_s22  ;;  %318 = vrot.lane.b32.xlu0 %v309_v56, %s665_s4 }
  0x72   : > { %371 = vrot.lane.b32.xlu1 %v368_v61, %s664_s28  ;;  %320 = vrot.lane.b32.xlu0 %v317_v63, %s665_s4 }
  0x76   : > { %361 = vrot.lane.b32.xlu1 %v358_v2, %s666_s5  ;;  %359 = vrot.lane.b32.xlu0 %v352_v0, %s666_s5 }
  0x7a   : > { %385 = vrot.lane.b32.xlu1 %v382_v7, %s667_s6  ;;  %383 = vrot.lane.b32.xlu0 %v317_v63, %s667_s6 }
  0x7e   : > { %392 = vrot.lane.b32.xlu1 %v389_v9, %s668_s7  ;;  %390 = vrot.lane.b32.xlu0 %v330_v41, %s668_s7 }
  0xd1   : > { %v376_v10 = vpop.permute.xlu1 %375 }
  0xd2   : > { %v374_v11 = vpop.permute.xlu0 %373 }
  0xd8   : > { %v342_v13 = vpop.permute.xlu0 %341  ;;  %v332_v14 = vpop.permute.xlu1 %331 }
  0xdc   : > { %v370_v15 = vpop.permute.xlu0 %369  ;;  %v334_v17 = vpop.permute.xlu1 %333 }
  0xe0   : > { %v344_v18 = vpop.permute.xlu1 %343  ;;  %v319_v19 = vpop.permute.xlu0 %318 }
  0xe1   : > { %v395_v20 = vsel %vm201_vm0, %v723_v21, %v319_v19 }
  0xe2   : > { %v400_v12 = vsel %vm398_vm15, %v395_v20, %v332_v14 }
  0xe3   : > { %v405_v28 = vsel %vm403_vm1, %v400_v12, %v342_v13 }
  0xe4   : > { %v372_v22 = vpop.permute.xlu1 %371  ;;  %v321_v23 = vpop.permute.xlu0 %320 }
  0xe5   : > { %v397_v24 = vsel %vm201_vm0, %v719_v16, %v321_v23  ;;  %vm428_vm0 = vcmask 261120  }
  0xe6   : > { %v402_v25 = vsel %vm398_vm15, %v397_v24, %v334_v17 }
  0xe7   : > { %v407_v26 = vsel %vm403_vm1, %v402_v25, %v344_v18 }
  0xe8   : > { %v362_v27 = vpop.permute.xlu1 %361  ;;  %v360_v29 = vpop.permute.xlu0 %359 }
  0xe9   : > { %v412_v30 = vsel %vm408_vm2, %v407_v26, %v362_v27  ;;  %v410_v31 = vsel %vm408_vm2, %v405_v28, %v360_v29 }
  0xea   : > { %v417_v32 = vsel %vm413_vm3, %v412_v30, %v372_v22  ;;  %v415_v33 = vsel %vm413_vm3, %v410_v31, %v370_v15 }
  0xeb   : > { %v422_v35 = vsel %vm418_vm4, %v417_v32, %v376_v10  ;;  %v420_v36 = vsel %vm418_vm4, %v415_v33, %v374_v11 }
  0xec   : > { %v386_v21 = vpop.permute.xlu1 %385  ;;  %v384_v34 = vpop.permute.xlu0 %383 }
  0xed   : > { %v427_v16 = vsel %vm423_vm5, %v422_v35, %v386_v21  ;;  %v425_v37 = vsel %vm423_vm5, %v420_v36, %v384_v34 }
  0xf0   : > { %v393_v38 = vpop.permute.xlu1 %392  ;;  %v391_v39 = vpop.permute.xlu0 %390 }
  0xf1   : > { %v432_v40 = vsel %vm428_vm0, %v427_v16, %v393_v38  ;;  %v430_v41 = vsel %vm428_vm0, %v425_v37, %v391_v39 }
  0xf2   : > { %626 = vmatprep.mubr.msk.bf16.mxu0 %vm453_vm6, %v430_v41 }
  0xf3   : > { %627 = vmatmul.mubr.msk.bf16.vlgmr.msra.gmra.mxu0 %vm453_vm6, %v432_v40 }
 0x1b3   : > { %v628_v42 = vpop.f32.mrf.mxu0 }
 0x1b4   : > { %v513_v43 = vpack.c.bf16 %v628_v42, %v628_v42 }
 0x1b5   : > { %v496_v44 = vpop.f32.mrf.mxu0 }
 0x1b6   : > { %518 = vst.msk [vmem:[%s184_s11 + $0x4] sm:$0x3] %vm515_vm7, %v513_v43  ;;  %v511_v45 = vpack.c.bf16 %v496_v44, %v496_v44 }
 0x1b7   : > { %v629_v46 = vpop.f32.mrf.mxu0 }
 0x1b8   : > { %516 = vst.msk [vmem:[%s184_s11] sm:$0x3] %vm515_vm7, %v511_v45  ;;  %v514_v47 = vpack.c.bf16 %v629_v46, %v629_v46 }
 0x1b9   : > { %v499_v48 = vpop.f32.mrf.mxu0 }
 0x1ba   : > { %519 = vst.msk [vmem:[%s184_s11 + $0x6] sm:$0x3] %vm515_vm7, %v514_v47  ;;  %v512_v49 = vpack.c.bf16 %v499_v48, %v499_v48 }
 0x1bc   : > { %517 = vst.msk [vmem:[%s184_s11 + $0x2] sm:$0x3] %vm515_vm7, %v512_v49 }
 0x1bd PF: > { %s13_s12 = sadd.s32 1, %s659_s12  }
 0x1be   : > { %p10_p4 = scmp.ge.s32.totalorder %s13_s12, 4  }
 0x1c0   :  { %12 = sbr.rel (!%p10_p4) target bundleno = 1 (0x1), region = 65 }

// kernel: _lambda_.20
= control target key start
LH: loop header
LB: loop body
LE: loop exit
PB: predicated region body
PF: predicated region fallthrough
CT: control target
= control target key end

     0   :  { %s885_s21 = smov 0   ;;  %s1014_s0 = inlined_call_operand.vmem [shape: bf16[2,32,16], index: 0, kind: input, shape index: {}]   ;;  %s1015_s1 = inlined_call_operand.vmem [shape: f32[2,1,16], index: 1, kind: input, shape index: {}]   ;;  %s1016_s2 = inlined_call_operand.vmem [shape: bf16[64,8], index: 2, kind: input, shape index: {}]   ;;  %s1017_s3 = inlined_call_operand.vmem [shape: bf16[2,16,16], index: 3, kind: input, shape index: {}]   ;;  %s1018_s4 = inlined_call_operand.vmem [shape: bf16[16,8], index: 4, kind: input, shape index: {}]   ;;  %s1019_s5 = inlined_call_operand.vmem [shape: f32[1,8], index: 5, kind: input, shape index: {}]   ;;  %s1020_s6 = inlined_call_operand.vmem [shape: bf16[2,2,2,8], index: 6, kind: output, shape index: {}]  }
   0x1 LB: > { %s746_s22 = sadd.s32 4294967295, %s837_s21   ;;  %p750_p0 = scmp.ge.s32.totalorder %s837_s21, 1  ;;  %s837_s21 = sphi %s885_s21, %s16_s21  }
   0x2   : > { %p230_p1 = scmp.lt.s32.totalorder %s837_s21, 3 }
   0x4   : > { %p231_p2 = pnand %p750_p0, %p230_p1 }
   0x5   : > { %p267_p3 = scmp.lt.s32.totalorder (!%p231_p2), %s746_s22, 1  ;;  %s839_s27 = smov (!%p231_p2), 124  }
   0x6   : > { %234 = sbr.rel (%p231_p2) target bundleno = 902 (0x386), region = 44  ;;  %s840_s28 = smov (!%p231_p2), 116  }
   0x7   : > { %s841_s29 = smov (!%p231_p2), 120   ;;  %s842_s30 = smov (!%p231_p2), 8  }
   0x8   : > { %s843_s7 = smov (!%p231_p2), 4   ;;  %s844_s8 = smov (!%p231_p2), 12  }
   0xb   : > { %s1022_s22 = smov (!%p267_p3, %s746_s22), 1  ;;  %vm294_vm0 = vcmask 130048   ;;  %vm301_vm1 = vcmask 123904   ;;  %v367_v47 = vlaneseq  ;;  %vm361_vm2 = vcmask 31744  }
   0xc   : > { %s768_s23 = sshll.u32 %s1022_s22, 4  ;;  %vm363_vm3 = vcmask 64512   ;;  %vm365_vm4 = vcmask 97280   ;;  %s274_s15 = scalar_lea.vmem %s1015_s1, %s1022_s22  ;;  %vm846_vm5 = vmmov 0   ;;  %vm497_vm10 = vcmask 1043456  }
   0xd   : > { %s271_s26 = scalar_lea.vmem %s1014_s0, %s768_s23  ;;  %v925_v48 = vshrl.u32 %v367_v47, 7  ;;  %s769_s20 = sshll.u32 %s1022_s22, 3  ;;  %vm480_vm11 = vsmask.f32 7424  ;;  %vm503_vm12 = vsmask.f32 3328 }
   0xe   : > { %v899_v0 = vld [vmem:[%s271_s26] sm:$0xff]   ;;  %v901_v1 = vld [vmem:[%s271_s26 + $0x8] sm:$0xff]   ;;  %s279_s25 = scalar_lea.vmem %s1017_s3, %s769_s20  ;;  %vm517_vm13 = vcmask 261120   ;;  %vm520_vm14 = vcmask 392192   ;;  %vm614_vm15 = vcmask 523264   ;;  %s755_s9 = sshll.u32 %s1022_s22, 1 }
   0xf   : > { %v773_v2 = vunpack.c.h.bf16 %v899_v0  ;;  %v776_v3 = vunpack.c.l.bf16 %v901_v1  ;;  %v772_v4 = vunpack.c.l.bf16 %v899_v0  ;;  %v369_v52 = vsub.s32 0, %v925_v48  ;;  %s283_s12 = scalar_lea.vmem %s1020_s6, %s755_s9 }
  0x11   : > { %v295_v5 = vsel %vm294_vm0, %v773_v2, 0.0  ;;  %v296_v6 = vsel %vm294_vm0, %v776_v3, 0.0  ;;  %v321_v7 = vsel %vm294_vm0, %v772_v4, 0.0 }
  0x12   : > { %v297_v8 = vadd.f32 %v296_v6, %v295_v5  ;;  %v322_v9 = vadd.f32 %v321_v7, %v295_v5 }
  0x14   : > { %v309_v10 = vsel %vm301_vm1, %v297_v8, 0.0  ;;  %v324_v11 = vrot.slane %v322_v9, 1  ;;  %v338_v12 = vsel %vm301_vm1, %v322_v9, 0.0  ;;  %v299_v32 = vrot.slane %v297_v8, 1 }
  0x15   : > { %v310_v13 = vrot.slane %v309_v10, 4  ;;  %v339_v14 = vrot.slane %v338_v12, 4 }
  0x16   : > { %v326_v15 = vsel %vm301_vm1, %v324_v11, 0.0  ;;  %v302_v33 = vsel %vm301_vm1, %v299_v32, 0.0 }
  0x17   : > { %v311_v16 = vadd.f32 %v310_v13, %v309_v10  ;;  %v327_v17 = vrot.slane %v326_v15, 4  ;;  %v340_v18 = vadd.f32 %v339_v14, %v338_v12  ;;  %v303_v34 = vrot.slane %v302_v33, 4 }
  0x19   : > { %v312_v19 = vrot.slane %v311_v16, 2  ;;  %v328_v20 = vadd.f32 %v327_v17, %v326_v15  ;;  %v341_v21 = vrot.slane %v340_v18, 2  ;;  %v304_v35 = vadd.f32 %v303_v34, %v302_v33 }
  0x1b   : > { %v313_v22 = vadd.f32 %v312_v19, %v311_v16  ;;  %v329_v23 = vrot.slane %v328_v20, 2  ;;  %v342_v24 = vadd.f32 %v341_v21, %v340_v18  ;;  %v305_v36 = vrot.slane %v304_v35, 2 }
  0x1d   : > { %v314_v25 = vrot.slane %v313_v22, 1  ;;  %v330_v26 = vadd.f32 %v329_v23, %v328_v20  ;;  %v343_v27 = vrot.slane %v342_v24, 1  ;;  %v306_v37 = vadd.f32 %v305_v36, %v304_v35 }
  0x1f   : > { %v315_v28 = vadd.f32 %v314_v25, %v313_v22  ;;  %v331_v29 = vrot.slane %v330_v26, 1  ;;  %v344_v30 = vadd.f32 %v343_v27, %v342_v24  ;;  %v307_v38 = vrot.slane %v306_v37, 1 }
  0x21   : > { %317 = vrot.lane.b32.xlu0 %v315_v28, %s839_s27  ;;  %v332_v31 = vadd.f32 %v331_v29, %v330_v26  ;;  %346 = vrot.lane.b32.xlu1 %v344_v30, %s840_s28  ;;  %v308_v39 = vadd.f32 %v307_v38, %v306_v37 }
  0x25   : > { %334 = vrot.lane.b32.xlu0 %v332_v31, %s841_s29 }
  0x93   : > { %v318_v40 = vpop.permute.xlu0 %317  ;;  %v347_v43 = vpop.permute.xlu1 %346 }
  0x94   : > { %v320_v41 = vadd.f32 %v318_v40, %v308_v39 }
  0x97   : > { %v335_v42 = vpop.permute.xlu0 %334 }
  0x98   : > { %v337_v44 = vadd.f32 %v335_v42, %v320_v41  ;;  %v823_v42 = vld [vmem:[%s1016_s2 + $0x18] sm:$0xff]  }
  0x9a   : > { %v349_v45 = vadd.f32 %v347_v43, %v337_v44  ;;  %v845_v43 = vmov 0.0   ;;  %v824_v44 = vld [vmem:[%s1016_s2 + $0x10] sm:$0xff]  }
  0x9b   : > { %792 = vmatprep.subr.bf16.mxu1 %v845_v43  ;;  %786 = vmatprep.subr.bf16.mxu0 %v845_v43 }
  0x9c   : > { %v350_v46 = vmul.f32 0.0625, %v349_v45  ;;  %793 = vmatpush3.bf16.msra.mxu1 %v823_v42  ;;  %788 = vmatprep.mubr.msk.bf16.mxu0 %vm846_vm5, %v845_v43 }
  0x9d   : > { %794 = vmatprep.subr.bf16.mxu1 %v845_v43  ;;  %800 = vmatprep.mubr.msk.bf16.mxu1 %vm846_vm5, %v845_v43 }
  0x9e   : > { %355 = vrot.lane.b32.xlu0 %v350_v46, %s842_s30  ;;  %352 = vrot.lane.b32.xlu1 %v350_v46, %s843_s7 }
  0xa0   : > { %795 = vmatpush3.bf16.msra.mxu1 %v824_v44  ;;  %v765_v44 = vld [vmem:[%s1019_s5] ss:$0 sm:$0xff] }
  0xa1   : > { %796 = vmatprep.subr.bf16.mxu1 %v845_v43 }
  0xa2   : > { %358 = vrot.lane.b32.xlu1 %v350_v46, %s844_s8 }
 0x110   : > { %v353_v49 = vpop.permute.xlu1 %352  ;;  %v356_v50 = vpop.permute.xlu0 %355 }
 0x111   : > { %v362_v51 = vsel %vm361_vm2, %v350_v46, %v353_v49 }
 0x112   : > { %v364_v53 = vsel %vm363_vm3, %v362_v51, %v356_v50 }
 0x114   : > { %v359_v54 = vpop.permute.xlu1 %358 }
 0x115   : > { %v366_v55 = vsel %vm365_vm4, %v364_v53, %v359_v54  ;;  %v777_v54 = vunpack.c.h.bf16 %v901_v1 }
 0x116   : > { %v933_v56 = vrot.slane %v366_v55, %v369_v52 }
 0x118   : > { %v938_v57 = vsub.f32 %v773_v2, %v933_v56  ;;  %v943_v58 = vsub.f32 %v776_v3, %v933_v56  ;;  %v948_v59 = vsub.f32 %v772_v4, %v933_v56 }
 0x11a   : > { %v373_v60 = vmul.f32 %v938_v57, %v938_v57  ;;  %v374_v61 = vmul.f32 %v943_v58, %v943_v58  ;;  %v401_v62 = vmul.f32 %v948_v59, %v948_v59 }
 0x11c   : > { %v375_v63 = vsel %vm294_vm0, %v373_v60, 0.0  ;;  %v376_v2 = vsel %vm294_vm0, %v374_v61, 0.0  ;;  %v402_v3 = vsel %vm294_vm0, %v401_v62, 0.0  ;;  %v445_v60 = vsub.f32 %v777_v54, %v933_v56  ;;  %v756_v62 = vld [vmem:[%s274_s15] ss:$0 sm:$0xff] }
 0x11d   : > { %v377_v5 = vadd.f32 %v376_v2, %v375_v63  ;;  %v403_v6 = vadd.f32 %v402_v3, %v375_v63  ;;  %v825_v63 = vld [vmem:[%s1018_s4] sm:$0xff]  }
 0x11e   : > { %787 = vmatpush3.bf16.msra.mxu0 %v825_v63 }
 0x11f   : > { %v388_v0 = vsel %vm301_vm1, %v377_v5, 0.0  ;;  %v405_v4 = vrot.slane %v403_v6, 1  ;;  %v419_v7 = vsel %vm301_vm1, %v403_v6, 0.0  ;;  %v379_v27 = vrot.slane %v377_v5, 1  ;;  %v826_v6 = vld [vmem:[%s1016_s2 + $0x8] sm:$0xff]  }
 0x120   : > { %v389_v8 = vrot.slane %v388_v0, 4  ;;  %v420_v9 = vrot.slane %v419_v7, 4  ;;  %797 = vmatpush3.bf16.msra.mxu1 %v826_v6 }
 0x121   : > { %v407_v10 = vsel %vm301_vm1, %v405_v4, 0.0  ;;  %v381_v28 = vsel %vm301_vm1, %v379_v27, 0.0  ;;  %798 = vmatprep.subr.bf16.mxu1 %v845_v43 }
 0x122   : > { %v390_v11 = vadd.f32 %v389_v8, %v388_v0  ;;  %v408_v12 = vrot.slane %v407_v10, 4  ;;  %v421_v13 = vadd.f32 %v420_v9, %v419_v7  ;;  %v382_v29 = vrot.slane %v381_v28, 4 }
 0x124   : > { %v391_v14 = vrot.slane %v390_v11, 2  ;;  %v409_v15 = vadd.f32 %v408_v12, %v407_v10  ;;  %v422_v16 = vrot.slane %v421_v13, 2  ;;  %v383_v30 = vadd.f32 %v382_v29, %v381_v28 }
 0x126   : > { %v392_v17 = vadd.f32 %v391_v14, %v390_v11  ;;  %v410_v18 = vrot.slane %v409_v15, 2  ;;  %v423_v19 = vadd.f32 %v422_v16, %v421_v13  ;;  %v384_v31 = vrot.slane %v383_v30, 2 }
 0x128   : > { %v393_v20 = vrot.slane %v392_v17, 1  ;;  %v411_v21 = vadd.f32 %v410_v18, %v409_v15  ;;  %v424_v24 = vrot.slane %v423_v19, 1  ;;  %v385_v32 = vadd.f32 %v384_v31, %v383_v30 }
 0x12a   : > { %v394_v22 = vadd.f32 %v393_v20, %v392_v17  ;;  %v412_v23 = vrot.slane %v411_v21, 1  ;;  %v425_v26 = vadd.f32 %v424_v24, %v423_v19  ;;  %v386_v33 = vrot.slane %v385_v32, 1 }
 0x12c   : > { %396 = vrot.lane.b32.xlu0 %v394_v22, %s839_s27  ;;  %v413_v25 = vadd.f32 %v412_v23, %v411_v21  ;;  %v387_v34 = vadd.f32 %v386_v33, %v385_v32 }
 0x12e   : > { %415 = vrot.lane.b32.xlu1 %v413_v25, %s841_s29  ;;  %s848_s29 = smov 16  }
 0x130   : > { %427 = vrot.lane.b32.xlu0 %v425_v26, %s840_s28  ;;  %s847_s28 = smov 32  }
 0x19e   : > { %v397_v35 = vpop.permute.xlu0 %396 }
 0x19f   : > { %v399_v36 = vadd.f32 %v397_v35, %v387_v34 }
 0x1a0   : > { %v416_v37 = vpop.permute.xlu1 %415 }
 0x1a1   : > { %v418_v38 = vadd.f32 %v416_v37, %v399_v36 }
 0x1a2   : > { %v428_v39 = vpop.permute.xlu0 %427 }
 0x1a3   : > { %v430_v40 = vadd.f32 %v428_v39, %v418_v38 }
 0x1a5   : > { %v431_v41 = vmul.f32 0.0625, %v430_v40 }
 0x1a7   : > { %436 = vrot.lane.b32.xlu0 %v431_v41, %s842_s30  ;;  %433 = vrot.lane.b32.xlu1 %v431_v41, %s843_s7  ;;  %s849_s30 = smov 48  }
 0x1ab   : > { %439 = vrot.lane.b32.xlu1 %v431_v41, %s844_s8 }
 0x219   : > { %v434_v45 = vpop.permute.xlu1 %433  ;;  %v437_v46 = vpop.permute.xlu0 %436 }
 0x21a   : > { %v442_v47 = vsel %vm361_vm2, %v431_v41, %v434_v45 }
 0x21b   : > { %v443_v49 = vsel %vm363_vm3, %v442_v47, %v437_v46 }
 0x21d   : > { %v440_v50 = vpop.permute.xlu1 %439 }
 0x21e   : > { %v444_v51 = vsel %vm365_vm4, %v443_v49, %v440_v50 }
 0x21f   : > { %v446_v53 = vadd.f32 1e-05, %v444_v51 }
 0x221   : > { %829 = vrsqrt.f32 %v446_v53 }
 0x22e   : > { %v830_v55 = vpop.eup %829 }
 0x22f   : > { %v451_v61 = vrot.slane %v830_v55, %v369_v52 }
 0x231   : > { %v452_v2 = vmul.f32 %v451_v61, %v948_v59  ;;  %v453_v3 = vmul.f32 %v451_v61, %v938_v57  ;;  %v454_v1 = vmul.f32 %v451_v61, %v943_v58  ;;  %v455_v5 = vmul.f32 %v451_v61, %v445_v60  ;;  %v827_v57 = vld [vmem:[%s279_s25] sm:$0xff]  }
 0x232   : > { %789 = vmatmul.mubr.msk.bf16.vlgmr.msra.gmra.mxu0 %vm294_vm0, %v827_v57  ;;  %v828_v58 = vld [vmem:[%s1016_s2] sm:$0xff]  }
 0x233   : > { %v462_v48 = vadd.f32 %v756_v62, %v452_v2  ;;  %v463_v52 = vadd.f32 %v756_v62, %v453_v3  ;;  %v464_v56 = vadd.f32 %v756_v62, %v454_v1  ;;  %v465_v0 = vadd.f32 %v756_v62, %v455_v5  ;;  %799 = vmatpush3.bf16.msra.mxu1 %v828_v58 }
 0x235   : > { %vm466_vm6 = vcmp.ge.f32.partialorder %v462_v48, 0.0  ;;  %vm467_vm7 = vcmp.ge.f32.partialorder %v463_v52, 0.0  ;;  %vm468_vm8 = vcmp.ge.f32.partialorder %v464_v56, 0.0  ;;  %vm469_vm9 = vcmp.ge.f32.partialorder %v465_v0, 0.0 }
 0x236   : > { %v470_v59 = vmul.f32 0.2, %v462_v48  ;;  %v471_v4 = vmul.f32 0.2, %v463_v52  ;;  %v472_v7 = vmul.f32 0.2, %v464_v56 }
 0x237   : > { %v473_v8 = vmul.f32 0.2, %v465_v0 }
 0x238   : > { %v474_v9 = vsel %vm466_vm6, %v462_v48, %v470_v59  ;;  %v475_v10 = vsel %vm467_vm7, %v463_v52, %v471_v4  ;;  %v476_v11 = vsel %vm468_vm8, %v464_v56, %v472_v7 }
 0x239   : > { %v477_v12 = vsel %vm469_vm9, %v465_v0, %v473_v8  ;;  %v478_v13 = vpack.c.bf16 %v475_v10, %v474_v9 }
 0x23a   : > { %v479_v14 = vpack.c.bf16 %v477_v12, %v476_v11 }
 0x23b   : > { %v498_v15 = vrot.slane %v478_v13, 4  ;;  %v482_v16 = vshrl.u32 %v478_v13, 16  ;;  %v484_v17 = vshll.u32 %v478_v13, 16 }
 0x23c   : > { %v499_v18 = vrot.slane %v479_v14, 4  ;;  %v489_v19 = vshll.u32 %v479_v14, 16  ;;  %v507_v20 = vshrl.u32 %v479_v14, 16 }
 0x23d   : > { %v486_v21 = vrot.slane %v484_v17, 1  ;;  %v504_v22 = vrot.slane %v482_v16, 4  ;;  %v505_v23 = vrot.slane %v484_v17, 5 }
 0x23e   : > { %v500_v24 = vsel %vm497_vm10, %v498_v15, %v499_v18  ;;  %v509_v25 = vrot.slane %v507_v20, 4  ;;  %v510_v26 = vrot.slane %v489_v19, 5  ;;  %v491_v28 = vrot.slane %v489_v19, 1 }
 0x23f   : > { %501 = vrot.lane.b32.xlu1 %v500_v24, %s847_s28  ;;  %v487_v27 = vor.u32 %v486_v21, %v482_v16  ;;  %v506_v30 = vor.u32 %v505_v23, %v504_v22 }
 0x240   : > { %v511_v31 = vor.u32 %v510_v26, %v509_v25 }
 0x241   : > { %v492_v29 = vsel %vm480_vm11, %v487_v27, %v491_v28 }
 0x242   : > { %493 = vrot.lane.b32.xlu0 %v492_v29, %s848_s29  ;;  %v512_v32 = vsel %vm503_vm12, %v506_v30, %v511_v31 }
 0x246   : > { %513 = vrot.lane.b32.xlu0 %v512_v32, %s849_s30 }
 0x2b1   : > { %v502_v35 = vpop.permute.xlu1 %501 }
 0x2b4   : > { %v494_v33 = vpop.permute.xlu0 %493 }
 0x2b5   : > { %v516_v34 = vsel %vm294_vm0, %v478_v13, %v494_v33  ;;  %vm669_vm0 = vcmask 57344  }
 0x2b6   : > { %v519_v36 = vsel %vm517_vm13, %v516_v34, %v502_v35 }
 0x2b8   : > { %v514_v37 = vpop.permute.xlu0 %513 }
 0x2b9   : > { %v522_v38 = vsel %vm520_vm14, %v519_v36, %v514_v37 }
 0x2ba   : > { %801 = vmatmul.mubr.msk.bf16.vlgmr.msra.gmra.mxu1 %vm614_vm15, %v522_v38 }
 0x2f2   : > { %v583_v39 = vpop.f32.mrf.mxu0 }
 0x2f4   : > { %v790_v40 = vpop.f32.mrf.mxu0 }
 0x2f6   : > { %v586_v41 = vpop.f32.mrf.mxu0 }
 0x2f8   : > { %v791_v42 = vpop.f32.mrf.mxu0 }
 0x37a   : > { %v651_v43 = vpop.f32.mrf.mxu1 }
 0x37b   : > { %v652_v45 = vadd.f32 %v651_v43, %v583_v39 }
 0x37c   : > { %v802_v46 = vpop.f32.mrf.mxu1 }
 0x37d   : > { %v665_v47 = vadd.f32 %v765_v44, %v652_v45 }
 0x37e   : > { %v654_v49 = vpop.f32.mrf.mxu1 }
 0x37f   : > { %v667_v50 = vpack.c.bf16 %v665_v47, %v665_v47  ;;  %v655_v51 = vadd.f32 %v654_v49, %v586_v41 }
 0x380   : > { %v803_v53 = vpop.f32.mrf.mxu1 }
 0x381   : > { %670 = vst.msk [vmem:[%s283_s12] sm:$0x1] %vm669_vm0, %v667_v50  ;;  %v666_v54 = vadd.f32 %v765_v44, %v655_v51 }
 0x383   : > { %v668_v55 = vpack.c.bf16 %v666_v54, %v666_v54 }
 0x385   : > { %671 = vst.msk [vmem:[%s283_s12 + $0x1] sm:$0x1] %vm669_vm0, %v668_v55 }
 0x386 PF: > { %s16_s21 = sadd.s32 1, %s837_s21  }
 0x387   : > { %p13_p4 = scmp.ge.s32.totalorder %s16_s21, 4  }
 0x389   :  { %15 = sbr.rel (!%p13_p4) target bundleno = 1 (0x1), region = 80 }

// kernel: _lambda_.21
= control target key start
LH: loop header
LB: loop body
LE: loop exit
PB: predicated region body
PF: predicated region fallthrough
CT: control target
= control target key end

     0   :  { %s613_s12 = smov 0   ;;  %s685_s0 = inlined_call_operand.vmem [shape: bf16[2,40,8], index: 0, kind: input, shape index: {}]   ;;  %s686_s1 = inlined_call_operand.vmem [shape: f32[2,1,8], index: 1, kind: input, shape index: {}]   ;;  %s687_s2 = inlined_call_operand.vmem [shape: bf16[72,8], index: 2, kind: input, shape index: {}]   ;;  %s688_s3 = inlined_call_operand.vmem [shape: bf16[2,2,2,8], index: 3, kind: output, shape index: {}]  }
   0x1 LB: > { %s504_s13 = sadd.s32 4294967295, %s581_s12   ;;  %p508_p0 = scmp.ge.s32.totalorder %s581_s12, 1  ;;  %s581_s12 = sphi %s613_s12, %s13_s12  }
   0x2   : > { %p145_p1 = scmp.lt.s32.totalorder %s581_s12, 3 }
   0x4   : > { %p146_p2 = pnand %p508_p0, %p145_p1 }
   0x5   : > { %p171_p3 = scmp.lt.s32.totalorder (!%p146_p2), %s504_s13, 1  ;;  %s584_s4 = smov (!%p146_p2), 24  }
   0x6   : > { %149 = sbr.rel (%p146_p2) target bundleno = 421 (0x1a5), region = 32  ;;  %s585_s5 = smov (!%p146_p2), 16  }
   0x7   : > { %s586_s6 = smov (!%p146_p2), 48   ;;  %s587_s7 = smov (!%p146_p2), 8  }
   0x8   : > { %s589_s8 = smov (!%p146_p2), 32   ;;  %s590_s9 = smov (!%p146_p2), 40  }
   0x9   : > { %s591_s10 = smov (!%p146_p2), 56   ;;  %s592_s11 = smov (!%p146_p2), 64  }
   0xb   : > { %s690_s13 = smov (!%p171_p3, %s504_s13), 1  ;;  %v583_v0 = vmov 0.0   ;;  %v568_v1 = vld [vmem:[%s687_s2 + $0x20] ss:$0 sps:$4 sm:$0xff]   ;;  %vm291_vm0 = vcmask 1043456   ;;  %v569_v3 = vld [vmem:[%s687_s2 + $0x18] sm:$0xff]  }
   0xc   : > { %535 = vmatprep.subr.bf16.mxu0 %v583_v0  ;;  %s549_s16 = smul.u32 20, %s690_s13  ;;  %v394_v2 = vsel %vm291_vm0, %v568_v1, 0  ;;  %vm195_vm1 = vcmask 64512   ;;  %vm202_vm2 = vcmask 58368   ;;  %s178_s24 = scalar_lea.vmem %s686_s1, %s690_s13  ;;  %v570_v50 = vld [vmem:[%s687_s2 + $0x10] sm:$0xff]   ;;  %vm285_vm8 = vcmask 1046528  }
   0xd   : > { %536 = vmatpush3.bf16.msra.mxu0 %v394_v2  ;;  %v511_v45 = vld [vmem:[%s178_s24] ss:$0 sm:$0xff]  ;;  %v571_v2 = vld [vmem:[%s687_s2 + $0x8] sm:$0xff]   ;;  %vm268_vm9 = vsmask.f32 7424  ;;  %vm309_vm11 = vcmask 1042432  }
   0xe   : > { %s632_s19 = scalar_lea.vmem %s685_s0, %s549_s16  ;;  %537 = vmatprep.subr.bf16.mxu0 %v583_v0  ;;  %vm297_vm10 = vsmask.f32 3328  ;;  %vm588_vm12 = vmmov 0   ;;  %vm332_vm13 = vcmask 130048   ;;  %vm335_vm14 = vcmask 195584   ;;  %s510_s14 = sshll.u32 %s690_s13, 1 }
   0xf   : > { %v521_v4 = vld [vmem:[%s632_s19] sm:$0xff]   ;;  %v528_v5 = vld [vmem:[%s632_s19 + $0x8] sm:$0xff]   ;;  %v188_v37 = vld [vmem:[%s632_s19 + $0x10] sm:$0xf]  ;;  %545 = vmatprep.mubr.msk.bf16.mxu0 %vm588_vm12, %v583_v0  ;;  %vm338_vm15 = vcmask 261120   ;;  %s182_s17 = scalar_lea.vmem %s688_s3, %s510_s14 }
  0x10   : > { %v523_v6 = vunpack.c.h.bf16 %v521_v4  ;;  %v526_v7 = vunpack.c.l.bf16 %v528_v5  ;;  %v522_v38 = vunpack.c.l.bf16 %v521_v4  ;;  %v527_v39 = vunpack.c.h.bf16 %v528_v5 }
  0x11   : > { %538 = vmatpush3.bf16.msra.mxu0 %v569_v3  ;;  %v193_v40 = vunpack.c.l.bf16 %v188_v37 }
  0x12   : > { %v196_v8 = vsel %vm195_vm1, %v523_v6, 0.0  ;;  %v197_v9 = vsel %vm195_vm1, %v526_v7, 0.0  ;;  %539 = vmatprep.subr.bf16.mxu0 %v583_v0 }
  0x13   : > { %v198_v10 = vadd.f32 %v197_v9, %v196_v8 }
  0x15   : > { %v200_v11 = vrot.slane %v198_v10, 1  ;;  %540 = vmatpush3.bf16.msra.mxu0 %v570_v50 }
  0x16   : > { %541 = vmatprep.subr.bf16.mxu0 %v583_v0 }
  0x17   : > { %v203_v12 = vsel %vm202_vm2, %v200_v11, 0.0 }
  0x18   : > { %v204_v13 = vrot.slane %v203_v12, 4 }
  0x19   : > { %542 = vmatpush3.bf16.msra.mxu0 %v571_v2 }
  0x1a   : > { %v205_v14 = vadd.f32 %v204_v13, %v203_v12  ;;  %543 = vmatprep.subr.bf16.mxu0 %v583_v0  ;;  %v572_v12 = vld [vmem:[%s687_s2] sm:$0xff]  }
  0x1c   : > { %v206_v15 = vrot.slane %v205_v14, 2 }
  0x1d   : > { %544 = vmatpush3.bf16.msra.mxu0 %v572_v12 }
  0x1e   : > { %v207_v16 = vadd.f32 %v206_v15, %v205_v14 }
  0x20   : > { %v208_v17 = vrot.slane %v207_v16, 1 }
  0x22   : > { %v209_v18 = vadd.f32 %v208_v17, %v207_v16 }
  0x24   : > { %v210_v19 = vmul.f32 0.25, %v209_v18 }
  0x26   : > { %v211_v20 = vsub.f32 %v523_v6, %v210_v19  ;;  %v212_v21 = vsub.f32 %v526_v7, %v210_v19  ;;  %v229_v41 = vsub.f32 %v522_v38, %v210_v19  ;;  %v230_v42 = vsub.f32 %v527_v39, %v210_v19 }
  0x27   : > { %v231_v43 = vsub.f32 %v193_v40, %v210_v19 }
  0x28   : > { %v213_v22 = vmul.f32 %v211_v20, %v211_v20  ;;  %v214_v23 = vmul.f32 %v212_v21, %v212_v21 }
  0x2a   : > { %v215_v24 = vsel %vm195_vm1, %v213_v22, 0.0  ;;  %v216_v25 = vsel %vm195_vm1, %v214_v23, 0.0 }
  0x2b   : > { %v217_v26 = vadd.f32 %v216_v25, %v215_v24 }
  0x2d   : > { %v219_v27 = vrot.slane %v217_v26, 1 }
  0x2f   : > { %v221_v28 = vsel %vm202_vm2, %v219_v27, 0.0  ;;  %vm344_vm2 = vcmask 392192  }
  0x30   : > { %v222_v29 = vrot.slane %v221_v28, 4 }
  0x32   : > { %v223_v30 = vadd.f32 %v222_v29, %v221_v28 }
  0x34   : > { %v224_v31 = vrot.slane %v223_v30, 2 }
  0x36   : > { %v225_v32 = vadd.f32 %v224_v31, %v223_v30 }
  0x38   : > { %v226_v33 = vrot.slane %v225_v32, 1 }
  0x3a   : > { %v227_v34 = vadd.f32 %v226_v33, %v225_v32 }
  0x3c   : > { %v228_v35 = vmul.f32 0.25, %v227_v34 }
  0x3e   : > { %v232_v36 = vadd.f32 1e-05, %v228_v35 }
  0x40   : > { %573 = vrsqrt.f32 %v232_v36 }
  0x4d   : > { %v574_v44 = vpop.eup %573 }
  0x4e   : > { %v234_v46 = vmul.f32 %v574_v44, %v229_v41  ;;  %v235_v47 = vmul.f32 %v574_v44, %v211_v20  ;;  %v236_v48 = vmul.f32 %v574_v44, %v212_v21  ;;  %v237_v49 = vmul.f32 %v574_v44, %v230_v42 }
  0x4f   : > { %v238_v51 = vmul.f32 %v574_v44, %v231_v43 }
  0x50   : > { %v245_v52 = vadd.f32 %v511_v45, %v234_v46  ;;  %v246_v53 = vadd.f32 %v511_v45, %v235_v47  ;;  %v247_v54 = vadd.f32 %v511_v45, %v236_v48  ;;  %v248_v55 = vadd.f32 %v511_v45, %v237_v49 }
  0x51   : > { %v249_v56 = vadd.f32 %v511_v45, %v238_v51 }
  0x52   : > { %vm250_vm3 = vcmp.ge.f32.partialorder %v245_v52, 0.0  ;;  %vm251_vm4 = vcmp.ge.f32.partialorder %v246_v53, 0.0  ;;  %vm252_vm5 = vcmp.ge.f32.partialorder %v247_v54, 0.0  ;;  %vm253_vm6 = vcmp.ge.f32.partialorder %v248_v55, 0.0 }
  0x53   : > { %v255_v57 = vmul.f32 0.2, %v245_v52  ;;  %v256_v58 = vmul.f32 0.2, %v246_v53  ;;  %v257_v59 = vmul.f32 0.2, %v247_v54 }
  0x54   : > { %v258_v60 = vmul.f32 0.2, %v248_v55  ;;  %vm254_vm7 = vcmp.ge.f32.partialorder %v249_v56, 0.0  ;;  %v259_v61 = vmul.f32 0.2, %v249_v56 }
  0x55   : > { %v260_v62 = vsel %vm250_vm3, %v245_v52, %v255_v57  ;;  %v261_v63 = vsel %vm251_vm4, %v246_v53, %v256_v58  ;;  %v262_v1 = vsel %vm252_vm5, %v247_v54, %v257_v59  ;;  %vm347_vm3 = vcmask 457728  }
  0x56   : > { %v263_v3 = vsel %vm253_vm6, %v248_v55, %v258_v60  ;;  %v659_v4 = vpack.c.bf16 %v261_v63, %v260_v62  ;;  %v264_v5 = vsel %vm254_vm7, %v249_v56, %v259_v61  ;;  %vm350_vm4 = vcmask 523264  }
  0x57   : > { %v266_v6 = vpack.c.bf16 %v263_v3, %v262_v1  ;;  %v267_v7 = vpack.c.bf16 %v264_v5, %v264_v5  ;;  %vm389_vm5 = vcmask 588800  }
  0x58   : > { %v292_v8 = vrot.slane %v659_v4, 4  ;;  %v286_v9 = vrot.slane %v659_v4, 1  ;;  %v270_v10 = vshrl.u32 %v659_v4, 16  ;;  %v272_v11 = vshll.u32 %v659_v4, 16 }
  0x59   : > { %v293_v13 = vrot.slane %v266_v6, 4  ;;  %v287_v14 = vrot.slane %v266_v6, 1  ;;  %v277_v15 = vshll.u32 %v266_v6, 16  ;;  %v301_v16 = vshrl.u32 %v266_v6, 16 }
  0x5a   : > { %v274_v17 = vrot.slane %v272_v11, 1  ;;  %v298_v18 = vrot.slane %v270_v10, 4  ;;  %v299_v19 = vrot.slane %v272_v11, 5  ;;  %v310_v27 = vrot.slane %v659_v4, 5 }
  0x5b   : > { %v294_v20 = vsel %vm291_vm0, %v292_v8, %v293_v13  ;;  %v288_v21 = vsel %vm285_vm8, %v286_v9, %v287_v14  ;;  %v279_v22 = vrot.slane %v277_v15, 1  ;;  %v303_v23 = vrot.slane %v301_v16, 4 }
  0x5c   : > { %295 = vrot.lane.b32.xlu1 %v294_v20, %s584_s4  ;;  %289 = vrot.lane.b32.xlu0 %v288_v21, %s585_s5  ;;  %v275_v24 = vor.u32 %v274_v17, %v270_v10  ;;  %v304_v25 = vrot.slane %v277_v15, 5  ;;  %v300_v26 = vor.u32 %v299_v19, %v298_v18  ;;  %v311_v28 = vrot.slane %v266_v6, 5 }
  0x5d   : > { %v319_v29 = vshll.u32 %v267_v7, 16  ;;  %v317_v32 = vor.u32 %v301_v16, %v279_v22  ;;  %v326_v36 = vrot.slane %v267_v7, 1  ;;  %vm341_vm0 = vcmask 326656  }
  0x5e   : > { %v280_v30 = vsel %vm268_vm9, %v275_v24, %v279_v22  ;;  %v305_v31 = vor.u32 %v304_v25, %v303_v23  ;;  %v312_v34 = vsel %vm309_vm11, %v310_v27, %v311_v28 }
  0x5f   : > { %v321_v35 = vrot.slane %v319_v29, 1  ;;  %v327_v38 = vsel %vm285_vm8, %v287_v14, %v326_v36 }
  0x60   : > { %315 = vrot.lane.b32.xlu1 %v266_v6, %s586_s6  ;;  %281 = vrot.lane.b32.xlu0 %v280_v30, %s587_s7  ;;  %v306_v33 = vsel %vm297_vm10, %v300_v26, %v305_v31 }
  0x61   : > { %v322_v37 = vsel %vm268_vm9, %v317_v32, %v321_v35 }
  0x64   : > { %307 = vrot.lane.b32.xlu1 %v306_v33, %s589_s8  ;;  %313 = vrot.lane.b32.xlu0 %v312_v34, %s590_s9 }
  0x68   : > { %323 = vrot.lane.b32.xlu0 %v322_v37, %s591_s10  ;;  %328 = vrot.lane.b32.xlu1 %v327_v38, %s592_s11 }
  0xce   : > { %v296_v39 = vpop.permute.xlu1 %295  ;;  %v290_v40 = vpop.permute.xlu0 %289 }
  0xd2   : > { %v316_v41 = vpop.permute.xlu1 %315  ;;  %v282_v42 = vpop.permute.xlu0 %281 }
  0xd3   : > { %v331_v0 = vsel %vm195_vm1, %v659_v4, %v282_v42  ;;  %vm439_vm1 = vcmask 57344  }
  0xd4   : > { %v334_v43 = vsel %vm332_vm13, %v331_v0, %v290_v40 }
  0xd5   : > { %v337_v44 = vsel %vm335_vm14, %v334_v43, %v296_v39 }
  0xd6   : > { %v308_v45 = vpop.permute.xlu1 %307  ;;  %v314_v46 = vpop.permute.xlu0 %313 }
  0xd7   : > { %v340_v47 = vsel %vm338_vm15, %v337_v44, %v308_v45 }
  0xd8   : > { %v343_v48 = vsel %vm341_vm0, %v340_v47, %v314_v46 }
  0xd9   : > { %v346_v49 = vsel %vm344_vm2, %v343_v48, %v316_v41 }
  0xda   : > { %v324_v50 = vpop.permute.xlu0 %323  ;;  %v329_v51 = vpop.permute.xlu1 %328 }
  0xdb   : > { %v349_v52 = vsel %vm347_vm3, %v346_v49, %v324_v50 }
  0xdc   : > { %v352_v53 = vsel %vm350_vm4, %v349_v52, %v329_v51 }
  0xdd   : > { %546 = vmatmul.mubr.msk.bf16.vlgmr.msra.gmra.mxu0 %vm389_vm5, %v352_v53 }
 0x19d   : > { %v430_v54 = vpop.f32.mrf.mxu0 }
 0x19e   : > { %v437_v55 = vpack.c.bf16 %v430_v54, %v430_v54 }
 0x19f   : > { %v547_v56 = vpop.f32.mrf.mxu0 }
 0x1a0   : > { %440 = vst.msk [vmem:[%s182_s17] sm:$0x1] %vm439_vm1, %v437_v55 }
 0x1a1   : > { %v433_v57 = vpop.f32.mrf.mxu0 }
 0x1a2   : > { %v438_v58 = vpack.c.bf16 %v433_v57, %v433_v57 }
 0x1a3   : > { %v548_v59 = vpop.f32.mrf.mxu0 }
 0x1a4   : > { %441 = vst.msk [vmem:[%s182_s17 + $0x1] sm:$0x1] %vm439_vm1, %v438_v58 }
 0x1a5 PF: > { %s13_s12 = sadd.s32 1, %s581_s12  }
 0x1a6   : > { %p10_p4 = scmp.ge.s32.totalorder %s13_s12, 4  }
 0x1a8   :  { %12 = sbr.rel (!%p10_p4) target bundleno = 1 (0x1), region = 65 }

// kernel: _lambda_.23
= control target key start
LH: loop header
LB: loop body
LE: loop exit
PB: predicated region body
PF: predicated region fallthrough
CT: control target
= control target key end

     0   :  { %s339_s14 = smov 0   ;;  %s359_s0 = inlined_call_operand.vmem [shape: bf16[2,8,16], index: 0, kind: input, shape index: {}]   ;;  %s360_s1 = inlined_call_operand.vmem [shape: bf16[16,1], index: 1, kind: input, shape index: {}]   ;;  %s361_s2 = inlined_call_operand.<no memory space> [shape: f32[1,1], index: 2, kind: input, shape index: {}]   ;;  %s362_s3 = inlined_call_operand.vmem [shape: f32[2,1,1,1], index: 3, kind: output, shape index: {}]  }
   0x1   :  { %v8_v0 = vstv %s361_s2 }
   0x2   :  { %9 = vst [vmem:[#allocation2] sm:$0x1] %v8_v0 }
   0x3 LB: > { %s276_s15 = sadd.s32 4294967295, %s312_s14   ;;  %p280_p0 = scmp.ge.s32.totalorder %s312_s14, 1  ;;  %s312_s14 = sphi %s339_s14, %s15_s14  }
   0x4   : > { %p138_p1 = scmp.lt.s32.totalorder %s312_s14, 3 }
   0x6   : > { %p139_p2 = pnand %p280_p0, %p138_p1 }
   0x7   : > { %p159_p3 = scmp.lt.s32.totalorder (!%p139_p2), %s276_s15, 1 }
   0x8   : > { %142 = sbr.rel (%p139_p2) target bundleno = 217 (0xd9), region = 32 }
   0xd   : > { %v305_v1 = vld [vmem:[%s360_s1] sm:$0xff]   ;;  %v314_v2 = vmov 0.0   ;;  %vm315_vm0 = vmmov 0   ;;  %s364_s15 = smov (!%p159_p3, %s276_s15), 1  ;;  %vm183_vm1 = vcmask 130048   ;;  %vm227_vm2 = vcmask 0  }
   0xe   : > { %289 = vmatprep.subr.bf16.mxu0 %v314_v2  ;;  %291 = vmatprep.mubr.msk.bf16.mxu0 %vm315_vm0, %v314_v2  ;;  %s281_s2 = sshll.u32 %s364_s15, 2  ;;  %v282_v4 = vld [vmem:[#allocation2] ss:$0 sm:$0xff]  ;;  %s165_s23 = scalar_lea.vmem %s362_s3, %s364_s15 }
   0xf   : > { %290 = vmatpush3.bf16.msra.mxu0 %v305_v1  ;;  %s162_s20 = scalar_lea.vmem %s359_s0, %s281_s2 }
  0x10   : > { %v167_v3 = vld [vmem:[%s162_s20] sm:$0xf] }
  0x12   : > { %292 = vmatmul.mubr.msk.bf16.vlgmr.msra.gmra.mxu0 %vm183_vm1, %v167_v3 }
  0xd2   : > { %v221_v5 = vpop.f32.mrf.mxu0 }
  0xd3   : > { %v222_v6 = vadd.f32 %v282_v4, %v221_v5 }
  0xd4   : > { %v293_v7 = vpop.f32.mrf.mxu0 }
  0xd5   : > { %228 = vst.msk [vmem:[%s165_s23] sm:$0x1] %vm227_vm2, %v222_v6 }
  0xd6   : > { %v224_v8 = vpop.f32.mrf.mxu0 }
  0xd8   : > { %v294_v9 = vpop.f32.mrf.mxu0 }
  0xd9 PF: > { %s15_s14 = sadd.s32 1, %s312_s14  }
  0xda   : > { %p12_p4 = scmp.ge.s32.totalorder %s15_s14, 4  }
  0xdc   :  { %14 = sbr.rel (!%p12_p4) target bundleno = 3 (0x3), region = 62 }

// kernel: _lambda_.22
= control target key start
LH: loop header
LB: loop body
LE: loop exit
PB: predicated region body
PF: predicated region fallthrough
CT: control target
= control target key end

     0   :  { %s829_s21 = smov 0   ;;  %s931_s0 = inlined_call_operand.vmem [shape: bf16[2,24,32], index: 0, kind: input, shape index: {}]   ;;  %s932_s1 = inlined_call_operand.vmem [shape: f32[2,1,32], index: 1, kind: input, shape index: {}]   ;;  %s933_s2 = inlined_call_operand.vmem [shape: bf16[128,16], index: 2, kind: input, shape index: {}]   ;;  %s934_s3 = inlined_call_operand.vmem [shape: bf16[2,8,32], index: 3, kind: input, shape index: {}]   ;;  %s935_s4 = inlined_call_operand.vmem [shape: bf16[32,16], index: 4, kind: input, shape index: {}]   ;;  %s936_s5 = inlined_call_operand.vmem [shape: f32[1,16], index: 5, kind: input, shape index: {}]   ;;  %s937_s6 = inlined_call_operand.vmem [shape: bf16[2,1,1,16], index: 6, kind: output, shape index: {}]  }
   0x1 LB: > { %s677_s22 = sadd.s32 4294967295, %s781_s21   ;;  %p681_p0 = scmp.ge.s32.totalorder %s781_s21, 1  ;;  %s781_s21 = sphi %s829_s21, %s16_s21  }
   0x2   : > { %p229_p1 = scmp.lt.s32.totalorder %s781_s21, 3 }
   0x4   : > { %p230_p2 = pnand %p681_p0, %p229_p1 }
   0x5   : > { %p264_p3 = scmp.lt.s32.totalorder (!%p230_p2), %s677_s22, 1  ;;  %s783_s27 = smov (!%p230_p2), 120  }
   0x6   : > { %233 = sbr.rel (%p230_p2) target bundleno = 870 (0x366), region = 44  ;;  %s784_s28 = smov (!%p230_p2), 104  }
   0x7   : > { %s785_s29 = smov (!%p230_p2), 112   ;;  %s786_s30 = smov (!%p230_p2), 16  }
   0x8   : > { %s787_s7 = smov (!%p230_p2), 8   ;;  %s788_s8 = smov (!%p230_p2), 24  }
   0x9   : > { %s791_s14 = smov (!%p230_p2), 64   ;;  %s792_s15 = smov (!%p230_p2), 32  }
   0xa   : > { %s793_s16 = smov (!%p230_p2), 96  }
   0xb   : > { %s939_s22 = smov (!%p264_p3, %s677_s22), 1  ;;  %v324_v12 = vlaneseq  ;;  %vm318_vm0 = vcmask 64512   ;;  %vm320_vm1 = vcmask 130048   ;;  %vm322_vm2 = vcmask 195584   ;;  %v763_v38 = vld [vmem:[%s933_s2 + $0x38] sm:$0xff]   ;;  %v768_v40 = vld [vmem:[%s935_s4 + $0x8] sm:$0xff]  }
   0xc   : > { %s743_s23 = smul.u32 12, %s939_s22  ;;  %v789_v39 = vmov 0.0   ;;  %v764_v41 = vld [vmem:[%s933_s2 + $0x30] sm:$0xff]   ;;  %v765_v42 = vld [vmem:[%s933_s2 + $0x28] sm:$0xff]   ;;  %v766_v43 = vld [vmem:[%s933_s2 + $0x20] sm:$0xff]   ;;  %vm790_vm3 = vmmov 0  }
   0xd   : > { %v849_v13 = vshrl.u32 %v324_v12, 7  ;;  %723 = vmatprep.subr.bf16.mxu1 %v789_v39  ;;  %715 = vmatprep.subr.bf16.mxu0 %v789_v39  ;;  %v767_v44 = vld [vmem:[%s933_s2 + $0x18] sm:$0xff]   ;;  %v769_v45 = vld [vmem:[%s933_s2 + $0x10] sm:$0xff]   ;;  %v770_v54 = vld [vmem:[%s935_s4] sm:$0xff]   ;;  %vm420_vm4 = vcmask 261120   ;;  %vm423_vm9 = vcmask 523264  }
   0xe   : > { %s268_s26 = scalar_lea.vmem %s931_s0, %s743_s23  ;;  %724 = vmatpush3.bf16.msra.mxu1 %v763_v38  ;;  %716 = vmatpush3.bf16.msra.mxu0 %v768_v40  ;;  %v771_v55 = vld [vmem:[%s933_s2 + $0x8] sm:$0xff]   ;;  %vm409_vm8 = vsmask.f32 3328  ;;  %vm426_vm10 = vcmask 785408   ;;  %s278_s23 = scalar_lea.vmem %s937_s6, %s939_s22  ;;  %vm603_vm11 = vcmask 122880  }
   0xf   : > { %v700_v0 = vld [vmem:[%s268_s26] sm:$0xff]   ;;  %v282_v15 = vld [vmem:[%s268_s26 + $0x8] sm:$0xf]  ;;  %v326_v18 = vsub.s32 1, %v849_v13  ;;  %725 = vmatprep.subr.bf16.mxu1 %v789_v39  ;;  %717 = vmatprep.subr.bf16.mxu0 %v789_v39  ;;  %vm604_vm12 = vsmask.f32 256 }
  0x10   : > { %v702_v1 = vunpack.c.h.bf16 %v700_v0  ;;  %v701_v2 = vunpack.c.l.bf16 %v700_v0  ;;  %v285_v19 = vunpack.c.l.bf16 %v282_v15  ;;  %719 = vmatprep.mubr.msk.bf16.mxu0 %vm790_vm3, %v789_v39  ;;  %739 = vmatprep.mubr.msk.bf16.mxu1 %vm790_vm3, %v789_v39  ;;  %vm605_vm13 = vmand %vm603_vm11, %vm604_vm12 }
  0x12   : > { %v290_v3 = vrot.slane %v702_v1, 7  ;;  %v302_v4 = vrot.slane %v701_v2, 7  ;;  %726 = vmatpush3.bf16.msra.mxu1 %v764_v41  ;;  %718 = vmatpush3.bf16.msra.mxu0 %v770_v54 }
  0x13   : > { %727 = vmatprep.subr.bf16.mxu1 %v789_v39 }
  0x14   : > { %291 = vrot.lane.b32.xlu0 %v290_v3, %s783_s27  ;;  %303 = vrot.lane.b32.xlu1 %v302_v4, %s784_s28 }
  0x16   : > { %728 = vmatpush3.bf16.msra.mxu1 %v765_v42 }
  0x17   : > { %729 = vmatprep.subr.bf16.mxu1 %v789_v39 }
  0x18   : > { %298 = vrot.lane.b32.xlu0 %v701_v2, %s785_s29 }
  0x1a   : > { %730 = vmatpush3.bf16.msra.mxu1 %v766_v43 }
  0x1b   : > { %731 = vmatprep.subr.bf16.mxu1 %v789_v39 }
  0x1e   : > { %732 = vmatpush3.bf16.msra.mxu1 %v767_v44 }
  0x1f   : > { %733 = vmatprep.subr.bf16.mxu1 %v789_v39 }
  0x22   : > { %734 = vmatpush3.bf16.msra.mxu1 %v769_v45 }
  0x23   : > { %735 = vmatprep.subr.bf16.mxu1 %v789_v39 }
  0x26   : > { %736 = vmatpush3.bf16.msra.mxu1 %v771_v55 }
  0x27   : > { %737 = vmatprep.subr.bf16.mxu1 %v789_v39 }
  0x86   : > { %v292_v5 = vpop.permute.xlu0 %291  ;;  %v304_v8 = vpop.permute.xlu1 %303 }
  0x87   : > { %v294_v6 = vadd.f32 %v702_v1, %v292_v5 }
  0x8a   : > { %v299_v7 = vpop.permute.xlu0 %298 }
  0x8b   : > { %v301_v9 = vadd.f32 %v299_v7, %v294_v6 }
  0x8d   : > { %v306_v10 = vadd.f32 %v304_v8, %v301_v9 }
  0x8f   : > { %v307_v11 = vmul.f32 0.25, %v306_v10 }
  0x91   : > { %312 = vrot.lane.b32.xlu0 %v307_v11, %s786_s30  ;;  %309 = vrot.lane.b32.xlu1 %v307_v11, %s787_s7 }
  0x95   : > { %315 = vrot.lane.b32.xlu1 %v307_v11, %s788_s8 }
 0x103   : > { %v310_v14 = vpop.permute.xlu1 %309  ;;  %v313_v16 = vpop.permute.xlu0 %312 }
 0x104   : > { %v319_v17 = vsel %vm318_vm0, %v307_v11, %v310_v14 }
 0x105   : > { %v321_v20 = vsel %vm320_vm1, %v319_v17, %v313_v16 }
 0x107   : > { %v316_v21 = vpop.permute.xlu1 %315 }
 0x108   : > { %v323_v22 = vsel %vm322_vm2, %v321_v20, %v316_v21 }
 0x109   : > { %v327_v23 = vrot.slane %v323_v22, %v326_v18 }
 0x10b   : > { %v857_v24 = vsub.f32 %v702_v1, %v327_v23  ;;  %v859_v25 = vsub.f32 %v285_v19, %v327_v23  ;;  %v861_v26 = vsub.f32 %v701_v2, %v327_v23  ;;  %v772_v1 = vld [vmem:[%s933_s2] sm:$0xff]  }
 0x10c   : > { %738 = vmatpush3.bf16.msra.mxu1 %v772_v1 }
 0x10d   : > { %v339_v27 = vmul.f32 %v861_v26, %v861_v26  ;;  %v329_v28 = vmul.f32 %v857_v24, %v857_v24 }
 0x10f   : > { %343 = vrot.lane.b32.xlu1 %v339_v27, %s785_s29  ;;  %v333_v29 = vrot.slane %v329_v28, 7  ;;  %v347_v30 = vrot.slane %v339_v27, 7 }
 0x111   : > { %334 = vrot.lane.b32.xlu0 %v333_v29, %s783_s27  ;;  %s271_s27 = scalar_lea.vmem %s932_s1, %s939_s22 }
 0x112   : > { %v684_v57 = vld [vmem:[%s271_s27] ss:$0 sm:$0xff] }
 0x115   : > { %348 = vrot.lane.b32.xlu0 %v347_v30, %s784_s28 }
 0x181   : > { %v344_v33 = vpop.permute.xlu1 %343 }
 0x183   : > { %v335_v31 = vpop.permute.xlu0 %334 }
 0x184   : > { %v337_v32 = vadd.f32 %v335_v31, %v329_v28 }
 0x186   : > { %v346_v34 = vadd.f32 %v344_v33, %v337_v32  ;;  %v696_v32 = vld [vmem:[%s936_s5] ss:$0 sm:$0xff] }
 0x187   : > { %v349_v35 = vpop.permute.xlu0 %348 }
 0x188   : > { %v351_v36 = vadd.f32 %v349_v35, %v346_v34 }
 0x18a   : > { %v352_v37 = vmul.f32 0.25, %v351_v36  ;;  %v606_v36 = vld [vmem:[%s278_s23] sm:$0x1] }
 0x18c   : > { %357 = vrot.lane.b32.xlu0 %v352_v37, %s786_s30  ;;  %354 = vrot.lane.b32.xlu1 %v352_v37, %s787_s7 }
 0x190   : > { %360 = vrot.lane.b32.xlu1 %v352_v37, %s788_s8  ;;  %s683_s8 = sshll.u32 %s939_s22, 2 }
 0x191   : > { %s275_s11 = scalar_lea.vmem %s934_s3, %s683_s8 }
 0x192   : > { %v446_v58 = vld [vmem:[%s275_s11] sm:$0xf] }
 0x193   : > { %720 = vmatmul.mubr.msk.bf16.vlgmr.msra.gmra.mxu0 %vm420_vm4, %v446_v58 }
 0x1fe   : > { %v355_v46 = vpop.permute.xlu1 %354  ;;  %v358_v47 = vpop.permute.xlu0 %357 }
 0x1ff   : > { %v363_v48 = vsel %vm318_vm0, %v352_v37, %v355_v46 }
 0x200   : > { %v364_v49 = vsel %vm320_vm1, %v363_v48, %v358_v47 }
 0x202   : > { %v361_v50 = vpop.permute.xlu1 %360 }
 0x203   : > { %v365_v51 = vsel %vm322_vm2, %v364_v49, %v361_v50 }
 0x204   : > { %v367_v52 = vadd.f32 1e-05, %v365_v51 }
 0x206   : > { %773 = vrsqrt.f32 %v367_v52 }
 0x213   : > { %v774_v53 = vpop.eup %773 }
 0x214   : > { %v372_v56 = vrot.slane %v774_v53, %v326_v18 }
 0x216   : > { %v373_v59 = vmul.f32 %v372_v56, %v861_v26  ;;  %v374_v60 = vmul.f32 %v372_v56, %v857_v24  ;;  %v375_v61 = vmul.f32 %v372_v56, %v859_v25 }
 0x218   : > { %v382_v62 = vadd.f32 %v684_v57, %v373_v59  ;;  %v383_v63 = vadd.f32 %v684_v57, %v374_v60  ;;  %v384_v0 = vadd.f32 %v684_v57, %v375_v61 }
 0x21a   : > { %vm385_vm5 = vcmp.ge.f32.partialorder %v382_v62, 0.0  ;;  %vm386_vm6 = vcmp.ge.f32.partialorder %v383_v63, 0.0  ;;  %v388_v2 = vmul.f32 0.2, %v382_v62  ;;  %v389_v3 = vmul.f32 0.2, %v383_v63 }
 0x21b   : > { %vm387_vm7 = vcmp.ge.f32.partialorder %v384_v0, 0.0  ;;  %v390_v4 = vmul.f32 0.2, %v384_v0 }
 0x21c   : > { %v391_v5 = vsel %vm385_vm5, %v382_v62, %v388_v2  ;;  %v392_v6 = vsel %vm386_vm6, %v383_v63, %v389_v3 }
 0x21d   : > { %v394_v7 = vpack.c.bf16 %v392_v6, %v391_v5  ;;  %v393_v8 = vsel %vm387_vm7, %v384_v0, %v390_v4 }
 0x21e   : > { %v395_v9 = vpack.c.bf16 %v393_v8, %v393_v8 }
 0x21f   : > { %v406_v10 = vrot.slane %v394_v7, 4  ;;  %v397_v11 = vshrl.u32 %v394_v7, 16  ;;  %v399_v12 = vshll.u32 %v394_v7, 16 }
 0x220   : > { %v414_v16 = vshll.u32 %v395_v9, 16 }
 0x221   : > { %407 = vrot.lane.b32.xlu1 %v406_v10, %s791_s14  ;;  %v401_v13 = vrot.slane %v399_v12, 1  ;;  %v410_v14 = vrot.slane %v397_v11, 4  ;;  %v411_v15 = vrot.slane %v399_v12, 5 }
 0x222   : > { %v416_v19 = vrot.slane %v414_v16, 5 }
 0x223   : > { %v402_v17 = vor.u32 %v401_v13, %v397_v11  ;;  %v412_v18 = vor.u32 %v411_v15, %v410_v14 }
 0x225   : > { %403 = vrot.lane.b32.xlu0 %v402_v17, %s792_s15  ;;  %v417_v20 = vsel %vm409_vm8, %v412_v18, %v416_v19 }
 0x229   : > { %418 = vrot.lane.b32.xlu0 %v417_v20, %s793_s16 }
 0x253   : > { %v500_v27 = vpop.f32.mrf.mxu0 }
 0x255   : > { %v721_v28 = vpop.f32.mrf.mxu0 }
 0x257   : > { %v503_v29 = vpop.f32.mrf.mxu0 }
 0x259   : > { %v722_v30 = vpop.f32.mrf.mxu0 }
 0x293   : > { %v408_v23 = vpop.permute.xlu1 %407 }
 0x297   : > { %v404_v21 = vpop.permute.xlu0 %403 }
 0x298   : > { %v422_v22 = vsel %vm420_vm4, %v394_v7, %v404_v21 }
 0x299   : > { %v425_v25 = vsel %vm423_vm9, %v422_v22, %v408_v23 }
 0x29b   : > { %v419_v24 = vpop.permute.xlu0 %418 }
 0x29c   : > { %v428_v26 = vsel %vm426_vm10, %v425_v25, %v419_v24 }
 0x29d   : > { %740 = vmatmul.mubr.bf16.vlgmr.msra.gmra.mxu1 %v428_v26 }
 0x35d   : > { %v588_v31 = vpop.f32.mrf.mxu1 }
 0x35e   : > { %v589_v33 = vadd.f32 %v588_v31, %v500_v27 }
 0x35f   : > { %v741_v34 = vpop.f32.mrf.mxu1 }
 0x360   : > { %v601_v35 = vadd.f32 %v696_v32, %v589_v33 }
 0x361   : > { %v591_v37 = vpop.f32.mrf.mxu1 }
 0x362   : > { %v602_v38 = vpack.c.bf16 %v601_v35, %v601_v35 }
 0x363   : > { %v742_v39 = vpop.f32.mrf.mxu1 }
 0x364   : > { %v607_v40 = vsel %vm605_vm13, %v602_v38, %v606_v36 }
 0x365   : > { %608 = vst [vmem:[%s278_s23] sm:$0x1] %v607_v40 }
 0x366 PF: > { %s16_s21 = sadd.s32 1, %s781_s21  }
 0x367   : > { %p13_p4 = scmp.ge.s32.totalorder %s16_s21, 4  }
 0x369   :  { %15 = sbr.rel (!%p13_p4) target bundleno = 1 (0x1), region = 80 }

</bundles_post_ra>
